<compile_context>
chip_gen: v5e
topology: v5e:2x2
jax: 0.10.0
libtpu: 0.0.40
codegen_flags: <defaults>
</compile_context>

<pallas_src>
import jax
import jax.numpy as jnp
from jax.experimental import pallas as pl
from jax.experimental.pallas import tpu as pltpu


# ---------------------------------------------------------------------------
# In-kernel helpers (all tile-aligned for BB = 8, f32)
# ---------------------------------------------------------------------------
def _merge(v):
    # (L, BB, C) -> (L*BB, C): BB == native sublane count -> layout no-op.
    L, BB, C = v.shape
    return v.reshape(L * BB, C)


def _maxpool2(h2d, BB):
    # Position-major maxpool(kernel=2, stride=2).
    # (L*BB, C) -> (L//2, BB, C); trailing odd position dropped (PyTorch floor).
    N, C = h2d.shape
    P = (N // BB) // 2
    r = h2d[: P * 2 * BB].reshape(P, 2 * BB, C)
    return jnp.maximum(r[:, :BB, :], r[:, BB:, :])


def _im2col3(p):
    # (L, BB, C) -> (L-2, BB, 3C): stack the 3 conv taps on the lane dim so the
    # conv becomes a single MXU matmul with contraction 3*C.
    L = p.shape[0] - 2
    return jnp.concatenate([p[0:L], p[1:L + 1], p[2:L + 2]], axis=-1)


# ---------------------------------------------------------------------------
# Fused kernel: one grid step == one block of BB samples.
# ---------------------------------------------------------------------------
def _cnn1d_kernel(x_ref, w1_ref, b1_ref, w2_ref, b2_ref, w3_ref, b3_ref,
                  wf1_ref, bf1_ref, wf2_ref, bf2_ref, o_ref):
    BB = x_ref.shape[1]
    L_in = x_ref.shape[0]
    L1 = L_in - 2                                            # 185

    # ---- conv1 (1 -> 64, k=3) + bias + ReLU : C_in == 1 so do it on the VPU
    #      as 3 broadcast multiply-adds instead of a zero-padded MXU matmul.
    x = x_ref[...]                                           # (L_in, BB, 1)
    w1 = w1_ref[...]                                         # (3, 64)
    h1 = (x[0:L1] * w1[0:1]
          + x[1:L1 + 1] * w1[1:2]
          + x[2:L1 + 2] * w1[2:3])                           # (185, BB, 64)
    h1 = jnp.maximum(_merge(h1) + b1_ref[...], 0.0)          # (185*BB, 64)
    p1 = _maxpool2(h1, BB)                                   # (92, BB, 64)

    # ---- conv2 (64 -> 128, k=3): im2col -> ONE matmul, contraction 192
    xc2 = _im2col3(p1)                                       # (90, BB, 192)
    h2 = jnp.dot(_merge(xc2), w2_ref[...],
                 preferred_element_type=jnp.float32)         # (90*BB, 128)
    h2 = jnp.maximum(h2 + b2_ref[...], 0.0)
    p2 = _maxpool2(h2, BB)                                   # (45, BB, 128)

    # ---- conv3 (128 -> 256, k=3): im2col -> ONE matmul, contraction 384
    xc3 = _im2col3(p2)                                       # (43, BB, 384)
    h3 = jnp.dot(_merge(xc3), w3_ref[...],
                 preferred_element_type=jnp.float32)         # (43*BB, 256)
    h3 = jnp.maximum(h3 + b3_ref[...], 0.0)
    p3 = _maxpool2(h3, BB)                                   # (21, BB, 256)

    # ---- flatten + fc1 + ReLU: batched over the block (M = BB), 21
    #      accumulating (BB,256)@(256,256) matmuls with contraction 256.
    nl = wf1_ref.shape[0]                                    # 21
    acc = jnp.dot(p3[0], wf1_ref[0], preferred_element_type=jnp.float32)
    for l in range(1, nl):
        acc = acc + jnp.dot(p3[l], wf1_ref[l],
                            preferred_element_type=jnp.float32)
    h = jnp.maximum(acc + bf1_ref[...], 0.0)                 # (BB, 256)

    # TODO(synk): nn.Dropout(0.5) is identity in eval mode; train-mode RNG
    # dropout is not implemented here.

    # ---- fc2 (output lanes zero-padded to a multiple of 128 -> unmasked store)
    o_ref[...] = (jnp.dot(h, wf2_ref[...], preferred_element_type=jnp.float32)
                  + bf2_ref[...]).astype(o_ref.dtype)


# ---------------------------------------------------------------------------
# Wrapper
# ---------------------------------------------------------------------------
def cnn1d_forward(x_ncl, params, *, block_b=8):
    """x_ncl: (B, 1, L) PyTorch-NCL input. Returns (B, num_classes) float32."""
    B, _, L = x_ncl.shape
    BB = block_b
    assert BB % 8 == 0, "batch block must be a multiple of the sublane count"
    B_pad = ((B + BB - 1) // BB) * BB

    # Layout plumbing in the wrapper (cheap XLA ops on tiny data):
    # NCL -> position-major (L, B_pad, 1) so each grid block is (L, BB, 1).
    x = x_ncl.reshape(B, L).astype(jnp.float32)
    x = jnp.pad(x, ((0, B_pad - B), (0, 0)))
    x = jnp.transpose(x)[:, :, None]                         # (L, B_pad, 1)

    w1, b1 = params["w1"], params["b1"]
    w2, b2 = params["w2"], params["b2"]
    w3, b3 = params["w3"], params["b3"]
    wf1, bf1 = params["wf1"], params["bf1"]
    wf2, bf2 = params["wf2"], params["bf2"]
    num_classes = int(params["num_classes"])
    ncp = wf2.shape[1]                                       # padded class dim

    out = pl.pallas_call(
        _cnn1d_kernel,
        out_shape=jax.ShapeDtypeStruct((B_pad, ncp), jnp.float32),
        grid_spec=pltpu.PrefetchScalarGridSpec(
            num_scalar_prefetch=0,
            grid=(B_pad // BB,),
            in_specs=[
                pl.BlockSpec((L, BB, 1), lambda i: (0, i, 0)),
                pl.BlockSpec(w1.shape, lambda i: (0, 0)),
                pl.BlockSpec(b1.shape, lambda i: (0, 0)),
                pl.BlockSpec(w2.shape, lambda i: (0, 0)),
                pl.BlockSpec(b2.shape, lambda i: (0, 0)),
                pl.BlockSpec(w3.shape, lambda i: (0, 0)),
                pl.BlockSpec(b3.shape, lambda i: (0, 0)),
                pl.BlockSpec(wf1.shape, lambda i: (0, 0, 0)),
                pl.BlockSpec(bf1.shape, lambda i: (0, 0)),
                pl.BlockSpec(wf2.shape, lambda i: (0, 0)),
                pl.BlockSpec(bf2.shape, lambda i: (0, 0)),
            ],
            out_specs=pl.BlockSpec((BB, ncp), lambda i: (i, 0)),
        ),
        compiler_params=pltpu.CompilerParams(
            dimension_semantics=("parallel",)),
    )(x, w1, b1, w2, b2, w3, b3, wf1, bf1, wf2, bf2)
    return out[:B, :num_classes]


# ---------------------------------------------------------------------------
# Parameters: PyTorch-default-style init in PyTorch layouts, plus conversion
# to the kernel layouts.
# ---------------------------------------------------------------------------
def make_params_pt(num_classes, input_length=187, seed=0):
    l = input_length
    for _ in range(3):
        l = (l - 2) // 2                                     # 21
    flat = 256 * l                                           # 5376

    def uni(key, shape, fan_in):
        b = 1.0 / float(fan_in) ** 0.5
        return jax.random.uniform(key, shape, jnp.float32, -b, b)

    ks = jax.random.split(jax.random.PRNGKey(seed), 10)
    return dict(
        w1=uni(ks[0], (64, 1, 3), 3), b1=uni(ks[1], (64,), 3),
        w2=uni(ks[2], (128, 64, 3), 64 * 3), b2=uni(ks[3], (128,), 64 * 3),
        w3=uni(ks[4], (256, 128, 3), 128 * 3), b3=uni(ks[5], (256,), 128 * 3),
        wf1=uni(ks[6], (256, flat), flat), bf1=uni(ks[7], (256,), flat),
        wf2=uni(ks[8], (num_classes, 256), 256),
        bf2=uni(ks[9], (num_classes,), 256),
    )


def to_kernel_params(pt, num_classes):
    l = pt["wf1"].shape[1] // 256                            # 21
    ncp = ((num_classes + 127) // 128) * 128                 # lane-dense output

    # conv weights (C_out, C_in, K) -> im2col layout (K*C_in, C_out)
    w1 = jnp.transpose(pt["w1"], (2, 1, 0))[:, 0, :]         # (3, 64)
    w2 = jnp.transpose(pt["w2"], (2, 1, 0)).reshape(3 * 64, 128)
    w3 = jnp.transpose(pt["w3"], (2, 1, 0)).reshape(3 * 128, 256)

    # fc1: PyTorch flattens (B, C=256, L=21) channel-major (index = c*21 + l);
    # the kernel sums per-position (256_in, 256_out) slabs -> (21, 256, 256).
    wf1 = jnp.transpose(pt["wf1"].reshape(256, 256, l), (2, 1, 0))

    # fc2, zero-padded on the output lanes; wrapper slices back to num_classes.
    wf2 = jnp.pad(jnp.transpose(pt["wf2"]), ((0, 0), (0, ncp - num_classes)))
    bf2 = jnp.pad(pt["bf2"], (0, ncp - num_classes))

    return dict(
        w1=w1, b1=pt["b1"].reshape(1, -1),
        w2=w2, b2=pt["b2"].reshape(1, -1),
        w3=w3, b3=pt["b3"].reshape(1, -1),
        wf1=wf1, bf1=pt["bf1"].reshape(1, -1),
        wf2=wf2, bf2=bf2.reshape(1, -1),
        num_classes=num_classes,
    )


# ---------------------------------------------------------------------------
# Pure-JAX reference (straight port of the PyTorch module, eval mode).
# ---------------------------------------------------------------------------
def cnn1d_reference(x_ncl, pt):
    hi = jax.lax.Precision.HIGHEST

    def conv1d(h, w, b):                   # h: (B, L, Cin), w: (Cout, Cin, K)
        K = w.shape[-1]
        L = h.shape[1] - K + 1
        out = sum(
            jnp.einsum("blc,oc->blo", h[:, k:k + L, :], w[:, :, k], precision=hi)
            for k in range(K))
        return out + b

    def pool(h):                           # (B, L, C) -> (B, L//2, C)
        P = h.shape[1] // 2
        return jnp.maximum(h[:, 0:2 * P:2, :], h[:, 1:2 * P:2, :])

    x = jnp.transpose(x_ncl, (0, 2, 1)).astype(jnp.float32)  # (B, 187, 1)
    h = pool(jax.nn.relu(conv1d(x, pt["w1"], pt["b1"])))
    h = pool(jax.nn.relu(conv1d(h, pt["w2"], pt["b2"])))
    h = pool(jax.nn.relu(conv1d(h, pt["w3"], pt["b3"])))     # (B, 21, 256)
    h = jnp.transpose(h, (0, 2, 1)).reshape(h.shape[0], -1)  # channel-major flatten
    h = jax.nn.relu(jnp.dot(h, pt["wf1"].T, precision=hi) + pt["bf1"])
    return jnp.dot(h, pt["wf2"].T, precision=hi) + pt["bf2"]


if __name__ == "__main__":
    num_classes = 5
    batch = 4

    pt_params = make_params_pt(num_classes)
    kparams = to_kernel_params(pt_params, num_classes)

    x = jax.random.normal(jax.random.PRNGKey(0), (batch, 1, 187), jnp.float32)

    out = jax.block_until_ready(cnn1d_forward(x, kparams))
    assert out.shape == (batch, num_classes)
    assert bool(jnp.all(jnp.isfinite(out)))

    ref = jax.block_until_ready(cnn1d_reference(x, pt_params))
    max_err = float(jnp.max(jnp.abs(out - ref)))
    assert max_err < 1e-2, f"mismatch vs reference: max abs err {max_err}"

    print("KERNEL_OK")
</pallas_src>

<mosaic_0001>
module attributes {stable_mosaic.version = 11 : i64} {
  func.func @_cnn1d_kernel(%arg0: i32, %arg1: memref<187x8x1xf32, #tpu.memory_space<vmem>>, %arg2: memref<3x64xf32, #tpu.memory_space<vmem>>, %arg3: memref<1x64xf32, #tpu.memory_space<vmem>>, %arg4: memref<192x128xf32, #tpu.memory_space<vmem>>, %arg5: memref<1x128xf32, #tpu.memory_space<vmem>>, %arg6: memref<384x256xf32, #tpu.memory_space<vmem>>, %arg7: memref<1x256xf32, #tpu.memory_space<vmem>>, %arg8: memref<21x256x256xf32, #tpu.memory_space<vmem>>, %arg9: memref<1x256xf32, #tpu.memory_space<vmem>>, %arg10: memref<256x128xf32, #tpu.memory_space<vmem>>, %arg11: memref<1x128xf32, #tpu.memory_space<vmem>>, %arg12: memref<8x128xf32, #tpu.memory_space<vmem>>) attributes {dimension_semantics = [#tpu.dimension_semantics<parallel>], iteration_bounds = array<i64: 1>, scalar_prefetch = 0 : i64, scratch_operands = 0 : i64, tpu.core_type = #tpu.core_type<tc>, window_params = [{transform_indices = @transform_0, window_bounds = array<i64: 187, 8, 1>}, {pipeline_mode = #tpu.pipeline_mode<synchronous>, transform_indices = @transform_1, window_bounds = array<i64: 3, 64>}, {pipeline_mode = #tpu.pipeline_mode<synchronous>, transform_indices = @transform_2, window_bounds = array<i64: 1, 64>}, {pipeline_mode = #tpu.pipeline_mode<synchronous>, transform_indices = @transform_3, window_bounds = array<i64: 192, 128>}, {pipeline_mode = #tpu.pipeline_mode<synchronous>, transform_indices = @transform_4, window_bounds = array<i64: 1, 128>}, {pipeline_mode = #tpu.pipeline_mode<synchronous>, transform_indices = @transform_5, window_bounds = array<i64: 384, 256>}, {pipeline_mode = #tpu.pipeline_mode<synchronous>, transform_indices = @transform_6, window_bounds = array<i64: 1, 256>}, {pipeline_mode = #tpu.pipeline_mode<synchronous>, transform_indices = @transform_7, window_bounds = array<i64: 21, 256, 256>}, {pipeline_mode = #tpu.pipeline_mode<synchronous>, transform_indices = @transform_8, window_bounds = array<i64: 1, 256>}, {pipeline_mode = #tpu.pipeline_mode<synchronous>, transform_indices = @transform_9, window_bounds = array<i64: 256, 128>}, {pipeline_mode = #tpu.pipeline_mode<synchronous>, transform_indices = @transform_10, window_bounds = array<i64: 1, 128>}, {transform_indices = @transform_11, window_bounds = array<i64: 8, 128>}]} {
    %c0 = arith.constant 0 : index
    %c0_0 = arith.constant 0 : index
    %c0_1 = arith.constant 0 : index
    %0 = vector.load %arg1[%c0, %c0_0, %c0_1] : memref<187x8x1xf32, #tpu.memory_space<vmem>>, vector<187x8x1xf32>
    %c0_2 = arith.constant 0 : index
    %c0_3 = arith.constant 0 : index
    %1 = vector.load %arg2[%c0_2, %c0_3] : memref<3x64xf32, #tpu.memory_space<vmem>>, vector<3x64xf32>
    %2 = vector.extract_strided_slice %0 {offsets = [0, 0, 0], sizes = [185, 8, 1], strides = [1, 1, 1]} : vector<187x8x1xf32> to vector<185x8x1xf32>
    %3 = vector.extract_strided_slice %1 {offsets = [0, 0], sizes = [1, 64], strides = [1, 1]} : vector<3x64xf32> to vector<1x64xf32>
    %4 = vector.shape_cast %3 : vector<1x64xf32> to vector<1x1x64xf32>
    %5 = vector.broadcast %2 : vector<185x8x1xf32> to vector<185x8x64xf32>
    %6 = vector.broadcast %4 : vector<1x1x64xf32> to vector<185x8x64xf32>
    %7 = arith.mulf %5, %6 : vector<185x8x64xf32>
    %8 = vector.extract_strided_slice %0 {offsets = [1, 0, 0], sizes = [185, 8, 1], strides = [1, 1, 1]} : vector<187x8x1xf32> to vector<185x8x1xf32>
    %9 = vector.extract_strided_slice %1 {offsets = [1, 0], sizes = [1, 64], strides = [1, 1]} : vector<3x64xf32> to vector<1x64xf32>
    %10 = vector.shape_cast %9 : vector<1x64xf32> to vector<1x1x64xf32>
    %11 = vector.broadcast %8 : vector<185x8x1xf32> to vector<185x8x64xf32>
    %12 = vector.broadcast %10 : vector<1x1x64xf32> to vector<185x8x64xf32>
    %13 = arith.mulf %11, %12 : vector<185x8x64xf32>
    %14 = arith.addf %7, %13 : vector<185x8x64xf32>
    %15 = vector.extract_strided_slice %0 {offsets = [2, 0, 0], sizes = [185, 8, 1], strides = [1, 1, 1]} : vector<187x8x1xf32> to vector<185x8x1xf32>
    %16 = vector.extract_strided_slice %1 {offsets = [2, 0], sizes = [1, 64], strides = [1, 1]} : vector<3x64xf32> to vector<1x64xf32>
    %17 = vector.shape_cast %16 : vector<1x64xf32> to vector<1x1x64xf32>
    %18 = vector.broadcast %15 : vector<185x8x1xf32> to vector<185x8x64xf32>
    %19 = vector.broadcast %17 : vector<1x1x64xf32> to vector<185x8x64xf32>
    %20 = arith.mulf %18, %19 : vector<185x8x64xf32>
    %21 = arith.addf %14, %20 : vector<185x8x64xf32>
    %22 = vector.shape_cast %21 : vector<185x8x64xf32> to vector<1480x64xf32>
    %c0_4 = arith.constant 0 : index
    %c0_5 = arith.constant 0 : index
    %23 = vector.load %arg3[%c0_4, %c0_5] : memref<1x64xf32, #tpu.memory_space<vmem>>, vector<1x64xf32>
    %24 = vector.broadcast %23 : vector<1x64xf32> to vector<1480x64xf32>
    %25 = arith.addf %22, %24 : vector<1480x64xf32>
    %cst = arith.constant 0.000000e+00 : f32
    %26 = vector.broadcast %cst : f32 to vector<1480x64xf32>
    %27 = arith.maximumf %25, %26 : vector<1480x64xf32>
    %28 = vector.extract_strided_slice %27 {offsets = [0, 0], sizes = [1472, 64], strides = [1, 1]} : vector<1480x64xf32> to vector<1472x64xf32>
    %29 = vector.shape_cast %28 : vector<1472x64xf32> to vector<92x16x64xf32>
    %30 = vector.extract_strided_slice %29 {offsets = [0, 0, 0], sizes = [92, 8, 64], strides = [1, 1, 1]} : vector<92x16x64xf32> to vector<92x8x64xf32>
    %31 = vector.extract_strided_slice %29 {offsets = [0, 8, 0], sizes = [92, 8, 64], strides = [1, 1, 1]} : vector<92x16x64xf32> to vector<92x8x64xf32>
    %32 = arith.maximumf %30, %31 : vector<92x8x64xf32>
    %33 = vector.extract_strided_slice %32 {offsets = [0, 0, 0], sizes = [90, 8, 64], strides = [1, 1, 1]} : vector<92x8x64xf32> to vector<90x8x64xf32>
    %34 = vector.extract_strided_slice %32 {offsets = [1, 0, 0], sizes = [90, 8, 64], strides = [1, 1, 1]} : vector<92x8x64xf32> to vector<90x8x64xf32>
    %35 = vector.extract_strided_slice %32 {offsets = [2, 0, 0], sizes = [90, 8, 64], strides = [1, 1, 1]} : vector<92x8x64xf32> to vector<90x8x64xf32>
    %36 = tpu.concatenate %33, %34, %35 in 2 : vector<90x8x64xf32>, vector<90x8x64xf32>, vector<90x8x64xf32> -> vector<90x8x192xf32>
    %37 = vector.shape_cast %36 : vector<90x8x192xf32> to vector<720x192xf32>
    %c0_6 = arith.constant 0 : index
    %c0_7 = arith.constant 0 : index
    %38 = vector.load %arg4[%c0_6, %c0_7] : memref<192x128xf32, #tpu.memory_space<vmem>>, vector<192x128xf32>
    %cst_8 = arith.constant dense<0.000000e+00> : vector<720x128xf32>
    %39 = tpu.matmul %37, %38, %cst_8 {dimension_numbers = #tpu.dot_dimension_numbers<[1], [0], [0], [1], [0, 0, 1, 1], [], []>} : vector<720x192xf32>, vector<192x128xf32>, vector<720x128xf32> -> vector<720x128xf32>
    %c0_9 = arith.constant 0 : index
    %c0_10 = arith.constant 0 : index
    %40 = vector.load %arg5[%c0_9, %c0_10] : memref<1x128xf32, #tpu.memory_space<vmem>>, vector<1x128xf32>
    %41 = vector.broadcast %40 : vector<1x128xf32> to vector<720x128xf32>
    %42 = arith.addf %39, %41 : vector<720x128xf32>
    %cst_11 = arith.constant 0.000000e+00 : f32
    %43 = vector.broadcast %cst_11 : f32 to vector<720x128xf32>
    %44 = arith.maximumf %42, %43 : vector<720x128xf32>
    %45 = vector.shape_cast %44 : vector<720x128xf32> to vector<45x16x128xf32>
    %46 = vector.extract_strided_slice %45 {offsets = [0, 0, 0], sizes = [45, 8, 128], strides = [1, 1, 1]} : vector<45x16x128xf32> to vector<45x8x128xf32>
    %47 = vector.extract_strided_slice %45 {offsets = [0, 8, 0], sizes = [45, 8, 128], strides = [1, 1, 1]} : vector<45x16x128xf32> to vector<45x8x128xf32>
    %48 = arith.maximumf %46, %47 : vector<45x8x128xf32>
    %49 = vector.extract_strided_slice %48 {offsets = [0, 0, 0], sizes = [43, 8, 128], strides = [1, 1, 1]} : vector<45x8x128xf32> to vector<43x8x128xf32>
    %50 = vector.extract_strided_slice %48 {offsets = [1, 0, 0], sizes = [43, 8, 128], strides = [1, 1, 1]} : vector<45x8x128xf32> to vector<43x8x128xf32>
    %51 = vector.extract_strided_slice %48 {offsets = [2, 0, 0], sizes = [43, 8, 128], strides = [1, 1, 1]} : vector<45x8x128xf32> to vector<43x8x128xf32>
    %52 = tpu.concatenate %49, %50, %51 in 2 : vector<43x8x128xf32>, vector<43x8x128xf32>, vector<43x8x128xf32> -> vector<43x8x384xf32>
    %53 = vector.shape_cast %52 : vector<43x8x384xf32> to vector<344x384xf32>
    %c0_12 = arith.constant 0 : index
    %c0_13 = arith.constant 0 : index
    %54 = vector.load %arg6[%c0_12, %c0_13] : memref<384x256xf32, #tpu.memory_space<vmem>>, vector<384x256xf32>
    %cst_14 = arith.constant dense<0.000000e+00> : vector<344x256xf32>
    %55 = tpu.matmul %53, %54, %cst_14 {dimension_numbers = #tpu.dot_dimension_numbers<[1], [0], [0], [1], [0, 0, 1, 1], [], []>} : vector<344x384xf32>, vector<384x256xf32>, vector<344x256xf32> -> vector<344x256xf32>
    %c0_15 = arith.constant 0 : index
    %c0_16 = arith.constant 0 : index
    %56 = vector.load %arg7[%c0_15, %c0_16] : memref<1x256xf32, #tpu.memory_space<vmem>>, vector<1x256xf32>
    %57 = vector.broadcast %56 : vector<1x256xf32> to vector<344x256xf32>
    %58 = arith.addf %55, %57 : vector<344x256xf32>
    %cst_17 = arith.constant 0.000000e+00 : f32
    %59 = vector.broadcast %cst_17 : f32 to vector<344x256xf32>
    %60 = arith.maximumf %58, %59 : vector<344x256xf32>
    %61 = vector.extract_strided_slice %60 {offsets = [0, 0], sizes = [336, 256], strides = [1, 1]} : vector<344x256xf32> to vector<336x256xf32>
    %62 = vector.shape_cast %61 : vector<336x256xf32> to vector<21x16x256xf32>
    %63 = vector.extract_strided_slice %62 {offsets = [0, 0, 0], sizes = [21, 8, 256], strides = [1, 1, 1]} : vector<21x16x256xf32> to vector<21x8x256xf32>
    %64 = vector.extract_strided_slice %62 {offsets = [0, 8, 0], sizes = [21, 8, 256], strides = [1, 1, 1]} : vector<21x16x256xf32> to vector<21x8x256xf32>
    %65 = arith.maximumf %63, %64 : vector<21x8x256xf32>
    %66 = vector.extract_strided_slice %65 {offsets = [0, 0, 0], sizes = [1, 8, 256], strides = [1, 1, 1]} : vector<21x8x256xf32> to vector<1x8x256xf32>
    %67 = vector.shape_cast %66 : vector<1x8x256xf32> to vector<8x256xf32>
    %c0_18 = arith.constant 0 : index
    %c0_19 = arith.constant 0 : index
    %c0_20 = arith.constant 0 : index
    %68 = vector.load %arg8[%c0_18, %c0_19, %c0_20] : memref<21x256x256xf32, #tpu.memory_space<vmem>>, vector<1x256x256xf32>
    %69 = vector.shape_cast %68 : vector<1x256x256xf32> to vector<256x256xf32>
    %cst_21 = arith.constant dense<0.000000e+00> : vector<8x256xf32>
    %70 = tpu.matmul %67, %69, %cst_21 {dimension_numbers = #tpu.dot_dimension_numbers<[1], [0], [0], [1], [0, 0, 1, 1], [], []>} : vector<8x256xf32>, vector<256x256xf32>, vector<8x256xf32> -> vector<8x256xf32>
    %71 = vector.extract_strided_slice %65 {offsets = [1, 0, 0], sizes = [1, 8, 256], strides = [1, 1, 1]} : vector<21x8x256xf32> to vector<1x8x256xf32>
    %72 = vector.shape_cast %71 : vector<1x8x256xf32> to vector<8x256xf32>
    %c1 = arith.constant 1 : index
    %c0_22 = arith.constant 0 : index
    %c0_23 = arith.constant 0 : index
    %73 = vector.load %arg8[%c1, %c0_22, %c0_23] : memref<21x256x256xf32, #tpu.memory_space<vmem>>, vector<1x256x256xf32>
    %74 = vector.shape_cast %73 : vector<1x256x256xf32> to vector<256x256xf32>
    %cst_24 = arith.constant dense<0.000000e+00> : vector<8x256xf32>
    %75 = tpu.matmul %72, %74, %cst_24 {dimension_numbers = #tpu.dot_dimension_numbers<[1], [0], [0], [1], [0, 0, 1, 1], [], []>} : vector<8x256xf32>, vector<256x256xf32>, vector<8x256xf32> -> vector<8x256xf32>
    %76 = arith.addf %70, %75 : vector<8x256xf32>
    %77 = vector.extract_strided_slice %65 {offsets = [2, 0, 0], sizes = [1, 8, 256], strides = [1, 1, 1]} : vector<21x8x256xf32> to vector<1x8x256xf32>
    %78 = vector.shape_cast %77 : vector<1x8x256xf32> to vector<8x256xf32>
    %c2 = arith.constant 2 : index
    %c0_25 = arith.constant 0 : index
    %c0_26 = arith.constant 0 : index
    %79 = vector.load %arg8[%c2, %c0_25, %c0_26] : memref<21x256x256xf32, #tpu.memory_space<vmem>>, vector<1x256x256xf32>
    %80 = vector.shape_cast %79 : vector<1x256x256xf32> to vector<256x256xf32>
    %cst_27 = arith.constant dense<0.000000e+00> : vector<8x256xf32>
    %81 = tpu.matmul %78, %80, %cst_27 {dimension_numbers = #tpu.dot_dimension_numbers<[1], [0], [0], [1], [0, 0, 1, 1], [], []>} : vector<8x256xf32>, vector<256x256xf32>, vector<8x256xf32> -> vector<8x256xf32>
    %82 = arith.addf %76, %81 : vector<8x256xf32>
    %83 = vector.extract_strided_slice %65 {offsets = [3, 0, 0], sizes = [1, 8, 256], strides = [1, 1, 1]} : vector<21x8x256xf32> to vector<1x8x256xf32>
    %84 = vector.shape_cast %83 : vector<1x8x256xf32> to vector<8x256xf32>
    %c3 = arith.constant 3 : index
    %c0_28 = arith.constant 0 : index
    %c0_29 = arith.constant 0 : index
    %85 = vector.load %arg8[%c3, %c0_28, %c0_29] : memref<21x256x256xf32, #tpu.memory_space<vmem>>, vector<1x256x256xf32>
    %86 = vector.shape_cast %85 : vector<1x256x256xf32> to vector<256x256xf32>
    %cst_30 = arith.constant dense<0.000000e+00> : vector<8x256xf32>
    %87 = tpu.matmul %84, %86, %cst_30 {dimension_numbers = #tpu.dot_dimension_numbers<[1], [0], [0], [1], [0, 0, 1, 1], [], []>} : vector<8x256xf32>, vector<256x256xf32>, vector<8x256xf32> -> vector<8x256xf32>
    %88 = arith.addf %82, %87 : vector<8x256xf32>
    %89 = vector.extract_strided_slice %65 {offsets = [4, 0, 0], sizes = [1, 8, 256], strides = [1, 1, 1]} : vector<21x8x256xf32> to vector<1x8x256xf32>
    %90 = vector.shape_cast %89 : vector<1x8x256xf32> to vector<8x256xf32>
    %c4 = arith.constant 4 : index
    %c0_31 = arith.constant 0 : index
    %c0_32 = arith.constant 0 : index
    %91 = vector.load %arg8[%c4, %c0_31, %c0_32] : memref<21x256x256xf32, #tpu.memory_space<vmem>>, vector<1x256x256xf32>
    %92 = vector.shape_cast %91 : vector<1x256x256xf32> to vector<256x256xf32>
    %cst_33 = arith.constant dense<0.000000e+00> : vector<8x256xf32>
    %93 = tpu.matmul %90, %92, %cst_33 {dimension_numbers = #tpu.dot_dimension_numbers<[1], [0], [0], [1], [0, 0, 1, 1], [], []>} : vector<8x256xf32>, vector<256x256xf32>, vector<8x256xf32> -> vector<8x256xf32>
    %94 = arith.addf %88, %93 : vector<8x256xf32>
    %95 = vector.extract_strided_slice %65 {offsets = [5, 0, 0], sizes = [1, 8, 256], strides = [1, 1, 1]} : vector<21x8x256xf32> to vector<1x8x256xf32>
    %96 = vector.shape_cast %95 : vector<1x8x256xf32> to vector<8x256xf32>
    %c5 = arith.constant 5 : index
    %c0_34 = arith.constant 0 : index
    %c0_35 = arith.constant 0 : index
    %97 = vector.load %arg8[%c5, %c0_34, %c0_35] : memref<21x256x256xf32, #tpu.memory_space<vmem>>, vector<1x256x256xf32>
    %98 = vector.shape_cast %97 : vector<1x256x256xf32> to vector<256x256xf32>
    %cst_36 = arith.constant dense<0.000000e+00> : vector<8x256xf32>
    %99 = tpu.matmul %96, %98, %cst_36 {dimension_numbers = #tpu.dot_dimension_numbers<[1], [0], [0], [1], [0, 0, 1, 1], [], []>} : vector<8x256xf32>, vector<256x256xf32>, vector<8x256xf32> -> vector<8x256xf32>
    %100 = arith.addf %94, %99 : vector<8x256xf32>
    %101 = vector.extract_strided_slice %65 {offsets = [6, 0, 0], sizes = [1, 8, 256], strides = [1, 1, 1]} : vector<21x8x256xf32> to vector<1x8x256xf32>
    %102 = vector.shape_cast %101 : vector<1x8x256xf32> to vector<8x256xf32>
    %c6 = arith.constant 6 : index
    %c0_37 = arith.constant 0 : index
    %c0_38 = arith.constant 0 : index
    %103 = vector.load %arg8[%c6, %c0_37, %c0_38] : memref<21x256x256xf32, #tpu.memory_space<vmem>>, vector<1x256x256xf32>
    %104 = vector.shape_cast %103 : vector<1x256x256xf32> to vector<256x256xf32>
    %cst_39 = arith.constant dense<0.000000e+00> : vector<8x256xf32>
    %105 = tpu.matmul %102, %104, %cst_39 {dimension_numbers = #tpu.dot_dimension_numbers<[1], [0], [0], [1], [0, 0, 1, 1], [], []>} : vector<8x256xf32>, vector<256x256xf32>, vector<8x256xf32> -> vector<8x256xf32>
    %106 = arith.addf %100, %105 : vector<8x256xf32>
    %107 = vector.extract_strided_slice %65 {offsets = [7, 0, 0], sizes = [1, 8, 256], strides = [1, 1, 1]} : vector<21x8x256xf32> to vector<1x8x256xf32>
    %108 = vector.shape_cast %107 : vector<1x8x256xf32> to vector<8x256xf32>
    %c7 = arith.constant 7 : index
    %c0_40 = arith.constant 0 : index
    %c0_41 = arith.constant 0 : index
    %109 = vector.load %arg8[%c7, %c0_40, %c0_41] : memref<21x256x256xf32, #tpu.memory_space<vmem>>, vector<1x256x256xf32>
    %110 = vector.shape_cast %109 : vector<1x256x256xf32> to vector<256x256xf32>
    %cst_42 = arith.constant dense<0.000000e+00> : vector<8x256xf32>
    %111 = tpu.matmul %108, %110, %cst_42 {dimension_numbers = #tpu.dot_dimension_numbers<[1], [0], [0], [1], [0, 0, 1, 1], [], []>} : vector<8x256xf32>, vector<256x256xf32>, vector<8x256xf32> -> vector<8x256xf32>
    %112 = arith.addf %106, %111 : vector<8x256xf32>
    %113 = vector.extract_strided_slice %65 {offsets = [8, 0, 0], sizes = [1, 8, 256], strides = [1, 1, 1]} : vector<21x8x256xf32> to vector<1x8x256xf32>
    %114 = vector.shape_cast %113 : vector<1x8x256xf32> to vector<8x256xf32>
    %c8 = arith.constant 8 : index
    %c0_43 = arith.constant 0 : index
    %c0_44 = arith.constant 0 : index
    %115 = vector.load %arg8[%c8, %c0_43, %c0_44] : memref<21x256x256xf32, #tpu.memory_space<vmem>>, vector<1x256x256xf32>
    %116 = vector.shape_cast %115 : vector<1x256x256xf32> to vector<256x256xf32>
    %cst_45 = arith.constant dense<0.000000e+00> : vector<8x256xf32>
    %117 = tpu.matmul %114, %116, %cst_45 {dimension_numbers = #tpu.dot_dimension_numbers<[1], [0], [0], [1], [0, 0, 1, 1], [], []>} : vector<8x256xf32>, vector<256x256xf32>, vector<8x256xf32> -> vector<8x256xf32>
    %118 = arith.addf %112, %117 : vector<8x256xf32>
    %119 = vector.extract_strided_slice %65 {offsets = [9, 0, 0], sizes = [1, 8, 256], strides = [1, 1, 1]} : vector<21x8x256xf32> to vector<1x8x256xf32>
    %120 = vector.shape_cast %119 : vector<1x8x256xf32> to vector<8x256xf32>
    %c9 = arith.constant 9 : index
    %c0_46 = arith.constant 0 : index
    %c0_47 = arith.constant 0 : index
    %121 = vector.load %arg8[%c9, %c0_46, %c0_47] : memref<21x256x256xf32, #tpu.memory_space<vmem>>, vector<1x256x256xf32>
    %122 = vector.shape_cast %121 : vector<1x256x256xf32> to vector<256x256xf32>
    %cst_48 = arith.constant dense<0.000000e+00> : vector<8x256xf32>
    %123 = tpu.matmul %120, %122, %cst_48 {dimension_numbers = #tpu.dot_dimension_numbers<[1], [0], [0], [1], [0, 0, 1, 1], [], []>} : vector<8x256xf32>, vector<256x256xf32>, vector<8x256xf32> -> vector<8x256xf32>
    %124 = arith.addf %118, %123 : vector<8x256xf32>
    %125 = vector.extract_strided_slice %65 {offsets = [10, 0, 0], sizes = [1, 8, 256], strides = [1, 1, 1]} : vector<21x8x256xf32> to vector<1x8x256xf32>
    %126 = vector.shape_cast %125 : vector<1x8x256xf32> to vector<8x256xf32>
    %c10 = arith.constant 10 : index
    %c0_49 = arith.constant 0 : index
    %c0_50 = arith.constant 0 : index
    %127 = vector.load %arg8[%c10, %c0_49, %c0_50] : memref<21x256x256xf32, #tpu.memory_space<vmem>>, vector<1x256x256xf32>
    %128 = vector.shape_cast %127 : vector<1x256x256xf32> to vector<256x256xf32>
    %cst_51 = arith.constant dense<0.000000e+00> : vector<8x256xf32>
    %129 = tpu.matmul %126, %128, %cst_51 {dimension_numbers = #tpu.dot_dimension_numbers<[1], [0], [0], [1], [0, 0, 1, 1], [], []>} : vector<8x256xf32>, vector<256x256xf32>, vector<8x256xf32> -> vector<8x256xf32>
    %130 = arith.addf %124, %129 : vector<8x256xf32>
    %131 = vector.extract_strided_slice %65 {offsets = [11, 0, 0], sizes = [1, 8, 256], strides = [1, 1, 1]} : vector<21x8x256xf32> to vector<1x8x256xf32>
    %132 = vector.shape_cast %131 : vector<1x8x256xf32> to vector<8x256xf32>
    %c11 = arith.constant 11 : index
    %c0_52 = arith.constant 0 : index
    %c0_53 = arith.constant 0 : index
    %133 = vector.load %arg8[%c11, %c0_52, %c0_53] : memref<21x256x256xf32, #tpu.memory_space<vmem>>, vector<1x256x256xf32>
    %134 = vector.shape_cast %133 : vector<1x256x256xf32> to vector<256x256xf32>
    %cst_54 = arith.constant dense<0.000000e+00> : vector<8x256xf32>
    %135 = tpu.matmul %132, %134, %cst_54 {dimension_numbers = #tpu.dot_dimension_numbers<[1], [0], [0], [1], [0, 0, 1, 1], [], []>} : vector<8x256xf32>, vector<256x256xf32>, vector<8x256xf32> -> vector<8x256xf32>
    %136 = arith.addf %130, %135 : vector<8x256xf32>
    %137 = vector.extract_strided_slice %65 {offsets = [12, 0, 0], sizes = [1, 8, 256], strides = [1, 1, 1]} : vector<21x8x256xf32> to vector<1x8x256xf32>
    %138 = vector.shape_cast %137 : vector<1x8x256xf32> to vector<8x256xf32>
    %c12 = arith.constant 12 : index
    %c0_55 = arith.constant 0 : index
    %c0_56 = arith.constant 0 : index
    %139 = vector.load %arg8[%c12, %c0_55, %c0_56] : memref<21x256x256xf32, #tpu.memory_space<vmem>>, vector<1x256x256xf32>
    %140 = vector.shape_cast %139 : vector<1x256x256xf32> to vector<256x256xf32>
    %cst_57 = arith.constant dense<0.000000e+00> : vector<8x256xf32>
    %141 = tpu.matmul %138, %140, %cst_57 {dimension_numbers = #tpu.dot_dimension_numbers<[1], [0], [0], [1], [0, 0, 1, 1], [], []>} : vector<8x256xf32>, vector<256x256xf32>, vector<8x256xf32> -> vector<8x256xf32>
    %142 = arith.addf %136, %141 : vector<8x256xf32>
    %143 = vector.extract_strided_slice %65 {offsets = [13, 0, 0], sizes = [1, 8, 256], strides = [1, 1, 1]} : vector<21x8x256xf32> to vector<1x8x256xf32>
    %144 = vector.shape_cast %143 : vector<1x8x256xf32> to vector<8x256xf32>
    %c13 = arith.constant 13 : index
    %c0_58 = arith.constant 0 : index
    %c0_59 = arith.constant 0 : index
    %145 = vector.load %arg8[%c13, %c0_58, %c0_59] : memref<21x256x256xf32, #tpu.memory_space<vmem>>, vector<1x256x256xf32>
    %146 = vector.shape_cast %145 : vector<1x256x256xf32> to vector<256x256xf32>
    %cst_60 = arith.constant dense<0.000000e+00> : vector<8x256xf32>
    %147 = tpu.matmul %144, %146, %cst_60 {dimension_numbers = #tpu.dot_dimension_numbers<[1], [0], [0], [1], [0, 0, 1, 1], [], []>} : vector<8x256xf32>, vector<256x256xf32>, vector<8x256xf32> -> vector<8x256xf32>
    %148 = arith.addf %142, %147 : vector<8x256xf32>
    %149 = vector.extract_strided_slice %65 {offsets = [14, 0, 0], sizes = [1, 8, 256], strides = [1, 1, 1]} : vector<21x8x256xf32> to vector<1x8x256xf32>
    %150 = vector.shape_cast %149 : vector<1x8x256xf32> to vector<8x256xf32>
    %c14 = arith.constant 14 : index
    %c0_61 = arith.constant 0 : index
    %c0_62 = arith.constant 0 : index
    %151 = vector.load %arg8[%c14, %c0_61, %c0_62] : memref<21x256x256xf32, #tpu.memory_space<vmem>>, vector<1x256x256xf32>
    %152 = vector.shape_cast %151 : vector<1x256x256xf32> to vector<256x256xf32>
    %cst_63 = arith.constant dense<0.000000e+00> : vector<8x256xf32>
    %153 = tpu.matmul %150, %152, %cst_63 {dimension_numbers = #tpu.dot_dimension_numbers<[1], [0], [0], [1], [0, 0, 1, 1], [], []>} : vector<8x256xf32>, vector<256x256xf32>, vector<8x256xf32> -> vector<8x256xf32>
    %154 = arith.addf %148, %153 : vector<8x256xf32>
    %155 = vector.extract_strided_slice %65 {offsets = [15, 0, 0], sizes = [1, 8, 256], strides = [1, 1, 1]} : vector<21x8x256xf32> to vector<1x8x256xf32>
    %156 = vector.shape_cast %155 : vector<1x8x256xf32> to vector<8x256xf32>
    %c15 = arith.constant 15 : index
    %c0_64 = arith.constant 0 : index
    %c0_65 = arith.constant 0 : index
    %157 = vector.load %arg8[%c15, %c0_64, %c0_65] : memref<21x256x256xf32, #tpu.memory_space<vmem>>, vector<1x256x256xf32>
    %158 = vector.shape_cast %157 : vector<1x256x256xf32> to vector<256x256xf32>
    %cst_66 = arith.constant dense<0.000000e+00> : vector<8x256xf32>
    %159 = tpu.matmul %156, %158, %cst_66 {dimension_numbers = #tpu.dot_dimension_numbers<[1], [0], [0], [1], [0, 0, 1, 1], [], []>} : vector<8x256xf32>, vector<256x256xf32>, vector<8x256xf32> -> vector<8x256xf32>
    %160 = arith.addf %154, %159 : vector<8x256xf32>
    %161 = vector.extract_strided_slice %65 {offsets = [16, 0, 0], sizes = [1, 8, 256], strides = [1, 1, 1]} : vector<21x8x256xf32> to vector<1x8x256xf32>
    %162 = vector.shape_cast %161 : vector<1x8x256xf32> to vector<8x256xf32>
    %c16 = arith.constant 16 : index
    %c0_67 = arith.constant 0 : index
    %c0_68 = arith.constant 0 : index
    %163 = vector.load %arg8[%c16, %c0_67, %c0_68] : memref<21x256x256xf32, #tpu.memory_space<vmem>>, vector<1x256x256xf32>
    %164 = vector.shape_cast %163 : vector<1x256x256xf32> to vector<256x256xf32>
    %cst_69 = arith.constant dense<0.000000e+00> : vector<8x256xf32>
    %165 = tpu.matmul %162, %164, %cst_69 {dimension_numbers = #tpu.dot_dimension_numbers<[1], [0], [0], [1], [0, 0, 1, 1], [], []>} : vector<8x256xf32>, vector<256x256xf32>, vector<8x256xf32> -> vector<8x256xf32>
    %166 = arith.addf %160, %165 : vector<8x256xf32>
    %167 = vector.extract_strided_slice %65 {offsets = [17, 0, 0], sizes = [1, 8, 256], strides = [1, 1, 1]} : vector<21x8x256xf32> to vector<1x8x256xf32>
    %168 = vector.shape_cast %167 : vector<1x8x256xf32> to vector<8x256xf32>
    %c17 = arith.constant 17 : index
    %c0_70 = arith.constant 0 : index
    %c0_71 = arith.constant 0 : index
    %169 = vector.load %arg8[%c17, %c0_70, %c0_71] : memref<21x256x256xf32, #tpu.memory_space<vmem>>, vector<1x256x256xf32>
    %170 = vector.shape_cast %169 : vector<1x256x256xf32> to vector<256x256xf32>
    %cst_72 = arith.constant dense<0.000000e+00> : vector<8x256xf32>
    %171 = tpu.matmul %168, %170, %cst_72 {dimension_numbers = #tpu.dot_dimension_numbers<[1], [0], [0], [1], [0, 0, 1, 1], [], []>} : vector<8x256xf32>, vector<256x256xf32>, vector<8x256xf32> -> vector<8x256xf32>
    %172 = arith.addf %166, %171 : vector<8x256xf32>
    %173 = vector.extract_strided_slice %65 {offsets = [18, 0, 0], sizes = [1, 8, 256], strides = [1, 1, 1]} : vector<21x8x256xf32> to vector<1x8x256xf32>
    %174 = vector.shape_cast %173 : vector<1x8x256xf32> to vector<8x256xf32>
    %c18 = arith.constant 18 : index
    %c0_73 = arith.constant 0 : index
    %c0_74 = arith.constant 0 : index
    %175 = vector.load %arg8[%c18, %c0_73, %c0_74] : memref<21x256x256xf32, #tpu.memory_space<vmem>>, vector<1x256x256xf32>
    %176 = vector.shape_cast %175 : vector<1x256x256xf32> to vector<256x256xf32>
    %cst_75 = arith.constant dense<0.000000e+00> : vector<8x256xf32>
    %177 = tpu.matmul %174, %176, %cst_75 {dimension_numbers = #tpu.dot_dimension_numbers<[1], [0], [0], [1], [0, 0, 1, 1], [], []>} : vector<8x256xf32>, vector<256x256xf32>, vector<8x256xf32> -> vector<8x256xf32>
    %178 = arith.addf %172, %177 : vector<8x256xf32>
    %179 = vector.extract_strided_slice %65 {offsets = [19, 0, 0], sizes = [1, 8, 256], strides = [1, 1, 1]} : vector<21x8x256xf32> to vector<1x8x256xf32>
    %180 = vector.shape_cast %179 : vector<1x8x256xf32> to vector<8x256xf32>
    %c19 = arith.constant 19 : index
    %c0_76 = arith.constant 0 : index
    %c0_77 = arith.constant 0 : index
    %181 = vector.load %arg8[%c19, %c0_76, %c0_77] : memref<21x256x256xf32, #tpu.memory_space<vmem>>, vector<1x256x256xf32>
    %182 = vector.shape_cast %181 : vector<1x256x256xf32> to vector<256x256xf32>
    %cst_78 = arith.constant dense<0.000000e+00> : vector<8x256xf32>
    %183 = tpu.matmul %180, %182, %cst_78 {dimension_numbers = #tpu.dot_dimension_numbers<[1], [0], [0], [1], [0, 0, 1, 1], [], []>} : vector<8x256xf32>, vector<256x256xf32>, vector<8x256xf32> -> vector<8x256xf32>
    %184 = arith.addf %178, %183 : vector<8x256xf32>
    %185 = vector.extract_strided_slice %65 {offsets = [20, 0, 0], sizes = [1, 8, 256], strides = [1, 1, 1]} : vector<21x8x256xf32> to vector<1x8x256xf32>
    %186 = vector.shape_cast %185 : vector<1x8x256xf32> to vector<8x256xf32>
    %c20 = arith.constant 20 : index
    %c0_79 = arith.constant 0 : index
    %c0_80 = arith.constant 0 : index
    %187 = vector.load %arg8[%c20, %c0_79, %c0_80] : memref<21x256x256xf32, #tpu.memory_space<vmem>>, vector<1x256x256xf32>
    %188 = vector.shape_cast %187 : vector<1x256x256xf32> to vector<256x256xf32>
    %cst_81 = arith.constant dense<0.000000e+00> : vector<8x256xf32>
    %189 = tpu.matmul %186, %188, %cst_81 {dimension_numbers = #tpu.dot_dimension_numbers<[1], [0], [0], [1], [0, 0, 1, 1], [], []>} : vector<8x256xf32>, vector<256x256xf32>, vector<8x256xf32> -> vector<8x256xf32>
    %190 = arith.addf %184, %189 : vector<8x256xf32>
    %c0_82 = arith.constant 0 : index
    %c0_83 = arith.constant 0 : index
    %191 = vector.load %arg9[%c0_82, %c0_83] : memref<1x256xf32, #tpu.memory_space<vmem>>, vector<1x256xf32>
    %192 = vector.broadcast %191 : vector<1x256xf32> to vector<8x256xf32>
    %193 = arith.addf %190, %192 : vector<8x256xf32>
    %cst_84 = arith.constant 0.000000e+00 : f32
    %194 = vector.broadcast %cst_84 : f32 to vector<8x256xf32>
    %195 = arith.maximumf %193, %194 : vector<8x256xf32>
    %c0_85 = arith.constant 0 : index
    %c0_86 = arith.constant 0 : index
    %196 = vector.load %arg10[%c0_85, %c0_86] : memref<256x128xf32, #tpu.memory_space<vmem>>, vector<256x128xf32>
    %cst_87 = arith.constant dense<0.000000e+00> : vector<8x128xf32>
    %197 = tpu.matmul %195, %196, %cst_87 {dimension_numbers = #tpu.dot_dimension_numbers<[1], [0], [0], [1], [0, 0, 1, 1], [], []>} : vector<8x256xf32>, vector<256x128xf32>, vector<8x128xf32> -> vector<8x128xf32>
    %c0_88 = arith.constant 0 : index
    %c0_89 = arith.constant 0 : index
    %198 = vector.load %arg11[%c0_88, %c0_89] : memref<1x128xf32, #tpu.memory_space<vmem>>, vector<1x128xf32>
    %199 = vector.broadcast %198 : vector<1x128xf32> to vector<8x128xf32>
    %200 = arith.addf %197, %199 : vector<8x128xf32>
    %c0_90 = arith.constant 0 : index
    %c0_91 = arith.constant 0 : index
    %201 = vector.load %arg12[%c0_90, %c0_91] : memref<8x128xf32, #tpu.memory_space<vmem>>, vector<8x128xf32>
    tpu.vector_store %arg12[%c0_90, %c0_91], %200 {strides = array<i32>} : memref<8x128xf32, #tpu.memory_space<vmem>>, vector<8x128xf32>,
    return
  }
  func.func @transform_0(%arg0: i32) -> (i32, i32, i32) {
    %c0_i32 = arith.constant 0 : i32
    %c0_i32_0 = arith.constant 0 : i32
    %c0_i32_1 = arith.constant 0 : i32
    return %c0_i32, %arg0, %c0_i32_0 : i32, i32, i32
  }
  func.func @transform_1(%arg0: i32) -> (i32, i32) {
    %c0_i32 = arith.constant 0 : i32
    %c0_i32_0 = arith.constant 0 : i32
    %c0_i32_1 = arith.constant 0 : i32
    return %c0_i32, %c0_i32_0 : i32, i32
  }
  func.func @transform_2(%arg0: i32) -> (i32, i32) {
    %c0_i32 = arith.constant 0 : i32
    %c0_i32_0 = arith.constant 0 : i32
    %c0_i32_1 = arith.constant 0 : i32
    return %c0_i32, %c0_i32_0 : i32, i32
  }
  func.func @transform_3(%arg0: i32) -> (i32, i32) {
    %c0_i32 = arith.constant 0 : i32
    %c0_i32_0 = arith.constant 0 : i32
    %c0_i32_1 = arith.constant 0 : i32
    return %c0_i32, %c0_i32_0 : i32, i32
  }
  func.func @transform_4(%arg0: i32) -> (i32, i32) {
    %c0_i32 = arith.constant 0 : i32
    %c0_i32_0 = arith.constant 0 : i32
    %c0_i32_1 = arith.constant 0 : i32
    return %c0_i32, %c0_i32_0 : i32, i32
  }
  func.func @transform_5(%arg0: i32) -> (i32, i32) {
    %c0_i32 = arith.constant 0 : i32
    %c0_i32_0 = arith.constant 0 : i32
    %c0_i32_1 = arith.constant 0 : i32
    return %c0_i32, %c0_i32_0 : i32, i32
  }
  func.func @transform_6(%arg0: i32) -> (i32, i32) {
    %c0_i32 = arith.constant 0 : i32
    %c0_i32_0 = arith.constant 0 : i32
    %c0_i32_1 = arith.constant 0 : i32
    return %c0_i32, %c0_i32_0 : i32, i32
  }
  func.func @transform_7(%arg0: i32) -> (i32, i32, i32) {
    %c0_i32 = arith.constant 0 : i32
    %c0_i32_0 = arith.constant 0 : i32
    %c0_i32_1 = arith.constant 0 : i32
    %c0_i32_2 = arith.constant 0 : i32
    return %c0_i32, %c0_i32_0, %c0_i32_1 : i32, i32, i32
  }
  func.func @transform_8(%arg0: i32) -> (i32, i32) {
    %c0_i32 = arith.constant 0 : i32
    %c0_i32_0 = arith.constant 0 : i32
    %c0_i32_1 = arith.constant 0 : i32
    return %c0_i32, %c0_i32_0 : i32, i32
  }
  func.func @transform_9(%arg0: i32) -> (i32, i32) {
    %c0_i32 = arith.constant 0 : i32
    %c0_i32_0 = arith.constant 0 : i32
    %c0_i32_1 = arith.constant 0 : i32
    return %c0_i32, %c0_i32_0 : i32, i32
  }
  func.func @transform_10(%arg0: i32) -> (i32, i32) {
    %c0_i32 = arith.constant 0 : i32
    %c0_i32_0 = arith.constant 0 : i32
    %c0_i32_1 = arith.constant 0 : i32
    return %c0_i32, %c0_i32_0 : i32, i32
  }
  func.func @transform_11(%arg0: i32) -> (i32, i32) {
    %c0_i32 = arith.constant 0 : i32
    %c0_i32_0 = arith.constant 0 : i32
    return %arg0, %c0_i32 : i32, i32
  }
}

</mosaic_0001>

<bundles_post_ra>
// kernel: tpu_custom_call.1
= control target key start
LH: loop header
LB: loop body
LE: loop exit
PB: predicated region body
PF: predicated region fallthrough
CT: control target
= control target key end

     0   :  { %16 = vsyncpa [#allocation3], 0  ;;  %s12408_s0 = inlined_call_operand.vmem [shape: f32[187,8,1], index: 0, kind: input, shape index: {}]   ;;  %s12409_s1 = inlined_call_operand.hbm [shape: f32[3,64], index: 1, kind: input, shape index: {}]   ;;  %s12410_s2 = inlined_call_operand.hbm [shape: f32[1,64], index: 2, kind: input, shape index: {}]   ;;  %s12411_s3 = inlined_call_operand.hbm [shape: f32[192,128], index: 3, kind: input, shape index: {}]   ;;  %s12412_s4 = inlined_call_operand.hbm [shape: f32[1,128], index: 4, kind: input, shape index: {}]   ;;  %s12413_s5 = inlined_call_operand.hbm [shape: f32[384,256], index: 5, kind: input, shape index: {}]   ;;  %s12414_s6 = inlined_call_operand.hbm [shape: f32[1,256], index: 6, kind: input, shape index: {}]   ;;  %s12415_s7 = inlined_call_operand.hbm [shape: f32[21,256,256], index: 7, kind: input, shape index: {}]   ;;  %s12416_s8 = inlined_call_operand.hbm [shape: f32[1,256], index: 8, kind: input, shape index: {}]   ;;  %s12417_s9 = inlined_call_operand.hbm [shape: f32[256,128], index: 9, kind: input, shape index: {}]   ;;  %s12418_s10 = inlined_call_operand.hbm [shape: f32[1,128], index: 10, kind: input, shape index: {}]   ;;  %s12419_s11 = inlined_call_operand.hbm [shape: f32[8,128], index: 11, kind: output, shape index: {}]  }
   0x1   :  { %17 = vsyncpa [#allocation6], 0 }
   0x2   :  { %18 = vsyncpa [#allocation9], 0 }
   0x3   :  { %19 = vsyncpa [#allocation12], 0 }
   0x4   :  { %20 = vsyncpa [#allocation15], 0 }
   0x5   :  { %21 = vsyncpa [#allocation18], 0  ;;  %s41_s19 = sshll.u32 %s12410_s2, 4  ;;  %s42_s19 = int_to_ptr.hbm [resolvable:$true] %s41_s19 }
   0x6   :  { %22 = vsyncpa [#allocation4], 0  ;;  %s8938_s20 = smov [#allocation5]   ;;  %s65_s24 = sshll.u32 %s12412_s4, 4  ;;  %s66_s24 = int_to_ptr.hbm [resolvable:$true] %s65_s24 }
   0x7   :  { %s43_s21 = sshll.u32 %s8938_s20, 4  ;;  %s8939_s25 = smov [#allocation8]   ;;  %s44_s21 = int_to_ptr.vmem [resolvable:$true] %s43_s21 }
   0x8   :  { %46 = dma.hbm_to_vmem [thread:$0]  %s42_s19, 16, %s44_s21, [#allocation6]  }
   0x9   :  { %s67_s26 = sshll.u32 %s8939_s25, 4  ;;  %s89_s29 = sshll.u32 %s12414_s6, 4  ;;  %s68_s26 = int_to_ptr.vmem [resolvable:$true] %s67_s26  ;;  %s90_s29 = int_to_ptr.hbm [resolvable:$true] %s89_s29 }
   0xa   :  { %70 = dma.hbm_to_vmem [thread:$0]  %s66_s24, 16, %s68_s26, [#allocation9]  }
   0xb   :  { %s113_s12 = sshll.u32 %s12416_s8, 4  ;;  %s8940_s13 = smov [#allocation11]   ;;  %s114_s12 = int_to_ptr.hbm [resolvable:$true] %s113_s12 }
   0xc   :  { %s91_s14 = sshll.u32 %s8940_s13, 4  ;;  %s8941_s4 = smov [#allocation14]   ;;  %s92_s14 = int_to_ptr.vmem [resolvable:$true] %s91_s14 }
   0xd   :  { %94 = dma.hbm_to_vmem [thread:$0]  %s90_s29, 32, %s92_s14, [#allocation12]  }
   0xe   :  { %s115_s15 = sshll.u32 %s8941_s4, 4  ;;  %s30_s18 = sshll.u32 %s12409_s1, 4  ;;  %s116_s15 = int_to_ptr.vmem [resolvable:$true] %s115_s15  ;;  %s31_s18 = int_to_ptr.hbm [resolvable:$true] %s30_s18 }
   0xf   :  { %118 = dma.hbm_to_vmem [thread:$0]  %s114_s12, 32, %s116_s15, [#allocation15]  }
  0x10   :  { %s51_s20 = sshll.u32 %s12411_s3, 4  ;;  %s8942_s21 = smov [#allocation2]   ;;  %s52_s20 = int_to_ptr.hbm [resolvable:$true] %s51_s20 }
  0x11   :  { %s32_s8 = sshll.u32 %s8942_s21, 4  ;;  %s8943_s22 = smov [#allocation7]   ;;  %s33_s8 = int_to_ptr.vmem [resolvable:$true] %s32_s8 }
  0x12   :  { %35 = dma.hbm_to_vmem [thread:$0]  %s31_s18, 64, %s33_s8, [#allocation3]  }
  0x13   :  { %s53_s23 = sshll.u32 %s8943_s22, 4  ;;  %s8944_s24 = smov 128   ;;  %s54_s23 = int_to_ptr.vmem [resolvable:$true] %s53_s23 }
  0x14   :  { %s8945_s25 = smov 8   ;;  %s75_s27 = sshll.u32 %s12413_s5, 4  ;;  %s76_s27 = int_to_ptr.hbm [resolvable:$true] %s75_s27 }
  0x15   :  { %59 = dma.hbm_to_vmem [thread:$0]  %s52_s20, 3072, %s54_s23, [#allocation6], %s8944_s24, %s8944_s24, %s8945_s25  }
  0x16   :  { %s8946_s28 = smov [#allocation10]   ;;  %s99_s30 = sshll.u32 %s12415_s7, 4  ;;  %s100_s30 = int_to_ptr.hbm [resolvable:$true] %s99_s30 }
  0x17   :  { %s77_s29 = sshll.u32 %s8946_s28, 4  ;;  %s8947_s12 = smov 256   ;;  %s78_s29 = int_to_ptr.vmem [resolvable:$true] %s77_s29 }
  0x18   :  { %s8948_s13 = smov 16   ;;  %s8949_s14 = smov [#allocation13]  }
  0x19   :  { %83 = dma.hbm_to_vmem [thread:$0]  %s76_s27, 12288, %s78_s29, [#allocation9], %s8947_s12, %s8947_s12, %s8948_s13  }
  0x1a   :  { %s101_s4 = sshll.u32 %s8949_s14, 4  ;;  %s123_s17 = sshll.u32 %s12417_s9, 4  ;;  %s102_s4 = int_to_ptr.vmem [resolvable:$true] %s101_s4  ;;  %s124_s17 = int_to_ptr.hbm [resolvable:$true] %s123_s17 }
  0x1b   :  { %107 = dma.hbm_to_vmem [thread:$0]  %s100_s30, 172032, %s102_s4, [#allocation12], %s8947_s12, %s8947_s12, %s8948_s13  }
  0x1c   :  { %s137_s6 = sshll.u32 %s12418_s10, 4  ;;  %s8950_s19 = smov [#allocation16]   ;;  %s138_s6 = int_to_ptr.hbm [resolvable:$true] %s137_s6 }
  0x1d   :  { %s125_s20 = sshll.u32 %s8950_s19, 4  ;;  %s8951_s7 = smov [#allocation17]   ;;  %s126_s20 = int_to_ptr.vmem [resolvable:$true] %s125_s20 }
  0x1e   :  { %131 = dma.hbm_to_vmem [thread:$0]  %s124_s17, 4096, %s126_s20, [#allocation15], %s8944_s24, %s8944_s24, %s8945_s25  }
  0x1f   :  { %s139_s21 = sshll.u32 %s8951_s7, 4  ;;  %s140_s21 = int_to_ptr.vmem [resolvable:$true] %s139_s21 }
  0x20   :  { %142 = dma.hbm_to_vmem [thread:$0]  %s138_s6, 16, %s140_s21, [#allocation18]  }
  0x21   :  { %8924 = dma.done.wait [#allocation3], 64  }
  0x22   :  { %8925 = vsyncadd [#allocation3], 4294967232 }
  0x23   :  { %8926 = dma.done.wait [#allocation6], 3088  }
  0x24   :  { %8927 = vsyncadd [#allocation6], 4294964208 }
  0x25   :  { %8928 = dma.done.wait [#allocation9], 12304  }
  0x26   :  { %8929 = vsyncadd [#allocation9], 4294954992 }
  0x27   :  { %8930 = dma.done.wait [#allocation12], 172064  }
  0x28   :  { %8931 = vsyncadd [#allocation12], 4294795232 }
  0x29   :  { %8932 = dma.done.wait [#allocation15], 4128  }
  0x2a   :  { %8933 = vsyncadd [#allocation15], 4294963168 }
  0x2b   :  { %8934 = dma.done.wait [#allocation18], 16  }
  0x2c   :  { %8935 = vsyncadd [#allocation18], 4294967280  ;;  %v8952_v0 = vmov 0   ;;  %v189_v1 = vld [vmem:[%s12408_s0 + $0x30] sm:$0xff]  ;;  %v187_v2 = vld [vmem:[%s12408_s0 + $0x20] sm:$0xff]  ;;  %vm3047_vm0 = vcmask 523264  }
  0x2d   :  { %8454 = vset.pattern.permute.xlu2 %v8952_v0  ;;  %8453 = vset.pattern.permute.xlu1 %v8952_v0  ;;  %v185_v3 = vld [vmem:[%s12408_s0 + $0x10] sm:$0xff]  ;;  %v190_v4 = vld [vmem:[%s12408_s0 + $0x38] sm:$0xff]  ;;  %v188_v5 = vld [vmem:[%s12408_s0 + $0x28] sm:$0xff]  ;;  %s8953_s12 = smov 64   ;;  %s8330_s27 = sshll.u32 %s12419_s11, 4  ;;  %s8331_s27 = int_to_ptr.hbm [resolvable:$true] %s8330_s27 }
  0x2e   :  { %8452 = vset.pattern.permute.xlu0 %v8952_v0  ;;  %402 = vperm.xlu2 %8454, %v189_v1   ;;  %v186_v6 = vld [vmem:[%s12408_s0 + $0x18] sm:$0xff]  ;;  %v193_v7 = vld [vmem:[%s12408_s0 + $0x50] sm:$0xff]  ;;  %v192_v8 = vld [vmem:[%s12408_s0 + $0x48] sm:$0xff] }
  0x2f   :  { %392 = vperm.xlu1 %8453, %v187_v2   ;;  %382 = vperm.xlu0 %8452, %v185_v3   ;;  %v191_v9 = vld [vmem:[%s12408_s0 + $0x40] sm:$0xff]  ;;  %v196_v10 = vld [vmem:[%s12408_s0 + $0x68] sm:$0xff]  ;;  %v194_v12 = vld [vmem:[%s12408_s0 + $0x58] sm:$0xff] }
  0x30   :  { %v195_v11 = vld [vmem:[%s12408_s0 + $0x60] sm:$0xff]  ;;  %v197_v13 = vld [vmem:[%s12408_s0 + $0x70] sm:$0xff]  ;;  %v184_v14 = vld [vmem:[%s12408_s0 + $0x8] sm:$0xff] }
  0x31   :  { %v183_v15 = vld [vmem:[%s12408_s0] sm:$0xff]  ;;  %v200_v16 = vld [vmem:[%s12408_s0 + $0x88] sm:$0xff]  ;;  %v198_v18 = vld [vmem:[%s12408_s0 + $0x78] sm:$0xff] }
  0x32   :  { %v199_v17 = vld [vmem:[%s12408_s0 + $0x80] sm:$0xff]  ;;  %v202_v19 = vld [vmem:[%s12408_s0 + $0x98] sm:$0xff]  ;;  %v201_v20 = vld [vmem:[%s12408_s0 + $0x90] sm:$0xff] }
  0x33   :  { %v204_v21 = vld [vmem:[%s12408_s0 + $0xa8] sm:$0xff]  ;;  %v206_v22 = vld [vmem:[%s12408_s0 + $0xb8] sm:$0xff]  ;;  %v369_v35 = vld [vmem:[#allocation2] sm:$0x7] }
  0x34   :  { %v3161_v23 = vld [vmem:[#allocation7 + $0xb8] sm:$0xff]  ;;  %v3160_v24 = vld [vmem:[#allocation7 + $0xb0] sm:$0xff]  ;;  %v3159_v25 = vld [vmem:[#allocation7 + $0xa8] sm:$0xff]  ;;  %v9113_v36 = vperm.slane %v369_v35, 0  ;;  %v9115_v37 = vperm.slane %v369_v35, 1  ;;  %v9117_v38 = vperm.slane %v369_v35, 2 }
  0x35   :  { %3642 = vmatpush.msra.mxu1 %v3161_v23  ;;  %v3158_v26 = vld [vmem:[#allocation7 + $0xa0] sm:$0xff]  ;;  %v3157_v27 = vld [vmem:[#allocation7 + $0x98] sm:$0xff]  ;;  %v3156_v28 = vld [vmem:[#allocation7 + $0x90] sm:$0xff] }
  0x36   :  { %407 = vperm.xlu2 %8454, %v190_v4   ;;  %v3155_v29 = vld [vmem:[#allocation7 + $0x88] sm:$0xff]  ;;  %v3154_v31 = vld [vmem:[#allocation7 + $0x80] sm:$0xff]  ;;  %v9135_v54 = vld [vmem:[#allocation5] ss:$0 sm:$0xff] }
  0x37   :  { %397 = vperm.xlu1 %8453, %v188_v5   ;;  %387 = vperm.xlu0 %8452, %v186_v6  }
  0x38   :  { %3643 = vmatpush.msra.mxu1 %v3160_v24 }
  0x3a   :  { %3644 = vmatpush.msra.mxu1 %v3159_v25 }
  0x3c   :  { %3645 = vmatpush.msra.mxu1 %v3158_v26 }
  0x3e   :  { %422 = vperm.xlu2 %8454, %v193_v7   ;;  %3646 = vmatpush.msra.mxu1 %v3157_v27 }
  0x3f   :  { %417 = vperm.xlu1 %8453, %v192_v8   ;;  %412 = vperm.xlu0 %8452, %v191_v9  }
  0x40   :  { %3647 = vmatpush.msra.mxu1 %v3156_v28 }
  0x42   :  { %3648 = vmatpush.msra.mxu1 %v3155_v29 }
  0x44   :  { %3649 = vmatpush.msra.mxu1 %v3154_v31 }
  0x46   :  { %437 = vperm.xlu2 %8454, %v196_v10  }
  0x47   :  { %432 = vperm.xlu1 %8453, %v195_v11   ;;  %427 = vperm.xlu0 %8452, %v194_v12  }
  0x4e   :  { %442 = vperm.xlu2 %8454, %v197_v13  }
  0x4f   :  { %377 = vperm.xlu1 %8453, %v184_v14   ;;  %372 = vperm.xlu0 %8452, %v183_v15  }
  0x56   :  { %457 = vperm.xlu2 %8454, %v200_v16  }
  0x57   :  { %452 = vperm.xlu1 %8453, %v199_v17   ;;  %447 = vperm.xlu0 %8452, %v198_v18  }
  0x5e   :  { %467 = vperm.xlu2 %8454, %v202_v19  }
  0x5f   :  { %462 = vperm.xlu1 %8453, %v201_v20  }
  0x67   :  { %477 = vperm.xlu1 %8453, %v204_v21  }
  0x6f   :  { %487 = vperm.xlu1 %8453, %v206_v22  }
  0x88   :  { %v403_v30 = vpop.permute.xlu2 %402 }
  0x89   :  { %v1486_v41 = vmul.f32 %v9115_v37, %v403_v30  ;;  %v1859_v50 = vmul.f32 %v9117_v38, %v403_v30  ;;  %v1297_v59 = vmul.f32 %v9113_v36, %v403_v30 }
  0x90   :  { %v408_v32 = vpop.permute.xlu2 %407 }
  0x91   :  { %v1860_v51 = vmul.f32 %v9117_v38, %v408_v32  ;;  %v1487_v60 = vmul.f32 %v9115_v37, %v408_v32  ;;  %v1298_v6 = vmul.f32 %v9113_v36, %v408_v32 }
  0x93   :  { %v1671_v7 = vadd.f32 %v1487_v60, %v1297_v59 }
  0x98   :  { %v423_v39 = vpop.permute.xlu2 %422 }
  0x99   :  { %v1863_v23 = vmul.f32 %v9117_v38, %v423_v39  ;;  %v1490_v32 = vmul.f32 %v9115_v37, %v423_v39  ;;  %v1301_v35 = vmul.f32 %v9113_v36, %v423_v39 }
  0xa0   :  { %v9145_v9 = vpop.permute.xlu2 %437 }
  0xa1   :  { %v393_v33 = vpop.permute.xlu1 %392  ;;  %v9111_v34 = vpop.permute.xlu0 %382 }
  0xa2   :  { %v1295_v42 = vmul.f32 %v9113_v36, %v393_v33  ;;  %v1484_v43 = vmul.f32 %v9115_v37, %v393_v33  ;;  %v1293_v46 = vmul.f32 %v9113_v36, %v9111_v34  ;;  %v1857_v52 = vmul.f32 %v9117_v38, %v393_v33 }
  0xa9   :  { %v398_v40 = vpop.permute.xlu1 %397  ;;  %v9123_v45 = vpop.permute.xlu0 %387 }
  0xaa   :  { %v1296_v44 = vmul.f32 %v9113_v36, %v398_v40  ;;  %v1485_v47 = vmul.f32 %v9115_v37, %v398_v40  ;;  %v1294_v48 = vmul.f32 %v9113_v36, %v9123_v45  ;;  %v1483_v49 = vmul.f32 %v9115_v37, %v9123_v45 }
  0xab   :  { %v1858_v56 = vmul.f32 %v9117_v38, %v398_v40 }
  0xac   :  { %v1670_v53 = vadd.f32 %v1486_v41, %v1296_v44  ;;  %v1669_v55 = vadd.f32 %v1485_v47, %v1295_v42  ;;  %v1667_v57 = vadd.f32 %v1483_v49, %v1293_v46  ;;  %v1668_v58 = vadd.f32 %v1484_v43, %v1294_v48  ;;  %v443_v48 = vpop.permute.xlu2 %442 }
  0xae   :  { %v2044_v61 = vadd.f32 %v1860_v51, %v1670_v53  ;;  %v2041_v62 = vadd.f32 %v1857_v52, %v1667_v57  ;;  %v2042_v63 = vadd.f32 %v1858_v56, %v1668_v58  ;;  %v2043_v0 = vadd.f32 %v1859_v50, %v1669_v55  ;;  %v203_v57 = vld [vmem:[%s12408_s0 + $0xa0] sm:$0xff] }
  0xaf   :  { %v1866_v53 = vmul.f32 %v9117_v38, %v9145_v9 }
  0xb0   :  { %v2232_v1 = vadd.f32 %v9135_v54, %v2044_v61  ;;  %v2231_v3 = vadd.f32 %v9135_v54, %v2043_v0  ;;  %v2229_v4 = vadd.f32 %v9135_v54, %v2041_v62  ;;  %v2230_v5 = vadd.f32 %v9135_v54, %v2042_v63 }
  0xb1   :  { %v418_v2 = vpop.permute.xlu1 %417  ;;  %v413_v8 = vpop.permute.xlu0 %412 }
  0xb2   :  { %v1489_v10 = vmul.f32 %v9115_v37, %v418_v2  ;;  %v1299_v11 = vmul.f32 %v9113_v36, %v413_v8  ;;  %v1488_v12 = vmul.f32 %v9115_v37, %v413_v8  ;;  %v1862_v13 = vmul.f32 %v9117_v38, %v418_v2 }
  0xb3   :  { %v1861_v14 = vmul.f32 %v9117_v38, %v413_v8  ;;  %v2415_v15 = vmax.f32 %v2231_v3, 0.0  ;;  %v2416_v16 = vmax.f32 %v2232_v1, 0.0  ;;  %v2413_v19 = vmax.f32 %v2229_v4, 0.0 }
  0xb4   :  { %v1672_v17 = vadd.f32 %v1488_v12, %v1298_v6  ;;  %v1673_v18 = vadd.f32 %v1489_v10, %v1299_v11  ;;  %v2414_v20 = vmax.f32 %v2230_v5, 0.0  ;;  %v1300_v26 = vmul.f32 %v9113_v36, %v418_v2  ;;  %v458_v10 = vpop.permute.xlu2 %457  ;;  %v205_v11 = vld [vmem:[%s12408_s0 + $0xb0] sm:$0xff] }
  0xb5   :  { %v2045_v21 = vadd.f32 %v1861_v14, %v1671_v7  ;;  %v9152_v22 = vmax.f32 %v2415_v15, %v2416_v16  ;;  %v1493_v1 = vmul.f32 %v9115_v37, %v9145_v9  ;;  %v1494_v7 = vmul.f32 %v9115_v37, %v443_v48 }
  0xb6   :  { %v9155_v24 = vmax.f32 %v2413_v19, %v2414_v20  ;;  %v2046_v25 = vadd.f32 %v1862_v13, %v1672_v17  ;;  %v2047_v28 = vadd.f32 %v1863_v23, %v1673_v18  ;;  %v1674_v43 = vadd.f32 %v1490_v32, %v1300_v26 }
  0xb7   :  { %8345 = vmatmul.msk.f32.vlgmr.msra.gmra.mxu1 %vm3047_vm0, %v9152_v22  ;;  %v2233_v27 = vadd.f32 %v9135_v54, %v2045_v21  ;;  %v1867_v8 = vmul.f32 %v9117_v38, %v443_v48  ;;  %v1304_v12 = vmul.f32 %v9113_v36, %v9145_v9  ;;  %v1305_v15 = vmul.f32 %v9113_v36, %v443_v48 }
  0xb8   :  { %v8455_v29 = vpack.i.bf16 %v9152_v22, %v9155_v24  ;;  %v2234_v31 = vadd.f32 %v9135_v54, %v2046_v25  ;;  %v2235_v49 = vadd.f32 %v9135_v54, %v2047_v28  ;;  %v207_v28 = vld [vmem:[%s12408_s0 + $0xc0] sm:$0xff]  ;;  %v1870_v32 = vmul.f32 %v9117_v38, %v458_v10 }
  0xb9   :  { %v433_v30 = vpop.permute.xlu1 %432  ;;  %v428_v33 = vpop.permute.xlu0 %427  ;;  %v2417_v46 = vmax.f32 %v2233_v27, 0.0  ;;  %v1678_v20 = vadd.f32 %v1494_v7, %v1304_v12  ;;  %v212_v12 = vld [vmem:[%s12408_s0 + $0xe8] sm:$0xff] }
  0xba   :  { %8456 = vrot.lane.b32.xlu0 %v8455_v29, %s8953_s12  ;;  %v1492_v40 = vmul.f32 %v9115_v37, %v433_v30  ;;  %v1302_v41 = vmul.f32 %v9113_v36, %v428_v33  ;;  %v1491_v42 = vmul.f32 %v9115_v37, %v428_v33  ;;  %v1864_v44 = vmul.f32 %v9117_v38, %v428_v33 }
  0xbb   :  { %v2418_v47 = vmax.f32 %v2234_v31, 0.0  ;;  %v1865_v55 = vmul.f32 %v9117_v38, %v433_v30  ;;  %v1303_v58 = vmul.f32 %v9113_v36, %v433_v30  ;;  %v2419_v62 = vmax.f32 %v2235_v49, 0.0 }
  0xbc   :  { %v1675_v50 = vadd.f32 %v1491_v42, %v1301_v35  ;;  %v1676_v51 = vadd.f32 %v1492_v40, %v1302_v41  ;;  %v2048_v39 = vadd.f32 %v1864_v44, %v1674_v43  ;;  %v1497_v40 = vmul.f32 %v9115_v37, %v458_v10  ;;  %v208_v41 = vld [vmem:[%s12408_s0 + $0xc8] sm:$0xff]  ;;  %v9227_v42 = vpop.permute.xlu2 %467 }
  0xbd   :  { %v9172_v52 = vmax.f32 %v2417_v46, %v2418_v47  ;;  %v1677_v3 = vadd.f32 %v1493_v1, %v1303_v58  ;;  %v1308_v49 = vmul.f32 %v9113_v36, %v458_v10  ;;  %v209_v58 = vld [vmem:[%s12408_s0 + $0xd0] sm:$0xff]  ;;  %v211_v10 = vld [vmem:[%s12408_s0 + $0xe0] sm:$0xff] }
  0xbe   :  { %v2236_v56 = vadd.f32 %v9135_v54, %v2048_v39  ;;  %v2049_v63 = vadd.f32 %v1865_v55, %v1675_v50  ;;  %v2050_v0 = vadd.f32 %v1866_v53, %v1676_v51  ;;  %v1872_v55 = vmul.f32 %v9117_v38, %v9227_v42 }
  0xbf   :  { %8346 = vmatmul.msk.f32.gmra.mxu1 %vm3047_vm0, %v9172_v52  ;;  %v2051_v13 = vadd.f32 %v1867_v8, %v1677_v3  ;;  %v210_v3 = vld [vmem:[%s12408_s0 + $0xd8] sm:$0xff] }
  0xc0   :  { %v2420_v60 = vmax.f32 %v2236_v56, 0.0  ;;  %v2237_v5 = vadd.f32 %v9135_v54, %v2049_v63  ;;  %v2238_v6 = vadd.f32 %v9135_v54, %v2050_v0 }
  0xc1   :  { %v9184_v59 = vpop.permute.xlu1 %377  ;;  %v9186_v61 = vpop.permute.xlu0 %372  ;;  %v2239_v29 = vadd.f32 %v9135_v54, %v2051_v13 }
  0xc2   :  { %472 = vperm.xlu0 %8452, %v203_v57   ;;  %v9190_v2 = vmax.f32 %v2419_v62, %v2420_v60  ;;  %v2421_v18 = vmax.f32 %v2237_v5, 0.0  ;;  %v2422_v19 = vmax.f32 %v2238_v6, 0.0 }
  0xc3   :  { %v2423_v46 = vmax.f32 %v2239_v29, 0.0  ;;  %v3145_v29 = vld [vmem:[#allocation7 + $0x38] sm:$0xff] }
  0xc4   :  { %v8460_v4 = vpack.i.bf16 %v9190_v2, %v9172_v52  ;;  %v9216_v31 = vmax.f32 %v2421_v18, %v2422_v19  ;;  %v214_v18 = vld [vmem:[%s12408_s0 + $0xf8] sm:$0xff]  ;;  %v3151_v19 = vld [vmem:[#allocation7 + $0x68] sm:$0xff] }
  0xc6   :  { %8461 = vrot.lane.b32.xlu2 %v8460_v4, %s8953_s12 }
  0xc7   :  { %8347 = vmatmul.msk.f32.gmra.mxu1 %vm3047_vm0, %v9190_v2 }
  0xc9   :  { %v453_v14 = vpop.permute.xlu1 %452  ;;  %v448_v17 = vpop.permute.xlu0 %447 }
  0xca   :  { %v1496_v16 = vmul.f32 %v9115_v37, %v453_v14  ;;  %482 = vperm.xlu0 %8452, %v205_v11   ;;  %v1306_v21 = vmul.f32 %v9113_v36, %v448_v17  ;;  %v1495_v23 = vmul.f32 %v9115_v37, %v448_v17  ;;  %v1868_v25 = vmul.f32 %v9117_v38, %v448_v17  ;;  %v213_v17 = vld [vmem:[%s12408_s0 + $0xf0] sm:$0xff] }
  0xcb   :  { %v1307_v30 = vmul.f32 %v9113_v36, %v453_v14  ;;  %v1869_v33 = vmul.f32 %v9117_v38, %v453_v14 }
  0xcc   :  { %v1679_v26 = vadd.f32 %v1495_v23, %v1305_v15  ;;  %v1680_v27 = vadd.f32 %v1496_v16, %v1306_v21  ;;  %v2052_v9 = vadd.f32 %v1868_v25, %v1678_v20  ;;  %v3153_v15 = vld [vmem:[#allocation7 + $0x78] sm:$0xff]  ;;  %v3152_v16 = vld [vmem:[#allocation7 + $0x70] sm:$0xff]  ;;  %v3150_v21 = vld [vmem:[#allocation7 + $0x60] sm:$0xff] }
  0xcd   :  { %v1681_v50 = vadd.f32 %v1497_v40, %v1307_v30  ;;  %3347 = vmatpush.msra.mxu0 %v3153_v15  ;;  %v215_v20 = vld [vmem:[%s12408_s0 + $0x100] sm:$0xff]  ;;  %v216_v25 = vld [vmem:[%s12408_s0 + $0x108] sm:$0xff]  ;;  %v218_v30 = vld [vmem:[%s12408_s0 + $0x118] sm:$0xff] }
  0xce   :  { %v2240_v35 = vadd.f32 %v9135_v54, %v2052_v9  ;;  %492 = vperm.xlu2 %8454, %v207_v28   ;;  %v2053_v47 = vadd.f32 %v1869_v33, %v1679_v26  ;;  %v2054_v48 = vadd.f32 %v1870_v32, %v1680_v27  ;;  %v3149_v23 = vld [vmem:[#allocation7 + $0x58] sm:$0xff]  ;;  %v3148_v26 = vld [vmem:[#allocation7 + $0x50] sm:$0xff]  ;;  %v3147_v27 = vld [vmem:[#allocation7 + $0x48] sm:$0xff] }
  0xcf   :  { %8348 = vmatmul.msk.f32.gmra.mxu1 %vm3047_vm0, %v9216_v31  ;;  %3348 = vmatpush.msra.mxu0 %v3152_v16  ;;  %v217_v9 = vld [vmem:[%s12408_s0 + $0x110] sm:$0xff]  ;;  %v3146_v28 = vld [vmem:[#allocation7 + $0x40] sm:$0xff]  ;;  %v222_v33 = vld [vmem:[%s12408_s0 + $0x138] sm:$0xff] }
  0xd0   :  { %v2424_v43 = vmax.f32 %v2240_v35, 0.0  ;;  %v2241_v62 = vadd.f32 %v9135_v54, %v2053_v47  ;;  %v2242_v63 = vadd.f32 %v9135_v54, %v2054_v48  ;;  %v220_v32 = vld [vmem:[%s12408_s0 + $0x128] sm:$0xff]  ;;  %v3144_v35 = vld [vmem:[#allocation7 + $0x30] sm:$0xff] }
  0xd1   :  { %v9229_v44 = vpop.permute.xlu1 %462  ;;  %3349 = vmatpush.msra.mxu0 %v3151_v19  ;;  %v3143_v40 = vld [vmem:[#allocation7 + $0x28] sm:$0xff]  ;;  %v3138_v48 = vld [vmem:[#allocation7] sm:$0xff] }
  0xd2   :  { %v1498_v51 = vmul.f32 %v9115_v37, %v9229_v44  ;;  %v1871_v39 = vmul.f32 %v9117_v38, %v9229_v44  ;;  %497 = vperm.xlu0 %8452, %v208_v41   ;;  %v9236_v53 = vmax.f32 %v2423_v46, %v2424_v43  ;;  %v2425_v5 = vmax.f32 %v2241_v62, 0.0  ;;  %v3142_v41 = vld [vmem:[#allocation7 + $0x20] sm:$0xff]  ;;  %v3141_v43 = vld [vmem:[#allocation7 + $0x18] sm:$0xff]  ;;  %v3140_v46 = vld [vmem:[#allocation7 + $0x10] sm:$0xff] }
  0xd3   :  { %v2426_v6 = vmax.f32 %v2242_v63, 0.0  ;;  %3350 = vmatpush.msra.mxu0 %v3150_v21  ;;  %v3139_v47 = vld [vmem:[#allocation7 + $0x8] sm:$0xff] }
  0xd4   :  { %v1682_v56 = vadd.f32 %v1498_v51, %v1308_v49  ;;  %v2055_v57 = vadd.f32 %v1871_v39, %v1681_v50  ;;  %v8465_v60 = vpack.i.bf16 %v9236_v53, %v9216_v31  ;;  %v1292_v49 = vmul.f32 %v9113_v36, %v9184_v59 }
  0xd5   :  { %v9263_v13 = vmax.f32 %v2425_v5, %v2426_v6  ;;  %3351 = vmatpush.msra.mxu0 %v3149_v23  ;;  %v1481_v50 = vmul.f32 %v9115_v37, %v9184_v59  ;;  %v1291_v51 = vmul.f32 %v9113_v36, %v9186_v61  ;;  %v1482_v39 = vmul.f32 %v9115_v37, %v9111_v34 }
  0xd6   :  { %v2056_v0 = vadd.f32 %v1872_v55, %v1682_v56  ;;  %v2243_v1 = vadd.f32 %v9135_v54, %v2055_v57  ;;  %8466 = vrot.lane.b32.xlu1 %v8465_v60, %s8953_s12  ;;  %502 = vperm.xlu2 %8454, %v209_v58   ;;  %v1855_v57 = vmul.f32 %v9117_v38, %v9111_v34 }
  0xd7   :  { %8349 = vmatmul.msk.f32.gmra.mxu1 %vm3047_vm0, %v9236_v53  ;;  %3352 = vmatpush.msra.mxu0 %v3148_v26  ;;  %v1666_v55 = vadd.f32 %v1482_v39, %v1292_v49  ;;  %v1665_v56 = vadd.f32 %v1481_v50, %v1291_v51  ;;  %v1856_v58 = vmul.f32 %v9117_v38, %v9123_v45 }
  0xd8   :  { %v2244_v4 = vadd.f32 %v9135_v54, %v2056_v0  ;;  %v2427_v7 = vmax.f32 %v2243_v1, 0.0  ;;  %v1309_v34 = vmul.f32 %v9113_v36, %v9229_v44  ;;  %v1499_v45 = vmul.f32 %v9115_v37, %v9227_v42 }
  0xd9   :  { %3353 = vmatpush.msra.mxu0 %v3147_v27  ;;  %v2040_v60 = vadd.f32 %v1856_v58, %v1666_v55  ;;  %v2039_v62 = vadd.f32 %v1855_v57, %v1665_v56 }
  0xda   :  { %v2428_v8 = vmax.f32 %v2244_v4, 0.0  ;;  %507 = vperm.xlu0 %8452, %v210_v3  }
  0xdb   :  { %3354 = vmatpush.msra.mxu0 %v3146_v28  ;;  %v2227_v63 = vadd.f32 %v9135_v54, %v2039_v62  ;;  %v2228_v59 = vadd.f32 %v9135_v54, %v2040_v60 }
  0xdc   :  { %v9258_v11 = vmax.f32 %v2427_v7, %v2428_v8  ;;  %v478_v7 = vpop.permute.xlu1 %477 }
  0xdd   :  { %3355 = vmatpush.msra.mxu0 %v3145_v29  ;;  %v2411_v0 = vmax.f32 %v2227_v63, 0.0  ;;  %v2412_v1 = vmax.f32 %v2228_v59, 0.0  ;;  %v1312_v28 = vmul.f32 %v9113_v36, %v478_v7 }
  0xde   :  { %512 = vperm.xlu1 %8453, %v211_v10   ;;  %v8470_v14 = vpack.i.bf16 %v9258_v11, %v9263_v13  ;;  %517 = vperm.xlu2 %8454, %v212_v12   ;;  %v1310_v12 = vmul.f32 %v9113_v36, %v9227_v42  ;;  %v1501_v42 = vmul.f32 %v9115_v37, %v478_v7 }
  0xdf   :  { %8350 = vmatmul.msk.f32.gmra.mxu1 %vm3047_vm0, %v9263_v13  ;;  %3356 = vmatpush.msra.mxu0 %v3144_v35  ;;  %v2595_v4 = vmax.f32 %v2411_v0, %v2412_v1 }
  0xe1   :  { %3357 = vmatpush.msra.mxu0 %v3143_v40 }
  0xe2   :  { %8471 = vrot.lane.b32.xlu0 %v8470_v14, %s8953_s12  ;;  %v1683_v14 = vadd.f32 %v1499_v45, %v1309_v34 }
  0xe3   :  { %3358 = vmatpush.msra.mxu0 %v3142_v41 }
  0xe4   :  { %v488_v26 = vpop.permute.xlu1 %487 }
  0xe5   :  { %3359 = vmatpush.msra.mxu0 %v3141_v43  ;;  %v1503_v41 = vmul.f32 %v9115_v37, %v488_v26  ;;  %v1876_v43 = vmul.f32 %v9117_v38, %v488_v26  ;;  %v1314_v56 = vmul.f32 %v9113_v36, %v488_v26 }
  0xe6   :  { %522 = vperm.xlu1 %8453, %v213_v17   ;;  %527 = vperm.xlu2 %8454, %v214_v18   ;;  %v1874_v17 = vmul.f32 %v9117_v38, %v478_v7 }
  0xe7   :  { %8351 = vmatmul.msk.f32.gmra.mxu1 %vm3047_vm0, %v9258_v11  ;;  %3360 = vmatpush.msra.mxu0 %v3140_v46 }
  0xe9   :  { %3361 = vmatpush.msra.mxu0 %v3139_v47 }
  0xea   :  { %532 = vperm.xlu0 %8452, %v215_v20  }
  0xeb   :  { %3362 = vmatpush.msra.mxu0 %v3138_v48 }
  0xee   :  { %537 = vperm.xlu1 %8453, %v216_v25  }
  0xf2   :  { %542 = vperm.xlu0 %8452, %v217_v9  }
  0xf6   :  { %547 = vperm.xlu1 %8453, %v218_v30  }
  0xfa   :  { %557 = vperm.xlu0 %8452, %v220_v32  }
 0x102   :  { %567 = vperm.xlu0 %8452, %v222_v33  }
 0x120   :  { %v8462_v5 = vpop.permute.xlu2 %8461 }
 0x121   :  { %v8463_v27 = vunpack.i.l.bf16 %v8462_v5  ;;  %v8464_v58 = vunpack.i.h.bf16 %v8462_v5 }
 0x123   :  { %v3050_v48 = vsel %vm3047_vm0, %v9152_v22, %v8463_v27  ;;  %v3051_v7 = vsel %vm3047_vm0, %v9172_v52, %v8464_v58 }
 0x128   :  { %v493_v21 = vpop.permute.xlu2 %492 }
 0x129   :  { %v1504_v50 = vmul.f32 %v9115_v37, %v493_v21  ;;  %v1877_v57 = vmul.f32 %v9117_v38, %v493_v21  ;;  %v1315_v62 = vmul.f32 %v9113_v36, %v493_v21 }
 0x12b   :  { %v1688_v63 = vadd.f32 %v1504_v50, %v1314_v56 }
 0x12c   :  { %v8457_v61 = vpop.permute.xlu0 %8456 }
 0x12d   :  { %v8458_v3 = vunpack.i.l.bf16 %v8457_v61  ;;  %v8459_v8 = vunpack.i.h.bf16 %v8457_v61 }
 0x12f   :  { %v3048_v6 = vsel %vm3047_vm0, %v2595_v4, %v8458_v3  ;;  %v3049_v44 = vsel %vm3047_vm0, %v9155_v24, %v8459_v8 }
 0x130   :  { %3363 = vmatmul.f32.vlgmr.msra.gmra.mxu0 %v3048_v6  ;;  %v503_v60 = vpop.permute.xlu2 %502 }
 0x131   :  { %v1879_v8 = vmul.f32 %v9117_v38, %v503_v60  ;;  %v1506_v52 = vmul.f32 %v9115_v37, %v503_v60 }
 0x134   :  { %v473_v10 = vpop.permute.xlu0 %472 }
 0x135   :  { %v1500_v15 = vmul.f32 %v9115_v37, %v473_v10  ;;  %v1873_v16 = vmul.f32 %v9117_v38, %v473_v10  ;;  %v1311_v20 = vmul.f32 %v9113_v36, %v473_v10 }
 0x137   :  { %v1684_v18 = vadd.f32 %v1500_v15, %v1310_v12  ;;  %v2057_v19 = vadd.f32 %v1873_v16, %v1683_v14  ;;  %v1685_v29 = vadd.f32 %v1501_v42, %v1311_v20 }
 0x138   :  { %3366 = vmatmul.f32.gmra.mxu0 %v3049_v44  ;;  %v518_v44 = vpop.permute.xlu2 %517 }
 0x139   :  { %v2058_v23 = vadd.f32 %v1874_v17, %v1684_v18  ;;  %v2245_v25 = vadd.f32 %v9135_v54, %v2057_v19  ;;  %v1509_v56 = vmul.f32 %v9115_v37, %v518_v44 }
 0x13b   :  { %v2246_v9 = vadd.f32 %v9135_v54, %v2058_v23  ;;  %v2429_v32 = vmax.f32 %v2245_v25, 0.0 }
 0x13c   :  { %v483_v30 = vpop.permute.xlu0 %482 }
 0x13d   :  { %v1313_v24 = vmul.f32 %v9113_v36, %v483_v30  ;;  %v1502_v33 = vmul.f32 %v9115_v37, %v483_v30  ;;  %v1875_v35 = vmul.f32 %v9117_v38, %v483_v30  ;;  %v2430_v40 = vmax.f32 %v2246_v9, 0.0  ;;  %v219_v30 = vld [vmem:[%s12408_s0 + $0x120] sm:$0xff] }
 0x13f   :  { %v1686_v46 = vadd.f32 %v1502_v33, %v1312_v28  ;;  %v2059_v47 = vadd.f32 %v1875_v35, %v1685_v29  ;;  %v9334_v49 = vmax.f32 %v2429_v32, %v2430_v40  ;;  %v1687_v51 = vadd.f32 %v1503_v41, %v1313_v24 }
 0x140   :  { %3369 = vmatmul.f32.gmra.mxu0 %v3050_v48  ;;  %v1317_v28 = vmul.f32 %v9113_v36, %v503_v60  ;;  %v1882_v35 = vmul.f32 %v9117_v38, %v518_v44 }
 0x141   :  { %8352 = vmatmul.msk.f32.gmra.mxu1 %vm3047_vm0, %v9334_v49  ;;  %v2060_v39 = vadd.f32 %v1876_v43, %v1686_v46  ;;  %v2247_v55 = vadd.f32 %v9135_v54, %v2059_v47  ;;  %v2061_v0 = vadd.f32 %v1877_v57, %v1687_v51  ;;  %v528_v57 = vpop.permute.xlu2 %527 }
 0x143   :  { %v2248_v22 = vadd.f32 %v9135_v54, %v2060_v39  ;;  %v2431_v3 = vmax.f32 %v2247_v55, 0.0  ;;  %v2249_v14 = vadd.f32 %v9135_v54, %v2061_v0  ;;  %v221_v0 = vld [vmem:[%s12408_s0 + $0x130] sm:$0xff] }
 0x144   :  { %v498_v59 = vpop.permute.xlu0 %497 }
 0x145   :  { %v1505_v1 = vmul.f32 %v9115_v37, %v498_v59  ;;  %v1878_v61 = vmul.f32 %v9117_v38, %v498_v59  ;;  %v2432_v4 = vmax.f32 %v2248_v22, 0.0  ;;  %v1316_v10 = vmul.f32 %v9113_v36, %v498_v59 }
 0x146   :  { %v2433_v23 = vmax.f32 %v2249_v14, 0.0 }
 0x147   :  { %v1689_v6 = vadd.f32 %v1505_v1, %v1315_v62  ;;  %v2062_v34 = vadd.f32 %v1878_v61, %v1688_v63  ;;  %v9348_v5 = vmax.f32 %v2431_v3, %v2432_v4  ;;  %v1690_v20 = vadd.f32 %v1506_v52, %v1316_v10  ;;  %v223_v52 = vld [vmem:[%s12408_s0 + $0x140] sm:$0xff] }
 0x148   :  { %3372 = vmatmul.f32.gmra.mxu0 %v3051_v7  ;;  %v8467_v45 = vpop.permute.xlu1 %8466  ;;  %v1320_v62 = vmul.f32 %v9113_v36, %v518_v44  ;;  %v1884_v3 = vmul.f32 %v9117_v38, %v528_v57 }
 0x149   :  { %8353 = vmatmul.msk.f32.gmra.mxu1 %vm3047_vm0, %v9348_v5  ;;  %v8475_v12 = vpack.i.bf16 %v9348_v5, %v9334_v49  ;;  %v8468_v15 = vunpack.i.l.bf16 %v8467_v45  ;;  %v2250_v16 = vadd.f32 %v9135_v54, %v2062_v34  ;;  %v2063_v17 = vadd.f32 %v1879_v8, %v1689_v6 }
 0x14a   :  { %v8469_v40 = vunpack.i.h.bf16 %v8467_v45 }
 0x14b   :  { %8476 = vrot.lane.b32.xlu2 %v8475_v12, %s8953_s12  ;;  %v2434_v19 = vmax.f32 %v2250_v16, 0.0  ;;  %v3052_v25 = vsel %vm3047_vm0, %v9190_v2, %v8468_v15  ;;  %v2251_v9 = vadd.f32 %v9135_v54, %v2063_v17  ;;  %v1511_v16 = vmul.f32 %v9115_v37, %v528_v57 }
 0x14c   :  { %v508_v18 = vpop.permute.xlu0 %507  ;;  %v3053_v58 = vsel %vm3047_vm0, %v9216_v31, %v8469_v40  ;;  %v1322_v17 = vmul.f32 %v9113_v36, %v528_v57 }
 0x14d   :  { %v1880_v21 = vmul.f32 %v9117_v38, %v508_v18  ;;  %v1507_v42 = vmul.f32 %v9115_v37, %v508_v18  ;;  %v9364_v27 = vmax.f32 %v2433_v23, %v2434_v19  ;;  %v1318_v32 = vmul.f32 %v9113_v36, %v508_v18 }
 0x14e   :  { %v2435_v47 = vmax.f32 %v2251_v9, 0.0 }
 0x14f   :  { %v2064_v26 = vadd.f32 %v1880_v21, %v1690_v20  ;;  %v1691_v41 = vadd.f32 %v1507_v42, %v1317_v28  ;;  %v224_v42 = vld [vmem:[%s12408_s0 + $0x148] sm:$0xff] }
 0x150   :  { %3375 = vmatmul.f32.gmra.mxu0 %v3052_v25  ;;  %v513_v29 = vpop.permute.xlu1 %512 }
 0x151   :  { %v2252_v24 = vadd.f32 %v9135_v54, %v2064_v26  ;;  %8354 = vmatmul.msk.f32.gmra.mxu1 %vm3047_vm0, %v9364_v27  ;;  %v1508_v2 = vmul.f32 %v9115_v37, %v513_v29  ;;  %v1881_v33 = vmul.f32 %v9117_v38, %v513_v29  ;;  %v1319_v48 = vmul.f32 %v9113_v36, %v513_v29 }
 0x153   :  { %v2436_v43 = vmax.f32 %v2252_v24, 0.0  ;;  %v1692_v46 = vadd.f32 %v1508_v2, %v1318_v32  ;;  %552 = vperm.xlu2 %8454, %v219_v30   ;;  %v2065_v51 = vadd.f32 %v1881_v33, %v1691_v41  ;;  %v1693_v63 = vadd.f32 %v1509_v56, %v1319_v48  ;;  %v226_v56 = vld [vmem:[%s12408_s0 + $0x158] sm:$0xff] }
 0x154   :  { %v9379_v50 = vpop.permute.xlu0 %8471 }
 0x155   :  { %v9381_v39 = vmax.f32 %v2435_v47, %v2436_v43  ;;  %v2066_v55 = vadd.f32 %v1882_v35, %v1692_v46  ;;  %v2253_v61 = vadd.f32 %v9135_v54, %v2065_v51  ;;  %v8473_v4 = vunpack.i.l.bf16 %v9379_v50  ;;  %v225_v46 = vld [vmem:[%s12408_s0 + $0x150] sm:$0xff] }
 0x156   :  { %v8474_v30 = vunpack.i.h.bf16 %v9379_v50 }
 0x157   :  { %v8480_v60 = vpack.i.bf16 %v9381_v39, %v9364_v27  ;;  %v2254_v22 = vadd.f32 %v9135_v54, %v2066_v55  ;;  %v2437_v15 = vmax.f32 %v2253_v61, 0.0  ;;  %v3054_v18 = vsel %vm3047_vm0, %v9236_v53, %v8473_v4 }
 0x158   :  { %3378 = vmatmul.f32.gmra.mxu0 %v3053_v58  ;;  %v523_v59 = vpop.permute.xlu1 %522  ;;  %v3055_v47 = vsel %vm3047_vm0, %v9263_v13, %v8474_v30  ;;  %v4062_v30 = vld [vmem:[#allocation10 + $0x30] sm:$0xff] }
 0x159   :  { %8481 = vrot.lane.b32.xlu1 %v8480_v60, %s8953_s12  ;;  %8355 = vmatmul.msk.f32.gmra.mxu1 %vm3047_vm0, %v9381_v39  ;;  %v1510_v31 = vmul.f32 %v9115_v37, %v523_v59  ;;  %v1883_v1 = vmul.f32 %v9117_v38, %v523_v59  ;;  %v2438_v7 = vmax.f32 %v2254_v22, 0.0  ;;  %v1321_v45 = vmul.f32 %v9113_v36, %v523_v59 }
 0x15b   :  { %v1694_v6 = vadd.f32 %v1510_v31, %v1320_v62  ;;  %v2067_v34 = vadd.f32 %v1883_v1, %v1693_v63  ;;  %562 = vperm.xlu2 %8454, %v221_v0   ;;  %v9411_v19 = vmax.f32 %v2437_v15, %v2438_v7  ;;  %v1695_v20 = vadd.f32 %v1511_v16, %v1321_v45  ;;  %v227_v63 = vld [vmem:[%s12408_s0 + $0x160] sm:$0xff]  ;;  %v228_v31 = vld [vmem:[%s12408_s0 + $0x168] sm:$0xff]  ;;  %v4086_v7 = vld [vmem:[#allocation10 + $0xf0] sm:$0xff] }
 0x15c   :  { %v533_v8 = vpop.permute.xlu0 %532  ;;  %4158 = vmatpush.msra.mxu2 %v4086_v7  ;;  %v4084_v45 = vld [vmem:[#allocation10 + $0xe0] sm:$0xff]  ;;  %v233_v15 = vld [vmem:[%s12408_s0 + $0x190] sm:$0xff]  ;;  %v234_v16 = vld [vmem:[%s12408_s0 + $0x198] sm:$0xff] }
 0x15d   :  { %v2068_v10 = vadd.f32 %v1884_v3, %v1694_v6  ;;  %v2255_v12 = vadd.f32 %v9135_v54, %v2067_v34  ;;  %v1512_v14 = vmul.f32 %v9115_v37, %v533_v8  ;;  %v1885_v23 = vmul.f32 %v9117_v38, %v533_v8  ;;  %v230_v34 = vld [vmem:[%s12408_s0 + $0x178] sm:$0xff] }
 0x15e   :  { %v1323_v29 = vmul.f32 %v9113_v36, %v533_v8  ;;  %v4082_v8 = vld [vmem:[#allocation10 + $0xd0] sm:$0xff]  ;;  %4159 = vmatpush.msra.mxu2 %v4084_v45 }
 0x15f   :  { %v2256_v44 = vadd.f32 %v9135_v54, %v2068_v10  ;;  %v2439_v21 = vmax.f32 %v2255_v12, 0.0  ;;  %v1696_v26 = vadd.f32 %v1512_v14, %v1322_v17  ;;  %v2069_v35 = vadd.f32 %v1885_v23, %v1695_v20  ;;  %v231_v10 = vld [vmem:[%s12408_s0 + $0x180] sm:$0xff]  ;;  %v4080_v12 = vld [vmem:[#allocation10 + $0xc0] sm:$0xff]  ;;  %v4118_v23 = vld [vmem:[#allocation10 + $0x1f0] sm:$0xff] }
 0x160   :  { %3381 = vmatmul.f32.gmra.mxu0 %v3054_v18  ;;  %v538_v25 = vpop.permute.xlu1 %537  ;;  %v232_v14 = vld [vmem:[%s12408_s0 + $0x188] sm:$0xff]  ;;  %4160 = vmatpush.msra.mxu2 %v4082_v8  ;;  %v4074_v18 = vld [vmem:[#allocation10 + $0x90] sm:$0xff]  ;;  %v9505_v8 = vld [vmem:[#allocation8] ss:$0 sm:$0xff] }
 0x161   :  { %572 = vperm.xlu1 %8453, %v223_v52   ;;  %8356 = vmatmul.msk.f32.gmra.mxu1 %vm3047_vm0, %v9411_v19  ;;  %v1513_v53 = vmul.f32 %v9115_v37, %v538_v25  ;;  %v1886_v9 = vmul.f32 %v9117_v38, %v538_v25  ;;  %v2440_v28 = vmax.f32 %v2256_v44, 0.0  ;;  %v1324_v50 = vmul.f32 %v9113_v36, %v538_v25  ;;  %v4078_v52 = vld [vmem:[#allocation10 + $0xb0] sm:$0xff]  ;;  %v4076_v17 = vld [vmem:[#allocation10 + $0xa0] sm:$0xff] }
 0x162   :  { %v2257_v13 = vadd.f32 %v9135_v54, %v2069_v35  ;;  %4161 = vmatpush.msra.mxu2 %v4080_v12  ;;  %v236_v44 = vld [vmem:[%s12408_s0 + $0x1a8] sm:$0xff]  ;;  %4303 = vmatpush.msra.mxu3 %v4118_v23 }
 0x163   :  { %v2070_v32 = vadd.f32 %v1886_v9, %v1696_v26  ;;  %577 = vperm.xlu2 %8454, %v224_v42   ;;  %v9424_v24 = vmax.f32 %v2439_v21, %v2440_v28  ;;  %v1697_v2 = vadd.f32 %v1513_v53, %v1323_v29  ;;  %v4072_v20 = vld [vmem:[#allocation10 + $0x80] sm:$0xff]  ;;  %v4070_v21 = vld [vmem:[#allocation10 + $0x70] sm:$0xff] }
 0x164   :  { %v9426_v33 = vpop.permute.xlu0 %542  ;;  %v2441_v59 = vmax.f32 %v2257_v13, 0.0  ;;  %4162 = vmatpush.msra.mxu2 %v4078_v52  ;;  %v4068_v25 = vld [vmem:[#allocation10 + $0x60] sm:$0xff]  ;;  %v4066_v26 = vld [vmem:[#allocation10 + $0x50] sm:$0xff] }
 0x165   :  { %v1887_v40 = vmul.f32 %v9117_v38, %v9426_v33  ;;  %v8485_v41 = vpack.i.bf16 %v9424_v24, %v9411_v19  ;;  %v1514_v43 = vmul.f32 %v9115_v37, %v9426_v33  ;;  %v2258_v48 = vadd.f32 %v9135_v54, %v2070_v32  ;;  %v4116_v42 = vld [vmem:[#allocation10 + $0x1e0] sm:$0xff]  ;;  %v4114_v53 = vld [vmem:[#allocation10 + $0x1d0] sm:$0xff] }
 0x166   :  { %4163 = vmatpush.msra.mxu2 %v4076_v17  ;;  %4304 = vmatpush.msra.mxu3 %v4116_v42  ;;  %v238_v9 = vld [vmem:[%s12408_s0 + $0x1b8] sm:$0xff]  ;;  %v4064_v28 = vld [vmem:[#allocation10 + $0x40] sm:$0xff]  ;;  %v9513_v17 = vld [vmem:[#allocation5] ss:$0 sm:$0xff] }
 0x167   :  { %8486 = vrot.lane.b32.xlu0 %v8485_v41, %s8953_s12  ;;  %v2071_v51 = vadd.f32 %v1887_v40, %v1697_v2  ;;  %v1698_v57 = vadd.f32 %v1514_v43, %v1324_v50  ;;  %v2442_v60 = vmax.f32 %v2258_v48, 0.0  ;;  %v4112_v29 = vld [vmem:[#allocation10 + $0x1c0] sm:$0xff]  ;;  %v4110_v32 = vld [vmem:[#allocation10 + $0x1b0] sm:$0xff]  ;;  %v3651_v50 = vpop.f32.mrf.mxu1 }
 0x168   :  { %3384 = vmatmul.f32.gmra.mxu0 %v3055_v47  ;;  %v9442_v55 = vpop.permute.xlu1 %547  ;;  %4164 = vmatpush.msra.mxu2 %v4074_v18  ;;  %v4060_v2 = vld [vmem:[#allocation10 + $0x20] sm:$0xff]  ;;  %v4058_v40 = vld [vmem:[#allocation10 + $0x10] sm:$0xff] }
 0x169   :  { %582 = vperm.xlu1 %8453, %v225_v46   ;;  %8357 = vmatmul.msk.f32.gmra.mxu1 %vm3047_vm0, %v9424_v24  ;;  %v1888_v58 = vmul.f32 %v9117_v38, %v9442_v55  ;;  %v2259_v22 = vadd.f32 %v9135_v54, %v2071_v51  ;;  %v9460_v1 = vmax.f32 %v2441_v59, %v2442_v60  ;;  %v4108_v35 = vld [vmem:[#allocation10 + $0x1a0] sm:$0xff]  ;;  %v4106_v41 = vld [vmem:[#allocation10 + $0x190] sm:$0xff] }
 0x16a   :  { %4165 = vmatpush.msra.mxu2 %v4072_v20  ;;  %4305 = vmatpush.msra.mxu3 %v4114_v53  ;;  %v4056_v43 = vld [vmem:[#allocation10] sm:$0xff]  ;;  %v4102_v47 = vld [vmem:[#allocation10 + $0x170] sm:$0xff] }
 0x16b   :  { %587 = vperm.xlu2 %8454, %v226_v56   ;;  %v2072_v62 = vadd.f32 %v1888_v58, %v1698_v57  ;;  %v2443_v61 = vmax.f32 %v2259_v22, 0.0  ;;  %v4104_v46 = vld [vmem:[#allocation10 + $0x180] sm:$0xff]  ;;  %v4098_v51 = vld [vmem:[#allocation10 + $0x150] sm:$0xff] }
 0x16c   :  { %4166 = vmatpush.msra.mxu2 %v4070_v21  ;;  %4306 = vmatpush.msra.mxu3 %v4112_v29  ;;  %v4100_v48 = vld [vmem:[#allocation10 + $0x160] sm:$0xff]  ;;  %v4094_v58 = vld [vmem:[#allocation10 + $0x130] sm:$0xff] }
 0x16d   :  { %v2260_v0 = vadd.f32 %v9135_v54, %v2072_v62  ;;  %v229_v54 = vld [vmem:[%s12408_s0 + $0x170] sm:$0xff]  ;;  %v4096_v13 = vld [vmem:[#allocation10 + $0x140] sm:$0xff]  ;;  %v1515_v62 = vmul.f32 %v9115_v37, %v9442_v55  ;;  %v4090_v59 = vld [vmem:[#allocation10 + $0x110] sm:$0xff] }
 0x16e   :  { %4167 = vmatpush.msra.mxu2 %v4068_v25  ;;  %4307 = vmatpush.msra.mxu3 %v4110_v32  ;;  %v4092_v22 = vld [vmem:[#allocation10 + $0x120] sm:$0xff] }
 0x16f   :  { %592 = vperm.xlu0 %8452, %v227_v63   ;;  %v2444_v3 = vmax.f32 %v2260_v0, 0.0  ;;  %v558_v63 = vpop.permute.xlu0 %557  ;;  %v3654_v0 = vpop.f32.mrf.mxu1 }
 0x170   :  { %4168 = vmatpush.msra.mxu2 %v4066_v26  ;;  %4308 = vmatpush.msra.mxu3 %v4108_v35  ;;  %v1517_v52 = vmul.f32 %v9115_v37, %v558_v63  ;;  %v1328_v21 = vmul.f32 %v9113_v36, %v558_v63 }
 0x171   :  { %597 = vperm.xlu1 %8453, %v228_v31   ;;  %8358 = vmatmul.msk.f32.gmra.mxu1 %vm3047_vm0, %v9460_v1  ;;  %v9464_v4 = vmax.f32 %v2443_v61, %v2444_v3  ;;  %v1325_v31 = vmul.f32 %v9113_v36, %v9426_v33 }
 0x172   :  { %4169 = vmatpush.msra.mxu2 %v4064_v28  ;;  %4309 = vmatpush.msra.mxu3 %v4106_v41 }
 0x173   :  { %v8490_v6 = vpack.i.bf16 %v9464_v4, %v9460_v1 }
 0x174   :  { %4170 = vmatpush.msra.mxu2 %v4062_v30  ;;  %4310 = vmatpush.msra.mxu3 %v4104_v46 }
 0x175   :  { %8491 = vrot.lane.b32.xlu2 %v8490_v6, %s8953_s12 }
 0x176   :  { %4171 = vmatpush.msra.mxu2 %v4060_v2  ;;  %4311 = vmatpush.msra.mxu3 %v4102_v47 }
 0x177   :  { %602 = vperm.xlu0 %8452, %v229_v54   ;;  %v4088_v54 = vld [vmem:[#allocation10 + $0x100] sm:$0xff]  ;;  %v3657_v28 = vpop.f32.mrf.mxu1 }
 0x178   :  { %4172 = vmatpush.msra.mxu2 %v4058_v40  ;;  %4312 = vmatpush.msra.mxu3 %v4100_v48 }
 0x179   :  { %607 = vperm.xlu1 %8453, %v230_v34   ;;  %8359 = vmatmul.msk.f32.gmra.mxu1 %vm3047_vm0, %v9464_v4  ;;  %v1699_v34 = vadd.f32 %v1515_v62, %v1325_v31 }
 0x17a   :  { %4173 = vmatpush.msra.mxu2 %v4056_v43  ;;  %4313 = vmatpush.msra.mxu3 %v4098_v51 }
 0x17c   :  { %4314 = vmatpush.msra.mxu3 %v4096_v13 }
 0x17d   :  { %612 = vperm.xlu2 %8454, %v231_v10   ;;  %v1890_v10 = vmul.f32 %v9117_v38, %v558_v63 }
 0x17e   :  { %4315 = vmatpush.msra.mxu3 %v4094_v58 }
 0x17f   :  { %617 = vperm.xlu0 %8452, %v232_v14   ;;  %v3660_v58 = vpop.f32.mrf.mxu1 }
 0x180   :  { %4316 = vmatpush.msra.mxu3 %v4092_v22 }
 0x182   :  { %4317 = vmatpush.msra.mxu3 %v4090_v59 }
 0x184   :  { %4318 = vmatpush.msra.mxu3 %v4088_v54 }
 0x185   :  { %622 = vperm.xlu2 %8454, %v233_v15  }
 0x187   :  { %627 = vperm.xlu0 %8452, %v234_v16   ;;  %v3663_v54 = vpop.f32.mrf.mxu1 }
 0x18d   :  { %637 = vperm.xlu2 %8454, %v236_v44   ;;  %v568_v44 = vpop.permute.xlu0 %567 }
 0x18e   :  { %v1892_v32 = vmul.f32 %v9117_v38, %v568_v44 }
 0x195   :  { %647 = vperm.xlu2 %8454, %v238_v9  }
 0x1a5   :  { %v8477_v56 = vpop.permute.xlu2 %8476 }
 0x1a6   :  { %v8478_v57 = vunpack.i.l.bf16 %v8477_v56  ;;  %v8479_v61 = vunpack.i.h.bf16 %v8477_v56 }
 0x1a8   :  { %v3056_v60 = vsel %vm3047_vm0, %v9258_v11, %v8478_v57  ;;  %v1326_v11 = vmul.f32 %v9113_v36, %v9442_v55  ;;  %v3057_v14 = vsel %vm3047_vm0, %v9334_v49, %v8479_v61 }
 0x1a9   :  { %3387 = vmatmul.f32.gmra.mxu0 %v3056_v60 }
 0x1ad   :  { %v553_v3 = vpop.permute.xlu2 %552  ;;  %v3364_v6 = vpop.f32.mrf.mxu0 }
 0x1ae   :  { %v1516_v7 = vmul.f32 %v9115_v37, %v553_v3  ;;  %v1889_v45 = vmul.f32 %v9117_v38, %v553_v3  ;;  %v1327_v15 = vmul.f32 %v9113_v36, %v553_v3  ;;  %v3365_v55 = vadd.f32 %v9505_v8, %v3364_v6  ;;  %v235_v6 = vld [vmem:[%s12408_s0 + $0x1a0] sm:$0xff] }
 0x1b0   :  { %v1700_v12 = vadd.f32 %v1516_v7, %v1326_v11  ;;  %v2073_v33 = vadd.f32 %v1889_v45, %v1699_v34  ;;  %v1701_v23 = vadd.f32 %v1517_v52, %v1327_v15  ;;  %v3652_v42 = vadd.f32 %v3651_v50, %v3365_v55 }
 0x1b1   :  { %3390 = vmatmul.f32.gmra.mxu0 %v3057_v14  ;;  %v1519_v15 = vmul.f32 %v9115_v37, %v568_v44 }
 0x1b2   :  { %v2074_v16 = vadd.f32 %v1890_v10, %v1700_v12  ;;  %v2261_v18 = vadd.f32 %v9513_v17, %v2073_v33  ;;  %v3921_v43 = vmax.f32 %v3652_v42, 0.0 }
 0x1b4   :  { %v2262_v20 = vadd.f32 %v9513_v17, %v2074_v16  ;;  %v2445_v29 = vmax.f32 %v2261_v18, 0.0  ;;  %v237_v16 = vld [vmem:[%s12408_s0 + $0x1b0] sm:$0xff]  ;;  %v1330_v18 = vmul.f32 %v9113_v36, %v568_v44 }
 0x1b5   :  { %v563_v25 = vpop.permute.xlu2 %562  ;;  %v3367_v49 = vpop.f32.mrf.mxu0 }
 0x1b6   :  { %v1518_v26 = vmul.f32 %v9115_v37, %v563_v25  ;;  %v1891_v53 = vmul.f32 %v9117_v38, %v563_v25  ;;  %v3368_v9 = vadd.f32 %v9505_v8, %v3367_v49  ;;  %v2446_v30 = vmax.f32 %v2262_v20, 0.0 }
 0x1b7   :  { %v1329_v33 = vmul.f32 %v9113_v36, %v563_v25 }
 0x1b8   :  { %v1702_v2 = vadd.f32 %v1518_v26, %v1328_v21  ;;  %v2075_v35 = vadd.f32 %v1891_v53, %v1701_v23  ;;  %v3655_v40 = vadd.f32 %v3654_v0, %v3368_v9  ;;  %v9522_v41 = vmax.f32 %v2445_v29, %v2446_v30  ;;  %v3666_v23 = vpop.f32.mrf.mxu1 }
 0x1b9   :  { %v1703_v20 = vadd.f32 %v1519_v15, %v1329_v33 }
 0x1ba   :  { %v3922_v46 = vmax.f32 %v3655_v40, 0.0  ;;  %v2076_v47 = vadd.f32 %v1892_v32, %v1702_v2  ;;  %8360 = vmatmul.msk.f32.gmra.mxu1 %vm3047_vm0, %v9522_v41  ;;  %v2263_v48 = vadd.f32 %v9513_v17, %v2075_v35 }
 0x1bc   :  { %v9527_v50 = vmax.f32 %v3921_v43, %v3922_v46  ;;  %v2264_v51 = vadd.f32 %v9513_v17, %v2076_v47  ;;  %v2447_v13 = vmax.f32 %v2263_v48, 0.0 }
 0x1bd   :  { %v3370_v56 = vpop.f32.mrf.mxu0  ;;  %v578_v45 = vpop.permute.xlu2 %577 }
 0x1be   :  { %4174 = vmatmul.f32.vlgmr.msra.gmra.mxu2 %v9527_v50  ;;  %v2448_v57 = vmax.f32 %v2264_v51, 0.0  ;;  %v3371_v22 = vadd.f32 %v9505_v8, %v3370_v56  ;;  %v1894_v25 = vmul.f32 %v9117_v38, %v578_v45  ;;  %v1521_v2 = vmul.f32 %v9115_v37, %v578_v45 }
 0x1bf   :  { %v1332_v51 = vmul.f32 %v9113_v36, %v578_v45 }
 0x1c0   :  { %v9531_v60 = vmax.f32 %v2447_v13, %v2448_v57  ;;  %v3658_v59 = vadd.f32 %v3657_v28, %v3371_v22 }
 0x1c2   :  { %8361 = vmatmul.msk.f32.gmra.mxu1 %vm3047_vm0, %v9531_v60  ;;  %v8495_v62 = vpack.i.bf16 %v9531_v60, %v9522_v41  ;;  %v3923_v61 = vmax.f32 %v3658_v59, 0.0 }
 0x1c4   :  { %8496 = vrot.lane.b32.xlu1 %v8495_v62, %s8953_s12 }
 0x1c5   :  { %v3373_v63 = vpop.f32.mrf.mxu0  ;;  %v588_v29 = vpop.permute.xlu2 %587 }
 0x1c6   :  { %v3374_v0 = vadd.f32 %v9505_v8, %v3373_v63 }
 0x1c8   :  { %v3661_v31 = vadd.f32 %v3660_v58, %v3374_v0 }
 0x1ca   :  { %v3924_v3 = vmax.f32 %v3661_v31, 0.0  ;;  %v1896_v31 = vmul.f32 %v9117_v38, %v588_v29 }
 0x1cb   :  { %v8482_v11 = vpop.permute.xlu1 %8481 }
 0x1cc   :  { %v9543_v34 = vmax.f32 %v3923_v61, %v3924_v3  ;;  %v8483_v7 = vunpack.i.l.bf16 %v8482_v11  ;;  %632 = vperm.xlu1 %8453, %v235_v6   ;;  %v8484_v14 = vunpack.i.h.bf16 %v8482_v11  ;;  %v3669_v6 = vpop.f32.mrf.mxu1 }
 0x1cd   :  { %v3376_v10 = vpop.f32.mrf.mxu0 }
 0x1ce   :  { %4177 = vmatmul.f32.gmra.mxu2 %v9543_v34  ;;  %4319 = vmatmul.f32.vlgmr.msra.gmra.mxu3 %v9543_v34  ;;  %v3058_v12 = vsel %vm3047_vm0, %v9348_v5, %v8483_v7  ;;  %v3377_v55 = vadd.f32 %v9505_v8, %v3376_v10  ;;  %v3059_v42 = vsel %vm3047_vm0, %v9364_v27, %v8484_v14  ;;  %v240_v27 = vld [vmem:[%s12408_s0 + $0x1c8] sm:$0xff] }
 0x1cf   :  { %3393 = vmatmul.f32.gmra.mxu0 %v3058_v12  ;;  %v1523_v10 = vmul.f32 %v9115_v37, %v588_v29 }
 0x1d0   :  { %v3664_v26 = vadd.f32 %v3663_v54, %v3377_v55  ;;  %v9578_v54 = vpop.permute.xlu2 %8491 }
 0x1d2   :  { %v3925_v43 = vmax.f32 %v3664_v26, 0.0 }
 0x1d3   :  { %v573_v52 = vpop.permute.xlu1 %572 }
 0x1d4   :  { %v1520_v21 = vmul.f32 %v9115_v37, %v573_v52  ;;  %v1893_v5 = vmul.f32 %v9117_v38, %v573_v52  ;;  %642 = vperm.xlu1 %8453, %v237_v16   ;;  %v1331_v44 = vmul.f32 %v9113_v36, %v573_v52  ;;  %v242_v52 = vld [vmem:[%s12408_s0 + $0x1d8] sm:$0xff] }
 0x1d5   :  { %v3379_v49 = vpop.f32.mrf.mxu0 }
 0x1d6   :  { %v1704_v53 = vadd.f32 %v1520_v21, %v1330_v18  ;;  %v2077_v9 = vadd.f32 %v1893_v5, %v1703_v20  ;;  %v3380_v28 = vadd.f32 %v9505_v8, %v3379_v49  ;;  %v1705_v13 = vadd.f32 %v1521_v2, %v1331_v44  ;;  %v3672_v44 = vpop.f32.mrf.mxu1 }
 0x1d7   :  { %3396 = vmatmul.f32.gmra.mxu0 %v3059_v42 }
 0x1d8   :  { %v3667_v30 = vadd.f32 %v3666_v23, %v3380_v28  ;;  %v2078_v32 = vadd.f32 %v1894_v25, %v1704_v53  ;;  %v2265_v40 = vadd.f32 %v9513_v17, %v2077_v9 }
 0x1d9   :  { %v8487_v35 = vpop.permute.xlu0 %8486 }
 0x1da   :  { %v3926_v46 = vmax.f32 %v3667_v30, 0.0  ;;  %v8488_v47 = vunpack.i.l.bf16 %v8487_v35  ;;  %v2266_v48 = vadd.f32 %v9513_v17, %v2078_v32  ;;  %v2449_v59 = vmax.f32 %v2265_v40, 0.0 }
 0x1db   :  { %v583_v56 = vpop.permute.xlu1 %582  ;;  %v8489_v14 = vunpack.i.h.bf16 %v8487_v35 }
 0x1dc   :  { %v9570_v57 = vmax.f32 %v3925_v43, %v3926_v46  ;;  %v1522_v58 = vmul.f32 %v9115_v37, %v583_v56  ;;  %v1895_v22 = vmul.f32 %v9117_v38, %v583_v56  ;;  %657 = vperm.xlu1 %8453, %v240_v27   ;;  %v3060_v63 = vsel %vm3047_vm0, %v9381_v39, %v8488_v47  ;;  %v613_v47 = vpop.permute.xlu2 %612 }
 0x1dd   :  { %v3382_v62 = vpop.f32.mrf.mxu0  ;;  %v2450_v0 = vmax.f32 %v2266_v48, 0.0  ;;  %v1333_v11 = vmul.f32 %v9113_v36, %v583_v56  ;;  %v1334_v39 = vmul.f32 %v9113_v36, %v588_v29  ;;  %v3061_v28 = vsel %vm3047_vm0, %v9411_v19, %v8489_v14 }
 0x1de   :  { %v1706_v61 = vadd.f32 %v1522_v58, %v1332_v51  ;;  %v2079_v3 = vadd.f32 %v1895_v22, %v1705_v13  ;;  %4180 = vmatmul.f32.gmra.mxu2 %v9570_v57  ;;  %4322 = vmatmul.f32.gmra.mxu3 %v9570_v57  ;;  %v3383_v15 = vadd.f32 %v9505_v8, %v3382_v62  ;;  %v8493_v46 = vunpack.i.l.bf16 %v9578_v54 }
 0x1df   :  { %3399 = vmatmul.f32.gmra.mxu0 %v3060_v63  ;;  %v9582_v7 = vmax.f32 %v2449_v59, %v2450_v0  ;;  %v1707_v18 = vadd.f32 %v1523_v10, %v1333_v11  ;;  %v1528_v14 = vmul.f32 %v9115_v37, %v613_v47 }
 0x1e0   :  { %v2080_v45 = vadd.f32 %v1896_v31, %v1706_v61  ;;  %v2267_v33 = vadd.f32 %v9513_v17, %v2079_v3  ;;  %v3670_v53 = vadd.f32 %v3669_v6, %v3383_v15  ;;  %v3062_v10 = vsel %vm3047_vm0, %v9424_v24, %v8493_v46  ;;  %v239_v15 = vld [vmem:[%s12408_s0 + $0x1c0] sm:$0xff] }
 0x1e1   :  { %8362 = vmatmul.msk.f32.gmra.mxu1 %vm3047_vm0, %v9582_v7  ;;  %v593_v12 = vpop.permute.xlu0 %592  ;;  %v1339_v24 = vmul.f32 %v9113_v36, %v613_v47 }
 0x1e2   :  { %v1524_v55 = vmul.f32 %v9115_v37, %v593_v12  ;;  %v1897_v16 = vmul.f32 %v9117_v38, %v593_v12  ;;  %v2268_v21 = vadd.f32 %v9513_v17, %v2080_v45  ;;  %v2451_v42 = vmax.f32 %v2267_v33, 0.0 }
 0x1e3   :  { %v598_v20 = vpop.permute.xlu1 %597  ;;  %v1335_v32 = vmul.f32 %v9113_v36, %v593_v12  ;;  %v3927_v48 = vmax.f32 %v3670_v53, 0.0 }
 0x1e4   :  { %v1898_v5 = vmul.f32 %v9117_v38, %v598_v20  ;;  %v1708_v23 = vadd.f32 %v1524_v55, %v1334_v39  ;;  %v2081_v25 = vadd.f32 %v1897_v16, %v1707_v18  ;;  %667 = vperm.xlu1 %8453, %v242_v52   ;;  %v2452_v26 = vmax.f32 %v2268_v21, 0.0 }
 0x1e5   :  { %v3385_v49 = vpop.f32.mrf.mxu0  ;;  %v1525_v30 = vmul.f32 %v9115_v37, %v598_v20  ;;  %v1336_v58 = vmul.f32 %v9113_v36, %v598_v20  ;;  %v8494_v55 = vunpack.i.h.bf16 %v9578_v54 }
 0x1e6   :  { %v3386_v9 = vadd.f32 %v9505_v8, %v3385_v49  ;;  %v2082_v29 = vadd.f32 %v1898_v5, %v1708_v23  ;;  %v9602_v2 = vmax.f32 %v2451_v42, %v2452_v26  ;;  %v2269_v35 = vadd.f32 %v9513_v17, %v2081_v25  ;;  %v9640_v25 = vpop.permute.xlu2 %622 }
 0x1e7   :  { %3402 = vmatmul.f32.gmra.mxu0 %v3061_v28  ;;  %v1709_v22 = vadd.f32 %v1525_v30, %v1335_v32  ;;  %v1901_v23 = vmul.f32 %v9117_v38, %v613_v47  ;;  %v1903_v28 = vmul.f32 %v9117_v38, %v9640_v25 }
 0x1e8   :  { %v3673_v40 = vadd.f32 %v3672_v44, %v3386_v9  ;;  %v2270_v43 = vadd.f32 %v9513_v17, %v2082_v29  ;;  %v8500_v19 = vpack.i.bf16 %v9602_v2, %v9582_v7  ;;  %v2453_v63 = vmax.f32 %v2269_v35, 0.0 }
 0x1e9   :  { %8363 = vmatmul.msk.f32.gmra.mxu1 %vm3047_vm0, %v9602_v2  ;;  %v603_v27 = vpop.permute.xlu0 %602  ;;  %v3063_v44 = vsel %vm3047_vm0, %v9460_v1, %v8494_v55  ;;  %v1530_v35 = vmul.f32 %v9115_v37, %v9640_v25 }
 0x1ea   :  { %v3928_v51 = vmax.f32 %v3673_v40, 0.0  ;;  %v1526_v56 = vmul.f32 %v9115_v37, %v603_v27  ;;  %v1899_v13 = vmul.f32 %v9117_v38, %v603_v27  ;;  %8501 = vrot.lane.b32.xlu0 %v8500_v19, %s8953_s12  ;;  %v2454_v59 = vmax.f32 %v2270_v43, 0.0  ;;  %v241_v43 = vld [vmem:[%s12408_s0 + $0x1d0] sm:$0xff] }
 0x1eb   :  { %v608_v62 = vpop.permute.xlu1 %607  ;;  %v1337_v61 = vmul.f32 %v9113_v36, %v603_v27 }
 0x1ec   :  { %v9615_v0 = vmax.f32 %v3927_v48, %v3928_v51  ;;  %v1527_v31 = vmul.f32 %v9115_v37, %v608_v62  ;;  %v1900_v3 = vmul.f32 %v9117_v38, %v608_v62  ;;  %v1710_v6 = vadd.f32 %v1526_v56, %v1336_v58  ;;  %v243_v58 = vld [vmem:[%s12408_s0 + $0x1e0] sm:$0xff] }
 0x1ed   :  { %v2083_v11 = vadd.f32 %v1899_v13, %v1709_v22  ;;  %v9620_v45 = vmax.f32 %v2453_v63, %v2454_v59  ;;  %v1338_v39 = vmul.f32 %v9113_v36, %v608_v62  ;;  %v244_v63 = vld [vmem:[%s12408_s0 + $0x1e8] sm:$0xff] }
 0x1ee   :  { %4183 = vmatmul.f32.gmra.mxu2 %v9615_v0  ;;  %4325 = vmatmul.f32.gmra.mxu3 %v9615_v0  ;;  %v2084_v12 = vadd.f32 %v1900_v3, %v1710_v6  ;;  %v1711_v16 = vadd.f32 %v1527_v31, %v1337_v61  ;;  %v245_v3 = vld [vmem:[%s12408_s0 + $0x1f0] sm:$0xff]  ;;  %v246_v6 = vld [vmem:[%s12408_s0 + $0x1f8] sm:$0xff] }
 0x1ef   :  { %3405 = vmatmul.f32.gmra.mxu0 %v3062_v10  ;;  %v2271_v33 = vadd.f32 %v9513_v17, %v2083_v11  ;;  %v1712_v20 = vadd.f32 %v1528_v14, %v1338_v39  ;;  %v247_v11 = vld [vmem:[%s12408_s0 + $0x200] sm:$0xff]  ;;  %v248_v39 = vld [vmem:[%s12408_s0 + $0x208] sm:$0xff]  ;;  %v249_v10 = vld [vmem:[%s12408_s0 + $0x210] sm:$0xff] }
 0x1f0   :  { %v2272_v18 = vadd.f32 %v9513_v17, %v2084_v12  ;;  %v2085_v9 = vadd.f32 %v1901_v23, %v1711_v16  ;;  %v250_v12 = vld [vmem:[%s12408_s0 + $0x218] sm:$0xff] }
 0x1f1   :  { %8364 = vmatmul.msk.f32.gmra.mxu1 %vm3047_vm0, %v9620_v45  ;;  %v618_v52 = vpop.permute.xlu0 %617  ;;  %v2455_v54 = vmax.f32 %v2271_v33, 0.0  ;;  %v252_v33 = vld [vmem:[%s12408_s0 + $0x228] sm:$0xff]  ;;  %v254_v14 = vld [vmem:[%s12408_s0 + $0x238] sm:$0xff] }
 0x1f2   :  { %v1529_v21 = vmul.f32 %v9115_v37, %v618_v52  ;;  %v1902_v5 = vmul.f32 %v9117_v38, %v618_v52  ;;  %652 = vperm.xlu0 %8452, %v239_v15   ;;  %v2456_v49 = vmax.f32 %v2272_v18, 0.0  ;;  %v1340_v29 = vmul.f32 %v9113_v36, %v618_v52  ;;  %v3675_v15 = vpop.f32.mrf.mxu1 }
 0x1f3   :  { %v2273_v46 = vadd.f32 %v9513_v17, %v2085_v9 }
 0x1f4   :  { %v1713_v42 = vadd.f32 %v1529_v21, %v1339_v24  ;;  %v2086_v26 = vadd.f32 %v1902_v5, %v1712_v20  ;;  %v9642_v53 = vmax.f32 %v2455_v54, %v2456_v49  ;;  %v1714_v47 = vadd.f32 %v1530_v35, %v1340_v29 }
 0x1f5   :  { %v2457_v56 = vmax.f32 %v2273_v46, 0.0  ;;  %v1341_v29 = vmul.f32 %v9113_v36, %v9640_v25 }
 0x1f6   :  { %v8505_v30 = vpack.i.bf16 %v9642_v53, %v9620_v45  ;;  %v2274_v32 = vadd.f32 %v9513_v17, %v2086_v26  ;;  %v2087_v40 = vadd.f32 %v1903_v28, %v1713_v42  ;;  %v638_v28 = vpop.permute.xlu2 %637 }
 0x1f7   :  { %3408 = vmatmul.f32.gmra.mxu0 %v3063_v44  ;;  %v1906_v46 = vmul.f32 %v9117_v38, %v638_v28 }
 0x1f8   :  { %8506 = vrot.lane.b32.xlu2 %v8505_v30, %s8953_s12  ;;  %v2458_v27 = vmax.f32 %v2274_v32, 0.0  ;;  %v2275_v51 = vadd.f32 %v9513_v17, %v2087_v40 }
 0x1f9   :  { %8365 = vmatmul.msk.f32.gmra.mxu1 %vm3047_vm0, %v9642_v53  ;;  %v628_v1 = vpop.permute.xlu0 %627 }
 0x1fa   :  { %v1904_v19 = vmul.f32 %v9117_v38, %v628_v1  ;;  %662 = vperm.xlu0 %8452, %v241_v43   ;;  %v9667_v22 = vmax.f32 %v2457_v56, %v2458_v27  ;;  %v2459_v59 = vmax.f32 %v2275_v51, 0.0  ;;  %v3678_v20 = vpop.f32.mrf.mxu1  ;;  %v1531_v9 = vmul.f32 %v9115_v37, %v628_v1 }
 0x1fb   :  { %v1342_v32 = vmul.f32 %v9113_v36, %v628_v1  ;;  %v1533_v1 = vmul.f32 %v9115_v37, %v638_v28 }
 0x1fc   :  { %v2088_v48 = vadd.f32 %v1904_v19, %v1714_v47  ;;  %v1715_v35 = vadd.f32 %v1531_v9, %v1341_v29  ;;  %v251_v29 = vld [vmem:[%s12408_s0 + $0x220] sm:$0xff] }
 0x1fe   :  { %v2276_v13 = vadd.f32 %v9513_v17, %v2088_v48 }
 0x200   :  { %v2460_v62 = vmax.f32 %v2276_v13, 0.0  ;;  %672 = vperm.xlu2 %8454, %v243_v58   ;;  %v1344_v13 = vmul.f32 %v9113_v36, %v638_v28  ;;  %v648_v58 = vpop.permute.xlu2 %647 }
 0x201   :  { %8366 = vmatmul.msk.f32.gmra.mxu1 %vm3047_vm0, %v9667_v22 }
 0x202   :  { %v9674_v31 = vmax.f32 %v2459_v59, %v2460_v62  ;;  %677 = vperm.xlu0 %8452, %v244_v63   ;;  %v3681_v51 = vpop.f32.mrf.mxu1 }
 0x204   :  { %v8510_v61 = vpack.i.bf16 %v9674_v31, %v9667_v22 }
 0x206   :  { %8511 = vrot.lane.b32.xlu1 %v8510_v61, %s8953_s12 }
 0x208   :  { %682 = vperm.xlu2 %8454, %v245_v3  }
 0x209   :  { %8367 = vmatmul.msk.f32.gmra.mxu1 %vm3047_vm0, %v9674_v31 }
 0x20a   :  { %687 = vperm.xlu0 %8452, %v246_v6   ;;  %v1908_v6 = vmul.f32 %v9117_v38, %v648_v58 }
 0x20e   :  { %692 = vperm.xlu1 %8453, %v247_v11  }
 0x210   :  { %697 = vperm.xlu2 %8454, %v248_v39  }
 0x216   :  { %702 = vperm.xlu1 %8453, %v249_v10  }
 0x218   :  { %707 = vperm.xlu2 %8454, %v250_v12  }
 0x21e   :  { %717 = vperm.xlu1 %8453, %v252_v33  }
 0x226   :  { %v3388_v55 = vpop.f32.mrf.mxu0  ;;  %727 = vperm.xlu1 %8453, %v254_v14  }
 0x227   :  { %v3389_v16 = vadd.f32 %v9505_v8, %v3388_v55  ;;  %v3684_v55 = vpop.f32.mrf.mxu1 }
 0x229   :  { %v3676_v18 = vadd.f32 %v3675_v15, %v3389_v16 }
 0x22b   :  { %v3929_v5 = vmax.f32 %v3676_v18, 0.0 }
 0x22e   :  { %v3391_v52 = vpop.f32.mrf.mxu0 }
 0x22f   :  { %v3392_v24 = vadd.f32 %v9505_v8, %v3391_v52  ;;  %v3687_v9 = vpop.f32.mrf.mxu1 }
 0x231   :  { %v3679_v21 = vadd.f32 %v3678_v20, %v3392_v24 }
 0x233   :  { %v3930_v23 = vmax.f32 %v3679_v21, 0.0 }
 0x235   :  { %v9707_v54 = vmax.f32 %v3929_v5, %v3930_v23 }
 0x236   :  { %v8497_v49 = vpop.permute.xlu1 %8496 }
 0x237   :  { %4186 = vmatmul.f32.gmra.mxu2 %v9707_v54  ;;  %4328 = vmatmul.f32.gmra.mxu3 %v9707_v54  ;;  %v8498_v42 = vunpack.i.l.bf16 %v8497_v49  ;;  %v8499_v44 = vunpack.i.h.bf16 %v8497_v49 }
 0x239   :  { %v3064_v26 = vsel %vm3047_vm0, %v9464_v4, %v8498_v42  ;;  %v3065_v19 = vsel %vm3047_vm0, %v9522_v41, %v8499_v44 }
 0x23a   :  { %3411 = vmatmul.f32.gmra.mxu0 %v3064_v26 }
 0x23e   :  { %v633_v30 = vpop.permute.xlu1 %632 }
 0x23f   :  { %v1532_v40 = vmul.f32 %v9115_v37, %v633_v30  ;;  %v1905_v43 = vmul.f32 %v9117_v38, %v633_v30  ;;  %v1343_v27 = vmul.f32 %v9113_v36, %v633_v30 }
 0x241   :  { %v1716_v47 = vadd.f32 %v1532_v40, %v1342_v32  ;;  %v2089_v4 = vadd.f32 %v1905_v43, %v1715_v35  ;;  %v1717_v62 = vadd.f32 %v1533_v1, %v1343_v27  ;;  %v1535_v27 = vmul.f32 %v9115_v37, %v648_v58 }
 0x242   :  { %3414 = vmatmul.f32.gmra.mxu0 %v3065_v19  ;;  %v3690_v19 = vpop.f32.mrf.mxu1 }
 0x243   :  { %v2090_v25 = vadd.f32 %v1906_v46, %v1716_v47  ;;  %v2277_v48 = vadd.f32 %v9513_v17, %v2089_v4  ;;  %v253_v4 = vld [vmem:[%s12408_s0 + $0x230] sm:$0xff] }
 0x245   :  { %v2278_v56 = vadd.f32 %v9513_v17, %v2090_v25  ;;  %v2461_v61 = vmax.f32 %v2277_v48, 0.0 }
 0x246   :  { %v643_v63 = vpop.permute.xlu1 %642 }
 0x247   :  { %v1534_v59 = vmul.f32 %v9115_v37, %v643_v63  ;;  %v1907_v41 = vmul.f32 %v9117_v38, %v643_v63  ;;  %v2462_v3 = vmax.f32 %v2278_v56, 0.0  ;;  %v1345_v46 = vmul.f32 %v9113_v36, %v643_v63 }
 0x249   :  { %v1718_v11 = vadd.f32 %v1534_v59, %v1344_v13  ;;  %v2091_v39 = vadd.f32 %v1907_v41, %v1717_v62  ;;  %v9730_v10 = vmax.f32 %v2461_v61, %v2462_v3  ;;  %v1719_v13 = vadd.f32 %v1535_v27, %v1345_v46 }
 0x24b   :  { %v2092_v12 = vadd.f32 %v1908_v6, %v1718_v11  ;;  %v2279_v33 = vadd.f32 %v9513_v17, %v2091_v39  ;;  %8368 = vmatmul.msk.f32.gmra.mxu1 %vm3047_vm0, %v9730_v10 }
 0x24c   :  { %v3394_v14 = vpop.f32.mrf.mxu0 }
 0x24d   :  { %v2280_v15 = vadd.f32 %v9513_v17, %v2092_v12  ;;  %v2463_v16 = vmax.f32 %v2279_v33, 0.0  ;;  %v3395_v18 = vadd.f32 %v9505_v8, %v3394_v14 }
 0x24e   :  { %v658_v47 = vpop.permute.xlu1 %657 }
 0x24f   :  { %v2464_v52 = vmax.f32 %v2280_v15, 0.0  ;;  %v3682_v5 = vadd.f32 %v3681_v51, %v3395_v18  ;;  %v1910_v41 = vmul.f32 %v9117_v38, %v658_v47  ;;  %v1537_v15 = vmul.f32 %v9115_v37, %v658_v47 }
 0x251   :  { %v9737_v24 = vmax.f32 %v2463_v16, %v2464_v52  ;;  %v3931_v42 = vmax.f32 %v3682_v5, 0.0  ;;  %v256_v52 = vld [vmem:[%s12408_s0 + $0x248] sm:$0xff] }
 0x252   :  { %v9752_v35 = vpop.permute.xlu2 %8506 }
 0x253   :  { %8369 = vmatmul.msk.f32.gmra.mxu1 %vm3047_vm0, %v9737_v24  ;;  %v8515_v21 = vpack.i.bf16 %v9737_v24, %v9730_v10 }
 0x254   :  { %v3397_v20 = vpop.f32.mrf.mxu0 }
 0x255   :  { %v3398_v23 = vadd.f32 %v9505_v8, %v3397_v20  ;;  %8516 = vrot.lane.b32.xlu0 %v8515_v21, %s8953_s12  ;;  %v1348_v21 = vmul.f32 %v9113_v36, %v658_v47 }
 0x257   :  { %v3685_v49 = vadd.f32 %v3684_v55, %v3398_v23  ;;  %v8508_v55 = vunpack.i.l.bf16 %v9752_v35 }
 0x259   :  { %v3932_v26 = vmax.f32 %v3685_v49, 0.0 }
 0x25b   :  { %v9745_v28 = vmax.f32 %v3931_v42, %v3932_v26  ;;  %v3693_v42 = vpop.f32.mrf.mxu1 }
 0x25c   :  { %v3400_v44 = vpop.f32.mrf.mxu0  ;;  %v8502_v30 = vpop.permute.xlu0 %8501 }
 0x25d   :  { %12505 = vst [vmem:[#allocation27_spill] sm:$0xff] %v9745_v28  ;;  %4189 = vmatmul.f32.gmra.mxu2 %v9745_v28  ;;  %4331 = vmatmul.f32.gmra.mxu3 %v9745_v28  ;;  %v8503_v32 = vunpack.i.l.bf16 %v8502_v30  ;;  %v3401_v43 = vadd.f32 %v9505_v8, %v3400_v44  ;;  %v8504_v25 = vunpack.i.h.bf16 %v8502_v30 }
 0x25e   :  { %712 = vperm.xlu0 %8452, %v251_v29  }
 0x25f   :  { %v3066_v40 = vsel %vm3047_vm0, %v9531_v60, %v8503_v32  ;;  %v3688_v1 = vadd.f32 %v3687_v9, %v3401_v43  ;;  %v1346_v60 = vmul.f32 %v9113_v36, %v648_v58  ;;  %v3067_v6 = vsel %vm3047_vm0, %v9582_v7, %v8504_v25  ;;  %v673_v58 = vpop.permute.xlu2 %672  ;;  %v668_v7 = vpop.permute.xlu1 %667 }
 0x260   :  { %3417 = vmatmul.f32.gmra.mxu0 %v3066_v40  ;;  %v1539_v30 = vmul.f32 %v9115_v37, %v668_v7  ;;  %v3068_v32 = vsel %vm3047_vm0, %v9602_v2, %v8508_v55  ;;  %v1912_v40 = vmul.f32 %v9117_v38, %v668_v7  ;;  %v1350_v2 = vmul.f32 %v9113_v36, %v668_v7 }
 0x261   :  { %v3933_v11 = vmax.f32 %v3688_v1, 0.0  ;;  %v1913_v1 = vmul.f32 %v9117_v38, %v673_v58 }
 0x264   :  { %v3403_v48 = vpop.f32.mrf.mxu0  ;;  %v653_v51 = vpop.permute.xlu0 %652 }
 0x265   :  { %v3404_v56 = vadd.f32 %v9505_v8, %v3403_v48  ;;  %v1536_v62 = vmul.f32 %v9115_v37, %v653_v51  ;;  %v1909_v63 = vmul.f32 %v9117_v38, %v653_v51  ;;  %v1347_v39 = vmul.f32 %v9113_v36, %v653_v51  ;;  %v258_v51 = vld [vmem:[%s12408_s0 + $0x258] sm:$0xff] }
 0x266   :  { %722 = vperm.xlu0 %8452, %v253_v4   ;;  %v1540_v4 = vmul.f32 %v9115_v37, %v673_v58 }
 0x267   :  { %v3691_v59 = vadd.f32 %v3690_v19, %v3404_v56  ;;  %v1720_v61 = vadd.f32 %v1536_v62, %v1346_v60  ;;  %v2093_v3 = vadd.f32 %v1909_v63, %v1719_v13  ;;  %v1721_v5 = vadd.f32 %v1537_v15, %v1347_v39  ;;  %v683_v13 = vpop.permute.xlu2 %682 }
 0x268   :  { %3420 = vmatmul.f32.gmra.mxu0 %v3067_v6  ;;  %v8509_v56 = vunpack.i.h.bf16 %v9752_v35  ;;  %v1351_v60 = vmul.f32 %v9113_v36, %v673_v58 }
 0x269   :  { %v3934_v12 = vmax.f32 %v3691_v59, 0.0  ;;  %v2094_v33 = vadd.f32 %v1910_v41, %v1720_v61  ;;  %v2281_v14 = vadd.f32 %v9513_v17, %v2093_v3  ;;  %v1724_v59 = vadd.f32 %v1540_v4, %v1350_v2 }
 0x26a   :  { %v3069_v55 = vsel %vm3047_vm0, %v9620_v45, %v8509_v56  ;;  %v1353_v56 = vmul.f32 %v9113_v36, %v683_v13 }
 0x26b   :  { %v9773_v16 = vmax.f32 %v3933_v11, %v3934_v12  ;;  %v2282_v20 = vadd.f32 %v9513_v17, %v2094_v33  ;;  %v2465_v49 = vmax.f32 %v2281_v14, 0.0  ;;  %v3696_v11 = vpop.f32.mrf.mxu1 }
 0x26c   :  { %v3406_v18 = vpop.f32.mrf.mxu0  ;;  %v663_v23 = vpop.permute.xlu0 %662 }
 0x26d   :  { %12506 = vst [vmem:[#allocation28_spill] sm:$0xff] %v9773_v16  ;;  %4192 = vmatmul.f32.gmra.mxu2 %v9773_v16  ;;  %4334 = vmatmul.f32.gmra.mxu3 %v9773_v16  ;;  %v1349_v26 = vmul.f32 %v9113_v36, %v663_v23  ;;  %v1538_v9 = vmul.f32 %v9115_v37, %v663_v23  ;;  %v2466_v44 = vmax.f32 %v2282_v20, 0.0 }
 0x26e   :  { %v1911_v29 = vmul.f32 %v9117_v38, %v663_v23  ;;  %737 = vperm.xlu0 %8452, %v256_v52   ;;  %v3407_v27 = vadd.f32 %v9505_v8, %v3406_v18  ;;  %v1915_v18 = vmul.f32 %v9117_v38, %v683_v13 }
 0x26f   :  { %v1722_v43 = vadd.f32 %v1538_v9, %v1348_v21  ;;  %v9789_v47 = vmax.f32 %v2465_v49, %v2466_v44  ;;  %v1723_v19 = vadd.f32 %v1539_v30, %v1349_v26  ;;  %v1542_v26 = vmul.f32 %v9115_v37, %v683_v13  ;;  %v698_v30 = vpop.permute.xlu2 %697 }
 0x270   :  { %v2095_v46 = vadd.f32 %v1911_v29, %v1721_v5  ;;  %3423 = vmatmul.f32.gmra.mxu0 %v3068_v32  ;;  %v3694_v61 = vadd.f32 %v3693_v42, %v3407_v27 }
 0x271   :  { %v2096_v25 = vadd.f32 %v1912_v40, %v1722_v43  ;;  %8370 = vmatmul.msk.f32.gmra.mxu1 %vm3047_vm0, %v9789_v47  ;;  %v2097_v41 = vadd.f32 %v1913_v1, %v1723_v19 }
 0x272   :  { %v2283_v48 = vadd.f32 %v9513_v17, %v2095_v46 }
 0x273   :  { %v2284_v63 = vadd.f32 %v9513_v17, %v2096_v25  ;;  %v2285_v45 = vadd.f32 %v9513_v17, %v2097_v41 }
 0x274   :  { %v3409_v62 = vpop.f32.mrf.mxu0  ;;  %v678_v3 = vpop.permute.xlu0 %677  ;;  %v2467_v33 = vmax.f32 %v2283_v48, 0.0 }
 0x275   :  { %v3410_v6 = vadd.f32 %v9505_v8, %v3409_v62  ;;  %v1541_v39 = vmul.f32 %v9115_v37, %v678_v3  ;;  %v1914_v12 = vmul.f32 %v9117_v38, %v678_v3  ;;  %v2468_v35 = vmax.f32 %v2284_v63, 0.0 }
 0x276   :  { %747 = vperm.xlu0 %8452, %v258_v51   ;;  %v3935_v8 = vmax.f32 %v3694_v61, 0.0  ;;  %v1352_v21 = vmul.f32 %v9113_v36, %v678_v3  ;;  %v2469_v43 = vmax.f32 %v2285_v45, 0.0  ;;  %v255_v51 = vld [vmem:[%s12408_s0 + $0x240] sm:$0xff]  ;;  %v1918_v62 = vmul.f32 %v9117_v38, %v698_v30 }
 0x277   :  { %v3697_v14 = vadd.f32 %v3696_v11, %v3410_v6  ;;  %v1725_v58 = vadd.f32 %v1541_v39, %v1351_v60  ;;  %v2098_v15 = vadd.f32 %v1914_v12, %v1724_v59  ;;  %v9809_v52 = vmax.f32 %v2467_v33, %v2468_v35  ;;  %v9847_v33 = vpop.permute.xlu2 %707 }
 0x278   :  { %v8512_v7 = vpop.permute.xlu1 %8511  ;;  %3426 = vmatmul.f32.gmra.mxu0 %v3069_v55  ;;  %v1726_v32 = vadd.f32 %v1542_v26, %v1352_v21  ;;  %v1545_v12 = vmul.f32 %v9115_v37, %v698_v30  ;;  %v1356_v55 = vmul.f32 %v9113_v36, %v698_v30  ;;  %v1920_v21 = vmul.f32 %v9117_v38, %v9847_v33 }
 0x279   :  { %v3936_v20 = vmax.f32 %v3697_v14, 0.0  ;;  %v2286_v5 = vadd.f32 %v9513_v17, %v2098_v15  ;;  %8371 = vmatmul.msk.f32.gmra.mxu1 %vm3047_vm0, %v9809_v52  ;;  %v8520_v23 = vpack.i.bf16 %v9809_v52, %v9789_v47  ;;  %v8513_v42 = vunpack.i.l.bf16 %v8512_v7 }
 0x27a   :  { %v2099_v9 = vadd.f32 %v1915_v18, %v1725_v58  ;;  %v8514_v59 = vunpack.i.h.bf16 %v8512_v7 }
 0x27b   :  { %v9819_v49 = vmax.f32 %v3935_v8, %v3936_v20  ;;  %8521 = vrot.lane.b32.xlu2 %v8520_v23, %s8953_s12  ;;  %v2470_v29 = vmax.f32 %v2286_v5, 0.0  ;;  %v3070_v46 = vsel %vm3047_vm0, %v9642_v53, %v8513_v42 }
 0x27c   :  { %v688_v44 = vpop.permute.xlu0 %687  ;;  %v2287_v48 = vadd.f32 %v9513_v17, %v2099_v9  ;;  %v3071_v35 = vsel %vm3047_vm0, %v9667_v22, %v8514_v59  ;;  %v257_v22 = vld [vmem:[%s12408_s0 + $0x250] sm:$0xff] }
 0x27d   :  { %12507 = vst [vmem:[#allocation29_spill] sm:$0xff] %v9819_v49  ;;  %4195 = vmatmul.f32.gmra.mxu2 %v9819_v49  ;;  %4337 = vmatmul.f32.gmra.mxu3 %v9819_v49  ;;  %v1916_v40 = vmul.f32 %v9117_v38, %v688_v44  ;;  %v1543_v4 = vmul.f32 %v9115_v37, %v688_v44 }
 0x27e   :  { %v9829_v27 = vmax.f32 %v2469_v43, %v2470_v29  ;;  %v1354_v2 = vmul.f32 %v9113_v36, %v688_v44  ;;  %v2471_v3 = vmax.f32 %v2287_v48, 0.0  ;;  %v259_v29 = vld [vmem:[%s12408_s0 + $0x260] sm:$0xff]  ;;  %v264_v48 = vld [vmem:[%s12408_s0 + $0x288] sm:$0xff] }
 0x27f   :  { %v2100_v19 = vadd.f32 %v1916_v40, %v1726_v32  ;;  %v1727_v41 = vadd.f32 %v1543_v4, %v1353_v56  ;;  %v260_v40 = vld [vmem:[%s12408_s0 + $0x268] sm:$0xff]  ;;  %v270_v56 = vld [vmem:[%s12408_s0 + $0x2b8] sm:$0xff] }
 0x280   :  { %v693_v25 = vpop.permute.xlu1 %692  ;;  %3429 = vmatmul.f32.gmra.mxu0 %v3070_v46 }
 0x281   :  { %v1544_v1 = vmul.f32 %v9115_v37, %v693_v25  ;;  %v2288_v53 = vadd.f32 %v9513_v17, %v2100_v19  ;;  %8372 = vmatmul.msk.f32.gmra.mxu1 %vm3047_vm0, %v9829_v27  ;;  %v1917_v60 = vmul.f32 %v9117_v38, %v693_v25  ;;  %v1355_v6 = vmul.f32 %v9113_v36, %v693_v25  ;;  %v262_v19 = vld [vmem:[%s12408_s0 + $0x278] sm:$0xff]  ;;  %v263_v25 = vld [vmem:[%s12408_s0 + $0x280] sm:$0xff] }
 0x283   :  { %v1728_v63 = vadd.f32 %v1544_v1, %v1354_v2  ;;  %v2472_v61 = vmax.f32 %v2288_v53, 0.0  ;;  %732 = vperm.xlu2 %8454, %v255_v51   ;;  %v2101_v39 = vadd.f32 %v1917_v60, %v1727_v41  ;;  %v1729_v7 = vadd.f32 %v1545_v12, %v1355_v6  ;;  %v265_v2 = vld [vmem:[%s12408_s0 + $0x290] sm:$0xff]  ;;  %v266_v1 = vld [vmem:[%s12408_s0 + $0x298] sm:$0xff]  ;;  %v268_v51 = vld [vmem:[%s12408_s0 + $0x2a8] sm:$0xff]  ;;  %v3699_v60 = vpop.f32.mrf.mxu1 }
 0x285   :  { %v2102_v11 = vadd.f32 %v1918_v62, %v1728_v63  ;;  %v9844_v13 = vmax.f32 %v2471_v3, %v2472_v61  ;;  %v2289_v20 = vadd.f32 %v9513_v17, %v2101_v39  ;;  %v9913_v62 = vld [vmem:[#allocation8] ss:$0 sm:$0xff] }
 0x287   :  { %v8525_v14 = vpack.i.bf16 %v9844_v13, %v9829_v27  ;;  %v2290_v15 = vadd.f32 %v9513_v17, %v2102_v11  ;;  %v2473_v9 = vmax.f32 %v2289_v20, 0.0  ;;  %v1358_v20 = vmul.f32 %v9113_v36, %v9847_v33 }
 0x288   :  { %v9853_v58 = vpop.permute.xlu1 %702  ;;  %3432 = vmatmul.f32.gmra.mxu0 %v3071_v35 }
 0x289   :  { %v1546_v18 = vmul.f32 %v9115_v37, %v9853_v58  ;;  %v1919_v8 = vmul.f32 %v9117_v38, %v9853_v58  ;;  %8526 = vrot.lane.b32.xlu1 %v8525_v14, %s8953_s12  ;;  %8373 = vmatmul.msk.f32.gmra.mxu1 %vm3047_vm0, %v9844_v13  ;;  %v2474_v45 = vmax.f32 %v2290_v15, 0.0 }
 0x28b   :  { %v1730_v5 = vadd.f32 %v1546_v18, %v1356_v55  ;;  %v2103_v23 = vadd.f32 %v1919_v8, %v1729_v7  ;;  %742 = vperm.xlu2 %8454, %v257_v22   ;;  %v9875_v30 = vmax.f32 %v2473_v9, %v2474_v45  ;;  %v3702_v3 = vpop.f32.mrf.mxu1  ;;  %v1357_v55 = vmul.f32 %v9113_v36, %v9853_v58 }
 0x28c   :  { %v1547_v18 = vmul.f32 %v9115_v37, %v9847_v33 }
 0x28d   :  { %v2104_v42 = vadd.f32 %v1920_v21, %v1730_v5  ;;  %v2291_v26 = vadd.f32 %v9513_v17, %v2103_v23 }
 0x28e   :  { %v1731_v21 = vadd.f32 %v1547_v18, %v1357_v55 }
 0x28f   :  { %v2292_v44 = vadd.f32 %v9513_v17, %v2104_v42  ;;  %v2475_v32 = vmax.f32 %v2291_v26, 0.0  ;;  %v261_v17 = vld [vmem:[%s12408_s0 + $0x270] sm:$0xff] }
 0x290   :  { %v718_v7 = vpop.permute.xlu1 %717 }
 0x291   :  { %v2476_v43 = vmax.f32 %v2292_v44, 0.0  ;;  %752 = vperm.xlu1 %8453, %v259_v29   ;;  %8374 = vmatmul.msk.f32.gmra.mxu1 %vm3047_vm0, %v9875_v30  ;;  %v9935_v29 = vld [vmem:[#allocation5] ss:$0 sm:$0xff] }
 0x293   :  { %v9882_v46 = vmax.f32 %v2475_v32, %v2476_v43  ;;  %757 = vperm.xlu2 %8454, %v260_v40   ;;  %v3705_v32 = vpop.f32.mrf.mxu1  ;;  %v1549_v40 = vmul.f32 %v9115_v37, %v718_v7 }
 0x295   :  { %v8530_v4 = vpack.i.bf16 %v9882_v46, %v9875_v30 }
 0x297   :  { %8531 = vrot.lane.b32.xlu0 %v8530_v4, %s8953_s12 }
 0x299   :  { %762 = vperm.xlu1 %8453, %v261_v17   ;;  %8375 = vmatmul.msk.f32.gmra.mxu1 %vm3047_vm0, %v9882_v46  ;;  %v728_v17 = vpop.permute.xlu1 %727 }
 0x29b   :  { %767 = vperm.xlu2 %8454, %v262_v19  }
 0x29f   :  { %772 = vperm.xlu0 %8452, %v263_v25   ;;  %v1360_v25 = vmul.f32 %v9113_v36, %v718_v7 }
 0x2a1   :  { %777 = vperm.xlu1 %8453, %v264_v48  }
 0x2a7   :  { %782 = vperm.xlu0 %8452, %v265_v2  }
 0x2a9   :  { %787 = vperm.xlu1 %8453, %v266_v1  }
 0x2af   :  { %797 = vperm.xlu0 %8452, %v268_v51  }
 0x2b7   :  { %807 = vperm.xlu0 %8452, %v270_v56   ;;  %v3412_v53 = vpop.f32.mrf.mxu0  ;;  %v1924_v56 = vmul.f32 %v9117_v38, %v728_v17 }
 0x2b8   :  { %v3413_v63 = vadd.f32 %v9913_v62, %v3412_v53 }
 0x2ba   :  { %v3700_v41 = vadd.f32 %v3699_v60, %v3413_v63 }
 0x2bc   :  { %v3937_v11 = vmax.f32 %v3700_v41, 0.0 }
 0x2bf   :  { %v3415_v59 = vpop.f32.mrf.mxu0 }
 0x2c0   :  { %v3416_v61 = vadd.f32 %v9913_v62, %v3415_v59 }
 0x2c2   :  { %v3703_v6 = vadd.f32 %v3702_v3, %v3416_v61  ;;  %v1362_v3 = vmul.f32 %v9113_v36, %v728_v17 }
 0x2c4   :  { %v3938_v39 = vmax.f32 %v3703_v6, 0.0  ;;  %v1551_v6 = vmul.f32 %v9115_v37, %v728_v17 }
 0x2c6   :  { %v9917_v12 = vmax.f32 %v3937_v11, %v3938_v39 }
 0x2c7   :  { %v8517_v35 = vpop.permute.xlu0 %8516 }
 0x2c8   :  { %v8518_v14 = vunpack.i.l.bf16 %v8517_v35  ;;  %4198 = vmatmul.f32.gmra.mxu2 %v9917_v12  ;;  %4340 = vmatmul.f32.gmra.mxu3 %v9917_v12  ;;  %v8519_v8 = vunpack.i.h.bf16 %v8517_v35 }
 0x2ca   :  { %v3072_v15 = vsel %vm3047_vm0, %v9674_v31, %v8518_v14  ;;  %v1922_v31 = vmul.f32 %v9117_v38, %v718_v7  ;;  %v3073_v58 = vsel %vm3047_vm0, %v9730_v10, %v8519_v8 }
 0x2cb   :  { %3435 = vmatmul.f32.gmra.mxu0 %v3072_v15 }
 0x2d0   :  { %v713_v22 = vpop.permute.xlu0 %712 }
 0x2d1   :  { %v1548_v5 = vmul.f32 %v9115_v37, %v713_v22  ;;  %v1921_v23 = vmul.f32 %v9117_v38, %v713_v22  ;;  %v1359_v26 = vmul.f32 %v9113_v36, %v713_v22  ;;  %v3708_v22 = vpop.f32.mrf.mxu1 }
 0x2d3   :  { %v1732_v45 = vadd.f32 %v1548_v5, %v1358_v20  ;;  %v2105_v42 = vadd.f32 %v1921_v23, %v1731_v21  ;;  %3438 = vmatmul.f32.gmra.mxu0 %v3073_v58  ;;  %v1733_v10 = vadd.f32 %v1549_v40, %v1359_v26 }
 0x2d5   :  { %v2106_v9 = vadd.f32 %v1922_v31, %v1732_v45  ;;  %v2293_v33 = vadd.f32 %v9935_v29, %v2105_v42  ;;  %v8522_v44 = vpop.permute.xlu2 %8521 }
 0x2d6   :  { %v8523_v43 = vunpack.i.l.bf16 %v8522_v44  ;;  %v8524_v35 = vunpack.i.h.bf16 %v8522_v44 }
 0x2d7   :  { %v2294_v4 = vadd.f32 %v9935_v29, %v2106_v9  ;;  %v2477_v1 = vmax.f32 %v2293_v33, 0.0 }
 0x2d8   :  { %v723_v19 = vpop.permute.xlu0 %722  ;;  %v3074_v63 = vsel %vm3047_vm0, %v9737_v24, %v8523_v43  ;;  %v3075_v31 = vsel %vm3047_vm0, %v9789_v47, %v8524_v35 }
 0x2d9   :  { %v1550_v48 = vmul.f32 %v9115_v37, %v723_v19  ;;  %v1923_v2 = vmul.f32 %v9117_v38, %v723_v19  ;;  %v2478_v51 = vmax.f32 %v2294_v4, 0.0  ;;  %v1361_v59 = vmul.f32 %v9113_v36, %v723_v19 }
 0x2db   :  { %v1734_v53 = vadd.f32 %v1550_v48, %v1360_v25  ;;  %v2107_v60 = vadd.f32 %v1923_v2, %v1733_v10  ;;  %3441 = vmatmul.f32.gmra.mxu0 %v3074_v63  ;;  %v9947_v41 = vmax.f32 %v2477_v1, %v2478_v51  ;;  %v1735_v55 = vadd.f32 %v1551_v6, %v1361_v59 }
 0x2dd   :  { %v2108_v61 = vadd.f32 %v1924_v56, %v1734_v53  ;;  %8376 = vmatmul.msk.f32.gmra.mxu1 %vm3047_vm0, %v9947_v41  ;;  %v733_v11 = vpop.permute.xlu2 %732  ;;  %v3418_v39 = vpop.f32.mrf.mxu0  ;;  %v2295_v14 = vadd.f32 %v9935_v29, %v2107_v60 }
 0x2de   :  { %v1552_v24 = vmul.f32 %v9115_v37, %v733_v11  ;;  %v1925_v15 = vmul.f32 %v9117_v38, %v733_v11  ;;  %v3419_v21 = vadd.f32 %v9913_v62, %v3418_v39  ;;  %v1363_v26 = vmul.f32 %v9113_v36, %v733_v11 }
 0x2df   :  { %v2296_v18 = vadd.f32 %v9935_v29, %v2108_v61  ;;  %v2479_v45 = vmax.f32 %v2295_v14, 0.0  ;;  %v3711_v61 = vpop.f32.mrf.mxu1 }
 0x2e0   :  { %v738_v7 = vpop.permute.xlu0 %737  ;;  %v1736_v8 = vadd.f32 %v1552_v24, %v1362_v3  ;;  %v2109_v20 = vadd.f32 %v1925_v15, %v1735_v55  ;;  %v3706_v44 = vadd.f32 %v3705_v32, %v3419_v21  ;;  %v267_v24 = vld [vmem:[%s12408_s0 + $0x2a0] sm:$0xff] }
 0x2e1   :  { %v1926_v5 = vmul.f32 %v9117_v38, %v738_v7  ;;  %v1553_v23 = vmul.f32 %v9115_v37, %v738_v7  ;;  %v2480_v42 = vmax.f32 %v2296_v18, 0.0  ;;  %v1364_v40 = vmul.f32 %v9113_v36, %v738_v7 }
 0x2e2   :  { %v2297_v33 = vadd.f32 %v9935_v29, %v2109_v20  ;;  %v3939_v60 = vmax.f32 %v3706_v44, 0.0 }
 0x2e3   :  { %v2110_v58 = vadd.f32 %v1926_v5, %v1736_v8  ;;  %3444 = vmatmul.f32.gmra.mxu0 %v3075_v31  ;;  %v9963_v9 = vmax.f32 %v2479_v45, %v2480_v42  ;;  %v1737_v19 = vadd.f32 %v1553_v23, %v1363_v26  ;;  %v269_v23 = vld [vmem:[%s12408_s0 + $0x2b0] sm:$0xff] }
 0x2e4   :  { %v2481_v59 = vmax.f32 %v2297_v33, 0.0 }
 0x2e5   :  { %v2298_v43 = vadd.f32 %v9935_v29, %v2110_v58  ;;  %v743_v4 = vpop.permute.xlu2 %742  ;;  %v3421_v17 = vpop.f32.mrf.mxu0  ;;  %8377 = vmatmul.msk.f32.gmra.mxu1 %vm3047_vm0, %v9963_v9  ;;  %v8535_v48 = vpack.i.bf16 %v9963_v9, %v9947_v41  ;;  %v271_v58 = vld [vmem:[%s12408_s0 + $0x2c0] sm:$0xff] }
 0x2e6   :  { %v1554_v47 = vmul.f32 %v9115_v37, %v743_v4  ;;  %v1927_v25 = vmul.f32 %v9117_v38, %v743_v4  ;;  %v3422_v10 = vadd.f32 %v9913_v62, %v3421_v17 }
 0x2e7   :  { %v2482_v56 = vmax.f32 %v2298_v43, 0.0  ;;  %8536 = vrot.lane.b32.xlu2 %v8535_v48, %s8953_s12  ;;  %v272_v43 = vld [vmem:[%s12408_s0 + $0x2c8] sm:$0xff]  ;;  %v1365_v48 = vmul.f32 %v9113_v36, %v743_v4 }
 0x2e8   :  { %v748_v32 = vpop.permute.xlu0 %747  ;;  %v1738_v2 = vadd.f32 %v1554_v47, %v1364_v40  ;;  %v2111_v1 = vadd.f32 %v1927_v25, %v1737_v19  ;;  %v3709_v51 = vadd.f32 %v3708_v22, %v3422_v10  ;;  %v3714_v22 = vpop.f32.mrf.mxu1 }
 0x2e9   :  { %v1928_v53 = vmul.f32 %v9117_v38, %v748_v32  ;;  %v9980_v39 = vmax.f32 %v2481_v59, %v2482_v56  ;;  %v1555_v47 = vmul.f32 %v9115_v37, %v748_v32  ;;  %v1366_v56 = vmul.f32 %v9113_v36, %v748_v32  ;;  %v274_v32 = vld [vmem:[%s12408_s0 + $0x2d8] sm:$0xff] }
 0x2ea   :  { %v3940_v63 = vmax.f32 %v3709_v51, 0.0  ;;  %v2299_v3 = vadd.f32 %v9935_v29, %v2111_v1  ;;  %v273_v1 = vld [vmem:[%s12408_s0 + $0x2d0] sm:$0xff] }
 0x2eb   :  { %v2112_v6 = vadd.f32 %v1928_v53, %v1738_v2  ;;  %v1739_v53 = vadd.f32 %v1555_v47, %v1365_v48 }
 0x2ec   :  { %v9978_v11 = vmax.f32 %v3939_v60, %v3940_v63  ;;  %v2483_v15 = vmax.f32 %v2299_v3, 0.0 }
 0x2ed   :  { %v2300_v35 = vadd.f32 %v9935_v29, %v2112_v6  ;;  %v3424_v14 = vpop.f32.mrf.mxu0  ;;  %8378 = vmatmul.msk.f32.gmra.mxu1 %vm3047_vm0, %v9980_v39  ;;  %v758_v25 = vpop.permute.xlu2 %757 }
 0x2ee   :  { %4201 = vmatmul.f32.gmra.mxu2 %v9978_v11  ;;  %4343 = vmatmul.f32.gmra.mxu3 %v9978_v11  ;;  %v3425_v18 = vadd.f32 %v9913_v62, %v3424_v14  ;;  %v1930_v63 = vmul.f32 %v9117_v38, %v758_v25 }
 0x2ef   :  { %v2484_v55 = vmax.f32 %v2300_v35, 0.0  ;;  %792 = vperm.xlu2 %8454, %v267_v24  }
 0x2f0   :  { %v3712_v21 = vadd.f32 %v3711_v61, %v3425_v18  ;;  %v3717_v19 = vpop.f32.mrf.mxu1 }
 0x2f1   :  { %v9990_v7 = vmax.f32 %v2483_v15, %v2484_v55 }
 0x2f2   :  { %v3941_v45 = vmax.f32 %v3712_v21, 0.0 }
 0x2f3   :  { %v8540_v8 = vpack.i.bf16 %v9990_v7, %v9980_v39 }
 0x2f5   :  { %8541 = vrot.lane.b32.xlu1 %v8540_v8, %s8953_s12  ;;  %v3427_v20 = vpop.f32.mrf.mxu0  ;;  %8379 = vmatmul.msk.f32.gmra.mxu1 %vm3047_vm0, %v9990_v7  ;;  %v1557_v8 = vmul.f32 %v9115_v37, %v758_v25 }
 0x2f6   :  { %v3428_v5 = vadd.f32 %v9913_v62, %v3427_v20 }
 0x2f7   :  { %802 = vperm.xlu2 %8454, %v269_v23   ;;  %v276_v23 = vld [vmem:[%s12408_s0 + $0x2e8] sm:$0xff] }
 0x2f8   :  { %v3715_v31 = vadd.f32 %v3714_v22, %v3428_v5  ;;  %v3720_v14 = vpop.f32.mrf.mxu1 }
 0x2fa   :  { %v3942_v42 = vmax.f32 %v3715_v31, 0.0  ;;  %v1368_v31 = vmul.f32 %v9113_v36, %v758_v25 }
 0x2fb   :  { %v8527_v26 = vpop.permute.xlu1 %8526 }
 0x2fc   :  { %v10005_v33 = vmax.f32 %v3941_v45, %v3942_v42  ;;  %v8528_v44 = vunpack.i.l.bf16 %v8527_v26  ;;  %v8529_v10 = vunpack.i.h.bf16 %v8527_v26  ;;  %v768_v45 = vpop.permute.xlu2 %767 }
 0x2fd   :  { %812 = vperm.xlu1 %8453, %v271_v58   ;;  %v3430_v40 = vpop.f32.mrf.mxu0 }
 0x2fe   :  { %12508 = vst [vmem:[#allocation30_spill] sm:$0xff] %v10005_v33  ;;  %4204 = vmatmul.f32.gmra.mxu2 %v10005_v33  ;;  %4346 = vmatmul.f32.gmra.mxu3 %v10005_v33  ;;  %v3076_v17 = vsel %vm3047_vm0, %v9809_v52, %v8528_v44  ;;  %v3431_v2 = vadd.f32 %v9913_v62, %v3430_v40 }
 0x2ff   :  { %3447 = vmatmul.f32.gmra.mxu0 %v3076_v17  ;;  %817 = vperm.xlu2 %8454, %v272_v43   ;;  %v3077_v4 = vsel %vm3047_vm0, %v9829_v27, %v8529_v10  ;;  %v1932_v10 = vmul.f32 %v9117_v38, %v768_v45 }
 0x300   :  { %v3718_v61 = vadd.f32 %v3717_v19, %v3431_v2  ;;  %v1559_v2 = vmul.f32 %v9115_v37, %v768_v45 }
 0x302   :  { %v3943_v20 = vmax.f32 %v3718_v61, 0.0  ;;  %v278_v61 = vld [vmem:[%s12408_s0 + $0x2f8] sm:$0xff] }
 0x303   :  { %v753_v51 = vpop.permute.xlu1 %752 }
 0x304   :  { %v1556_v52 = vmul.f32 %v9115_v37, %v753_v51  ;;  %v1929_v60 = vmul.f32 %v9117_v38, %v753_v51  ;;  %v1367_v24 = vmul.f32 %v9113_v36, %v753_v51 }
 0x305   :  { %822 = vperm.xlu1 %8453, %v273_v1   ;;  %v3433_v59 = vpop.f32.mrf.mxu0 }
 0x306   :  { %v1740_v3 = vadd.f32 %v1556_v52, %v1366_v56  ;;  %v2113_v6 = vadd.f32 %v1929_v60, %v1739_v53  ;;  %v3434_v35 = vadd.f32 %v9913_v62, %v3433_v59  ;;  %v1741_v42 = vadd.f32 %v1557_v8, %v1367_v24 }
 0x307   :  { %3450 = vmatmul.f32.gmra.mxu0 %v3077_v4  ;;  %827 = vperm.xlu2 %8454, %v274_v32   ;;  %v1370_v52 = vmul.f32 %v9113_v36, %v768_v45 }
 0x308   :  { %v2114_v15 = vadd.f32 %v1930_v63, %v1740_v3  ;;  %v3721_v55 = vadd.f32 %v3720_v14, %v3434_v35  ;;  %v2301_v27 = vadd.f32 %v9935_v29, %v2113_v6 }
 0x309   :  { %v8532_v18 = vpop.permute.xlu0 %8531 }
 0x30a   :  { %v8533_v22 = vunpack.i.l.bf16 %v8532_v18  ;;  %v2302_v21 = vadd.f32 %v9935_v29, %v2114_v15  ;;  %v3944_v5 = vmax.f32 %v3721_v55, 0.0  ;;  %v2485_v17 = vmax.f32 %v2301_v27, 0.0 }
 0x30b   :  { %v763_v58 = vpop.permute.xlu1 %762  ;;  %v8534_v4 = vunpack.i.h.bf16 %v8532_v18 }
 0x30c   :  { %v10038_v26 = vmax.f32 %v3943_v20, %v3944_v5  ;;  %v1558_v44 = vmul.f32 %v9115_v37, %v763_v58  ;;  %v1931_v40 = vmul.f32 %v9117_v38, %v763_v58  ;;  %v3078_v43 = vsel %vm3047_vm0, %v9844_v13, %v8533_v22 }
 0x30d   :  { %v1369_v19 = vmul.f32 %v9113_v36, %v763_v58  ;;  %837 = vperm.xlu1 %8453, %v276_v23   ;;  %v2486_v47 = vmax.f32 %v2302_v21, 0.0  ;;  %v3079_v18 = vsel %vm3047_vm0, %v9875_v30, %v8534_v4  ;;  %v284_v4 = vld [vmem:[%s12408_s0 + $0x328] sm:$0xff] }
 0x30e   :  { %12509 = vst [vmem:[#allocation31_spill] sm:$0xff] %v10038_v26  ;;  %v1742_v25 = vadd.f32 %v1558_v44, %v1368_v31  ;;  %v2115_v48 = vadd.f32 %v1931_v40, %v1741_v42  ;;  %4207 = vmatmul.f32.gmra.mxu2 %v10038_v26  ;;  %4349 = vmatmul.f32.gmra.mxu3 %v10038_v26 }
 0x30f   :  { %3453 = vmatmul.f32.gmra.mxu0 %v3078_v43  ;;  %v10049_v1 = vmax.f32 %v2485_v17, %v2486_v47  ;;  %v1743_v53 = vadd.f32 %v1559_v2, %v1369_v19 }
 0x310   :  { %v2116_v51 = vadd.f32 %v1932_v10, %v1742_v25  ;;  %v2303_v13 = vadd.f32 %v9935_v29, %v2115_v48  ;;  %v275_v25 = vld [vmem:[%s12408_s0 + $0x2e0] sm:$0xff] }
 0x311   :  { %v773_v56 = vpop.permute.xlu0 %772  ;;  %8380 = vmatmul.msk.f32.gmra.mxu1 %vm3047_vm0, %v10049_v1 }
 0x312   :  { %v1560_v60 = vmul.f32 %v9115_v37, %v773_v56  ;;  %v1933_v63 = vmul.f32 %v9117_v38, %v773_v56  ;;  %v2304_v59 = vadd.f32 %v9935_v29, %v2116_v51  ;;  %v2487_v32 = vmax.f32 %v2303_v13, 0.0 }
 0x313   :  { %v778_v3 = vpop.permute.xlu1 %777  ;;  %v1371_v55 = vmul.f32 %v9113_v36, %v773_v56 }
 0x314   :  { %v1744_v6 = vadd.f32 %v1560_v60, %v1370_v52  ;;  %v2117_v35 = vadd.f32 %v1933_v63, %v1743_v53  ;;  %v1934_v14 = vmul.f32 %v9117_v38, %v778_v3  ;;  %v2488_v24 = vmax.f32 %v2304_v59, 0.0  ;;  %v277_v52 = vld [vmem:[%s12408_s0 + $0x2f0] sm:$0xff]  ;;  %v279_v53 = vld [vmem:[%s12408_s0 + $0x300] sm:$0xff]  ;;  %v280_v60 = vld [vmem:[%s12408_s0 + $0x308] sm:$0xff] }
 0x315   :  { %v1561_v15 = vmul.f32 %v9115_v37, %v778_v3  ;;  %847 = vperm.xlu1 %8453, %v278_v61   ;;  %v1372_v23 = vmul.f32 %v9113_v36, %v778_v3  ;;  %v281_v63 = vld [vmem:[%s12408_s0 + $0x310] sm:$0xff]  ;;  %v282_v59 = vld [vmem:[%s12408_s0 + $0x318] sm:$0xff] }
 0x316   :  { %v2118_v8 = vadd.f32 %v1934_v14, %v1744_v6  ;;  %v10066_v27 = vmax.f32 %v2487_v32, %v2488_v24  ;;  %v2305_v22 = vadd.f32 %v9935_v29, %v2117_v35  ;;  %v286_v6 = vld [vmem:[%s12408_s0 + $0x338] sm:$0xff]  ;;  %v3723_v35 = vpop.f32.mrf.mxu1 }
 0x317   :  { %3456 = vmatmul.f32.gmra.mxu0 %v3079_v18  ;;  %v1745_v31 = vadd.f32 %v1561_v15, %v1371_v55 }
 0x318   :  { %v2306_v20 = vadd.f32 %v9935_v29, %v2118_v8  ;;  %v8545_v21 = vpack.i.bf16 %v10066_v27, %v10049_v1  ;;  %v2489_v58 = vmax.f32 %v2305_v22, 0.0 }
 0x319   :  { %v783_v5 = vpop.permute.xlu0 %782  ;;  %8381 = vmatmul.msk.f32.gmra.mxu1 %vm3047_vm0, %v10066_v27 }
 0x31a   :  { %v1562_v45 = vmul.f32 %v9115_v37, %v783_v5  ;;  %v1935_v30 = vmul.f32 %v9117_v38, %v783_v5  ;;  %8546 = vrot.lane.b32.xlu0 %v8545_v21, %s8953_s12  ;;  %v2490_v42 = vmax.f32 %v2306_v20, 0.0  ;;  %v1373_v24 = vmul.f32 %v9113_v36, %v783_v5 }
 0x31b   :  { %v788_v44 = vpop.permute.xlu1 %787 }
 0x31c   :  { %v1746_v40 = vadd.f32 %v1562_v45, %v1372_v23  ;;  %v2119_v43 = vadd.f32 %v1935_v30, %v1745_v31  ;;  %v1936_v17 = vmul.f32 %v9117_v38, %v788_v44  ;;  %v10079_v19 = vmax.f32 %v2489_v58, %v2490_v42 }
 0x31d   :  { %v1563_v14 = vmul.f32 %v9115_v37, %v788_v44  ;;  %v1374_v22 = vmul.f32 %v9113_v36, %v788_v44 }
 0x31e   :  { %v2120_v47 = vadd.f32 %v1936_v17, %v1746_v40  ;;  %v2307_v10 = vadd.f32 %v9935_v29, %v2119_v43 }
 0x31f   :  { %v1747_v20 = vadd.f32 %v1563_v14, %v1373_v24 }
 0x320   :  { %v2308_v48 = vadd.f32 %v9935_v29, %v2120_v47  ;;  %v2491_v2 = vmax.f32 %v2307_v10, 0.0 }
 0x321   :  { %8382 = vmatmul.msk.f32.gmra.mxu1 %vm3047_vm0, %v10079_v19  ;;  %v798_v55 = vpop.permute.xlu0 %797 }
 0x322   :  { %832 = vperm.xlu0 %8452, %v275_v25   ;;  %v2492_v51 = vmax.f32 %v2308_v48, 0.0  ;;  %v1938_v45 = vmul.f32 %v9117_v38, %v798_v55  ;;  %v1565_v17 = vmul.f32 %v9115_v37, %v798_v55  ;;  %v1376_v48 = vmul.f32 %v9113_v36, %v798_v55 }
 0x324   :  { %v10088_v13 = vmax.f32 %v2491_v2, %v2492_v51 }
 0x326   :  { %v8550_v56 = vpack.i.bf16 %v10088_v13, %v10079_v19 }
 0x328   :  { %8551 = vrot.lane.b32.xlu2 %v8550_v56, %s8953_s12 }
 0x329   :  { %8383 = vmatmul.msk.f32.gmra.mxu1 %vm3047_vm0, %v10088_v13  ;;  %v808_v2 = vpop.permute.xlu0 %807 }
 0x32a   :  { %842 = vperm.xlu0 %8452, %v277_v52  }
 0x330   :  { %852 = vperm.xlu2 %8454, %v279_v53  }
 0x332   :  { %857 = vperm.xlu0 %8452, %v280_v60  }
 0x338   :  { %862 = vperm.xlu2 %8454, %v281_v63  }
 0x33a   :  { %867 = vperm.xlu0 %8452, %v282_v59  }
 0x340   :  { %877 = vperm.xlu2 %8454, %v284_v4  }
 0x341   :  { %v8537_v61 = vpop.permute.xlu2 %8536 }
 0x342   :  { %v8538_v3 = vunpack.i.l.bf16 %v8537_v61  ;;  %v8539_v8 = vunpack.i.h.bf16 %v8537_v61  ;;  %v1940_v61 = vmul.f32 %v9117_v38, %v808_v2 }
 0x344   :  { %v3080_v32 = vsel %vm3047_vm0, %v9882_v46, %v8538_v3  ;;  %v3726_v46 = vpop.f32.mrf.mxu1  ;;  %v3081_v5 = vsel %vm3047_vm0, %v9947_v41, %v8539_v8 }
 0x345   :  { %3459 = vmatmul.f32.gmra.mxu0 %v3080_v32 }
 0x348   :  { %v3436_v15 = vpop.f32.mrf.mxu0  ;;  %887 = vperm.xlu2 %8454, %v286_v6  }
 0x349   :  { %v793_v18 = vpop.permute.xlu2 %792  ;;  %v3437_v31 = vadd.f32 %v9913_v62, %v3436_v15 }
 0x34a   :  { %v1564_v21 = vmul.f32 %v9115_v37, %v793_v18  ;;  %v1937_v23 = vmul.f32 %v9117_v38, %v793_v18  ;;  %v1375_v58 = vmul.f32 %v9113_v36, %v793_v18 }
 0x34b   :  { %v3724_v47 = vadd.f32 %v3723_v35, %v3437_v31 }
 0x34c   :  { %v1748_v30 = vadd.f32 %v1564_v21, %v1374_v22  ;;  %v2121_v42 = vadd.f32 %v1937_v23, %v1747_v20  ;;  %v1749_v51 = vadd.f32 %v1565_v17, %v1375_v58  ;;  %v3729_v14 = vpop.f32.mrf.mxu1 }
 0x34d   :  { %3462 = vmatmul.f32.gmra.mxu0 %v3081_v5  ;;  %v3945_v59 = vmax.f32 %v3724_v47, 0.0 }
 0x34e   :  { %v2122_v40 = vadd.f32 %v1938_v45, %v1748_v30  ;;  %v2309_v44 = vadd.f32 %v9935_v29, %v2121_v42 }
 0x350   :  { %v3439_v43 = vpop.f32.mrf.mxu0  ;;  %v2310_v25 = vadd.f32 %v9935_v29, %v2122_v40  ;;  %v2493_v52 = vmax.f32 %v2309_v44, 0.0 }
 0x351   :  { %v3440_v10 = vadd.f32 %v9913_v62, %v3439_v43  ;;  %v803_v56 = vpop.permute.xlu2 %802  ;;  %v283_v43 = vld [vmem:[%s12408_s0 + $0x320] sm:$0xff] }
 0x352   :  { %v1566_v53 = vmul.f32 %v9115_v37, %v803_v56  ;;  %v1939_v60 = vmul.f32 %v9117_v38, %v803_v56  ;;  %v2494_v63 = vmax.f32 %v2310_v25, 0.0 }
 0x353   :  { %v3727_v41 = vadd.f32 %v3726_v46, %v3440_v10  ;;  %v1377_v10 = vmul.f32 %v9113_v36, %v803_v56 }
 0x354   :  { %v1750_v3 = vadd.f32 %v1566_v53, %v1376_v48  ;;  %v2123_v6 = vadd.f32 %v1939_v60, %v1749_v51  ;;  %v10136_v35 = vmax.f32 %v2493_v52, %v2494_v63  ;;  %v3732_v30 = vpop.f32.mrf.mxu1  ;;  %v1567_v48 = vmul.f32 %v9115_v37, %v808_v2  ;;  %v285_v52 = vld [vmem:[%s12408_s0 + $0x330] sm:$0xff] }
 0x355   :  { %v3946_v4 = vmax.f32 %v3727_v41, 0.0  ;;  %v1378_v53 = vmul.f32 %v9113_v36, %v808_v2 }
 0x356   :  { %v2124_v24 = vadd.f32 %v1940_v61, %v1750_v3  ;;  %v2311_v15 = vadd.f32 %v9935_v29, %v2123_v6  ;;  %8384 = vmatmul.msk.f32.gmra.mxu1 %vm3047_vm0, %v10136_v35  ;;  %v1751_v60 = vadd.f32 %v1567_v48, %v1377_v10 }
 0x357   :  { %v10138_v32 = vmax.f32 %v3945_v59, %v3946_v4 }
 0x358   :  { %v3442_v55 = vpop.f32.mrf.mxu0  ;;  %v2312_v8 = vadd.f32 %v9935_v29, %v2124_v24  ;;  %v2495_v18 = vmax.f32 %v2311_v15, 0.0 }
 0x359   :  { %12510 = vst [vmem:[#allocation32_spill] sm:$0xff] %v10138_v32  ;;  %4210 = vmatmul.f32.gmra.mxu2 %v10138_v32  ;;  %4352 = vmatmul.f32.gmra.mxu3 %v10138_v32  ;;  %v3443_v20 = vadd.f32 %v9913_v62, %v3442_v55  ;;  %v818_v25 = vpop.permute.xlu2 %817 }
 0x35a   :  { %v2496_v22 = vmax.f32 %v2312_v8, 0.0  ;;  %v1569_v2 = vmul.f32 %v9115_v37, %v818_v25  ;;  %v1380_v15 = vmul.f32 %v9113_v36, %v818_v25 }
 0x35b   :  { %v3730_v46 = vadd.f32 %v3729_v14, %v3443_v20 }
 0x35c   :  { %v10147_v21 = vmax.f32 %v2495_v18, %v2496_v22  ;;  %v288_v22 = vld [vmem:[%s12408_s0 + $0x348] sm:$0xff] }
 0x35d   :  { %v3947_v5 = vmax.f32 %v3730_v46, 0.0  ;;  %v3735_v46 = vpop.f32.mrf.mxu1 }
 0x35e   :  { %8385 = vmatmul.msk.f32.gmra.mxu1 %vm3047_vm0, %v10147_v21  ;;  %v8555_v23 = vpack.i.bf16 %v10147_v21, %v10136_v35 }
 0x360   :  { %v3445_v31 = vpop.f32.mrf.mxu0  ;;  %8556 = vrot.lane.b32.xlu1 %v8555_v23, %s8953_s12 }
 0x361   :  { %v3446_v45 = vadd.f32 %v9913_v62, %v3445_v31  ;;  %v828_v55 = vpop.permute.xlu2 %827 }
 0x363   :  { %v3733_v42 = vadd.f32 %v3732_v30, %v3446_v45  ;;  %v1944_v45 = vmul.f32 %v9117_v38, %v828_v55 }
 0x365   :  { %v3948_v58 = vmax.f32 %v3733_v42, 0.0 }
 0x367   :  { %v10155_v40 = vmax.f32 %v3947_v5, %v3948_v58  ;;  %v8542_v44 = vpop.permute.xlu1 %8541 }
 0x368   :  { %v8543_v17 = vunpack.i.l.bf16 %v8542_v44  ;;  %872 = vperm.xlu1 %8453, %v283_v43   ;;  %v8544_v51 = vunpack.i.h.bf16 %v8542_v44 }
 0x369   :  { %12511 = vst [vmem:[#allocation33_spill] sm:$0xff] %v10155_v40  ;;  %4213 = vmatmul.f32.gmra.mxu2 %v10155_v40  ;;  %4355 = vmatmul.f32.gmra.mxu3 %v10155_v40 }
 0x36a   :  { %v3082_v47 = vsel %vm3047_vm0, %v9963_v9, %v8543_v17  ;;  %v1942_v9 = vmul.f32 %v9117_v38, %v818_v25  ;;  %v3083_v61 = vsel %vm3047_vm0, %v9980_v39, %v8544_v51 }
 0x36b   :  { %3465 = vmatmul.f32.gmra.mxu0 %v3082_v47  ;;  %v290_v47 = vld [vmem:[%s12408_s0 + $0x358] sm:$0xff] }
 0x36f   :  { %v813_v41 = vpop.permute.xlu1 %812 }
 0x370   :  { %v1568_v63 = vmul.f32 %v9115_v37, %v813_v41  ;;  %v1941_v59 = vmul.f32 %v9117_v38, %v813_v41  ;;  %882 = vperm.xlu1 %8453, %v285_v52   ;;  %v1379_v3 = vmul.f32 %v9113_v36, %v813_v41  ;;  %v3738_v41 = vpop.f32.mrf.mxu1 }
 0x372   :  { %v1752_v4 = vadd.f32 %v1568_v63, %v1378_v53  ;;  %v2125_v56 = vadd.f32 %v1941_v59, %v1751_v60  ;;  %v1753_v8 = vadd.f32 %v1569_v2, %v1379_v3 }
 0x373   :  { %3468 = vmatmul.f32.gmra.mxu0 %v3083_v61  ;;  %v287_v61 = vld [vmem:[%s12408_s0 + $0x340] sm:$0xff] }
 0x374   :  { %v2126_v6 = vadd.f32 %v1942_v9, %v1752_v4  ;;  %v2313_v14 = vadd.f32 %v9935_v29, %v2125_v56 }
 0x376   :  { %v2314_v24 = vadd.f32 %v9935_v29, %v2126_v6  ;;  %v2497_v39 = vmax.f32 %v2313_v14, 0.0 }
 0x377   :  { %v823_v18 = vpop.permute.xlu1 %822 }
 0x378   :  { %v1570_v20 = vmul.f32 %v9115_v37, %v823_v18  ;;  %v1943_v23 = vmul.f32 %v9117_v38, %v823_v18  ;;  %v2498_v31 = vmax.f32 %v2314_v24, 0.0  ;;  %897 = vperm.xlu1 %8453, %v288_v22   ;;  %v3741_v2 = vpop.f32.mrf.mxu1 }
 0x37a   :  { %v1754_v30 = vadd.f32 %v1570_v20, %v1380_v15  ;;  %v2127_v42 = vadd.f32 %v1943_v23, %v1753_v8  ;;  %v10186_v5 = vmax.f32 %v2497_v39, %v2498_v31  ;;  %v1381_v15 = vmul.f32 %v9113_v36, %v823_v18  ;;  %v289_v31 = vld [vmem:[%s12408_s0 + $0x350] sm:$0xff] }
 0x37b   :  { %v1571_v20 = vmul.f32 %v9115_v37, %v828_v55 }
 0x37c   :  { %v2128_v58 = vadd.f32 %v1944_v45, %v1754_v30  ;;  %v2315_v44 = vadd.f32 %v9935_v29, %v2127_v42  ;;  %8386 = vmatmul.msk.f32.gmra.mxu1 %vm3047_vm0, %v10186_v5  ;;  %v3448_v43 = vpop.f32.mrf.mxu0 }
 0x37d   :  { %v3449_v48 = vadd.f32 %v9913_v62, %v3448_v43  ;;  %v1755_v45 = vadd.f32 %v1571_v20, %v1381_v15 }
 0x37e   :  { %v2316_v17 = vadd.f32 %v9935_v29, %v2128_v58  ;;  %v2499_v10 = vmax.f32 %v2315_v44, 0.0 }
 0x37f   :  { %v3736_v60 = vadd.f32 %v3735_v46, %v3449_v48  ;;  %v838_v8 = vpop.permute.xlu1 %837  ;;  %v1382_v46 = vmul.f32 %v9113_v36, %v828_v55 }
 0x380   :  { %v2500_v25 = vmax.f32 %v2316_v17, 0.0  ;;  %907 = vperm.xlu1 %8453, %v290_v47   ;;  %v3744_v43 = vpop.f32.mrf.mxu1  ;;  %v1946_v17 = vmul.f32 %v9117_v38, %v838_v8 }
 0x381   :  { %v3949_v9 = vmax.f32 %v3736_v60, 0.0 }
 0x382   :  { %v10196_v51 = vmax.f32 %v2499_v10, %v2500_v25  ;;  %v10214_v22 = vpop.permute.xlu2 %8551 }
 0x384   :  { %8387 = vmatmul.msk.f32.gmra.mxu1 %vm3047_vm0, %v10196_v51  ;;  %v3451_v52 = vpop.f32.mrf.mxu0  ;;  %v8560_v53 = vpack.i.bf16 %v10196_v51, %v10186_v5 }
 0x385   :  { %v3452_v63 = vadd.f32 %v9913_v62, %v3451_v52 }
 0x386   :  { %8561 = vrot.lane.b32.xlu0 %v8560_v53, %s8953_s12 }
 0x387   :  { %v3739_v59 = vadd.f32 %v3738_v41, %v3452_v63  ;;  %v8553_v63 = vunpack.i.l.bf16 %v10214_v22 }
 0x389   :  { %v3950_v4 = vmax.f32 %v3739_v59, 0.0  ;;  %v848_v59 = vpop.permute.xlu1 %847 }
 0x38b   :  { %v10204_v56 = vmax.f32 %v3949_v9, %v3950_v4  ;;  %v853_v9 = vpop.permute.xlu2 %852 }
 0x38c   :  { %v8547_v3 = vpop.permute.xlu0 %8546  ;;  %v3454_v6 = vpop.f32.mrf.mxu0 }
 0x38d   :  { %12512 = vst [vmem:[#allocation34_spill] sm:$0xff] %v10204_v56  ;;  %v8548_v14 = vunpack.i.l.bf16 %v8547_v3  ;;  %4216 = vmatmul.f32.gmra.mxu2 %v10204_v56  ;;  %4358 = vmatmul.f32.gmra.mxu3 %v10204_v56  ;;  %v3455_v39 = vadd.f32 %v9913_v62, %v3454_v6  ;;  %v8549_v23 = vunpack.i.h.bf16 %v8547_v3  ;;  %v1384_v3 = vmul.f32 %v9113_v36, %v838_v8 }
 0x38e   :  { %892 = vperm.xlu0 %8452, %v287_v61  }
 0x38f   :  { %v3084_v24 = vsel %vm3047_vm0, %v9990_v7, %v8548_v14  ;;  %v3742_v42 = vadd.f32 %v3741_v2, %v3455_v39  ;;  %v3085_v55 = vsel %vm3047_vm0, %v10049_v1, %v8549_v23  ;;  %v292_v1 = vld [vmem:[%s12408_s0 + $0x368] sm:$0xff]  ;;  %v1575_v23 = vmul.f32 %v9115_v37, %v848_v59 }
 0x390   :  { %3471 = vmatmul.f32.gmra.mxu0 %v3084_v24 }
 0x391   :  { %v3951_v41 = vmax.f32 %v3742_v42, 0.0 }
 0x394   :  { %v833_v30 = vpop.permute.xlu0 %832  ;;  %v3457_v7 = vpop.f32.mrf.mxu0 }
 0x395   :  { %v1572_v18 = vmul.f32 %v9115_v37, %v833_v30  ;;  %v1945_v58 = vmul.f32 %v9117_v38, %v833_v30  ;;  %v3458_v44 = vadd.f32 %v9913_v62, %v3457_v7  ;;  %v1383_v48 = vmul.f32 %v9113_v36, %v833_v30 }
 0x396   :  { %902 = vperm.xlu0 %8452, %v289_v31   ;;  %v1573_v62 = vmul.f32 %v9115_v37, %v838_v8  ;;  %v3086_v8 = vsel %vm3047_vm0, %v10066_v27, %v8553_v63  ;;  %v1948_v31 = vmul.f32 %v9117_v38, %v848_v59  ;;  %v1576_v7 = vmul.f32 %v9115_v37, %v853_v9 }
 0x397   :  { %v1756_v47 = vadd.f32 %v1572_v18, %v1382_v46  ;;  %v2129_v10 = vadd.f32 %v1945_v58, %v1755_v45  ;;  %v3745_v25 = vadd.f32 %v3744_v43, %v3458_v44  ;;  %v1386_v44 = vmul.f32 %v9113_v36, %v848_v59 }
 0x398   :  { %3474 = vmatmul.f32.gmra.mxu0 %v3085_v55  ;;  %v1757_v6 = vadd.f32 %v1573_v62, %v1383_v48  ;;  %v1949_v27 = vmul.f32 %v9117_v38, %v853_v9  ;;  %v8554_v43 = vunpack.i.h.bf16 %v10214_v22 }
 0x399   :  { %v2130_v52 = vadd.f32 %v1946_v17, %v1756_v47  ;;  %v2317_v53 = vadd.f32 %v9935_v29, %v2129_v10  ;;  %v3952_v60 = vmax.f32 %v3745_v25, 0.0  ;;  %v294_v47 = vld [vmem:[%s12408_s0 + $0x378] sm:$0xff]  ;;  %v1387_v10 = vmul.f32 %v9113_v36, %v853_v9 }
 0x39a   :  { %v1760_v25 = vadd.f32 %v1576_v7, %v1386_v44  ;;  %v3087_v59 = vsel %vm3047_vm0, %v10079_v19, %v8554_v43  ;;  %v296_v43 = vld [vmem:[%s12408_s0 + $0x388] sm:$0xff] }
 0x39b   :  { %v2318_v4 = vadd.f32 %v9935_v29, %v2130_v52  ;;  %v10233_v61 = vmax.f32 %v3951_v41, %v3952_v60  ;;  %v2501_v14 = vmax.f32 %v2317_v53, 0.0  ;;  %v10262_v41 = vpop.permute.xlu2 %862 }
 0x39c   :  { %v843_v2 = vpop.permute.xlu0 %842  ;;  %v1951_v9 = vmul.f32 %v9117_v38, %v10262_v41  ;;  %v1578_v19 = vmul.f32 %v9115_v37, %v10262_v41 }
 0x39d   :  { %12513 = vst [vmem:[#allocation35_spill] sm:$0xff] %v10233_v61  ;;  %v1385_v24 = vmul.f32 %v9113_v36, %v843_v2  ;;  %v1574_v15 = vmul.f32 %v9115_v37, %v843_v2  ;;  %v1947_v39 = vmul.f32 %v9117_v38, %v843_v2  ;;  %4219 = vmatmul.f32.gmra.mxu2 %v10233_v61  ;;  %v2502_v20 = vmax.f32 %v2318_v4, 0.0 }
 0x39e   :  { %4361 = vmatmul.f32.gmra.mxu3 %v10233_v61  ;;  %917 = vperm.xlu0 %8452, %v292_v1  }
 0x39f   :  { %v1758_v46 = vadd.f32 %v1574_v15, %v1384_v3  ;;  %v2131_v45 = vadd.f32 %v1947_v39, %v1757_v6  ;;  %v10248_v30 = vmax.f32 %v2501_v14, %v2502_v20  ;;  %v1759_v42 = vadd.f32 %v1575_v23, %v1385_v24 }
 0x3a0   :  { %3477 = vmatmul.f32.gmra.mxu0 %v3086_v8 }
 0x3a1   :  { %v2132_v18 = vadd.f32 %v1948_v31, %v1758_v46  ;;  %v2319_v58 = vadd.f32 %v9935_v29, %v2131_v45  ;;  %8388 = vmatmul.msk.f32.gmra.mxu1 %vm3047_vm0, %v10248_v30  ;;  %v2133_v55 = vadd.f32 %v1949_v27, %v1759_v42  ;;  %v291_v45 = vld [vmem:[%s12408_s0 + $0x360] sm:$0xff]  ;;  %v293_v27 = vld [vmem:[%s12408_s0 + $0x370] sm:$0xff] }
 0x3a3   :  { %v2320_v17 = vadd.f32 %v9935_v29, %v2132_v18  ;;  %v2503_v52 = vmax.f32 %v2319_v58, 0.0  ;;  %v2321_v1 = vadd.f32 %v9935_v29, %v2133_v55  ;;  %v10314_v55 = vld [vmem:[#allocation8] ss:$0 sm:$0xff] }
 0x3a4   :  { %v858_v48 = vpop.permute.xlu0 %857 }
 0x3a5   :  { %v1577_v53 = vmul.f32 %v9115_v37, %v858_v48  ;;  %v1950_v60 = vmul.f32 %v9117_v38, %v858_v48  ;;  %v2504_v62 = vmax.f32 %v2320_v17, 0.0  ;;  %v1388_v3 = vmul.f32 %v9113_v36, %v858_v48  ;;  %v3747_v17 = vpop.f32.mrf.mxu1 }
 0x3a6   :  { %927 = vperm.xlu0 %8452, %v294_v47   ;;  %v2505_v23 = vmax.f32 %v2321_v1, 0.0 }
 0x3a7   :  { %v1761_v22 = vadd.f32 %v1577_v53, %v1387_v10  ;;  %v2134_v63 = vadd.f32 %v1950_v60, %v1760_v25  ;;  %v10268_v4 = vmax.f32 %v2503_v52, %v2504_v62  ;;  %v1762_v39 = vadd.f32 %v1578_v19, %v1388_v3  ;;  %v297_v10 = vld [vmem:[%s12408_s0 + $0x390] sm:$0xff]  ;;  %v298_v25 = vld [vmem:[%s12408_s0 + $0x398] sm:$0xff] }
 0x3a8   :  { %3480 = vmatmul.f32.gmra.mxu0 %v3087_v59 }
 0x3a9   :  { %v2322_v6 = vadd.f32 %v9935_v29, %v2134_v63  ;;  %8389 = vmatmul.msk.f32.gmra.mxu1 %vm3047_vm0, %v10268_v4  ;;  %v8565_v14 = vpack.i.bf16 %v10268_v4, %v10248_v30  ;;  %v2135_v2 = vadd.f32 %v1951_v9, %v1761_v22  ;;  %v300_v22 = vld [vmem:[%s12408_s0 + $0x3a8] sm:$0xff] }
 0x3ab   :  { %v2506_v24 = vmax.f32 %v2322_v6, 0.0  ;;  %8566 = vrot.lane.b32.xlu2 %v8565_v14, %s8953_s12  ;;  %v2323_v8 = vadd.f32 %v9935_v29, %v2135_v2  ;;  %v302_v14 = vld [vmem:[%s12408_s0 + $0x3b8] sm:$0xff] }
 0x3ac   :  { %v868_v15 = vpop.permute.xlu0 %867 }
 0x3ad   :  { %v1952_v20 = vmul.f32 %v9117_v38, %v868_v15  ;;  %v10284_v46 = vmax.f32 %v2505_v23, %v2506_v24  ;;  %v2507_v42 = vmax.f32 %v2323_v8, 0.0  ;;  %v3750_v62 = vpop.f32.mrf.mxu1  ;;  %v1579_v2 = vmul.f32 %v9115_v37, %v868_v15  ;;  %v878_v24 = vpop.permute.xlu2 %877 }
 0x3ae   :  { %v1390_v8 = vmul.f32 %v9113_v36, %v868_v15 }
 0x3af   :  { %v2136_v31 = vadd.f32 %v1952_v20, %v1762_v39  ;;  %v1389_v39 = vmul.f32 %v9113_v36, %v10262_v41 }
 0x3b1   :  { %v2324_v7 = vadd.f32 %v9935_v29, %v2136_v31  ;;  %8390 = vmatmul.msk.f32.gmra.mxu1 %vm3047_vm0, %v10284_v46  ;;  %v295_v29 = vld [vmem:[%s12408_s0 + $0x380] sm:$0xff]  ;;  %v1763_v31 = vadd.f32 %v1579_v2, %v1389_v39 }
 0x3b3   :  { %v2508_v18 = vmax.f32 %v2324_v7, 0.0  ;;  %912 = vperm.xlu2 %8454, %v291_v45  }
 0x3b5   :  { %v10292_v58 = vmax.f32 %v2507_v42, %v2508_v18  ;;  %v1954_v42 = vmul.f32 %v9117_v38, %v878_v24 }
 0x3b7   :  { %v8570_v44 = vpack.i.bf16 %v10292_v58, %v10284_v46 }
 0x3b9   :  { %8571 = vrot.lane.b32.xlu1 %v8570_v44, %s8953_s12  ;;  %8391 = vmatmul.msk.f32.gmra.mxu1 %vm3047_vm0, %v10292_v58 }
 0x3bb   :  { %922 = vperm.xlu2 %8454, %v293_v27  }
 0x3c1   :  { %932 = vperm.xlu1 %8453, %v295_v29   ;;  %v10340_v29 = vld [vmem:[#allocation5] ss:$0 sm:$0xff] }
 0x3c2   :  { %v3460_v47 = vpop.f32.mrf.mxu0 }
 0x3c3   :  { %937 = vperm.xlu2 %8454, %v296_v43   ;;  %v3461_v48 = vadd.f32 %v10314_v55, %v3460_v47  ;;  %v1581_v43 = vmul.f32 %v9115_v37, %v878_v24  ;;  %v1392_v47 = vmul.f32 %v9113_v36, %v878_v24 }
 0x3c5   :  { %v3748_v53 = vadd.f32 %v3747_v17, %v3461_v48 }
 0x3c7   :  { %v3953_v59 = vmax.f32 %v3748_v53, 0.0 }
 0x3c9   :  { %942 = vperm.xlu1 %8453, %v297_v10   ;;  %v888_v10 = vpop.permute.xlu2 %887 }
 0x3ca   :  { %v3463_v52 = vpop.f32.mrf.mxu0 }
 0x3cb   :  { %947 = vperm.xlu2 %8454, %v298_v25   ;;  %v3464_v60 = vadd.f32 %v10314_v55, %v3463_v52 }
 0x3cd   :  { %v3751_v63 = vadd.f32 %v3750_v62, %v3464_v60  ;;  %v1956_v62 = vmul.f32 %v9117_v38, %v888_v10 }
 0x3cf   :  { %v3954_v9 = vmax.f32 %v3751_v63, 0.0 }
 0x3d1   :  { %957 = vperm.xlu1 %8453, %v300_v22   ;;  %v10321_v1 = vmax.f32 %v3953_v59, %v3954_v9 }
 0x3d2   :  { %v8557_v3 = vpop.permute.xlu1 %8556 }
 0x3d3   :  { %12514 = vst [vmem:[#allocation36_spill] sm:$0xff] %v10321_v1  ;;  %v8558_v6 = vunpack.i.l.bf16 %v8557_v3  ;;  %4222 = vmatmul.f32.gmra.mxu2 %v10321_v1  ;;  %4364 = vmatmul.f32.gmra.mxu3 %v10321_v1  ;;  %v8559_v20 = vunpack.i.h.bf16 %v8557_v3 }
 0x3d5   :  { %v3088_v19 = vsel %vm3047_vm0, %v10088_v13, %v8558_v6  ;;  %v3089_v44 = vsel %vm3047_vm0, %v10136_v35, %v8559_v20  ;;  %v3753_v6 = vpop.f32.mrf.mxu1 }
 0x3d6   :  { %3483 = vmatmul.f32.gmra.mxu0 %v3088_v19 }
 0x3d9   :  { %967 = vperm.xlu1 %8453, %v302_v14  }
 0x3da   :  { %v873_v23 = vpop.permute.xlu1 %872 }
 0x3db   :  { %v1580_v45 = vmul.f32 %v9115_v37, %v873_v23  ;;  %v1953_v7 = vmul.f32 %v9117_v38, %v873_v23  ;;  %v1391_v27 = vmul.f32 %v9113_v36, %v873_v23 }
 0x3dd   :  { %v1764_v13 = vadd.f32 %v1580_v45, %v1390_v8  ;;  %v2137_v18 = vadd.f32 %v1953_v7, %v1763_v31  ;;  %v1765_v25 = vadd.f32 %v1581_v43, %v1391_v27  ;;  %v3756_v45 = vpop.f32.mrf.mxu1 }
 0x3de   :  { %3486 = vmatmul.f32.gmra.mxu0 %v3089_v44 }
 0x3df   :  { %v2138_v41 = vadd.f32 %v1954_v42, %v1764_v13  ;;  %v2325_v15 = vadd.f32 %v10340_v29, %v2137_v18 }
 0x3e1   :  { %v2326_v17 = vadd.f32 %v10340_v29, %v2138_v41  ;;  %v2509_v52 = vmax.f32 %v2325_v15, 0.0  ;;  %v299_v15 = vld [vmem:[%s12408_s0 + $0x3a0] sm:$0xff] }
 0x3e2   :  { %v883_v48 = vpop.permute.xlu1 %882 }
 0x3e3   :  { %v1582_v35 = vmul.f32 %v9115_v37, %v883_v48  ;;  %v1955_v53 = vmul.f32 %v9117_v38, %v883_v48  ;;  %v2510_v60 = vmax.f32 %v2326_v17, 0.0  ;;  %v1393_v17 = vmul.f32 %v9113_v36, %v883_v48 }
 0x3e5   :  { %v1766_v22 = vadd.f32 %v1582_v35, %v1392_v47  ;;  %v2139_v63 = vadd.f32 %v1955_v53, %v1765_v25  ;;  %v10349_v59 = vmax.f32 %v2509_v52, %v2510_v60  ;;  %v1583_v25 = vmul.f32 %v9115_v37, %v888_v10 }
 0x3e6   :  { %v1394_v53 = vmul.f32 %v9113_v36, %v888_v10 }
 0x3e7   :  { %v2140_v3 = vadd.f32 %v1956_v62, %v1766_v22  ;;  %8392 = vmatmul.msk.f32.gmra.mxu1 %vm3047_vm0, %v10349_v59  ;;  %v2327_v14 = vadd.f32 %v10340_v29, %v2139_v63  ;;  %v1767_v60 = vadd.f32 %v1583_v25, %v1393_v17 }
 0x3e8   :  { %v3466_v9 = vpop.f32.mrf.mxu0 }
 0x3e9   :  { %v2328_v19 = vadd.f32 %v10340_v29, %v2140_v3  ;;  %v3467_v2 = vadd.f32 %v10314_v55, %v3466_v9  ;;  %v2511_v24 = vmax.f32 %v2327_v14, 0.0 }
 0x3ea   :  { %v898_v47 = vpop.permute.xlu1 %897 }
 0x3eb   :  { %v2512_v39 = vmax.f32 %v2328_v19, 0.0  ;;  %v3754_v8 = vadd.f32 %v3753_v6, %v3467_v2  ;;  %v1958_v63 = vmul.f32 %v9117_v38, %v898_v47  ;;  %v1585_v2 = vmul.f32 %v9115_v37, %v898_v47 }
 0x3ed   :  { %v10356_v20 = vmax.f32 %v2511_v24, %v2512_v39  ;;  %v3955_v13 = vmax.f32 %v3754_v8, 0.0  ;;  %v1396_v8 = vmul.f32 %v9113_v36, %v898_v47 }
 0x3ef   :  { %8393 = vmatmul.msk.f32.gmra.mxu1 %vm3047_vm0, %v10356_v20  ;;  %v8575_v7 = vpack.i.bf16 %v10356_v20, %v10349_v59 }
 0x3f0   :  { %v3469_v23 = vpop.f32.mrf.mxu0 }
 0x3f1   :  { %v3470_v31 = vadd.f32 %v10314_v55, %v3469_v23  ;;  %8576 = vrot.lane.b32.xlu0 %v8575_v7, %s8953_s12 }
 0x3f2   :  { %v908_v39 = vpop.permute.xlu1 %907 }
 0x3f3   :  { %v3757_v42 = vadd.f32 %v3756_v45, %v3470_v31 }
 0x3f5   :  { %v3956_v18 = vmax.f32 %v3757_v42, 0.0 }
 0x3f7   :  { %v10364_v44 = vmax.f32 %v3955_v13, %v3956_v18  ;;  %v304_v13 = vld [vmem:[%s12408_s0 + $0x3c8] sm:$0xff] }
 0x3f8   :  { %v8562_v27 = vpop.permute.xlu0 %8561 }
 0x3f9   :  { %12515 = vst [vmem:[#allocation37_spill] sm:$0xff] %v10364_v44  ;;  %v8563_v41 = vunpack.i.l.bf16 %v8562_v27  ;;  %4225 = vmatmul.f32.gmra.mxu2 %v10364_v44  ;;  %4367 = vmatmul.f32.gmra.mxu3 %v10364_v44  ;;  %v8564_v52 = vunpack.i.h.bf16 %v8562_v27  ;;  %v3759_v27 = vpop.f32.mrf.mxu1 }
 0x3fa   :  { %952 = vperm.xlu0 %8452, %v299_v15  }
 0x3fb   :  { %v3090_v43 = vsel %vm3047_vm0, %v10147_v21, %v8563_v41  ;;  %v301_v21 = vld [vmem:[%s12408_s0 + $0x3b0] sm:$0xff]  ;;  %v3091_v3 = vsel %vm3047_vm0, %v10186_v5, %v8564_v52  ;;  %v1960_v41 = vmul.f32 %v9117_v38, %v908_v39  ;;  %v1587_v52 = vmul.f32 %v9115_v37, %v908_v39 }
 0x3fc   :  { %3489 = vmatmul.f32.gmra.mxu0 %v3090_v43 }
 0x400   :  { %v893_v35 = vpop.permute.xlu0 %892 }
 0x401   :  { %v1584_v62 = vmul.f32 %v9115_v37, %v893_v35  ;;  %v1957_v22 = vmul.f32 %v9117_v38, %v893_v35  ;;  %v1395_v6 = vmul.f32 %v9113_v36, %v893_v35 }
 0x402   :  { %962 = vperm.xlu0 %8452, %v301_v21  }
 0x403   :  { %v1768_v9 = vadd.f32 %v1584_v62, %v1394_v53  ;;  %v2141_v48 = vadd.f32 %v1957_v22, %v1767_v60  ;;  %v1769_v31 = vadd.f32 %v1585_v2, %v1395_v6  ;;  %v1398_v62 = vmul.f32 %v9113_v36, %v908_v39 }
 0x404   :  { %3492 = vmatmul.f32.gmra.mxu0 %v3091_v3 }
 0x405   :  { %v2142_v10 = vadd.f32 %v1958_v63, %v1768_v9  ;;  %v2329_v14 = vadd.f32 %v10340_v29, %v2141_v48  ;;  %v8567_v19 = vpop.permute.xlu2 %8566 }
 0x406   :  { %v8568_v24 = vunpack.i.l.bf16 %v8567_v19  ;;  %v8569_v63 = vunpack.i.h.bf16 %v8567_v19 }
 0x407   :  { %v2330_v23 = vadd.f32 %v10340_v29, %v2142_v10  ;;  %v2513_v7 = vmax.f32 %v2329_v14, 0.0 }
 0x408   :  { %v903_v45 = vpop.permute.xlu0 %902  ;;  %v3092_v15 = vsel %vm3047_vm0, %v10196_v51, %v8568_v24  ;;  %v306_v24 = vld [vmem:[%s12408_s0 + $0x3d8] sm:$0xff]  ;;  %v3093_v19 = vsel %vm3047_vm0, %v10248_v30, %v8569_v63 }
 0x409   :  { %v1586_v5 = vmul.f32 %v9115_v37, %v903_v45  ;;  %v1959_v42 = vmul.f32 %v9117_v38, %v903_v45  ;;  %v2514_v18 = vmax.f32 %v2330_v23, 0.0  ;;  %v1397_v43 = vmul.f32 %v9113_v36, %v903_v45  ;;  %v3762_v45 = vpop.f32.mrf.mxu1 }
 0x40a   :  { %977 = vperm.xlu0 %8452, %v304_v13  }
 0x40b   :  { %v1770_v17 = vadd.f32 %v1586_v5, %v1396_v8  ;;  %v2143_v47 = vadd.f32 %v1959_v42, %v1769_v31  ;;  %v10398_v25 = vmax.f32 %v2513_v7, %v2514_v18  ;;  %v1771_v9 = vadd.f32 %v1587_v52, %v1397_v43 }
 0x40c   :  { %3495 = vmatmul.f32.gmra.mxu0 %v3092_v15 }
 0x40d   :  { %v2144_v35 = vadd.f32 %v1960_v41, %v1770_v17  ;;  %8394 = vmatmul.msk.f32.gmra.mxu1 %vm3047_vm0, %v10398_v25  ;;  %v913_v53 = vpop.permute.xlu2 %912  ;;  %v3472_v60 = vpop.f32.mrf.mxu0  ;;  %v2331_v51 = vadd.f32 %v10340_v29, %v2143_v47 }
 0x40e   :  { %v1588_v22 = vmul.f32 %v9115_v37, %v913_v53  ;;  %v1961_v21 = vmul.f32 %v9117_v38, %v913_v53  ;;  %v3473_v14 = vadd.f32 %v10314_v55, %v3472_v60  ;;  %v1399_v7 = vmul.f32 %v9113_v36, %v913_v53 }
 0x40f   :  { %v2332_v48 = vadd.f32 %v10340_v29, %v2144_v35  ;;  %v2515_v39 = vmax.f32 %v2331_v51, 0.0 }
 0x410   :  { %v1772_v3 = vadd.f32 %v1588_v22, %v1398_v62  ;;  %v918_v6 = vpop.permute.xlu0 %917  ;;  %v2145_v10 = vadd.f32 %v1961_v21, %v1771_v9  ;;  %v3760_v13 = vadd.f32 %v3759_v27, %v3473_v14 }
 0x411   :  { %v1962_v2 = vmul.f32 %v9117_v38, %v918_v6  ;;  %v1589_v23 = vmul.f32 %v9115_v37, %v918_v6  ;;  %v2516_v8 = vmax.f32 %v2332_v48, 0.0  ;;  %v1400_v18 = vmul.f32 %v9113_v36, %v918_v6 }
 0x412   :  { %987 = vperm.xlu0 %8452, %v306_v24   ;;  %v2333_v42 = vadd.f32 %v10340_v29, %v2145_v10  ;;  %v3957_v63 = vmax.f32 %v3760_v13, 0.0  ;;  %v303_v24 = vld [vmem:[%s12408_s0 + $0x3c0] sm:$0xff] }
 0x413   :  { %v2146_v31 = vadd.f32 %v1962_v2, %v1772_v3  ;;  %v10417_v5 = vmax.f32 %v2515_v39, %v2516_v8  ;;  %v1773_v17 = vadd.f32 %v1589_v23, %v1399_v7  ;;  %v3765_v39 = vpop.f32.mrf.mxu1 }
 0x414   :  { %3498 = vmatmul.f32.gmra.mxu0 %v3093_v19  ;;  %v2517_v21 = vmax.f32 %v2333_v42, 0.0 }
 0x415   :  { %v2334_v41 = vadd.f32 %v10340_v29, %v2146_v31  ;;  %v923_v15 = vpop.permute.xlu2 %922  ;;  %v3475_v43 = vpop.f32.mrf.mxu0  ;;  %8395 = vmatmul.msk.f32.gmra.mxu1 %vm3047_vm0, %v10417_v5  ;;  %v8580_v35 = vpack.i.bf16 %v10417_v5, %v10398_v25 }
 0x416   :  { %v1590_v30 = vmul.f32 %v9115_v37, %v923_v15  ;;  %v1963_v47 = vmul.f32 %v9117_v38, %v923_v15  ;;  %v3476_v52 = vadd.f32 %v10314_v55, %v3475_v43 }
 0x417   :  { %v2518_v27 = vmax.f32 %v2334_v41, 0.0  ;;  %8581 = vrot.lane.b32.xlu2 %v8580_v35, %s8953_s12 }
 0x418   :  { %v1774_v53 = vadd.f32 %v1590_v30, %v1400_v18  ;;  %v2147_v60 = vadd.f32 %v1963_v47, %v1773_v17  ;;  %v3763_v62 = vadd.f32 %v3762_v45, %v3476_v52  ;;  %v928_v51 = vpop.permute.xlu0 %927  ;;  %v305_v18 = vld [vmem:[%s12408_s0 + $0x3d0] sm:$0xff]  ;;  %v307_v47 = vld [vmem:[%s12408_s0 + $0x3e0] sm:$0xff] }
 0x419   :  { %v1964_v22 = vmul.f32 %v9117_v38, %v928_v51  ;;  %v10434_v10 = vmax.f32 %v2517_v21, %v2518_v27  ;;  %v1401_v21 = vmul.f32 %v9113_v36, %v923_v15  ;;  %v310_v15 = vld [vmem:[%s12408_s0 + $0x3f8] sm:$0xff] }
 0x41a   :  { %v3958_v9 = vmax.f32 %v3763_v62, 0.0  ;;  %v2335_v48 = vadd.f32 %v10340_v29, %v2147_v60  ;;  %v1591_v62 = vmul.f32 %v9115_v37, %v928_v51 }
 0x41b   :  { %v2148_v3 = vadd.f32 %v1964_v22, %v1774_v53  ;;  %v3768_v41 = vpop.f32.mrf.mxu1  ;;  %v308_v53 = vld [vmem:[%s12408_s0 + $0x3e8] sm:$0xff] }
 0x41c   :  { %v10432_v6 = vmax.f32 %v3957_v63, %v3958_v9  ;;  %v2519_v23 = vmax.f32 %v2335_v48, 0.0  ;;  %v309_v9 = vld [vmem:[%s12408_s0 + $0x3f0] sm:$0xff] }
 0x41d   :  { %v2336_v14 = vadd.f32 %v10340_v29, %v2148_v3  ;;  %v3478_v2 = vpop.f32.mrf.mxu0  ;;  %8396 = vmatmul.msk.f32.gmra.mxu1 %vm3047_vm0, %v10434_v10  ;;  %v938_v22 = vpop.permute.xlu2 %937  ;;  %v1402_v3 = vmul.f32 %v9113_v36, %v928_v51 }
 0x41e   :  { %12516 = vst [vmem:[#allocation38_spill] sm:$0xff] %v10432_v6  ;;  %4228 = vmatmul.f32.gmra.mxu2 %v10432_v6  ;;  %4370 = vmatmul.f32.gmra.mxu3 %v10432_v6  ;;  %v3479_v19 = vadd.f32 %v10314_v55, %v3478_v2 }
 0x41f   :  { %v2520_v8 = vmax.f32 %v2336_v14, 0.0  ;;  %972 = vperm.xlu2 %8454, %v303_v24   ;;  %v1775_v14 = vadd.f32 %v1591_v62, %v1401_v21  ;;  %v1966_v24 = vmul.f32 %v9117_v38, %v938_v22 }
 0x420   :  { %v3766_v42 = vadd.f32 %v3765_v39, %v3479_v19 }
 0x421   :  { %v10444_v31 = vmax.f32 %v2519_v23, %v2520_v8 }
 0x422   :  { %v3959_v17 = vmax.f32 %v3766_v42, 0.0 }
 0x423   :  { %v8585_v45 = vpack.i.bf16 %v10444_v31, %v10434_v10 }
 0x425   :  { %8586 = vrot.lane.b32.xlu1 %v8585_v45, %s8953_s12  ;;  %v3481_v7 = vpop.f32.mrf.mxu0  ;;  %8397 = vmatmul.msk.f32.gmra.mxu1 %vm3047_vm0, %v10444_v31 }
 0x426   :  { %v3482_v13 = vadd.f32 %v10314_v55, %v3481_v7  ;;  %v1593_v7 = vmul.f32 %v9115_v37, %v938_v22 }
 0x427   :  { %982 = vperm.xlu2 %8454, %v305_v18   ;;  %v1404_v18 = vmul.f32 %v9113_v36, %v938_v22 }
 0x428   :  { %v3769_v43 = vadd.f32 %v3768_v41, %v3482_v13  ;;  %v312_v13 = vld [vmem:[%s12408_s0 + $0x408] sm:$0xff]  ;;  %v948_v41 = vpop.permute.xlu2 %947 }
 0x42a   :  { %v3960_v30 = vmax.f32 %v3769_v43, 0.0 }
 0x42b   :  { %v8572_v52 = vpop.permute.xlu1 %8571 }
 0x42c   :  { %v10459_v35 = vmax.f32 %v3959_v17, %v3960_v30  ;;  %v8573_v27 = vunpack.i.l.bf16 %v8572_v52  ;;  %v8574_v63 = vunpack.i.h.bf16 %v8572_v52 }
 0x42d   :  { %992 = vperm.xlu1 %8453, %v307_v47  }
 0x42e   :  { %12517 = vst [vmem:[#allocation39_spill] sm:$0xff] %v10459_v35  ;;  %4231 = vmatmul.f32.gmra.mxu2 %v10459_v35  ;;  %4373 = vmatmul.f32.gmra.mxu3 %v10459_v35  ;;  %v3094_v60 = vsel %vm3047_vm0, %v10268_v4, %v8573_v27  ;;  %v3095_v8 = vsel %vm3047_vm0, %v10284_v46, %v8574_v63 }
 0x42f   :  { %3501 = vmatmul.f32.gmra.mxu0 %v3094_v60  ;;  %997 = vperm.xlu2 %8454, %v308_v53   ;;  %v1968_v27 = vmul.f32 %v9117_v38, %v948_v41 }
 0x433   :  { %v933_v48 = vpop.permute.xlu1 %932 }
 0x434   :  { %v1592_v2 = vmul.f32 %v9115_v37, %v933_v48  ;;  %v1965_v4 = vmul.f32 %v9117_v38, %v933_v48  ;;  %v1403_v19 = vmul.f32 %v9113_v36, %v933_v48 }
 0x435   :  { %1002 = vperm.xlu1 %8453, %v309_v9   ;;  %v314_v9 = vld [vmem:[%s12408_s0 + $0x418] sm:$0xff] }
 0x436   :  { %v1776_v39 = vadd.f32 %v1592_v2, %v1402_v3  ;;  %v2149_v23 = vadd.f32 %v1965_v4, %v1775_v14  ;;  %v1777_v43 = vadd.f32 %v1593_v7, %v1403_v19  ;;  %v311_v4 = vld [vmem:[%s12408_s0 + $0x400] sm:$0xff]  ;;  %v316_v7 = vld [vmem:[%s12408_s0 + $0x428] sm:$0xff] }
 0x437   :  { %3504 = vmatmul.f32.gmra.mxu0 %v3095_v8  ;;  %1007 = vperm.xlu2 %8454, %v310_v15  }
 0x438   :  { %v2150_v51 = vadd.f32 %v1966_v24, %v1776_v39  ;;  %v2337_v45 = vadd.f32 %v10340_v29, %v2149_v23  ;;  %v3771_v39 = vpop.f32.mrf.mxu1  ;;  %v313_v23 = vld [vmem:[%s12408_s0 + $0x410] sm:$0xff] }
 0x43a   :  { %v2338_v42 = vadd.f32 %v10340_v29, %v2150_v51  ;;  %v2521_v17 = vmax.f32 %v2337_v45, 0.0 }
 0x43b   :  { %v943_v46 = vpop.permute.xlu1 %942 }
 0x43c   :  { %v1594_v30 = vmul.f32 %v9115_v37, %v943_v46  ;;  %v1967_v47 = vmul.f32 %v9117_v38, %v943_v46  ;;  %v2522_v52 = vmax.f32 %v2338_v42, 0.0 }
 0x43d   :  { %1017 = vperm.xlu1 %8453, %v312_v13  }
 0x43e   :  { %v1778_v53 = vadd.f32 %v1594_v30, %v1404_v18  ;;  %v2151_v60 = vadd.f32 %v1967_v47, %v1777_v43  ;;  %v10493_v62 = vmax.f32 %v2521_v17, %v2522_v52  ;;  %v318_v47 = vld [vmem:[%s12408_s0 + $0x438] sm:$0xff] }
 0x440   :  { %v2152_v21 = vadd.f32 %v1968_v27, %v1778_v53  ;;  %v2339_v63 = vadd.f32 %v10340_v29, %v2151_v60  ;;  %8398 = vmatmul.msk.f32.gmra.mxu1 %vm3047_vm0, %v10493_v62  ;;  %v3774_v45 = vpop.f32.mrf.mxu1  ;;  %v1405_v27 = vmul.f32 %v9113_v36, %v943_v46  ;;  %v1595_v60 = vmul.f32 %v9115_v37, %v948_v41 }
 0x442   :  { %v2340_v22 = vadd.f32 %v10340_v29, %v2152_v21  ;;  %v2523_v48 = vmax.f32 %v2339_v63, 0.0 }
 0x443   :  { %v958_v53 = vpop.permute.xlu1 %957 }
 0x444   :  { %v2524_v3 = vmax.f32 %v2340_v22, 0.0  ;;  %v1406_v22 = vmul.f32 %v9113_v36, %v948_v41  ;;  %v1597_v41 = vmul.f32 %v9115_v37, %v958_v53 }
 0x445   :  { %1027 = vperm.xlu1 %8453, %v314_v9   ;;  %v1779_v9 = vadd.f32 %v1595_v60, %v1405_v27 }
 0x446   :  { %v10502_v14 = vmax.f32 %v2523_v48, %v2524_v3 }
 0x448   :  { %8399 = vmatmul.msk.f32.gmra.mxu1 %vm3047_vm0, %v10502_v14  ;;  %v8590_v2 = vpack.i.bf16 %v10502_v14, %v10493_v62 }
 0x44a   :  { %8591 = vrot.lane.b32.xlu0 %v8590_v2, %s8953_s12  ;;  %v1970_v2 = vmul.f32 %v9117_v38, %v958_v53 }
 0x452   :  { %1012 = vperm.xlu0 %8452, %v311_v4  }
 0x453   :  { %v3484_v24 = vpop.f32.mrf.mxu0 }
 0x454   :  { %v3485_v15 = vadd.f32 %v10314_v55, %v3484_v24 }
 0x456   :  { %v3772_v19 = vadd.f32 %v3771_v39, %v3485_v15 }
 0x458   :  { %v3961_v13 = vmax.f32 %v3772_v19, 0.0  ;;  %v968_v19 = vpop.permute.xlu1 %967 }
 0x45a   :  { %1022 = vperm.xlu0 %8452, %v313_v23  }
 0x45b   :  { %v3487_v8 = vpop.f32.mrf.mxu0 }
 0x45c   :  { %v3488_v51 = vadd.f32 %v10314_v55, %v3487_v8 }
 0x45e   :  { %v3775_v42 = vadd.f32 %v3774_v45, %v3488_v51  ;;  %v1408_v45 = vmul.f32 %v9113_v36, %v958_v53 }
 0x460   :  { %v3962_v18 = vmax.f32 %v3775_v42, 0.0 }
 0x462   :  { %1037 = vperm.xlu0 %8452, %v316_v7   ;;  %v10520_v43 = vmax.f32 %v3961_v13, %v3962_v18  ;;  %v3777_v13 = vpop.f32.mrf.mxu1 }
 0x463   :  { %v8577_v17 = vpop.permute.xlu0 %8576 }
 0x464   :  { %12518 = vst [vmem:[#allocation40_spill] sm:$0xff] %v10520_v43  ;;  %4234 = vmatmul.f32.gmra.mxu2 %v10520_v43  ;;  %4376 = vmatmul.f32.gmra.mxu3 %v10520_v43  ;;  %v8578_v30 = vunpack.i.l.bf16 %v8577_v17  ;;  %v8579_v21 = vunpack.i.h.bf16 %v8577_v17 }
 0x466   :  { %v3096_v52 = vsel %vm3047_vm0, %v10292_v58, %v8578_v30  ;;  %v3097_v24 = vsel %vm3047_vm0, %v10349_v59, %v8579_v21 }
 0x467   :  { %3507 = vmatmul.f32.gmra.mxu0 %v3096_v52 }
 0x46a   :  { %1047 = vperm.xlu0 %8452, %v318_v47   ;;  %v1972_v47 = vmul.f32 %v9117_v38, %v968_v19 }
 0x46c   :  { %v953_v63 = vpop.permute.xlu0 %952 }
 0x46d   :  { %v1596_v48 = vmul.f32 %v9115_v37, %v953_v63  ;;  %v1969_v3 = vmul.f32 %v9117_v38, %v953_v63  ;;  %v1407_v46 = vmul.f32 %v9113_v36, %v953_v63 }
 0x46f   :  { %v1780_v4 = vadd.f32 %v1596_v48, %v1406_v22  ;;  %v2153_v58 = vadd.f32 %v1969_v3, %v1779_v9  ;;  %3510 = vmatmul.f32.gmra.mxu0 %v3097_v24  ;;  %v1781_v7 = vadd.f32 %v1597_v41, %v1407_v46  ;;  %v1599_v22 = vmul.f32 %v9115_v37, %v968_v19 }
 0x471   :  { %v2154_v39 = vadd.f32 %v1970_v2, %v1780_v4  ;;  %v2341_v23 = vadd.f32 %v10340_v29, %v2153_v58  ;;  %v8582_v15 = vpop.permute.xlu2 %8581  ;;  %v1410_v2 = vmul.f32 %v9113_v36, %v968_v19 }
 0x472   :  { %v8583_v8 = vunpack.i.l.bf16 %v8582_v15  ;;  %v8584_v58 = vunpack.i.h.bf16 %v8582_v15 }
 0x473   :  { %v2342_v51 = vadd.f32 %v10340_v29, %v2154_v39  ;;  %v2525_v18 = vmax.f32 %v2341_v23, 0.0 }
 0x474   :  { %v963_v42 = vpop.permute.xlu0 %962  ;;  %v3098_v52 = vsel %vm3047_vm0, %v10356_v20, %v8583_v8  ;;  %v3780_v8 = vpop.f32.mrf.mxu1 }
 0x475   :  { %v1598_v59 = vmul.f32 %v9115_v37, %v963_v42  ;;  %v1971_v17 = vmul.f32 %v9117_v38, %v963_v42  ;;  %v2526_v30 = vmax.f32 %v2342_v51, 0.0  ;;  %v1409_v27 = vmul.f32 %v9113_v36, %v963_v42 }
 0x477   :  { %v1782_v60 = vadd.f32 %v1598_v59, %v1408_v45  ;;  %v2155_v21 = vadd.f32 %v1971_v17, %v1781_v7  ;;  %v10548_v63 = vmax.f32 %v2525_v18, %v2526_v30  ;;  %3513 = vmatmul.f32.gmra.mxu0 %v3098_v52  ;;  %v1783_v24 = vadd.f32 %v1599_v22, %v1409_v27 }
 0x478   :  { %v3099_v59 = vsel %vm3047_vm0, %v10398_v25, %v8584_v58 }
 0x479   :  { %v3490_v53 = vpop.f32.mrf.mxu0  ;;  %v2156_v9 = vadd.f32 %v1972_v47, %v1782_v60  ;;  %v2343_v48 = vadd.f32 %v10340_v29, %v2155_v21  ;;  %8400 = vmatmul.msk.f32.gmra.mxu1 %vm3047_vm0, %v10548_v63  ;;  %v973_v3 = vpop.permute.xlu2 %972 }
 0x47a   :  { %v1600_v20 = vmul.f32 %v9115_v37, %v973_v3  ;;  %v1973_v4 = vmul.f32 %v9117_v38, %v973_v3  ;;  %v3491_v23 = vadd.f32 %v10314_v55, %v3490_v53  ;;  %v1411_v30 = vmul.f32 %v9113_v36, %v973_v3 }
 0x47b   :  { %v2344_v46 = vadd.f32 %v10340_v29, %v2156_v9  ;;  %v2527_v51 = vmax.f32 %v2343_v48, 0.0 }
 0x47c   :  { %v1784_v39 = vadd.f32 %v1600_v20, %v1410_v2  ;;  %v978_v41 = vpop.permute.xlu0 %977  ;;  %v2157_v45 = vadd.f32 %v1973_v4, %v1783_v24  ;;  %v3778_v47 = vadd.f32 %v3777_v13, %v3491_v23 }
 0x47d   :  { %v1974_v7 = vmul.f32 %v9117_v38, %v978_v41  ;;  %v2528_v42 = vmax.f32 %v2344_v46, 0.0  ;;  %v1601_v19 = vmul.f32 %v9115_v37, %v978_v41  ;;  %v1412_v60 = vmul.f32 %v9113_v36, %v978_v41  ;;  %v3783_v41 = vpop.f32.mrf.mxu1 }
 0x47e   :  { %v2345_v27 = vadd.f32 %v10340_v29, %v2157_v45  ;;  %v3963_v2 = vmax.f32 %v3778_v47, 0.0 }
 0x47f   :  { %v2158_v18 = vadd.f32 %v1974_v7, %v1784_v39  ;;  %v10563_v15 = vmax.f32 %v2527_v51, %v2528_v42  ;;  %3516 = vmatmul.f32.gmra.mxu0 %v3099_v59  ;;  %v1785_v22 = vadd.f32 %v1601_v19, %v1411_v30  ;;  %v315_v42 = vld [vmem:[%s12408_s0 + $0x420] sm:$0xff] }
 0x480   :  { %v2529_v46 = vmax.f32 %v2345_v27, 0.0 }
 0x481   :  { %v3493_v17 = vpop.f32.mrf.mxu0  ;;  %v2346_v21 = vadd.f32 %v10340_v29, %v2158_v18  ;;  %8401 = vmatmul.msk.f32.gmra.mxu1 %vm3047_vm0, %v10563_v15  ;;  %v983_v53 = vpop.permute.xlu2 %982  ;;  %v8595_v25 = vpack.i.bf16 %v10563_v15, %v10548_v63 }
 0x482   :  { %v3494_v52 = vadd.f32 %v10314_v55, %v3493_v17  ;;  %v1602_v9 = vmul.f32 %v9115_v37, %v983_v53  ;;  %v1975_v13 = vmul.f32 %v9117_v38, %v983_v53 }
 0x483   :  { %v2530_v3 = vmax.f32 %v2346_v21, 0.0  ;;  %8596 = vrot.lane.b32.xlu2 %v8595_v25, %s8953_s12  ;;  %v317_v21 = vld [vmem:[%s12408_s0 + $0x430] sm:$0xff] }
 0x484   :  { %v3781_v48 = vadd.f32 %v3780_v8, %v3494_v52  ;;  %v1786_v20 = vadd.f32 %v1602_v9, %v1412_v60  ;;  %v2159_v4 = vadd.f32 %v1975_v13, %v1785_v22  ;;  %v988_v24 = vpop.permute.xlu0 %987 }
 0x485   :  { %v1976_v39 = vmul.f32 %v9117_v38, %v988_v24  ;;  %v10581_v7 = vmax.f32 %v2529_v46, %v2530_v3  ;;  %v3786_v25 = vpop.f32.mrf.mxu1  ;;  %v1603_v46 = vmul.f32 %v9115_v37, %v988_v24 }
 0x486   :  { %v3964_v58 = vmax.f32 %v3781_v48, 0.0  ;;  %v2347_v51 = vadd.f32 %v10340_v29, %v2159_v4  ;;  %v320_v4 = vld [vmem:[%s12408_s0 + $0x448] sm:$0xff] }
 0x487   :  { %v2160_v45 = vadd.f32 %v1976_v39, %v1786_v20  ;;  %v319_v20 = vld [vmem:[%s12408_s0 + $0x440] sm:$0xff] }
 0x488   :  { %v10578_v23 = vmax.f32 %v3963_v2, %v3964_v58  ;;  %v2531_v18 = vmax.f32 %v2347_v51, 0.0 }
 0x489   :  { %v3496_v8 = vpop.f32.mrf.mxu0  ;;  %v2348_v19 = vadd.f32 %v10340_v29, %v2160_v45  ;;  %8402 = vmatmul.msk.f32.gmra.mxu1 %vm3047_vm0, %v10581_v7  ;;  %v998_v39 = vpop.permute.xlu2 %997 }
 0x48a   :  { %12519 = vst [vmem:[#allocation41_spill] sm:$0xff] %v10578_v23  ;;  %4237 = vmatmul.f32.gmra.mxu2 %v10578_v23  ;;  %4379 = vmatmul.f32.gmra.mxu3 %v10578_v23  ;;  %v3497_v17 = vadd.f32 %v10314_v55, %v3496_v8  ;;  %v1414_v8 = vmul.f32 %v9113_v36, %v988_v24 }
 0x48b   :  { %v2532_v59 = vmax.f32 %v2348_v19, 0.0  ;;  %1032 = vperm.xlu2 %8454, %v315_v42  }
 0x48c   :  { %v3784_v27 = vadd.f32 %v3783_v41, %v3497_v17  ;;  %v1413_v41 = vmul.f32 %v9113_v36, %v983_v53  ;;  %v322_v53 = vld [vmem:[%s12408_s0 + $0x458] sm:$0xff] }
 0x48d   :  { %v10592_v30 = vmax.f32 %v2531_v18, %v2532_v59  ;;  %v1978_v59 = vmul.f32 %v9117_v38, %v998_v39 }
 0x48e   :  { %v3965_v9 = vmax.f32 %v3784_v27, 0.0  ;;  %v1787_v42 = vadd.f32 %v1603_v46, %v1413_v41 }
 0x48f   :  { %v8600_v47 = vpack.i.bf16 %v10592_v30, %v10581_v7 }
 0x491   :  { %v3499_v52 = vpop.f32.mrf.mxu0  ;;  %8601 = vrot.lane.b32.xlu1 %v8600_v47, %s8953_s12  ;;  %8403 = vmatmul.msk.f32.gmra.mxu1 %vm3047_vm0, %v10592_v30 }
 0x492   :  { %v3500_v60 = vadd.f32 %v10314_v55, %v3499_v52 }
 0x493   :  { %1042 = vperm.xlu2 %8454, %v317_v21   ;;  %v1605_v21 = vmul.f32 %v9115_v37, %v998_v39 }
 0x494   :  { %v3787_v22 = vadd.f32 %v3786_v25, %v3500_v60 }
 0x496   :  { %v3966_v13 = vmax.f32 %v3787_v22, 0.0  ;;  %v1416_v22 = vmul.f32 %v9113_v36, %v998_v39 }
 0x497   :  { %v8587_v48 = vpop.permute.xlu1 %8586 }
 0x498   :  { %v10603_v3 = vmax.f32 %v3965_v9, %v3966_v13  ;;  %v8588_v2 = vunpack.i.l.bf16 %v8587_v48  ;;  %v8589_v51 = vunpack.i.h.bf16 %v8587_v48  ;;  %v1008_v9 = vpop.permute.xlu2 %1007 }
 0x499   :  { %1052 = vperm.xlu1 %8453, %v319_v20   ;;  %v1980_v46 = vmul.f32 %v9117_v38, %v1008_v9 }
 0x49a   :  { %4240 = vmatmul.f32.gmra.mxu2 %v10603_v3  ;;  %4382 = vmatmul.f32.gmra.mxu3 %v10603_v3  ;;  %v3100_v58 = vsel %vm3047_vm0, %v10417_v5, %v8588_v2  ;;  %v321_v5 = vld [vmem:[%s12408_s0 + $0x450] sm:$0xff]  ;;  %v3101_v24 = vsel %vm3047_vm0, %v10434_v10, %v8589_v51 }
 0x49b   :  { %3519 = vmatmul.f32.gmra.mxu0 %v3100_v58  ;;  %1057 = vperm.xlu2 %8454, %v320_v4   ;;  %v324_v4 = vld [vmem:[%s12408_s0 + $0x468] sm:$0xff] }
 0x49f   :  { %v993_v45 = vpop.permute.xlu1 %992 }
 0x4a0   :  { %v1604_v19 = vmul.f32 %v9115_v37, %v993_v45  ;;  %v1977_v18 = vmul.f32 %v9117_v38, %v993_v45  ;;  %v1415_v52 = vmul.f32 %v9113_v36, %v993_v45 }
 0x4a1   :  { %1062 = vperm.xlu1 %8453, %v321_v5  }
 0x4a2   :  { %v1788_v17 = vadd.f32 %v1604_v19, %v1414_v8  ;;  %v2161_v47 = vadd.f32 %v1977_v18, %v1787_v42  ;;  %v1789_v13 = vadd.f32 %v1605_v21, %v1415_v52  ;;  %v3789_v19 = vpop.f32.mrf.mxu1 }
 0x4a3   :  { %3522 = vmatmul.f32.gmra.mxu0 %v3101_v24  ;;  %1067 = vperm.xlu2 %8454, %v322_v53  }
 0x4a4   :  { %v2162_v27 = vadd.f32 %v1978_v59, %v1788_v17  ;;  %v2349_v60 = vadd.f32 %v10340_v29, %v2161_v47  ;;  %v326_v59 = vld [vmem:[%s12408_s0 + $0x478] sm:$0xff] }
 0x4a6   :  { %v2350_v25 = vadd.f32 %v10340_v29, %v2162_v27  ;;  %v2533_v2 = vmax.f32 %v2349_v60, 0.0 }
 0x4a7   :  { %v1003_v48 = vpop.permute.xlu1 %1002 }
 0x4a8   :  { %v1606_v10 = vmul.f32 %v9115_v37, %v1003_v48  ;;  %v1979_v20 = vmul.f32 %v9117_v38, %v1003_v48  ;;  %v2534_v58 = vmax.f32 %v2350_v25, 0.0 }
 0x4a9   :  { %1077 = vperm.xlu1 %8453, %v324_v4  }
 0x4aa   :  { %v1790_v41 = vadd.f32 %v1606_v10, %v1416_v22  ;;  %v2163_v51 = vadd.f32 %v1979_v20, %v1789_v13  ;;  %v10640_v45 = vmax.f32 %v2533_v2, %v2534_v58  ;;  %v3792_v21 = vpop.f32.mrf.mxu1  ;;  %v323_v10 = vld [vmem:[%s12408_s0 + $0x460] sm:$0xff]  ;;  %v1417_v58 = vmul.f32 %v9113_v36, %v1003_v48 }
 0x4ac   :  { %v2164_v39 = vadd.f32 %v1980_v46, %v1790_v41  ;;  %v2351_v8 = vadd.f32 %v10340_v29, %v2163_v51  ;;  %8404 = vmatmul.msk.f32.gmra.mxu1 %vm3047_vm0, %v10640_v45  ;;  %v3502_v42 = vpop.f32.mrf.mxu0  ;;  %v1607_v41 = vmul.f32 %v9115_v37, %v1008_v9 }
 0x4ad   :  { %v3503_v47 = vadd.f32 %v10314_v55, %v3502_v42  ;;  %v1418_v42 = vmul.f32 %v9113_v36, %v1008_v9 }
 0x4ae   :  { %v2352_v18 = vadd.f32 %v10340_v29, %v2164_v39  ;;  %v2535_v5 = vmax.f32 %v2351_v8, 0.0  ;;  %v325_v39 = vld [vmem:[%s12408_s0 + $0x470] sm:$0xff] }
 0x4af   :  { %v3790_v27 = vadd.f32 %v3789_v19, %v3503_v47  ;;  %v1018_v46 = vpop.permute.xlu1 %1017  ;;  %v1791_v19 = vadd.f32 %v1607_v41, %v1417_v58 }
 0x4b0   :  { %v2536_v17 = vmax.f32 %v2352_v18, 0.0  ;;  %v1609_v9 = vmul.f32 %v9115_v37, %v1018_v46 }
 0x4b1   :  { %1087 = vperm.xlu1 %8453, %v326_v59   ;;  %v3967_v22 = vmax.f32 %v3790_v27, 0.0 }
 0x4b2   :  { %v10650_v53 = vmax.f32 %v2535_v5, %v2536_v17 }
 0x4b4   :  { %8405 = vmatmul.msk.f32.gmra.mxu1 %vm3047_vm0, %v10650_v53  ;;  %v3505_v24 = vpop.f32.mrf.mxu0  ;;  %v8605_v52 = vpack.i.bf16 %v10650_v53, %v10640_v45 }
 0x4b5   :  { %v3506_v60 = vadd.f32 %v10314_v55, %v3505_v24 }
 0x4b6   :  { %8606 = vrot.lane.b32.xlu0 %v8605_v52, %s8953_s12 }
 0x4b7   :  { %v3793_v25 = vadd.f32 %v3792_v21, %v3506_v60  ;;  %v328_v60 = vld [vmem:[%s12408_s0 + $0x488] sm:$0xff]  ;;  %v1420_v21 = vmul.f32 %v9113_v36, %v1018_v46 }
 0x4b9   :  { %v3968_v13 = vmax.f32 %v3793_v25, 0.0  ;;  %v1028_v25 = vpop.permute.xlu1 %1027 }
 0x4bb   :  { %v10658_v2 = vmax.f32 %v3967_v22, %v3968_v13 }
 0x4bc   :  { %v8592_v20 = vpop.permute.xlu0 %8591 }
 0x4bd   :  { %12520 = vst [vmem:[#allocation42_spill] sm:$0xff] %v10658_v2  ;;  %v8593_v4 = vunpack.i.l.bf16 %v8592_v20  ;;  %4243 = vmatmul.f32.gmra.mxu2 %v10658_v2  ;;  %4385 = vmatmul.f32.gmra.mxu3 %v10658_v2  ;;  %v8594_v51 = vunpack.i.h.bf16 %v8592_v20 }
 0x4be   :  { %1072 = vperm.xlu0 %8452, %v323_v10  }
 0x4bf   :  { %v3102_v55 = vsel %vm3047_vm0, %v10444_v31, %v8593_v4  ;;  %v1982_v31 = vmul.f32 %v9117_v38, %v1018_v46  ;;  %v3103_v17 = vsel %vm3047_vm0, %v10493_v62, %v8594_v51 }
 0x4c0   :  { %3525 = vmatmul.f32.gmra.mxu0 %v3102_v55  ;;  %v1984_v55 = vmul.f32 %v9117_v38, %v1028_v25 }
 0x4c4   :  { %v1013_v8 = vpop.permute.xlu0 %1012 }
 0x4c5   :  { %v1608_v18 = vmul.f32 %v9115_v37, %v1013_v8  ;;  %v1981_v5 = vmul.f32 %v9117_v38, %v1013_v8  ;;  %v1419_v47 = vmul.f32 %v9113_v36, %v1013_v8 }
 0x4c6   :  { %1082 = vperm.xlu0 %8452, %v325_v39  }
 0x4c7   :  { %v1792_v48 = vadd.f32 %v1608_v18, %v1418_v42  ;;  %v2165_v59 = vadd.f32 %v1981_v5, %v1791_v19  ;;  %v1793_v22 = vadd.f32 %v1609_v9, %v1419_v47  ;;  %v330_v42 = vld [vmem:[%s12408_s0 + $0x498] sm:$0xff]  ;;  %v1611_v9 = vmul.f32 %v9115_v37, %v1028_v25 }
 0x4c8   :  { %3528 = vmatmul.f32.gmra.mxu0 %v3103_v17 }
 0x4c9   :  { %v2166_v24 = vadd.f32 %v1982_v31, %v1792_v48  ;;  %v2353_v52 = vadd.f32 %v10340_v29, %v2165_v59 }
 0x4cb   :  { %v2354_v27 = vadd.f32 %v10340_v29, %v2166_v24  ;;  %v2537_v62 = vmax.f32 %v2353_v52, 0.0  ;;  %v3795_v52 = vpop.f32.mrf.mxu1 }
 0x4cc   :  { %v1023_v13 = vpop.permute.xlu0 %1022 }
 0x4cd   :  { %v1610_v10 = vmul.f32 %v9115_v37, %v1023_v13  ;;  %v1983_v20 = vmul.f32 %v9117_v38, %v1023_v13  ;;  %v2538_v4 = vmax.f32 %v2354_v27, 0.0  ;;  %v1421_v47 = vmul.f32 %v9113_v36, %v1023_v13 }
 0x4ce   :  { %1097 = vperm.xlu0 %8452, %v328_v60  }
 0x4cf   :  { %v1794_v58 = vadd.f32 %v1610_v10, %v1420_v21  ;;  %v2167_v41 = vadd.f32 %v1983_v20, %v1793_v22  ;;  %v10689_v51 = vmax.f32 %v2537_v62, %v2538_v4  ;;  %v1422_v22 = vmul.f32 %v9113_v36, %v1028_v25 }
 0x4d0   :  { %v1795_v62 = vadd.f32 %v1611_v9, %v1421_v47 }
 0x4d1   :  { %v2168_v39 = vadd.f32 %v1984_v55, %v1794_v58  ;;  %v2355_v8 = vadd.f32 %v10340_v29, %v2167_v41  ;;  %8406 = vmatmul.msk.f32.gmra.mxu1 %vm3047_vm0, %v10689_v51 }
 0x4d3   :  { %v2356_v46 = vadd.f32 %v10340_v29, %v2168_v39  ;;  %v2539_v19 = vmax.f32 %v2355_v8, 0.0  ;;  %v327_v29 = vld [vmem:[%s12408_s0 + $0x480] sm:$0xff] }
 0x4d4   :  { %v1038_v24 = vpop.permute.xlu0 %1037  ;;  %v10722_v39 = vld [vmem:[#allocation8] ss:$0 sm:$0xff] }
 0x4d5   :  { %v2540_v18 = vmax.f32 %v2356_v46, 0.0  ;;  %v1986_v13 = vmul.f32 %v9117_v38, %v1038_v24  ;;  %v3798_v46 = vpop.f32.mrf.mxu1 }
 0x4d6   :  { %1107 = vperm.xlu0 %8452, %v330_v42   ;;  %v1613_v42 = vmul.f32 %v9115_v37, %v1038_v24 }
 0x4d7   :  { %v10698_v5 = vmax.f32 %v2539_v19, %v2540_v18  ;;  %v10726_v19 = vld [vmem:[#allocation5] ss:$0 sm:$0xff] }
 0x4d9   :  { %8407 = vmatmul.msk.f32.gmra.mxu1 %vm3047_vm0, %v10698_v5  ;;  %v8610_v31 = vpack.i.bf16 %v10698_v5, %v10689_v51 }
 0x4db   :  { %8611 = vrot.lane.b32.xlu2 %v8610_v31, %s8953_s12 }
 0x4dc   :  { %v10729_v31 = vpop.permute.xlu0 %1047 }
 0x4dd   :  { %v8597_v48 = vpop.permute.xlu2 %8596 }
 0x4de   :  { %v8598_v59 = vunpack.i.l.bf16 %v8597_v48  ;;  %v8599_v27 = vunpack.i.h.bf16 %v8597_v48  ;;  %v1424_v48 = vmul.f32 %v9113_v36, %v1038_v24 }
 0x4e0   :  { %v3104_v17 = vsel %vm3047_vm0, %v10502_v14, %v8598_v59  ;;  %v329_v14 = vld [vmem:[%s12408_s0 + $0x490] sm:$0xff]  ;;  %v3105_v58 = vsel %vm3047_vm0, %v10548_v63, %v8599_v27 }
 0x4e1   :  { %3531 = vmatmul.f32.gmra.mxu0 %v3104_v17 }
 0x4e3   :  { %1092 = vperm.xlu2 %8454, %v327_v29  }
 0x4e4   :  { %v3508_v21 = vpop.f32.mrf.mxu0 }
 0x4e5   :  { %v1033_v60 = vpop.permute.xlu2 %1032  ;;  %v3509_v8 = vadd.f32 %v10722_v39, %v3508_v21  ;;  %v332_v21 = vld [vmem:[%s12408_s0 + $0x4a8] sm:$0xff] }
 0x4e6   :  { %v1612_v10 = vmul.f32 %v9115_v37, %v1033_v60  ;;  %v1985_v20 = vmul.f32 %v9117_v38, %v1033_v60  ;;  %v1423_v41 = vmul.f32 %v9113_v36, %v1033_v60 }
 0x4e7   :  { %v3796_v47 = vadd.f32 %v3795_v52, %v3509_v8  ;;  %v3801_v8 = vpop.f32.mrf.mxu1 }
 0x4e8   :  { %v1796_v4 = vadd.f32 %v1612_v10, %v1422_v22  ;;  %v2169_v55 = vadd.f32 %v1985_v20, %v1795_v62  ;;  %v1797_v59 = vadd.f32 %v1613_v42, %v1423_v41  ;;  %v1988_v10 = vmul.f32 %v9117_v38, %v10729_v31 }
 0x4e9   :  { %3534 = vmatmul.f32.gmra.mxu0 %v3105_v58  ;;  %v3969_v52 = vmax.f32 %v3796_v47, 0.0 }
 0x4ea   :  { %v2170_v25 = vadd.f32 %v1986_v13, %v1796_v4  ;;  %v2357_v18 = vadd.f32 %v10726_v19, %v2169_v55 }
 0x4eb   :  { %1102 = vperm.xlu2 %8454, %v329_v14  }
 0x4ec   :  { %v2358_v63 = vadd.f32 %v10726_v19, %v2170_v25  ;;  %v3511_v17 = vpop.f32.mrf.mxu0  ;;  %v2541_v22 = vmax.f32 %v2357_v18, 0.0  ;;  %v10749_v18 = vpop.f32.mrf.mxu2 }
 0x4ed   :  { %v1043_v29 = vpop.permute.xlu2 %1042  ;;  %v3512_v60 = vadd.f32 %v10722_v39, %v3511_v17  ;;  %12522 = vst [vmem:[#allocation44_spill] sm:$0xff] %v10749_v18 }
 0x4ee   :  { %v1614_v9 = vmul.f32 %v9115_v37, %v1043_v29  ;;  %v1987_v27 = vmul.f32 %v9117_v38, %v1043_v29  ;;  %v2542_v62 = vmax.f32 %v2358_v63, 0.0 }
 0x4ef   :  { %v3799_v14 = vadd.f32 %v3798_v46, %v3512_v60  ;;  %v334_v46 = vld [vmem:[%s12408_s0 + $0x4b8] sm:$0xff] }
 0x4f0   :  { %v1798_v24 = vadd.f32 %v1614_v9, %v1424_v48  ;;  %v2171_v20 = vadd.f32 %v1987_v27, %v1797_v59  ;;  %v10741_v13 = vmax.f32 %v2541_v22, %v2542_v62 }
 0x4f1   :  { %v3970_v55 = vmax.f32 %v3799_v14, 0.0 }
 0x4f2   :  { %v2172_v4 = vadd.f32 %v1988_v10, %v1798_v24  ;;  %v2359_v58 = vadd.f32 %v10726_v19, %v2171_v20  ;;  %8408 = vmatmul.msk.f32.gmra.mxu1 %vm3047_vm0, %v10741_v13  ;;  %v331_v24 = vld [vmem:[%s12408_s0 + $0x4a0] sm:$0xff] }
 0x4f3   :  { %1117 = vperm.xlu2 %8454, %v332_v21   ;;  %v10747_v25 = vmax.f32 %v3969_v52, %v3970_v55  ;;  %v3804_v21 = vpop.f32.mrf.mxu1  ;;  %v10772_v55 = vpop.f32.mrf.mxu3 }
 0x4f4   :  { %v2360_v41 = vadd.f32 %v10726_v19, %v2172_v4  ;;  %v3514_v42 = vpop.f32.mrf.mxu0  ;;  %v2543_v63 = vmax.f32 %v2359_v58, 0.0  ;;  %v10770_v4 = vpop.f32.mrf.mxu2  ;;  %12525 = vst [vmem:[#allocation47_spill] sm:$0xff] %v10772_v55 }
 0x4f5   :  { %12521 = vst [vmem:[#allocation43_spill] sm:$0xff] %v10747_v25  ;;  %4246 = vmatmul.f32.gmra.mxu2 %v10747_v25  ;;  %4388 = vmatmul.f32.gmra.mxu3 %v10747_v25  ;;  %v3515_v17 = vadd.f32 %v10722_v39, %v3514_v42  ;;  %v1615_v42 = vmul.f32 %v9115_v37, %v10729_v31 }
 0x4f6   :  { %v2544_v48 = vmax.f32 %v2360_v41, 0.0  ;;  %12524 = vst [vmem:[#allocation46_spill] sm:$0xff] %v10770_v4  ;;  %v1425_v41 = vmul.f32 %v9113_v36, %v1043_v29 }
 0x4f7   :  { %v3802_v27 = vadd.f32 %v3801_v8, %v3515_v17  ;;  %v1058_v8 = vpop.permute.xlu2 %1057  ;;  %v1426_v17 = vmul.f32 %v9113_v36, %v10729_v31 }
 0x4f8   :  { %v10756_v59 = vmax.f32 %v2543_v63, %v2544_v48  ;;  %v333_v63 = vld [vmem:[%s12408_s0 + $0x4b0] sm:$0xff]  ;;  %v1990_v29 = vmul.f32 %v9117_v38, %v1058_v8  ;;  %v1617_v31 = vmul.f32 %v9115_v37, %v1058_v8 }
 0x4f9   :  { %v3971_v62 = vmax.f32 %v3802_v27, 0.0 }
 0x4fa   :  { %8409 = vmatmul.msk.f32.gmra.mxu1 %vm3047_vm0, %v10756_v59  ;;  %v8615_v47 = vpack.i.bf16 %v10756_v59, %v10741_v13 }
 0x4fb   :  { %1127 = vperm.xlu2 %8454, %v334_v46  }
 0x4fc   :  { %8616 = vrot.lane.b32.xlu1 %v8615_v47, %s8953_s12  ;;  %v3517_v9 = vpop.f32.mrf.mxu0  ;;  %v1799_v47 = vadd.f32 %v1615_v42, %v1425_v41 }
 0x4fd   :  { %v3518_v60 = vadd.f32 %v10722_v39, %v3517_v9 }
 0x4ff   :  { %v3805_v22 = vadd.f32 %v3804_v21, %v3518_v60 }
 0x501   :  { %v3972_v10 = vmax.f32 %v3805_v22, 0.0 }
 0x503   :  { %v8602_v20 = vpop.permute.xlu1 %8601  ;;  %v10768_v14 = vmax.f32 %v3971_v62, %v3972_v10 }
 0x504   :  { %v8603_v52 = vunpack.i.l.bf16 %v8602_v20  ;;  %1112 = vperm.xlu1 %8453, %v331_v24   ;;  %v8604_v46 = vunpack.i.h.bf16 %v8602_v20  ;;  %v336_v20 = vld [vmem:[%s12408_s0 + $0x4c8] sm:$0xff] }
 0x505   :  { %12523 = vst [vmem:[#allocation45_spill] sm:$0xff] %v10768_v14  ;;  %4249 = vmatmul.f32.gmra.mxu2 %v10768_v14  ;;  %4391 = vmatmul.f32.gmra.mxu3 %v10768_v14 }
 0x506   :  { %v3106_v58 = vsel %vm3047_vm0, %v10563_v15, %v8603_v52  ;;  %v3107_v21 = vsel %vm3047_vm0, %v10581_v7, %v8604_v46  ;;  %v1428_v52 = vmul.f32 %v9113_v36, %v1058_v8 }
 0x507   :  { %3537 = vmatmul.f32.gmra.mxu0 %v3106_v58  ;;  %v1068_v58 = vpop.permute.xlu2 %1067 }
 0x50b   :  { %v1053_v48 = vpop.permute.xlu1 %1052 }
 0x50c   :  { %v1616_v9 = vmul.f32 %v9115_v37, %v1053_v48  ;;  %v1989_v15 = vmul.f32 %v9117_v38, %v1053_v48  ;;  %1122 = vperm.xlu1 %8453, %v333_v63   ;;  %v1427_v22 = vmul.f32 %v9113_v36, %v1053_v48 }
 0x50e   :  { %v1800_v27 = vadd.f32 %v1616_v9, %v1426_v17  ;;  %v2173_v60 = vadd.f32 %v1989_v15, %v1799_v47  ;;  %v1801_v41 = vadd.f32 %v1617_v31, %v1427_v22  ;;  %v1992_v17 = vmul.f32 %v9117_v38, %v1068_v58  ;;  %v338_v22 = vld [vmem:[%s12408_s0 + $0x4d8] sm:$0xff] }
 0x50f   :  { %3540 = vmatmul.f32.gmra.mxu0 %v3107_v21 }
 0x510   :  { %v2174_v62 = vadd.f32 %v1990_v29, %v1800_v27  ;;  %v2361_v10 = vadd.f32 %v10726_v19, %v2173_v60  ;;  %v3807_v27 = vpop.f32.mrf.mxu1 }
 0x512   :  { %v2362_v24 = vadd.f32 %v10726_v19, %v2174_v62  ;;  %v2545_v7 = vmax.f32 %v2361_v10, 0.0 }
 0x513   :  { %v1063_v42 = vpop.permute.xlu1 %1062 }
 0x514   :  { %v1618_v46 = vmul.f32 %v9115_v37, %v1063_v42  ;;  %v1991_v63 = vmul.f32 %v9117_v38, %v1063_v42  ;;  %v2546_v48 = vmax.f32 %v2362_v24, 0.0  ;;  %1137 = vperm.xlu1 %8453, %v336_v20  }
 0x516   :  { %v1802_v47 = vadd.f32 %v1618_v46, %v1428_v52  ;;  %v2175_v9 = vadd.f32 %v1991_v63, %v1801_v41  ;;  %v10802_v15 = vmax.f32 %v2545_v7, %v2546_v48 }
 0x518   :  { %v3520_v29 = vpop.f32.mrf.mxu0  ;;  %v2176_v60 = vadd.f32 %v1992_v17, %v1802_v47  ;;  %8410 = vmatmul.msk.f32.gmra.mxu1 %vm3047_vm0, %v10802_v15  ;;  %v2363_v8 = vadd.f32 %v10726_v19, %v2175_v9  ;;  %v3810_v7 = vpop.f32.mrf.mxu1 }
 0x519   :  { %v3521_v62 = vadd.f32 %v10722_v39, %v3520_v29  ;;  %v10822_v29 = vpop.f32.mrf.mxu2 }
 0x51a   :  { %v2364_v21 = vadd.f32 %v10726_v19, %v2176_v60  ;;  %v2547_v10 = vmax.f32 %v2363_v8, 0.0  ;;  %v335_v8 = vld [vmem:[%s12408_s0 + $0x4c0] sm:$0xff] }
 0x51b   :  { %v3808_v20 = vadd.f32 %v3807_v27, %v3521_v62  ;;  %v10824_v27 = vpop.f32.mrf.mxu3  ;;  %v1078_v62 = vpop.permute.xlu1 %1077 }
 0x51c   :  { %1147 = vperm.xlu1 %8453, %v338_v22   ;;  %v2548_v31 = vmax.f32 %v2364_v21, 0.0  ;;  %12527 = vst [vmem:[#allocation49_spill] sm:$0xff] %v10824_v27  ;;  %v1429_v22 = vmul.f32 %v9113_v36, %v1063_v42 }
 0x51d   :  { %v3973_v48 = vmax.f32 %v3808_v20, 0.0  ;;  %v1430_v20 = vmul.f32 %v9113_v36, %v1068_v58 }
 0x51e   :  { %v10812_v52 = vmax.f32 %v2547_v10, %v2548_v31  ;;  %v1619_v10 = vmul.f32 %v9115_v37, %v1068_v58 }
 0x520   :  { %v3523_v24 = vpop.f32.mrf.mxu0  ;;  %8411 = vmatmul.msk.f32.gmra.mxu1 %vm3047_vm0, %v10812_v52  ;;  %v8620_v63 = vpack.i.bf16 %v10812_v52, %v10802_v15 }
 0x521   :  { %v3524_v41 = vadd.f32 %v10722_v39, %v3523_v24 }
 0x522   :  { %8621 = vrot.lane.b32.xlu0 %v8620_v63, %s8953_s12  ;;  %v1994_v63 = vmul.f32 %v9117_v38, %v1078_v62 }
 0x523   :  { %v3811_v46 = vadd.f32 %v3810_v7, %v3524_v41  ;;  %v1803_v41 = vadd.f32 %v1619_v10, %v1429_v22  ;;  %v1088_v10 = vpop.permute.xlu1 %1087 }
 0x524   :  { %v1434_v14 = vmul.f32 %v9113_v36, %v1088_v10 }
 0x525   :  { %v3974_v17 = vmax.f32 %v3811_v46, 0.0 }
 0x527   :  { %v10820_v47 = vmax.f32 %v3973_v48, %v3974_v17 }
 0x528   :  { %v8607_v9 = vpop.permute.xlu0 %8606 }
 0x529   :  { %12526 = vst [vmem:[#allocation48_spill] sm:$0xff] %v10820_v47  ;;  %v8608_v60 = vunpack.i.l.bf16 %v8607_v9  ;;  %4252 = vmatmul.f32.gmra.mxu2 %v10820_v47  ;;  %4394 = vmatmul.f32.gmra.mxu3 %v10820_v47  ;;  %v8609_v31 = vunpack.i.h.bf16 %v8607_v9 }
 0x52a   :  { %1132 = vperm.xlu0 %8452, %v335_v8  }
 0x52b   :  { %v3108_v21 = vsel %vm3047_vm0, %v10592_v30, %v8608_v60  ;;  %v337_v30 = vld [vmem:[%s12408_s0 + $0x4d0] sm:$0xff]  ;;  %v3109_v17 = vsel %vm3047_vm0, %v10640_v45, %v8609_v31 }
 0x52c   :  { %3543 = vmatmul.f32.gmra.mxu0 %v3108_v21  ;;  %v1621_v21 = vmul.f32 %v9115_v37, %v1078_v62 }
 0x530   :  { %v1073_v24 = vpop.permute.xlu0 %1072 }
 0x531   :  { %v1620_v7 = vmul.f32 %v9115_v37, %v1073_v24  ;;  %v1993_v46 = vmul.f32 %v9117_v38, %v1073_v24  ;;  %v1431_v9 = vmul.f32 %v9113_v36, %v1073_v24 }
 0x532   :  { %1142 = vperm.xlu0 %8452, %v337_v30   ;;  %v340_v30 = vld [vmem:[%s12408_s0 + $0x4e8] sm:$0xff] }
 0x533   :  { %v1804_v42 = vadd.f32 %v1620_v7, %v1430_v20  ;;  %v2177_v48 = vadd.f32 %v1993_v46, %v1803_v41  ;;  %v1432_v20 = vmul.f32 %v9113_v36, %v1078_v62  ;;  %v1805_v41 = vadd.f32 %v1621_v21, %v1431_v9 }
 0x534   :  { %3546 = vmatmul.f32.gmra.mxu0 %v3109_v17 }
 0x535   :  { %v2178_v58 = vadd.f32 %v1994_v63, %v1804_v42  ;;  %v2365_v60 = vadd.f32 %v10726_v19, %v2177_v48  ;;  %v8612_v8 = vpop.permute.xlu2 %8611  ;;  %v1996_v63 = vmul.f32 %v9117_v38, %v1088_v10 }
 0x536   :  { %v8613_v22 = vunpack.i.l.bf16 %v8612_v8 }
 0x537   :  { %v2366_v47 = vadd.f32 %v10726_v19, %v2178_v58  ;;  %v2549_v46 = vmax.f32 %v2365_v60, 0.0  ;;  %v1623_v58 = vmul.f32 %v9115_v37, %v1088_v10 }
 0x538   :  { %v1083_v7 = vpop.permute.xlu0 %1082  ;;  %v3110_v42 = vsel %vm3047_vm0, %v10650_v53, %v8613_v22 }
 0x539   :  { %v1622_v45 = vmul.f32 %v9115_v37, %v1083_v7  ;;  %v1995_v31 = vmul.f32 %v9117_v38, %v1083_v7  ;;  %v2550_v24 = vmax.f32 %v2366_v47, 0.0  ;;  %v1433_v48 = vmul.f32 %v9113_v36, %v1083_v7 }
 0x53a   :  { %1157 = vperm.xlu0 %8452, %v340_v30   ;;  %v8614_v7 = vunpack.i.h.bf16 %v8612_v8 }
 0x53b   :  { %v1806_v62 = vadd.f32 %v1622_v45, %v1432_v20  ;;  %v2179_v17 = vadd.f32 %v1995_v31, %v1805_v41  ;;  %v10858_v9 = vmax.f32 %v2549_v46, %v2550_v24  ;;  %v3813_v41 = vpop.f32.mrf.mxu1  ;;  %v1807_v46 = vadd.f32 %v1623_v58, %v1433_v48 }
 0x53c   :  { %3549 = vmatmul.f32.gmra.mxu0 %v3110_v42  ;;  %v3111_v8 = vsel %vm3047_vm0, %v10689_v51, %v8614_v7 }
 0x53d   :  { %v2180_v60 = vadd.f32 %v1996_v63, %v1806_v62  ;;  %8412 = vmatmul.msk.f32.gmra.mxu1 %vm3047_vm0, %v10858_v9  ;;  %v1093_v47 = vpop.permute.xlu2 %1092  ;;  %v3526_v21 = vpop.f32.mrf.mxu0  ;;  %v2367_v53 = vadd.f32 %v10726_v19, %v2179_v17  ;;  %v342_v17 = vld [vmem:[%s12408_s0 + $0x4f8] sm:$0xff] }
 0x53e   :  { %v1624_v22 = vmul.f32 %v9115_v37, %v1093_v47  ;;  %v1997_v20 = vmul.f32 %v9117_v38, %v1093_v47  ;;  %v3527_v30 = vadd.f32 %v10722_v39, %v3526_v21 }
 0x53f   :  { %v2368_v45 = vadd.f32 %v10726_v19, %v2180_v60  ;;  %v2551_v62 = vmax.f32 %v2367_v53, 0.0 }
 0x540   :  { %v1808_v31 = vadd.f32 %v1624_v22, %v1434_v14  ;;  %v1098_v24 = vpop.permute.xlu0 %1097  ;;  %v2181_v63 = vadd.f32 %v1997_v20, %v1807_v46  ;;  %v1435_v14 = vmul.f32 %v9113_v36, %v1093_v47  ;;  %v3814_v60 = vadd.f32 %v3813_v41, %v3527_v30 }
 0x541   :  { %v1998_v42 = vmul.f32 %v9117_v38, %v1098_v24  ;;  %v1625_v10 = vmul.f32 %v9115_v37, %v1098_v24  ;;  %v2552_v55 = vmax.f32 %v2368_v45, 0.0  ;;  %v1436_v21 = vmul.f32 %v9113_v36, %v1098_v24 }
 0x542   :  { %v2369_v58 = vadd.f32 %v10726_v19, %v2181_v63  ;;  %1167 = vperm.xlu0 %8452, %v342_v17  }
 0x543   :  { %v2182_v27 = vadd.f32 %v1998_v42, %v1808_v31  ;;  %v10877_v48 = vmax.f32 %v2551_v62, %v2552_v55  ;;  %v1809_v46 = vadd.f32 %v1625_v10, %v1435_v14  ;;  %v3816_v41 = vpop.f32.mrf.mxu1  ;;  %v3975_v62 = vmax.f32 %v3814_v60, 0.0  ;;  %v10909_v60 = vpop.f32.mrf.mxu3 }
 0x544   :  { %3552 = vmatmul.f32.gmra.mxu0 %v3111_v8  ;;  %v2553_v42 = vmax.f32 %v2369_v58, 0.0  ;;  %v339_v58 = vld [vmem:[%s12408_s0 + $0x4e0] sm:$0xff] }
 0x545   :  { %v2370_v53 = vadd.f32 %v10726_v19, %v2182_v27  ;;  %v10882_v22 = vpop.permute.xlu2 %1102  ;;  %v3529_v20 = vpop.f32.mrf.mxu0  ;;  %8413 = vmatmul.msk.f32.gmra.mxu1 %vm3047_vm0, %v10877_v48  ;;  %v8625_v27 = vpack.i.bf16 %v10877_v48, %v10858_v9 }
 0x546   :  { %v1626_v51 = vmul.f32 %v9115_v37, %v10882_v22  ;;  %v1999_v55 = vmul.f32 %v9117_v38, %v10882_v22  ;;  %v3530_v47 = vadd.f32 %v10722_v39, %v3529_v20 }
 0x547   :  { %v2554_v7 = vmax.f32 %v2370_v53, 0.0  ;;  %8626 = vrot.lane.b32.xlu2 %v8625_v27, %s8953_s12  ;;  %v343_v27 = vld [vmem:[%s12408_s0 + $0x500] sm:$0xff] }
 0x548   :  { %v1810_v45 = vadd.f32 %v1626_v51, %v1436_v21  ;;  %v2183_v31 = vadd.f32 %v1999_v55, %v1809_v46  ;;  %v3817_v24 = vadd.f32 %v3816_v41, %v3530_v47  ;;  %v1108_v63 = vpop.permute.xlu0 %1107  ;;  %v10901_v21 = vpop.f32.mrf.mxu2  ;;  %v341_v41 = vld [vmem:[%s12408_s0 + $0x4f0] sm:$0xff] }
 0x549   :  { %v2000_v30 = vmul.f32 %v9117_v38, %v1108_v63  ;;  %v10898_v20 = vmax.f32 %v2553_v42, %v2554_v7  ;;  %v344_v7 = vld [vmem:[%s12408_s0 + $0x508] sm:$0xff]  ;;  %v346_v42 = vld [vmem:[%s12408_s0 + $0x518] sm:$0xff] }
 0x54a   :  { %v3976_v10 = vmax.f32 %v3817_v24, 0.0  ;;  %v2371_v17 = vadd.f32 %v10726_v19, %v2183_v31  ;;  %v345_v24 = vld [vmem:[%s12408_s0 + $0x510] sm:$0xff] }
 0x54b   :  { %v2184_v8 = vadd.f32 %v2000_v30, %v1810_v45  ;;  %v3819_v45 = vpop.f32.mrf.mxu1 }
 0x54c   :  { %v10896_v14 = vmax.f32 %v3975_v62, %v3976_v10  ;;  %v2555_v46 = vmax.f32 %v2371_v17, 0.0 }
 0x54d   :  { %v2372_v53 = vadd.f32 %v10726_v19, %v2184_v8  ;;  %8414 = vmatmul.msk.f32.gmra.mxu1 %vm3047_vm0, %v10898_v20 }
 0x54e   :  { %12528 = vst [vmem:[#allocation50_spill] sm:$0xff] %v10896_v14  ;;  %4255 = vmatmul.f32.gmra.mxu2 %v10896_v14  ;;  %4397 = vmatmul.f32.gmra.mxu3 %v10896_v14 }
 0x54f   :  { %v2556_v51 = vmax.f32 %v2372_v53, 0.0  ;;  %1152 = vperm.xlu2 %8454, %v339_v58   ;;  %v348_v53 = vld [vmem:[%s12408_s0 + $0x528] sm:$0xff] }
 0x551   :  { %v10912_v55 = vmax.f32 %v2555_v46, %v2556_v51 }
 0x553   :  { %v8630_v47 = vpack.i.bf16 %v10912_v55, %v10898_v20  ;;  %v3822_v8 = vpop.f32.mrf.mxu1 }
 0x555   :  { %8631 = vrot.lane.b32.xlu1 %v8630_v47, %s8953_s12  ;;  %8415 = vmatmul.msk.f32.gmra.mxu1 %vm3047_vm0, %v10912_v55 }
 0x557   :  { %1162 = vperm.xlu2 %8454, %v341_v41   ;;  %v10941_v41 = vpop.f32.mrf.mxu2 }
 0x55d   :  { %1172 = vperm.xlu1 %8453, %v343_v27   ;;  %v10943_v27 = vpop.f32.mrf.mxu3 }
 0x55e   :  { %v3532_v31 = vpop.f32.mrf.mxu0 }
 0x55f   :  { %1177 = vperm.xlu2 %8454, %v344_v7   ;;  %v3533_v30 = vadd.f32 %v10722_v39, %v3532_v31  ;;  %v350_v31 = vld [vmem:[%s12408_s0 + $0x538] sm:$0xff] }
 0x561   :  { %v3820_v10 = vadd.f32 %v3819_v45, %v3533_v30  ;;  %v1627_v30 = vmul.f32 %v9115_v37, %v1108_v63 }
 0x563   :  { %v3977_v46 = vmax.f32 %v3820_v10, 0.0 }
 0x565   :  { %1182 = vperm.xlu1 %8453, %v345_v24  }
 0x566   :  { %v3535_v62 = vpop.f32.mrf.mxu0 }
 0x567   :  { %v3536_v17 = vadd.f32 %v10722_v39, %v3535_v62  ;;  %1187 = vperm.xlu2 %8454, %v346_v42   ;;  %v1118_v42 = vpop.permute.xlu2 %1117  ;;  %v1437_v62 = vmul.f32 %v9113_v36, %v10882_v22 }
 0x569   :  { %v3823_v58 = vadd.f32 %v3822_v8, %v3536_v17  ;;  %v1438_v8 = vmul.f32 %v9113_v36, %v1108_v63  ;;  %v1629_v63 = vmul.f32 %v9115_v37, %v1118_v42 }
 0x56b   :  { %v3978_v51 = vmax.f32 %v3823_v58, 0.0 }
 0x56d   :  { %1197 = vperm.xlu1 %8453, %v348_v53   ;;  %v10939_v47 = vmax.f32 %v3977_v46, %v3978_v51  ;;  %v1811_v53 = vadd.f32 %v1627_v30, %v1437_v62  ;;  %v2002_v51 = vmul.f32 %v9117_v38, %v1118_v42  ;;  %v1440_v62 = vmul.f32 %v9113_v36, %v1118_v42 }
 0x56e   :  { %v8617_v7 = vpop.permute.xlu1 %8616 }
 0x56f   :  { %12529 = vst [vmem:[#allocation51_spill] sm:$0xff] %v10939_v47  ;;  %4258 = vmatmul.f32.gmra.mxu2 %v10939_v47  ;;  %4400 = vmatmul.f32.gmra.mxu3 %v10939_v47  ;;  %v8618_v45 = vunpack.i.l.bf16 %v8617_v7  ;;  %v8619_v10 = vunpack.i.h.bf16 %v8617_v7  ;;  %v1128_v47 = vpop.permute.xlu2 %1127 }
 0x571   :  { %v3112_v24 = vsel %vm3047_vm0, %v10698_v5, %v8618_v45 }
 0x572   :  { %3555 = vmatmul.f32.gmra.mxu0 %v3112_v24 }
 0x575   :  { %1207 = vperm.xlu1 %8453, %v350_v31   ;;  %v3113_v31 = vsel %vm3047_vm0, %v10741_v13, %v8619_v10 }
 0x576   :  { %v1113_v17 = vpop.permute.xlu1 %1112 }
 0x577   :  { %v1628_v58 = vmul.f32 %v9115_v37, %v1113_v17  ;;  %v2001_v46 = vmul.f32 %v9117_v38, %v1113_v17  ;;  %v1439_v24 = vmul.f32 %v9113_v36, %v1113_v17  ;;  %v2004_v17 = vmul.f32 %v9117_v38, %v1128_v47 }
 0x579   :  { %v1812_v5 = vadd.f32 %v1628_v58, %v1438_v8  ;;  %v2185_v45 = vadd.f32 %v2001_v46, %v1811_v53  ;;  %v1813_v14 = vadd.f32 %v1629_v63, %v1439_v24 }
 0x57a   :  { %3558 = vmatmul.f32.gmra.mxu0 %v3113_v31  ;;  %v3825_v31 = vpop.f32.mrf.mxu1 }
 0x57b   :  { %v2186_v22 = vadd.f32 %v2002_v51, %v1812_v5  ;;  %v2373_v7 = vadd.f32 %v10726_v19, %v2185_v45 }
 0x57d   :  { %v2374_v30 = vadd.f32 %v10726_v19, %v2186_v22  ;;  %v2557_v8 = vmax.f32 %v2373_v7, 0.0 }
 0x57e   :  { %v1123_v18 = vpop.permute.xlu1 %1122 }
 0x57f   :  { %v1630_v53 = vmul.f32 %v9115_v37, %v1123_v18  ;;  %v2003_v13 = vmul.f32 %v9117_v38, %v1123_v18  ;;  %v2558_v10 = vmax.f32 %v2374_v30, 0.0 }
 0x581   :  { %v1814_v58 = vadd.f32 %v1630_v53, %v1440_v62  ;;  %v2187_v46 = vadd.f32 %v2003_v13, %v1813_v14  ;;  %v10969_v51 = vmax.f32 %v2557_v8, %v2558_v10 }
 0x582   :  { %v3828_v13 = vpop.f32.mrf.mxu1 }
 0x583   :  { %v2188_v5 = vadd.f32 %v2004_v17, %v1814_v58  ;;  %v2375_v45 = vadd.f32 %v10726_v19, %v2187_v46  ;;  %8416 = vmatmul.msk.f32.gmra.mxu1 %vm3047_vm0, %v10969_v51 }
 0x584   :  { %v3538_v42 = vpop.f32.mrf.mxu0 }
 0x585   :  { %v2376_v24 = vadd.f32 %v10726_v19, %v2188_v5  ;;  %v2559_v22 = vmax.f32 %v2375_v45, 0.0  ;;  %v3539_v63 = vadd.f32 %v10722_v39, %v3538_v42  ;;  %v347_v5 = vld [vmem:[%s12408_s0 + $0x520] sm:$0xff]  ;;  %v10989_v45 = vpop.f32.mrf.mxu2  ;;  %v10991_v42 = vpop.f32.mrf.mxu3 }
 0x586   :  { %12531 = vst [vmem:[#allocation53_spill] sm:$0xff] %v10989_v45 }
 0x587   :  { %v2560_v7 = vmax.f32 %v2376_v24, 0.0  ;;  %v3826_v8 = vadd.f32 %v3825_v31, %v3539_v63  ;;  %12532 = vst [vmem:[#allocation54_spill] sm:$0xff] %v10991_v42  ;;  %v1138_v63 = vpop.permute.xlu1 %1137 }
 0x589   :  { %v10976_v30 = vmax.f32 %v2559_v22, %v2560_v7  ;;  %v3979_v17 = vmax.f32 %v3826_v8, 0.0  ;;  %v1441_v7 = vmul.f32 %v9113_v36, %v1123_v18 }
 0x58b   :  { %8417 = vmatmul.msk.f32.gmra.mxu1 %vm3047_vm0, %v10976_v30  ;;  %v8635_v62 = vpack.i.bf16 %v10976_v30, %v10969_v51 }
 0x58c   :  { %v3541_v14 = vpop.f32.mrf.mxu0 }
 0x58d   :  { %v3542_v53 = vadd.f32 %v10722_v39, %v3541_v14  ;;  %8636 = vrot.lane.b32.xlu0 %v8635_v62, %s8953_s12  ;;  %v349_v14 = vld [vmem:[%s12408_s0 + $0x530] sm:$0xff]  ;;  %v1631_v62 = vmul.f32 %v9115_v37, %v1128_v47 }
 0x58f   :  { %v3829_v10 = vadd.f32 %v3828_v13, %v3542_v53  ;;  %v1442_v13 = vmul.f32 %v9113_v36, %v1128_v47 }
 0x591   :  { %v3980_v58 = vmax.f32 %v3829_v10, 0.0  ;;  %v1815_v10 = vadd.f32 %v1631_v62, %v1441_v7  ;;  %v1633_v7 = vmul.f32 %v9115_v37, %v1138_v63  ;;  %v1148_v62 = vpop.permute.xlu1 %1147 }
 0x593   :  { %v10984_v46 = vmax.f32 %v3979_v17, %v3980_v58 }
 0x594   :  { %v8622_v24 = vpop.permute.xlu0 %8621 }
 0x595   :  { %12530 = vst [vmem:[#allocation52_spill] sm:$0xff] %v10984_v46  ;;  %4261 = vmatmul.f32.gmra.mxu2 %v10984_v46  ;;  %4403 = vmatmul.f32.gmra.mxu3 %v10984_v46  ;;  %v8623_v31 = vunpack.i.l.bf16 %v8622_v24  ;;  %v8624_v8 = vunpack.i.h.bf16 %v8622_v24 }
 0x596   :  { %1192 = vperm.xlu0 %8452, %v347_v5  }
 0x597   :  { %v3114_v22 = vsel %vm3047_vm0, %v10756_v59, %v8623_v31  ;;  %v2006_v59 = vmul.f32 %v9117_v38, %v1138_v63  ;;  %v3115_v31 = vsel %vm3047_vm0, %v10802_v15, %v8624_v8 }
 0x598   :  { %3561 = vmatmul.f32.gmra.mxu0 %v3114_v22 }
 0x59c   :  { %v1133_v53 = vpop.permute.xlu0 %1132 }
 0x59d   :  { %v1632_v17 = vmul.f32 %v9115_v37, %v1133_v53  ;;  %v2005_v58 = vmul.f32 %v9117_v38, %v1133_v53  ;;  %v1443_v22 = vmul.f32 %v9113_v36, %v1133_v53 }
 0x59e   :  { %1202 = vperm.xlu0 %8452, %v349_v14   ;;  %v352_v14 = vld [vmem:[%s12408_s0 + $0x548] sm:$0xff] }
 0x59f   :  { %v1816_v18 = vadd.f32 %v1632_v17, %v1442_v13  ;;  %v2189_v5 = vadd.f32 %v2005_v58, %v1815_v10  ;;  %v1444_v17 = vmul.f32 %v9113_v36, %v1138_v63  ;;  %v1817_v15 = vadd.f32 %v1633_v7, %v1443_v22 }
 0x5a0   :  { %3564 = vmatmul.f32.gmra.mxu0 %v3115_v31  ;;  %v2008_v31 = vmul.f32 %v9117_v38, %v1148_v62 }
 0x5a1   :  { %v8627_v24 = vpop.permute.xlu2 %8626  ;;  %v2190_v46 = vadd.f32 %v2006_v59, %v1816_v18  ;;  %v2377_v47 = vadd.f32 %v10726_v19, %v2189_v5  ;;  %v3831_v5 = vpop.f32.mrf.mxu1 }
 0x5a2   :  { %v8628_v10 = vunpack.i.l.bf16 %v8627_v24 }
 0x5a3   :  { %v2378_v13 = vadd.f32 %v10726_v19, %v2190_v46  ;;  %v2561_v53 = vmax.f32 %v2377_v47, 0.0  ;;  %v1635_v47 = vmul.f32 %v9115_v37, %v1148_v62 }
 0x5a4   :  { %v1143_v8 = vpop.permute.xlu0 %1142  ;;  %v3116_v63 = vsel %vm3047_vm0, %v10812_v52, %v8628_v10  ;;  %v354_v10 = vld [vmem:[%s12408_s0 + $0x558] sm:$0xff] }
 0x5a5   :  { %v1634_v58 = vmul.f32 %v9115_v37, %v1143_v8  ;;  %v2007_v59 = vmul.f32 %v9117_v38, %v1143_v8  ;;  %v2562_v18 = vmax.f32 %v2378_v13, 0.0  ;;  %v1445_v4 = vmul.f32 %v9113_v36, %v1143_v8 }
 0x5a6   :  { %1217 = vperm.xlu0 %8452, %v352_v14   ;;  %v1446_v14 = vmul.f32 %v9113_v36, %v1148_v62 }
 0x5a7   :  { %v1818_v2 = vadd.f32 %v1634_v58, %v1444_v17  ;;  %v2191_v46 = vadd.f32 %v2007_v59, %v1817_v15  ;;  %v11022_v22 = vmax.f32 %v2561_v53, %v2562_v18  ;;  %v8629_v15 = vunpack.i.h.bf16 %v8627_v24 }
 0x5a8   :  { %3567 = vmatmul.f32.gmra.mxu0 %v3116_v63  ;;  %v1819_v8 = vadd.f32 %v1635_v47, %v1445_v4 }
 0x5a9   :  { %v3544_v25 = vpop.f32.mrf.mxu0  ;;  %v1153_v7 = vpop.permute.xlu2 %1152  ;;  %v2192_v13 = vadd.f32 %v2008_v31, %v1818_v2  ;;  %v2379_v42 = vadd.f32 %v10726_v19, %v2191_v46  ;;  %8418 = vmatmul.msk.f32.gmra.mxu1 %vm3047_vm0, %v11022_v22  ;;  %v3117_v63 = vsel %vm3047_vm0, %v10858_v9, %v8629_v15 }
 0x5aa   :  { %v1636_v17 = vmul.f32 %v9115_v37, %v1153_v7  ;;  %v2009_v52 = vmul.f32 %v9117_v38, %v1153_v7  ;;  %v3545_v2 = vadd.f32 %v10722_v39, %v3544_v25  ;;  %v3834_v24 = vpop.f32.mrf.mxu1  ;;  %v1447_v45 = vmul.f32 %v9113_v36, %v1153_v7 }
 0x5ab   :  { %v2380_v53 = vadd.f32 %v10726_v19, %v2192_v13  ;;  %v2563_v18 = vmax.f32 %v2379_v42, 0.0 }
 0x5ac   :  { %v1820_v58 = vadd.f32 %v1636_v17, %v1446_v14  ;;  %v2193_v62 = vadd.f32 %v2009_v52, %v1819_v8  ;;  %v1158_v59 = vpop.permute.xlu0 %1157  ;;  %v3832_v17 = vadd.f32 %v3831_v5, %v3545_v2 }
 0x5ad   :  { %v1637_v31 = vmul.f32 %v9115_v37, %v1158_v59  ;;  %v2010_v46 = vmul.f32 %v9117_v38, %v1158_v59  ;;  %v2564_v4 = vmax.f32 %v2380_v53, 0.0  ;;  %v1448_v8 = vmul.f32 %v9113_v36, %v1158_v59 }
 0x5ae   :  { %1227 = vperm.xlu0 %8452, %v354_v10   ;;  %v2381_v42 = vadd.f32 %v10726_v19, %v2193_v62 }
 0x5af   :  { %v2194_v13 = vadd.f32 %v2010_v46, %v1820_v58  ;;  %v11041_v14 = vmax.f32 %v2563_v18, %v2564_v4  ;;  %v1821_v10 = vadd.f32 %v1637_v31, %v1447_v45  ;;  %v356_v58 = vld [vmem:[%s12408_s0 + $0x568] sm:$0xff]  ;;  %v3981_v18 = vmax.f32 %v3832_v17, 0.0  ;;  %v351_v17 = vld [vmem:[%s12408_s0 + $0x540] sm:$0xff] }
 0x5b0   :  { %3570 = vmatmul.f32.gmra.mxu0 %v3117_v63  ;;  %v2565_v59 = vmax.f32 %v2381_v42, 0.0 }
 0x5b1   :  { %v3547_v47 = vpop.f32.mrf.mxu0  ;;  %v11046_v52 = vpop.permute.xlu2 %1162  ;;  %v2382_v53 = vadd.f32 %v10726_v19, %v2194_v13  ;;  %8419 = vmatmul.msk.f32.gmra.mxu1 %vm3047_vm0, %v11041_v14  ;;  %v8640_v5 = vpack.i.bf16 %v11041_v14, %v11022_v22 }
 0x5b2   :  { %v3548_v25 = vadd.f32 %v10722_v39, %v3547_v47  ;;  %v1638_v9 = vmul.f32 %v9115_v37, %v11046_v52  ;;  %v2011_v7 = vmul.f32 %v9117_v38, %v11046_v52 }
 0x5b3   :  { %v2566_v45 = vmax.f32 %v2382_v53, 0.0  ;;  %8641 = vrot.lane.b32.xlu2 %v8640_v5, %s8953_s12  ;;  %v11067_v53 = vpop.f32.mrf.mxu2 }
 0x5b4   :  { %v3835_v15 = vadd.f32 %v3834_v24, %v3548_v25  ;;  %v1822_v62 = vadd.f32 %v1638_v9, %v1448_v8  ;;  %v2195_v2 = vadd.f32 %v2011_v7, %v1821_v10  ;;  %v1168_v46 = vpop.permute.xlu0 %1167  ;;  %12534 = vst [vmem:[#allocation56_spill] sm:$0xff] %v11067_v53  ;;  %v3837_v8 = vpop.f32.mrf.mxu1  ;;  %v358_v9 = vld [vmem:[%s12408_s0 + $0x578] sm:$0xff] }
 0x5b5   :  { %v2012_v4 = vmul.f32 %v9117_v38, %v1168_v46  ;;  %v11064_v63 = vmax.f32 %v2565_v59, %v2566_v45  ;;  %v11078_v10 = vpop.f32.mrf.mxu3 }
 0x5b6   :  { %v3982_v31 = vmax.f32 %v3835_v15, 0.0  ;;  %1237 = vperm.xlu0 %8452, %v356_v58   ;;  %v2383_v13 = vadd.f32 %v10726_v19, %v2195_v2  ;;  %12535 = vst [vmem:[#allocation57_spill] sm:$0xff] %v11078_v10 }
 0x5b7   :  { %v2196_v25 = vadd.f32 %v2012_v4, %v1822_v62  ;;  %2929 = vrot.lane.b32.xlu1 %v11064_v63, %s8953_s12  ;;  %v360_v4 = vld [vmem:[%s12408_s0 + $0x588] sm:$0xff] }
 0x5b8   :  { %v11062_v24 = vmax.f32 %v3981_v18, %v3982_v31  ;;  %v2567_v7 = vmax.f32 %v2383_v13, 0.0  ;;  %v353_v31 = vld [vmem:[%s12408_s0 + $0x550] sm:$0xff] }
 0x5b9   :  { %v3550_v47 = vpop.f32.mrf.mxu0  ;;  %v2384_v42 = vadd.f32 %v10726_v19, %v2196_v25  ;;  %8420 = vmatmul.msk.f32.gmra.mxu1 %vm3047_vm0, %v11064_v63 }
 0x5ba   :  { %12533 = vst [vmem:[#allocation55_spill] sm:$0xff] %v11062_v24  ;;  %4264 = vmatmul.f32.gmra.mxu2 %v11062_v24  ;;  %4406 = vmatmul.f32.gmra.mxu3 %v11062_v24  ;;  %v3551_v5 = vadd.f32 %v10722_v39, %v3550_v47 }
 0x5bb   :  { %v2568_v15 = vmax.f32 %v2384_v42, 0.0  ;;  %1212 = vperm.xlu2 %8454, %v351_v17   ;;  %v11100_v42 = vpop.f32.mrf.mxu2 }
 0x5bc   :  { %v3838_v62 = vadd.f32 %v3837_v8, %v3551_v5  ;;  %v3840_v59 = vpop.f32.mrf.mxu1  ;;  %12537 = vst [vmem:[#allocation59_spill] sm:$0xff] %v11100_v42  ;;  %v1178_v5 = vpop.permute.xlu2 %1177 }
 0x5bd   :  { %v11085_v58 = vmax.f32 %v2567_v7, %v2568_v15  ;;  %v11102_v17 = vpop.f32.mrf.mxu3  ;;  %v1639_v7 = vmul.f32 %v9115_v37, %v1168_v46  ;;  %v355_v15 = vld [vmem:[%s12408_s0 + $0x560] sm:$0xff] }
 0x5be   :  { %1247 = vperm.xlu0 %8452, %v358_v9   ;;  %v3983_v47 = vmax.f32 %v3838_v62, 0.0  ;;  %12538 = vst [vmem:[#allocation60_spill] sm:$0xff] %v11102_v17  ;;  %v1449_v62 = vmul.f32 %v9113_v36, %v11046_v52 }
 0x5bf   :  { %2931 = vrot.lane.b32.xlu1 %v11085_v58, %s8953_s12 }
 0x5c1   :  { %v3553_v45 = vpop.f32.mrf.mxu0  ;;  %8421 = vmatmul.msk.f32.gmra.mxu1 %vm3047_vm0, %v11085_v58 }
 0x5c2   :  { %v3554_v2 = vadd.f32 %v10722_v39, %v3553_v45  ;;  %v362_v45 = vld [vmem:[%s12408_s0 + $0x598] sm:$0xff] }
 0x5c3   :  { %1222 = vperm.xlu2 %8454, %v353_v31  }
 0x5c4   :  { %v3841_v18 = vadd.f32 %v3840_v59, %v3554_v2 }
 0x5c6   :  { %v3984_v13 = vmax.f32 %v3841_v18, 0.0  ;;  %1257 = vperm.xlu0 %8452, %v360_v4   ;;  %v1823_v18 = vadd.f32 %v1639_v7, %v1449_v62  ;;  %v1641_v7 = vmul.f32 %v9115_v37, %v1178_v5  ;;  %v1452_v62 = vmul.f32 %v9113_v36, %v1178_v5 }
 0x5c7   :  { %v8632_v39 = vpop.permute.xlu1 %8631 }
 0x5c8   :  { %v11098_v25 = vmax.f32 %v3983_v47, %v3984_v13  ;;  %v8633_v8 = vunpack.i.l.bf16 %v8632_v39  ;;  %v8634_v2 = vunpack.i.h.bf16 %v8632_v39  ;;  %v2014_v47 = vmul.f32 %v9117_v38, %v1178_v5  ;;  %v359_v5 = vld [vmem:[%s12408_s0 + $0x580] sm:$0xff] }
 0x5ca   :  { %12536 = vst [vmem:[#allocation58_spill] sm:$0xff] %v11098_v25  ;;  %4267 = vmatmul.f32.gmra.mxu2 %v11098_v25  ;;  %4409 = vmatmul.f32.gmra.mxu3 %v11098_v25  ;;  %v3118_v9 = vsel %vm3047_vm0, %v10877_v48, %v8633_v8  ;;  %v1450_v48 = vmul.f32 %v9113_v36, %v1168_v46  ;;  %v357_v46 = vld [vmem:[%s12408_s0 + $0x570] sm:$0xff] }
 0x5cb   :  { %3573 = vmatmul.f32.gmra.mxu0 %v3118_v9  ;;  %1232 = vperm.xlu2 %8454, %v355_v15   ;;  %v3119_v9 = vsel %vm3047_vm0, %v10898_v20, %v8634_v2 }
 0x5ce   :  { %1267 = vperm.xlu0 %8452, %v362_v45  }
 0x5cf   :  { %v1173_v59 = vpop.permute.xlu1 %1172 }
 0x5d0   :  { %v1640_v31 = vmul.f32 %v9115_v37, %v1173_v59  ;;  %v2013_v4 = vmul.f32 %v9117_v38, %v1173_v59  ;;  %v1451_v52 = vmul.f32 %v9113_v36, %v1173_v59 }
 0x5d2   :  { %v1824_v13 = vadd.f32 %v1640_v31, %v1450_v48  ;;  %v2197_v8 = vadd.f32 %v2013_v4, %v1823_v18  ;;  %v1188_v48 = vpop.permute.xlu2 %1187  ;;  %v1825_v18 = vadd.f32 %v1641_v7, %v1451_v52 }
 0x5d3   :  { %3576 = vmatmul.f32.gmra.mxu0 %v3119_v9  ;;  %1242 = vperm.xlu2 %8454, %v357_v46  }
 0x5d4   :  { %v2198_v39 = vadd.f32 %v2014_v47, %v1824_v13  ;;  %v2385_v15 = vadd.f32 %v10726_v19, %v2197_v8  ;;  %v2016_v47 = vmul.f32 %v9117_v38, %v1188_v48 }
 0x5d6   :  { %v2386_v45 = vadd.f32 %v10726_v19, %v2198_v39  ;;  %v2569_v2 = vmax.f32 %v2385_v15, 0.0 }
 0x5d7   :  { %v1183_v20 = vpop.permute.xlu1 %1182 }
 0x5d8   :  { %v1642_v59 = vmul.f32 %v9115_v37, %v1183_v20  ;;  %v2015_v31 = vmul.f32 %v9117_v38, %v1183_v20  ;;  %v2570_v4 = vmax.f32 %v2386_v45, 0.0  ;;  %v361_v45 = vld [vmem:[%s12408_s0 + $0x590] sm:$0xff] }
 0x5da   :  { %v1826_v13 = vadd.f32 %v1642_v59, %v1452_v62  ;;  %v2199_v8 = vadd.f32 %v2015_v31, %v1825_v18  ;;  %v11134_v9 = vmax.f32 %v2569_v2, %v2570_v4  ;;  %v3843_v18 = vpop.f32.mrf.mxu1  ;;  %v11154_v2 = vld [vmem:[#allocation8] ss:$0 sm:$0xff] }
 0x5db   :  { %1252 = vperm.xlu2 %8454, %v359_v5  }
 0x5dc   :  { %v2200_v25 = vadd.f32 %v2016_v47, %v1826_v13  ;;  %v2387_v39 = vadd.f32 %v10726_v19, %v2199_v8  ;;  %2933 = vrot.lane.b32.xlu1 %v11134_v9, %s8953_s12  ;;  %8422 = vmatmul.msk.f32.gmra.mxu1 %vm3047_vm0, %v11134_v9 }
 0x5de   :  { %v2388_v52 = vadd.f32 %v10726_v19, %v2200_v25  ;;  %v2571_v15 = vmax.f32 %v2387_v39, 0.0 }
 0x5e0   :  { %v2572_v46 = vmax.f32 %v2388_v52, 0.0  ;;  %v11160_v52 = vpop.f32.mrf.mxu2 }
 0x5e1   :  { %12540 = vst [vmem:[#allocation62_spill] sm:$0xff] %v11160_v52 }
 0x5e2   :  { %v11145_v7 = vmax.f32 %v2571_v15, %v2572_v46  ;;  %v3846_v4 = vpop.f32.mrf.mxu1  ;;  %v11162_v15 = vpop.f32.mrf.mxu3 }
 0x5e3   :  { %1262 = vperm.xlu2 %8454, %v361_v45   ;;  %12541 = vst [vmem:[#allocation63_spill] sm:$0xff] %v11162_v15 }
 0x5e4   :  { %2935 = vrot.lane.b32.xlu1 %v11145_v7, %s8953_s12  ;;  %8423 = vmatmul.msk.f32.gmra.mxu1 %vm3047_vm0, %v11145_v7 }
 0x5ea   :  { %v3849_v17 = vpop.f32.mrf.mxu1 }
 0x5ef   :  { %v3556_v62 = vpop.f32.mrf.mxu0 }
 0x5f0   :  { %v3557_v19 = vadd.f32 %v11154_v2, %v3556_v62  ;;  %v1453_v62 = vmul.f32 %v9113_v36, %v1183_v20 }
 0x5f2   :  { %v3844_v59 = vadd.f32 %v3843_v18, %v3557_v19  ;;  %v1198_v18 = vpop.permute.xlu1 %1197  ;;  %v1643_v19 = vmul.f32 %v9115_v37, %v1188_v48 }
 0x5f4   :  { %v3985_v13 = vmax.f32 %v3844_v59, 0.0 }
 0x5f7   :  { %v3559_v25 = vpop.f32.mrf.mxu0 }
 0x5f8   :  { %v3560_v31 = vadd.f32 %v11154_v2, %v3559_v25 }
 0x5fa   :  { %v3847_v47 = vadd.f32 %v3846_v4, %v3560_v31  ;;  %v1454_v31 = vmul.f32 %v9113_v36, %v1188_v48  ;;  %v1827_v4 = vadd.f32 %v1643_v19, %v1453_v62  ;;  %v1208_v62 = vpop.permute.xlu1 %1207 }
 0x5fc   :  { %v3986_v8 = vmax.f32 %v3847_v47, 0.0 }
 0x5fe   :  { %v11158_v39 = vmax.f32 %v3985_v13, %v3986_v8  ;;  %v2018_v8 = vmul.f32 %v9117_v38, %v1198_v18 }
 0x5ff   :  { %v8637_v5 = vpop.permute.xlu0 %8636 }
 0x600   :  { %12539 = vst [vmem:[#allocation61_spill] sm:$0xff] %v11158_v39  ;;  %v8638_v46 = vunpack.i.l.bf16 %v8637_v5  ;;  %4270 = vmatmul.f32.gmra.mxu2 %v11158_v39  ;;  %4412 = vmatmul.f32.gmra.mxu3 %v11158_v39  ;;  %v8639_v25 = vunpack.i.h.bf16 %v8637_v5  ;;  %v11177_v5 = vld [vmem:[#allocation5] ss:$0 sm:$0xff] }
 0x602   :  { %v3120_v45 = vsel %vm3047_vm0, %v10912_v55, %v8638_v46  ;;  %v3121_v55 = vsel %vm3047_vm0, %v10969_v51, %v8639_v25 }
 0x603   :  { %3579 = vmatmul.f32.gmra.mxu0 %v3120_v45  ;;  %v1645_v45 = vmul.f32 %v9115_v37, %v1198_v18 }
 0x608   :  { %v1193_v59 = vpop.permute.xlu0 %1192 }
 0x609   :  { %v1644_v47 = vmul.f32 %v9115_v37, %v1193_v59  ;;  %v2017_v13 = vmul.f32 %v9117_v38, %v1193_v59  ;;  %v1455_v20 = vmul.f32 %v9113_v36, %v1193_v59 }
 0x60b   :  { %v1828_v39 = vadd.f32 %v1644_v47, %v1454_v31  ;;  %v2201_v24 = vadd.f32 %v2017_v13, %v1827_v4  ;;  %3582 = vmatmul.f32.gmra.mxu0 %v3121_v55  ;;  %v1456_v31 = vmul.f32 %v9113_v36, %v1198_v18  ;;  %v1829_v4 = vadd.f32 %v1645_v45, %v1455_v20 }
 0x60d   :  { %v2202_v46 = vadd.f32 %v2018_v8, %v1828_v39  ;;  %v2389_v48 = vadd.f32 %v11177_v5, %v2201_v24  ;;  %v8642_v52 = vpop.permute.xlu2 %8641  ;;  %v2020_v8 = vmul.f32 %v9117_v38, %v1208_v62 }
 0x60e   :  { %v8643_v47 = vunpack.i.l.bf16 %v8642_v52 }
 0x60f   :  { %v2390_v19 = vadd.f32 %v11177_v5, %v2202_v46  ;;  %v2573_v51 = vmax.f32 %v2389_v48, 0.0  ;;  %v1647_v48 = vmul.f32 %v9115_v37, %v1208_v62 }
 0x610   :  { %v1203_v13 = vpop.permute.xlu0 %1202  ;;  %v3122_v15 = vsel %vm3047_vm0, %v10976_v30, %v8643_v47  ;;  %v1458_v47 = vmul.f32 %v9113_v36, %v1208_v62  ;;  %v3852_v62 = vpop.f32.mrf.mxu1 }
 0x611   :  { %v1646_v25 = vmul.f32 %v9115_v37, %v1203_v13  ;;  %v2019_v39 = vmul.f32 %v9117_v38, %v1203_v13  ;;  %v2574_v59 = vmax.f32 %v2390_v19, 0.0  ;;  %v1457_v18 = vmul.f32 %v9113_v36, %v1203_v13 }
 0x612   :  { %v8644_v19 = vunpack.i.h.bf16 %v8642_v52 }
 0x613   :  { %v1830_v24 = vadd.f32 %v1646_v25, %v1456_v31  ;;  %v2203_v55 = vadd.f32 %v2019_v39, %v1829_v4  ;;  %v11188_v46 = vmax.f32 %v2573_v51, %v2574_v59  ;;  %3585 = vmatmul.f32.gmra.mxu0 %v3122_v15  ;;  %v1831_v13 = vadd.f32 %v1647_v48, %v1457_v18 }
 0x615   :  { %v2204_v20 = vadd.f32 %v2020_v8, %v1830_v24  ;;  %2937 = vrot.lane.b32.xlu1 %v11188_v46, %s8953_s12  ;;  %8424 = vmatmul.msk.f32.gmra.mxu1 %vm3047_vm0, %v11188_v46  ;;  %v3562_v45 = vpop.f32.mrf.mxu0  ;;  %v2391_v31 = vadd.f32 %v11177_v5, %v2203_v55  ;;  %v1213_v4 = vpop.permute.xlu2 %1212 }
 0x616   :  { %v1648_v15 = vmul.f32 %v9115_v37, %v1213_v4  ;;  %v2021_v51 = vmul.f32 %v9117_v38, %v1213_v4  ;;  %v3563_v24 = vadd.f32 %v11154_v2, %v3562_v45  ;;  %v1459_v53 = vmul.f32 %v9113_v36, %v1213_v4 }
 0x617   :  { %v2392_v30 = vadd.f32 %v11177_v5, %v2204_v20  ;;  %v2575_v52 = vmax.f32 %v2391_v31, 0.0  ;;  %v3123_v20 = vsel %vm3047_vm0, %v11022_v22, %v8644_v19 }
 0x618   :  { %v1218_v25 = vpop.permute.xlu0 %1217  ;;  %v1832_v59 = vadd.f32 %v1648_v15, %v1458_v47  ;;  %v2205_v8 = vadd.f32 %v2021_v51, %v1831_v13  ;;  %v3850_v47 = vadd.f32 %v3849_v17, %v3563_v24 }
 0x619   :  { %v2022_v39 = vmul.f32 %v9117_v38, %v1218_v25  ;;  %v1649_v55 = vmul.f32 %v9115_v37, %v1218_v25  ;;  %v2576_v42 = vmax.f32 %v2392_v30, 0.0  ;;  %v1460_v31 = vmul.f32 %v9113_v36, %v1218_v25 }
 0x61a   :  { %v2393_v18 = vadd.f32 %v11177_v5, %v2205_v8  ;;  %v3987_v24 = vmax.f32 %v3850_v47, 0.0 }
 0x61b   :  { %v2206_v48 = vadd.f32 %v2022_v39, %v1832_v59  ;;  %3588 = vmatmul.f32.gmra.mxu0 %v3123_v20  ;;  %v11208_v10 = vmax.f32 %v2575_v52, %v2576_v42  ;;  %v1833_v15 = vadd.f32 %v1649_v55, %v1459_v53 }
 0x61c   :  { %v2577_v30 = vmax.f32 %v2393_v18, 0.0 }
 0x61d   :  { %v2394_v13 = vadd.f32 %v11177_v5, %v2206_v48  ;;  %v3565_v45 = vpop.f32.mrf.mxu0  ;;  %2939 = vrot.lane.b32.xlu1 %v11208_v10, %s8953_s12  ;;  %8425 = vmatmul.msk.f32.gmra.mxu1 %vm3047_vm0, %v11208_v10  ;;  %v1223_v22 = vpop.permute.xlu2 %1222 }
 0x61e   :  { %v3566_v19 = vadd.f32 %v11154_v2, %v3565_v45  ;;  %v1650_v42 = vmul.f32 %v9115_v37, %v1223_v22  ;;  %v2023_v17 = vmul.f32 %v9117_v38, %v1223_v22  ;;  %v1461_v48 = vmul.f32 %v9113_v36, %v1223_v22 }
 0x61f   :  { %v2578_v4 = vmax.f32 %v2394_v13, 0.0 }
 0x620   :  { %v1228_v51 = vpop.permute.xlu0 %1227  ;;  %v3853_v39 = vadd.f32 %v3852_v62, %v3566_v19  ;;  %v1834_v53 = vadd.f32 %v1650_v42, %v1460_v31  ;;  %v2207_v59 = vadd.f32 %v2023_v17, %v1833_v15  ;;  %v3855_v62 = vpop.f32.mrf.mxu1 }
 0x621   :  { %v2024_v25 = vmul.f32 %v9117_v38, %v1228_v51  ;;  %v11220_v8 = vmax.f32 %v2577_v30, %v2578_v4  ;;  %v1651_v55 = vmul.f32 %v9115_v37, %v1228_v51  ;;  %v11230_v15 = vpop.f32.mrf.mxu2  ;;  %v1462_v47 = vmul.f32 %v9113_v36, %v1228_v51  ;;  %v11236_v4 = vpop.f32.mrf.mxu3 }
 0x622   :  { %v3988_v52 = vmax.f32 %v3853_v39, 0.0  ;;  %v2395_v20 = vadd.f32 %v11177_v5, %v2207_v59  ;;  %12543 = vst [vmem:[#allocation65_spill] sm:$0xff] %v11230_v15 }
 0x623   :  { %v2208_v18 = vadd.f32 %v2024_v25, %v1834_v53  ;;  %2941 = vrot.lane.b32.xlu2 %v11220_v8, %s8953_s12  ;;  %v1835_v19 = vadd.f32 %v1651_v55, %v1461_v48  ;;  %12544 = vst [vmem:[#allocation66_spill] sm:$0xff] %v11236_v4 }
 0x624   :  { %v11227_v13 = vmax.f32 %v3987_v24, %v3988_v52  ;;  %v2579_v22 = vmax.f32 %v2395_v20, 0.0 }
 0x625   :  { %v2396_v45 = vadd.f32 %v11177_v5, %v2208_v18  ;;  %v3568_v31 = vpop.f32.mrf.mxu0  ;;  %8426 = vmatmul.msk.f32.gmra.mxu1 %vm3047_vm0, %v11220_v8  ;;  %v1233_v30 = vpop.permute.xlu2 %1232 }
 0x626   :  { %12542 = vst [vmem:[#allocation64_spill] sm:$0xff] %v11227_v13  ;;  %4273 = vmatmul.f32.gmra.mxu2 %v11227_v13  ;;  %v1652_v17 = vmul.f32 %v9115_v37, %v1233_v30  ;;  %v2025_v39 = vmul.f32 %v9117_v38, %v1233_v30  ;;  %4415 = vmatmul.f32.gmra.mxu3 %v11227_v13 }
 0x627   :  { %v2580_v42 = vmax.f32 %v2396_v45, 0.0  ;;  %v3569_v52 = vadd.f32 %v11154_v2, %v3568_v31  ;;  %v1463_v13 = vmul.f32 %v9113_v36, %v1233_v30 }
 0x628   :  { %v1238_v25 = vpop.permute.xlu0 %1237  ;;  %v1836_v53 = vadd.f32 %v1652_v17, %v1462_v47  ;;  %v2209_v59 = vadd.f32 %v2025_v39, %v1835_v19 }
 0x629   :  { %v2026_v51 = vmul.f32 %v9117_v38, %v1238_v25  ;;  %v11242_v24 = vmax.f32 %v2579_v22, %v2580_v42  ;;  %v1653_v55 = vmul.f32 %v9115_v37, %v1238_v25  ;;  %v2930_v18 = vpop.permute.xlu1 %2929  ;;  %v3856_v22 = vadd.f32 %v3855_v62, %v3569_v52 }
 0x62a   :  { %v2397_v20 = vadd.f32 %v11177_v5, %v2209_v59  ;;  %v3124_v45 = vsel %vm3047_vm0, %v11041_v14, %v2930_v18  ;;  %v1464_v31 = vmul.f32 %v9113_v36, %v1238_v25 }
 0x62b   :  { %v2210_v48 = vadd.f32 %v2026_v51, %v1836_v53  ;;  %2943 = vrot.lane.b32.xlu0 %v11242_v24, %s8953_s12  ;;  %3591 = vmatmul.f32.gmra.mxu0 %v3124_v45  ;;  %v1837_v42 = vadd.f32 %v1653_v55, %v1463_v13  ;;  %v3858_v51 = vpop.f32.mrf.mxu1  ;;  %v363_v13 = vld [vmem:[%s12408_s0 + $0x5a0] sm:$0xff]  ;;  %v3989_v45 = vmax.f32 %v3856_v22, 0.0 }
 0x62c   :  { %v2581_v53 = vmax.f32 %v2397_v20, 0.0 }
 0x62d   :  { %v2398_v47 = vadd.f32 %v11177_v5, %v2210_v48  ;;  %v3571_v19 = vpop.f32.mrf.mxu0  ;;  %8427 = vmatmul.msk.f32.gmra.mxu1 %vm3047_vm0, %v11242_v24  ;;  %v1243_v17 = vpop.permute.xlu2 %1242 }
 0x62e   :  { %v3572_v39 = vadd.f32 %v11154_v2, %v3571_v19  ;;  %v1654_v14 = vmul.f32 %v9115_v37, %v1243_v17  ;;  %v2027_v30 = vmul.f32 %v9117_v38, %v1243_v17 }
 0x62f   :  { %v2582_v59 = vmax.f32 %v2398_v47, 0.0 }
 0x630   :  { %v1248_v18 = vpop.permute.xlu0 %1247  ;;  %v3859_v48 = vadd.f32 %v3858_v51, %v3572_v39  ;;  %v1838_v25 = vadd.f32 %v1654_v14, %v1464_v31  ;;  %v2211_v52 = vadd.f32 %v2027_v30, %v1837_v42  ;;  %v1465_v31 = vmul.f32 %v9113_v36, %v1243_v17  ;;  %v11275_v51 = vpop.f32.mrf.mxu2 }
 0x631   :  { %v2028_v62 = vmul.f32 %v9117_v38, %v1248_v18  ;;  %v11263_v55 = vmax.f32 %v2581_v53, %v2582_v59  ;;  %v1655_v20 = vmul.f32 %v9115_v37, %v1248_v18  ;;  %v2932_v47 = vpop.permute.xlu1 %2931  ;;  %v1466_v53 = vmul.f32 %v9113_v36, %v1248_v18  ;;  %v11281_v30 = vpop.f32.mrf.mxu3 }
 0x632   :  { %v3990_v19 = vmax.f32 %v3859_v48, 0.0  ;;  %v2399_v4 = vadd.f32 %v11177_v5, %v2211_v52  ;;  %v3125_v39 = vsel %vm3047_vm0, %v11064_v63, %v2932_v47 }
 0x633   :  { %v2212_v15 = vadd.f32 %v2028_v62, %v1838_v25  ;;  %1272 = vperm.xlu0 %8452, %v363_v13   ;;  %2945 = vrot.lane.b32.xlu1 %v11263_v55, %s8953_s12  ;;  %v1839_v59 = vadd.f32 %v1655_v20, %v1465_v31 }
 0x634   :  { %v11272_v42 = vmax.f32 %v3989_v45, %v3990_v19  ;;  %3594 = vmatmul.f32.gmra.mxu0 %v3125_v39  ;;  %v2583_v63 = vmax.f32 %v2399_v4, 0.0 }
 0x635   :  { %v2400_v22 = vadd.f32 %v11177_v5, %v2212_v15  ;;  %8428 = vmatmul.msk.f32.gmra.mxu1 %vm3047_vm0, %v11263_v55  ;;  %v1253_v14 = vpop.permute.xlu2 %1252 }
 0x636   :  { %12545 = vst [vmem:[#allocation67_spill] sm:$0xff] %v11272_v42  ;;  %4276 = vmatmul.f32.gmra.mxu2 %v11272_v42  ;;  %v1656_v48 = vmul.f32 %v9115_v37, %v1253_v14  ;;  %v2029_v62 = vmul.f32 %v9117_v38, %v1253_v14  ;;  %4418 = vmatmul.f32.gmra.mxu3 %v11272_v42 }
 0x637   :  { %v2584_v17 = vmax.f32 %v2400_v22, 0.0  ;;  %v1467_v4 = vmul.f32 %v9113_v36, %v1253_v14 }
 0x638   :  { %v1258_v15 = vpop.permute.xlu0 %1257  ;;  %v1840_v13 = vadd.f32 %v1656_v48, %v1466_v53  ;;  %v2213_v25 = vadd.f32 %v2029_v62, %v1839_v59  ;;  %v364_v62 = vld [vmem:[%s12408_s0 + $0x5a8] sm:$0xff] }
 0x639   :  { %v2030_v18 = vmul.f32 %v9117_v38, %v1258_v15  ;;  %v11287_v52 = vmax.f32 %v2583_v63, %v2584_v17  ;;  %v1657_v45 = vmul.f32 %v9115_v37, %v1258_v15  ;;  %v1468_v39 = vmul.f32 %v9113_v36, %v1258_v15 }
 0x63a   :  { %v2401_v19 = vadd.f32 %v11177_v5, %v2213_v25 }
 0x63b   :  { %v2214_v20 = vadd.f32 %v2030_v18, %v1840_v13  ;;  %2947 = vrot.lane.b32.xlu2 %v11287_v52, %s8953_s12  ;;  %v1841_v31 = vadd.f32 %v1657_v45, %v1467_v4  ;;  %v3861_v4 = vpop.f32.mrf.mxu1 }
 0x63c   :  { %v2585_v53 = vmax.f32 %v2401_v19, 0.0 }
 0x63d   :  { %v2402_v47 = vadd.f32 %v11177_v5, %v2214_v20  ;;  %8429 = vmatmul.msk.f32.gmra.mxu1 %vm3047_vm0, %v11287_v52  ;;  %v11298_v22 = vpop.permute.xlu2 %1262 }
 0x63e   :  { %v1658_v63 = vmul.f32 %v9115_v37, %v11298_v22  ;;  %v2031_v17 = vmul.f32 %v9117_v38, %v11298_v22 }
 0x63f   :  { %v2586_v59 = vmax.f32 %v2402_v47, 0.0 }
 0x640   :  { %v11304_v48 = vpop.permute.xlu0 %1267  ;;  %v1842_v15 = vadd.f32 %v1658_v63, %v1468_v39  ;;  %v2215_v18 = vadd.f32 %v2031_v17, %v1841_v31  ;;  %v366_v39 = vld [vmem:[%s12408_s0 + $0x5b8] sm:$0xff]  ;;  %v365_v31 = vld [vmem:[%s12408_s0 + $0x5b0] sm:$0xff] }
 0x641   :  { %v2032_v14 = vmul.f32 %v9117_v38, %v11304_v48  ;;  %v11311_v13 = vmax.f32 %v2585_v53, %v2586_v59 }
 0x642   :  { %v2403_v25 = vadd.f32 %v11177_v5, %v2215_v18 }
 0x643   :  { %v2216_v45 = vadd.f32 %v2032_v14, %v1842_v15  ;;  %1277 = vperm.xlu2 %8454, %v364_v62   ;;  %2949 = vrot.lane.b32.xlu1 %v11311_v13, %s8953_s12  ;;  %v3864_v15 = vpop.f32.mrf.mxu1 }
 0x644   :  { %v2587_v47 = vmax.f32 %v2403_v25, 0.0  ;;  %v368_v25 = vld [vmem:[%s12408_s0 + $0x5c8] sm:$0xff] }
 0x645   :  { %v2404_v19 = vadd.f32 %v11177_v5, %v2216_v45  ;;  %8430 = vmatmul.msk.f32.gmra.mxu1 %vm3047_vm0, %v11311_v13  ;;  %v367_v45 = vld [vmem:[%s12408_s0 + $0x5c0] sm:$0xff]  ;;  %s8954_s0 = smov [#allocation19]  }
 0x647   :  { %v2588_v42 = vmax.f32 %v2404_v19, 0.0 }
 0x648   :  { %v3574_v20 = vpop.f32.mrf.mxu0 }
 0x649   :  { %v11325_v53 = vmax.f32 %v2587_v47, %v2588_v42  ;;  %v3575_v59 = vadd.f32 %v11154_v2, %v3574_v20 }
 0x64b   :  { %1287 = vperm.xlu2 %8454, %v366_v39   ;;  %1282 = vperm.xlu1 %8453, %v365_v31   ;;  %v3862_v62 = vadd.f32 %v3861_v4, %v3575_v59  ;;  %v11345_v39 = vpop.f32.mrf.mxu2  ;;  %v11347_v31 = vpop.f32.mrf.mxu3 }
 0x64c   :  { %2951 = vrot.lane.b32.xlu0 %v11325_v53, %s8953_s12  ;;  %12547 = vst [vmem:[#allocation69_spill] sm:$0xff] %v11347_v31  ;;  %v3867_v59 = vpop.f32.mrf.mxu1 }
 0x64d   :  { %8431 = vmatmul.msk.f32.gmra.mxu1 %vm3047_vm0, %v11325_v53  ;;  %v3991_v19 = vmax.f32 %v3862_v62, 0.0 }
 0x64e   :  { %v2934_v63 = vpop.permute.xlu1 %2933 }
 0x64f   :  { %v3126_v17 = vsel %vm3047_vm0, %v11085_v58, %v2934_v63 }
 0x650   :  { %v3577_v14 = vpop.f32.mrf.mxu0  ;;  %3597 = vmatmul.f32.gmra.mxu0 %v3126_v17 }
 0x651   :  { %v3578_v42 = vadd.f32 %v11154_v2, %v3577_v14 }
 0x653   :  { %v3865_v18 = vadd.f32 %v3864_v15, %v3578_v42  ;;  %1851 = vperm.xlu2 %8454, %v368_v25   ;;  %v11357_v31 = vpop.f32.mrf.mxu2 }
 0x654   :  { %1477 = vperm.xlu0 %8452, %v367_v45   ;;  %v3870_v17 = vpop.f32.mrf.mxu1 }
 0x655   :  { %v3992_v58 = vmax.f32 %v3865_v18, 0.0 }
 0x656   :  { %v2936_v20 = vpop.permute.xlu1 %2935 }
 0x657   :  { %v11341_v4 = vmax.f32 %v3991_v19, %v3992_v58  ;;  %v3127_v47 = vsel %vm3047_vm0, %v11134_v9, %v2936_v20 }
 0x658   :  { %3600 = vmatmul.f32.gmra.mxu0 %v3127_v47 }
 0x659   :  { %12546 = vst [vmem:[#allocation68_spill] sm:$0xff] %v11341_v4  ;;  %4279 = vmatmul.f32.gmra.mxu2 %v11341_v4  ;;  %4421 = vmatmul.f32.gmra.mxu3 %v11341_v4 }
 0x65c   :  { %v3873_v58 = vpop.f32.mrf.mxu1 }
 0x680   :  { %v3580_v63 = vpop.f32.mrf.mxu0 }
 0x681   :  { %v3581_v14 = vadd.f32 %v11154_v2, %v3580_v63  ;;  %v11359_v63 = vpop.f32.mrf.mxu3 }
 0x683   :  { %v3868_v9 = vadd.f32 %v3867_v59, %v3581_v14  ;;  %v2942_v59 = vpop.permute.xlu2 %2941 }
 0x685   :  { %v3993_v45 = vmax.f32 %v3868_v9, 0.0  ;;  %v3876_v9 = vpop.f32.mrf.mxu1 }
 0x687   :  { %v2938_v62 = vpop.permute.xlu1 %2937 }
 0x688   :  { %v3128_v42 = vsel %vm3047_vm0, %v11145_v7, %v2938_v62  ;;  %v3583_v15 = vpop.f32.mrf.mxu0 }
 0x689   :  { %3603 = vmatmul.f32.gmra.mxu0 %v3128_v42  ;;  %v3584_v18 = vadd.f32 %v11154_v2, %v3583_v15  ;;  %v3130_v15 = vsel %vm3047_vm0, %v11208_v10, %v2942_v59  ;;  %v1659_v10 = vmul.f32 %v9115_v37, %v11304_v48 }
 0x68b   :  { %v3871_v25 = vadd.f32 %v3870_v17, %v3584_v18 }
 0x68d   :  { %v3994_v19 = vmax.f32 %v3871_v25, 0.0 }
 0x68f   :  { %v11355_v20 = vmax.f32 %v3993_v45, %v3994_v19  ;;  %v2940_v47 = vpop.permute.xlu1 %2939 }
 0x690   :  { %v3586_v4 = vpop.f32.mrf.mxu0  ;;  %v3129_v7 = vsel %vm3047_vm0, %v11188_v46, %v2940_v47 }
 0x691   :  { %12548 = vst [vmem:[#allocation70_spill] sm:$0xff] %v11355_v20  ;;  %4282 = vmatmul.f32.gmra.mxu2 %v11355_v20  ;;  %4424 = vmatmul.f32.gmra.mxu3 %v11355_v20  ;;  %v3587_v17 = vadd.f32 %v11154_v2, %v3586_v4  ;;  %v11373_v20 = vpop.f32.mrf.mxu3 }
 0x692   :  { %3606 = vmatmul.f32.gmra.mxu0 %v3129_v7  ;;  %v11371_v7 = vpop.f32.mrf.mxu2  ;;  %12551 = vst [vmem:[#allocation73_spill] sm:$0xff] %v11373_v20 }
 0x693   :  { %v3874_v62 = vadd.f32 %v3873_v58, %v3587_v17  ;;  %12550 = vst [vmem:[#allocation72_spill] sm:$0xff] %v11371_v7  ;;  %v1469_v58 = vmul.f32 %v9113_v36, %v11298_v22  ;;  %v3879_v22 = vpop.f32.mrf.mxu1 }
 0x695   :  { %v2948_v18 = vpop.permute.xlu2 %2947  ;;  %v3995_v46 = vmax.f32 %v3874_v62, 0.0  ;;  %v1470_v62 = vmul.f32 %v9113_v36, %v11304_v48 }
 0x698   :  { %v3589_v14 = vpop.f32.mrf.mxu0 }
 0x699   :  { %v3590_v42 = vadd.f32 %v11154_v2, %v3589_v14 }
 0x69a   :  { %3609 = vmatmul.f32.gmra.mxu0 %v3130_v15 }
 0x69b   :  { %v3877_v25 = vadd.f32 %v3876_v9, %v3590_v42  ;;  %v1843_v42 = vadd.f32 %v1659_v10, %v1469_v58 }
 0x69d   :  { %v3996_v45 = vmax.f32 %v3877_v25, 0.0  ;;  %v2944_v19 = vpop.permute.xlu0 %2943  ;;  %v1278_v59 = vpop.permute.xlu2 %1277 }
 0x69e   :  { %v3131_v4 = vsel %vm3047_vm0, %v11220_v8, %v2944_v19  ;;  %v2034_v9 = vmul.f32 %v9117_v38, %v1278_v59 }
 0x69f   :  { %v11369_v47 = vmax.f32 %v3995_v46, %v3996_v45 }
 0x6a1   :  { %12549 = vst [vmem:[#allocation71_spill] sm:$0xff] %v11369_v47  ;;  %4285 = vmatmul.f32.gmra.mxu2 %v11369_v47  ;;  %4427 = vmatmul.f32.gmra.mxu3 %v11369_v47 }
 0x6a2   :  { %3612 = vmatmul.f32.gmra.mxu0 %v3131_v4 }
 0x6a5   :  { %v2946_v17 = vpop.permute.xlu1 %2945  ;;  %v1273_v14 = vpop.permute.xlu0 %1272 }
 0x6a6   :  { %v1660_v8 = vmul.f32 %v9115_v37, %v1273_v14  ;;  %v2033_v15 = vmul.f32 %v9117_v38, %v1273_v14  ;;  %v3132_v19 = vsel %vm3047_vm0, %v11242_v24, %v2946_v17  ;;  %v3882_v17 = vpop.f32.mrf.mxu1 }
 0x6a8   :  { %v1844_v25 = vadd.f32 %v1660_v8, %v1470_v62  ;;  %v2217_v46 = vadd.f32 %v2033_v15, %v1843_v42  ;;  %v3592_v45 = vpop.f32.mrf.mxu0  ;;  %v3133_v62 = vsel %vm3047_vm0, %v11263_v55, %v2948_v18  ;;  %v1471_v18 = vmul.f32 %v9113_v36, %v1273_v14 }
 0x6a9   :  { %v3593_v10 = vadd.f32 %v11154_v2, %v3592_v45  ;;  %v1661_v45 = vmul.f32 %v9115_v37, %v1278_v59 }
 0x6aa   :  { %3615 = vmatmul.f32.gmra.mxu0 %v3132_v19  ;;  %v2218_v4 = vadd.f32 %v2034_v9, %v1844_v25  ;;  %v2405_v47 = vadd.f32 %v11177_v5, %v2217_v46  ;;  %v1288_v19 = vpop.permute.xlu2 %1287 }
 0x6ab   :  { %v3880_v8 = vadd.f32 %v3879_v22, %v3593_v10  ;;  %v2036_v14 = vmul.f32 %v9117_v38, %v1288_v19 }
 0x6ac   :  { %v2406_v48 = vadd.f32 %v11177_v5, %v2218_v4  ;;  %v2589_v58 = vmax.f32 %v2405_v47, 0.0  ;;  %v1472_v4 = vmul.f32 %v9113_v36, %v1278_v59 }
 0x6ad   :  { %v3997_v9 = vmax.f32 %v3880_v8, 0.0 }
 0x6ae   :  { %v2590_v20 = vmax.f32 %v2406_v48, 0.0  ;;  %v1845_v48 = vadd.f32 %v1661_v45, %v1471_v18 }
 0x6b0   :  { %v11395_v42 = vmax.f32 %v2589_v58, %v2590_v20  ;;  %v11406_v20 = vpop.f32.mrf.mxu2 }
 0x6b1   :  { %v3595_v7 = vpop.f32.mrf.mxu0 }
 0x6b2   :  { %v3596_v24 = vadd.f32 %v11154_v2, %v3595_v7  ;;  %3618 = vmatmul.f32.gmra.mxu0 %v3133_v62  ;;  %2953 = vrot.lane.b32.xlu1 %v11395_v42, %s8953_s12  ;;  %v11410_v7 = vpop.f32.mrf.mxu3 }
 0x6b3   :  { %8432 = vmatmul.msk.f32.gmra.mxu1 %vm3047_vm0, %v11395_v42 }
 0x6b4   :  { %v3883_v15 = vadd.f32 %v3882_v17, %v3596_v24 }
 0x6b5   :  { %v2950_v47 = vpop.permute.xlu1 %2949 }
 0x6b6   :  { %v3998_v25 = vmax.f32 %v3883_v15, 0.0  ;;  %v3134_v55 = vsel %vm3047_vm0, %v11287_v52, %v2950_v47 }
 0x6b8   :  { %v11402_v46 = vmax.f32 %v3997_v9, %v3998_v25  ;;  %v1663_v9 = vmul.f32 %v9115_v37, %v1288_v19  ;;  %v1852_v25 = vpop.permute.xlu2 %1851 }
 0x6ba   :  { %12552 = vst [vmem:[#allocation74_spill] sm:$0xff] %v11402_v46  ;;  %3621 = vmatmul.f32.gmra.mxu0 %v3134_v55  ;;  %4288 = vmatmul.f32.gmra.mxu2 %v11402_v46 }
 0x6bb   :  { %4430 = vmatmul.f32.gmra.mxu3 %v11402_v46 }
 0x6bd   :  { %v1283_v22 = vpop.permute.xlu1 %1282 }
 0x6be   :  { %v1662_v52 = vmul.f32 %v9115_v37, %v1283_v22  ;;  %v2035_v10 = vmul.f32 %v9117_v38, %v1283_v22  ;;  %v2952_v58 = vpop.permute.xlu0 %2951  ;;  %v1473_v47 = vmul.f32 %v9113_v36, %v1283_v22 }
 0x6bf   :  { %v3135_v24 = vsel %vm3047_vm0, %v11311_v13, %v2952_v58  ;;  %v2038_v58 = vmul.f32 %v9117_v38, %v1852_v25 }
 0x6c0   :  { %v1846_v62 = vadd.f32 %v1662_v52, %v1472_v4  ;;  %v2219_v8 = vadd.f32 %v2035_v10, %v1845_v48  ;;  %v1474_v4 = vmul.f32 %v9113_v36, %v1288_v19  ;;  %v1847_v48 = vadd.f32 %v1663_v9, %v1473_v47 }
 0x6c2   :  { %v2220_v17 = vadd.f32 %v2036_v14, %v1846_v62  ;;  %v2407_v15 = vadd.f32 %v11177_v5, %v2219_v8  ;;  %3624 = vmatmul.f32.gmra.mxu0 %v3135_v24 }
 0x6c4   :  { %v2408_v59 = vadd.f32 %v11177_v5, %v2220_v17  ;;  %v2591_v55 = vmax.f32 %v2407_v15, 0.0  ;;  %v3885_v17 = vpop.f32.mrf.mxu1 }
 0x6c6   :  { %v1478_v18 = vpop.permute.xlu0 %1477  ;;  %v2592_v45 = vmax.f32 %v2408_v59, 0.0 }
 0x6c7   :  { %v1664_v52 = vmul.f32 %v9115_v37, %v1478_v18  ;;  %v2037_v13 = vmul.f32 %v9117_v38, %v1478_v18 }
 0x6c8   :  { %v2685_v10 = vmax.f32 %v2591_v55, %v2592_v45 }
 0x6c9   :  { %v1848_v14 = vadd.f32 %v1664_v52, %v1474_v4  ;;  %v2221_v22 = vadd.f32 %v2037_v13, %v1847_v48  ;;  %v11437_v48 = vpop.f32.mrf.mxu2 }
 0x6ca   :  { %2955 = vrot.lane.b32.xlu0 %v2685_v10, %s8953_s12  ;;  %8433 = vmatmul.msk.f32.gmra.mxu1 %vm3047_vm0, %v2685_v10  ;;  %s8328_s12 = sshll.u32 %s8954_s0, 4  ;;  %s8329_s12 = int_to_ptr.vmem [resolvable:$true] %s8328_s12 }
 0x6cb   :  { %v2222_v8 = vadd.f32 %v2038_v58, %v1848_v14  ;;  %v2409_v24 = vadd.f32 %v11177_v5, %v2221_v22 }
 0x6cc   :  { %v3888_v25 = vpop.f32.mrf.mxu1 }
 0x6cd   :  { %v3598_v62 = vpop.f32.mrf.mxu0  ;;  %v2410_v36 = vadd.f32 %v11177_v5, %v2222_v8  ;;  %v2593_v19 = vmax.f32 %v2409_v24, 0.0  ;;  %v11439_v5 = vpop.f32.mrf.mxu3  ;;  %v4148_v24 = vld [vmem:[#allocation10 + $0x2e0] sm:$0xff] }
 0x6ce   :  { %v3599_v15 = vadd.f32 %v11154_v2, %v3598_v62  ;;  %v4150_v62 = vld [vmem:[#allocation10 + $0x2f0] sm:$0xff] }
 0x6cf   :  { %v2594_v37 = vmax.f32 %v2410_v36, 0.0  ;;  %4448 = vmatpush.msrb.mxu2 %v4150_v62  ;;  %v4146_v36 = vld [vmem:[#allocation10 + $0x2d0] sm:$0xff] }
 0x6d0   :  { %v3886_v38 = vadd.f32 %v3885_v17, %v3599_v15 }
 0x6d1   :  { %v2686_v47 = vmax.f32 %v2593_v19, %v2594_v37  ;;  %v11443_v52 = vpop.f32.mrf.mxu2  ;;  %4449 = vmatpush.msrb.mxu2 %v4148_v24  ;;  %v4144_v37 = vld [vmem:[#allocation10 + $0x2c0] sm:$0xff] }
 0x6d2   :  { %v3999_v18 = vmax.f32 %v3886_v38, 0.0  ;;  %v4140_v38 = vld [vmem:[#allocation10 + $0x2a0] sm:$0xff] }
 0x6d3   :  { %8434 = vmatmul.msk.f32.gmra.mxu1 %vm3047_vm0, %v2686_v47  ;;  %4450 = vmatpush.msrb.mxu2 %v4146_v36  ;;  %v4142_v47 = vld [vmem:[#allocation10 + $0x2b0] sm:$0xff] }
 0x6d4   :  { %v3891_v22 = vpop.f32.mrf.mxu1  ;;  %v4134_v36 = vld [vmem:[#allocation10 + $0x270] sm:$0xff] }
 0x6d5   :  { %v3601_v59 = vpop.f32.mrf.mxu0  ;;  %v11445_v13 = vpop.f32.mrf.mxu3  ;;  %4451 = vmatpush.msrb.mxu2 %v4144_v37  ;;  %v4087_v37 = vld [vmem:[#allocation10 + $0xf8] sm:$0xff] }
 0x6d6   :  { %v3602_v9 = vadd.f32 %v11154_v2, %v3601_v59  ;;  %4593 = vmatpush.msrb.mxu3 %v4087_v37 }
 0x6d7   :  { %4452 = vmatpush.msrb.mxu2 %v4142_v47 }
 0x6d8   :  { %v3889_v55 = vadd.f32 %v3888_v25, %v3602_v9 }
 0x6d9   :  { %v11447_v10 = vpop.f32.mrf.mxu2  ;;  %4453 = vmatpush.msrb.mxu2 %v4140_v38  ;;  %v4085_v38 = vld [vmem:[#allocation10 + $0xe8] sm:$0xff] }
 0x6da   :  { %v4000_v45 = vmax.f32 %v3889_v55, 0.0  ;;  %v4138_v55 = vld [vmem:[#allocation10 + $0x290] sm:$0xff]  ;;  %4594 = vmatpush.msrb.mxu3 %v4085_v38 }
 0x6db   :  { %4454 = vmatpush.msrb.mxu2 %v4138_v55 }
 0x6dc   :  { %v11435_v4 = vmax.f32 %v3999_v18, %v4000_v45  ;;  %v3894_v15 = vpop.f32.mrf.mxu1  ;;  %v4136_v18 = vld [vmem:[#allocation10 + $0x280] sm:$0xff] }
 0x6dd   :  { %v11449_v58 = vpop.f32.mrf.mxu3  ;;  %4455 = vmatpush.msrb.mxu2 %v4136_v18  ;;  %v4130_v18 = vld [vmem:[#allocation10 + $0x250] sm:$0xff] }
 0x6de   :  { %12553 = vst [vmem:[#allocation75_spill] sm:$0xff] %v11435_v4  ;;  %4291 = vmatmul.f32.gmra.mxu2 %v11435_v4  ;;  %4433 = vmatmul.f32.gmra.mxu3 %v11435_v4 }
 0x6df   :  { %4456 = vmatpush.msrb.mxu2 %v4134_v36  ;;  %v4081_v36 = vld [vmem:[#allocation10 + $0xc8] sm:$0xff] }
 0x6e1   :  { %v11451_v14 = vpop.f32.mrf.mxu2 }
 0x6e4   :  { %v3897_v4 = vpop.f32.mrf.mxu1 }
 0x6e5   :  { %v11453_v8 = vpop.f32.mrf.mxu3 }
 0x6e9   :  { %v11455_v17 = vpop.f32.mrf.mxu2 }
 0x6ea   :  { %12554 = vst [vmem:[#allocation76_spill] sm:$0xff] %v11455_v17 }
 0x6ed   :  { %v11457_v59 = vpop.f32.mrf.mxu3 }
 0x6ee   :  { %12555 = vst [vmem:[#allocation77_spill] sm:$0xff] %v11457_v59 }
 0x6f1   :  { %v11459_v9 = vpop.f32.mrf.mxu2 }
 0x6f2   :  { %12556 = vst [vmem:[#allocation78_spill] sm:$0xff] %v11459_v9  ;;  %v4132_v9 = vld [vmem:[#allocation10 + $0x260] sm:$0xff] }
 0x6f3   :  { %4457 = vmatpush.msrb.mxu2 %v4132_v9  ;;  %v4079_v9 = vld [vmem:[#allocation10 + $0xb8] sm:$0xff] }
 0x6f5   :  { %v11463_v47 = vpop.f32.mrf.mxu3  ;;  %4458 = vmatpush.msrb.mxu2 %v4130_v18  ;;  %v4122_v18 = vld [vmem:[#allocation10 + $0x210] sm:$0xff] }
 0x6f6   :  { %12557 = vst [vmem:[#allocation79_spill] sm:$0xff] %v11463_v47 }
 0x6f9   :  { %v11465_v59 = vpop.f32.mrf.mxu2 }
 0x6fa   :  { %12558 = vst [vmem:[#allocation80_spill] sm:$0xff] %v11465_v59  ;;  %v4069_v59 = vld [vmem:[#allocation10 + $0x68] sm:$0xff] }
 0x701   :  { %v11473_v38 = vpop.f32.mrf.mxu2 }
 0x702   :  { %12561 = vst [vmem:[#allocation83_spill] sm:$0xff] %v11473_v38 }
 0x706   :  { %v3604_v19 = vpop.f32.mrf.mxu0 }
 0x707   :  { %v3605_v25 = vadd.f32 %v11154_v2, %v3604_v19 }
 0x709   :  { %v3892_v62 = vadd.f32 %v3891_v22, %v3605_v25  ;;  %v4083_v22 = vld [vmem:[#allocation10 + $0xd8] sm:$0xff] }
 0x70a   :  { %4595 = vmatpush.msrb.mxu3 %v4083_v22  ;;  %v4075_v22 = vld [vmem:[#allocation10 + $0x98] sm:$0xff] }
 0x70b   :  { %v4001_v19 = vmax.f32 %v3892_v62, 0.0  ;;  %v4124_v62 = vld [vmem:[#allocation10 + $0x220] sm:$0xff] }
 0x70c   :  { %4596 = vmatpush.msrb.mxu3 %v4081_v36  ;;  %v4073_v36 = vld [vmem:[#allocation10 + $0x88] sm:$0xff] }
 0x70e   :  { %4597 = vmatpush.msrb.mxu3 %v4079_v9 }
 0x70f   :  { %v3607_v45 = vpop.f32.mrf.mxu0 }
 0x710   :  { %v3608_v24 = vadd.f32 %v11154_v2, %v3607_v45  ;;  %v4128_v45 = vld [vmem:[#allocation10 + $0x240] sm:$0xff] }
 0x711   :  { %4459 = vmatpush.msrb.mxu2 %v4128_v45  ;;  %v4120_v45 = vld [vmem:[#allocation10 + $0x200] sm:$0xff] }
 0x712   :  { %v3895_v46 = vadd.f32 %v3894_v15, %v3608_v24  ;;  %v4126_v15 = vld [vmem:[#allocation10 + $0x230] sm:$0xff]  ;;  %v4077_v24 = vld [vmem:[#allocation10 + $0xa8] sm:$0xff] }
 0x713   :  { %4460 = vmatpush.msrb.mxu2 %v4126_v15  ;;  %4598 = vmatpush.msrb.mxu3 %v4077_v24  ;;  %v11479_v24 = vpop.f32.mrf.mxu2 }
 0x714   :  { %v4002_v55 = vmax.f32 %v3895_v46, 0.0  ;;  %v11471_v46 = vpop.f32.mrf.mxu3 }
 0x715   :  { %12560 = vst [vmem:[#allocation82_spill] sm:$0xff] %v11471_v46  ;;  %4461 = vmatpush.msrb.mxu2 %v4124_v62  ;;  %4599 = vmatpush.msrb.mxu3 %v4075_v22  ;;  %v4071_v46 = vld [vmem:[#allocation10 + $0x78] sm:$0xff] }
 0x716   :  { %v11467_v25 = vmax.f32 %v4001_v19, %v4002_v55  ;;  %v3900_v19 = vpop.f32.mrf.mxu1  ;;  %v4067_v22 = vld [vmem:[#allocation10 + $0x58] sm:$0xff] }
 0x717   :  { %v3610_v37 = vpop.f32.mrf.mxu0  ;;  %4462 = vmatpush.msrb.mxu2 %v4122_v18  ;;  %4600 = vmatpush.msrb.mxu3 %v4073_v36 }
 0x718   :  { %12559 = vst [vmem:[#allocation81_spill] sm:$0xff] %v11467_v25  ;;  %4294 = vmatmul.f32.gmra.mxu2 %v11467_v25  ;;  %4436 = vmatmul.f32.gmra.mxu3 %v11467_v25  ;;  %v3611_v55 = vadd.f32 %v11154_v2, %v3610_v37 }
 0x719   :  { %4463 = vmatpush.msrb.mxu2 %v4120_v45  ;;  %4601 = vmatpush.msrb.mxu3 %v4071_v46 }
 0x71a   :  { %v3898_v15 = vadd.f32 %v3897_v4, %v3611_v55 }
 0x71b   :  { %4602 = vmatpush.msrb.mxu3 %v4069_v59  ;;  %v4063_v59 = vld [vmem:[#allocation10 + $0x38] sm:$0xff]  ;;  %v11489_v36 = vpop.f32.mrf.mxu2 }
 0x71c   :  { %v11477_v62 = vpop.f32.mrf.mxu3  ;;  %v4003_v37 = vmax.f32 %v3898_v15, 0.0  ;;  %12564 = vst [vmem:[#allocation86_spill] sm:$0xff] %v11489_v36 }
 0x71d   :  { %4603 = vmatpush.msrb.mxu3 %v4067_v22 }
 0x71e   :  { %v3903_v47 = vpop.f32.mrf.mxu1 }
 0x71f   :  { %v3613_v25 = vpop.f32.mrf.mxu0 }
 0x720   :  { %v3614_v9 = vadd.f32 %v11154_v2, %v3613_v25  ;;  %v4065_v25 = vld [vmem:[#allocation10 + $0x48] sm:$0xff] }
 0x721   :  { %4604 = vmatpush.msrb.mxu3 %v4065_v25 }
 0x722   :  { %v3901_v38 = vadd.f32 %v3900_v19, %v3614_v9  ;;  %v4061_v19 = vld [vmem:[#allocation10 + $0x28] sm:$0xff] }
 0x723   :  { %4605 = vmatpush.msrb.mxu3 %v4063_v59  ;;  %v11495_v25 = vpop.f32.mrf.mxu2 }
 0x724   :  { %v4004_v18 = vmax.f32 %v3901_v38, 0.0  ;;  %v2954_v17 = vpop.permute.xlu1 %2953  ;;  %v4059_v38 = vld [vmem:[#allocation10 + $0x18] sm:$0xff]  ;;  %v11487_v55 = vpop.f32.mrf.mxu3  ;;  %12565 = vst [vmem:[#allocation87_spill] sm:$0xff] %v11495_v25 }
 0x725   :  { %v3136_v4 = vsel %vm3047_vm0, %v11325_v53, %v2954_v17  ;;  %12563 = vst [vmem:[#allocation85_spill] sm:$0xff] %v11487_v55  ;;  %4606 = vmatpush.msrb.mxu3 %v4061_v19  ;;  %v4057_v53 = vld [vmem:[#allocation10 + $0x8] sm:$0xff] }
 0x726   :  { %v11481_v45 = vmax.f32 %v4003_v37, %v4004_v18  ;;  %3627 = vmatmul.f32.gmra.mxu0 %v3136_v4  ;;  %v3906_v17 = vpop.f32.mrf.mxu1 }
 0x727   :  { %v3616_v46 = vpop.f32.mrf.mxu0  ;;  %4607 = vmatpush.msrb.mxu3 %v4059_v38 }
 0x728   :  { %12562 = vst [vmem:[#allocation84_spill] sm:$0xff] %v11481_v45  ;;  %4297 = vmatmul.f32.gmra.mxu2 %v11481_v45  ;;  %4439 = vmatmul.f32.gmra.mxu3 %v11481_v45  ;;  %v3617_v15 = vadd.f32 %v11154_v2, %v3616_v46 }
 0x729   :  { %4608 = vmatpush.msrb.mxu3 %v4057_v53 }
 0x72a   :  { %v3904_v37 = vadd.f32 %v3903_v47, %v3617_v15 }
 0x72b   :  { %v11503_v47 = vpop.f32.mrf.mxu2 }
 0x72c   :  { %v11493_v4 = vpop.f32.mrf.mxu3  ;;  %v4005_v59 = vmax.f32 %v3904_v37, 0.0  ;;  %12567 = vst [vmem:[#allocation89_spill] sm:$0xff] %v11503_v47 }
 0x72e   :  { %v3909_v46 = vpop.f32.mrf.mxu1 }
 0x72f   :  { %v3619_v9 = vpop.f32.mrf.mxu0 }
 0x730   :  { %v3620_v18 = vadd.f32 %v11154_v2, %v3619_v9  ;;  %v8657_v2 = vld [vmem:[#allocation8] ss:$0 sm:$0xff] }
 0x732   :  { %v3907_v22 = vadd.f32 %v3906_v17, %v3620_v18 }
 0x733   :  { %v11510_v25 = vpop.f32.mrf.mxu2 }
 0x734   :  { %v4006_v45 = vmax.f32 %v3907_v22, 0.0  ;;  %v11501_v38 = vpop.f32.mrf.mxu3 }
 0x735   :  { %12566 = vst [vmem:[#allocation88_spill] sm:$0xff] %v11501_v38 }
 0x736   :  { %v11497_v55 = vmax.f32 %v4005_v59, %v4006_v45  ;;  %v3912_v18 = vpop.f32.mrf.mxu1 }
 0x737   :  { %v3622_v19 = vpop.f32.mrf.mxu0 }
 0x738   :  { %4300 = vmatmul.f32.gmra.mxu2 %v11497_v55  ;;  %4442 = vmatmul.f32.gmra.mxu3 %v11497_v55  ;;  %v3623_v15 = vadd.f32 %v8657_v2, %v3622_v19 }
 0x73a   :  { %v3910_v45 = vadd.f32 %v3909_v46, %v3623_v15 }
 0x73b   :  { %v11518_v19 = vpop.f32.mrf.mxu2 }
 0x73c   :  { %v2956_v53 = vpop.permute.xlu0 %2955  ;;  %v11508_v59 = vpop.f32.mrf.mxu3  ;;  %v4007_v38 = vmax.f32 %v3910_v45, 0.0 }
 0x73d   :  { %v3137_v17 = vsel %vm3047_vm0, %v11395_v42, %v2956_v53 }
 0x73e   :  { %3630 = vmatmul.f32.gmra.mxu0 %v3137_v17 }
 0x73f   :  { %v3625_v9 = vpop.f32.mrf.mxu0 }
 0x740   :  { %v3626_v37 = vadd.f32 %v8657_v2, %v3625_v9  ;;  %4464 = vmatmul.f32.vlgmr.msrb.gmra.mxu2 %v9570_v57 }
 0x742   :  { %v3913_v22 = vadd.f32 %v3912_v18, %v3626_v37 }
 0x743   :  { %v11524_v2 = vpop.f32.mrf.mxu2 }
 0x744   :  { %v4008_v47 = vmax.f32 %v3913_v22, 0.0  ;;  %v11516_v42 = vpop.f32.mrf.mxu3 }
 0x746   :  { %v11512_v36 = vmax.f32 %v4007_v38, %v4008_v47 }
 0x748   :  { %12568 = vst [vmem:[#allocation90_spill] sm:$0xff] %v11512_v36  ;;  %4445 = vmatmul.f32.gmra.mxu3 %v11512_v36  ;;  %4467 = vmatmul.f32.gmra.mxu2 %v9615_v0 }
 0x74b   :  { %v11530_v47 = vpop.f32.mrf.mxu2 }
 0x74c   :  { %v11522_v46 = vpop.f32.mrf.mxu3 }
 0x750   :  { %4470 = vmatmul.f32.gmra.mxu2 %v9707_v54  ;;  %4609 = vmatmul.f32.vlgmr.msrb.gmra.mxu3 %v9527_v50 }
 0x753   :  { %v11536_v53 = vpop.f32.mrf.mxu2 }
 0x754   :  { %v11528_v38 = vpop.f32.mrf.mxu3 }
 0x758   :  { %4473 = vmatmul.f32.gmra.mxu2 %v9745_v28  ;;  %4612 = vmatmul.f32.gmra.mxu3 %v9543_v34 }
 0x75b   :  { %v11542_v17 = vpop.f32.mrf.mxu2 }
 0x75c   :  { %v11534_v15 = vpop.f32.mrf.mxu3  ;;  %12570 = vst [vmem:[#allocation92_spill] sm:$0xff] %v11542_v17 }
 0x760   :  { %4476 = vmatmul.f32.gmra.mxu2 %v9773_v16  ;;  %4615 = vmatmul.f32.gmra.mxu3 %v9570_v57 }
 0x763   :  { %v11548_v45 = vpop.f32.mrf.mxu2 }
 0x764   :  { %v11540_v50 = vpop.f32.mrf.mxu3  ;;  %12572 = vst [vmem:[#allocation94_spill] sm:$0xff] %v11548_v45  ;;  %v5245_v45 = vld [vmem:[#allocation13 + $0x2d0] sm:$0xff] }
 0x765   :  { %12569 = vst [vmem:[#allocation91_spill] sm:$0xff] %v11540_v50  ;;  %v5249_v50 = vld [vmem:[#allocation13 + $0x2f0] sm:$0xff] }
 0x766   :  { %5283 = vmatpush.msrb.mxu1 %v5249_v50  ;;  %v5235_v50 = vld [vmem:[#allocation13 + $0x280] sm:$0xff] }
 0x768   :  { %4479 = vmatmul.f32.gmra.mxu2 %v9819_v49  ;;  %4618 = vmatmul.f32.gmra.mxu3 %v9615_v0 }
 0x76b   :  { %v11554_v18 = vpop.f32.mrf.mxu2 }
 0x76c   :  { %v11546_v9 = vpop.f32.mrf.mxu3  ;;  %12574 = vst [vmem:[#allocation96_spill] sm:$0xff] %v11554_v18 }
 0x76d   :  { %12571 = vst [vmem:[#allocation93_spill] sm:$0xff] %v11546_v9  ;;  %v5247_v9 = vld [vmem:[#allocation13 + $0x2e0] sm:$0xff] }
 0x76e   :  { %5284 = vmatpush.msrb.mxu1 %v5247_v9  ;;  %v5233_v9 = vld [vmem:[#allocation13 + $0x270] sm:$0xff] }
 0x770   :  { %4482 = vmatmul.f32.gmra.mxu2 %v9917_v12  ;;  %4621 = vmatmul.f32.gmra.mxu3 %v9707_v54 }
 0x771   :  { %5285 = vmatpush.msrb.mxu1 %v5245_v45 }
 0x773   :  { %v11560_v17 = vpop.f32.mrf.mxu2 }
 0x774   :  { %v11552_v37 = vpop.f32.mrf.mxu3  ;;  %12576 = vst [vmem:[#allocation98_spill] sm:$0xff] %v11560_v17  ;;  %v5237_v17 = vld [vmem:[#allocation13 + $0x290] sm:$0xff] }
 0x775   :  { %12573 = vst [vmem:[#allocation95_spill] sm:$0xff] %v11552_v37  ;;  %v5243_v37 = vld [vmem:[#allocation13 + $0x2c0] sm:$0xff] }
 0x776   :  { %5286 = vmatpush.msrb.mxu1 %v5243_v37  ;;  %v5229_v37 = vld [vmem:[#allocation13 + $0x250] sm:$0xff] }
 0x778   :  { %4485 = vmatmul.f32.gmra.mxu2 %v9978_v11  ;;  %4624 = vmatmul.f32.gmra.mxu3 %v9745_v28 }
 0x77b   :  { %v11566_v28 = vpop.f32.mrf.mxu2 }
 0x77c   :  { %v11558_v22 = vpop.f32.mrf.mxu3  ;;  %12578 = vst [vmem:[#allocation100_spill] sm:$0xff] %v11566_v28 }
 0x77d   :  { %12575 = vst [vmem:[#allocation97_spill] sm:$0xff] %v11558_v22  ;;  %v5239_v22 = vld [vmem:[#allocation13 + $0x2a0] sm:$0xff] }
 0x780   :  { %4488 = vmatmul.f32.gmra.mxu2 %v10005_v33  ;;  %4627 = vmatmul.f32.gmra.mxu3 %v9773_v16  ;;  %v5241_v16 = vld [vmem:[#allocation13 + $0x2b0] sm:$0xff] }
 0x781   :  { %5287 = vmatpush.msrb.mxu1 %v5241_v16  ;;  %v5227_v16 = vld [vmem:[#allocation13 + $0x240] sm:$0xff] }
 0x783   :  { %5288 = vmatpush.msrb.mxu1 %v5239_v22  ;;  %v11572_v45 = vpop.f32.mrf.mxu2 }
 0x784   :  { %v11564_v18 = vpop.f32.mrf.mxu3  ;;  %12580 = vst [vmem:[#allocation102_spill] sm:$0xff] %v11572_v45 }
 0x785   :  { %12577 = vst [vmem:[#allocation99_spill] sm:$0xff] %v11564_v18  ;;  %5289 = vmatpush.msrb.mxu1 %v5237_v17  ;;  %v5231_v18 = vld [vmem:[#allocation13 + $0x260] sm:$0xff]  ;;  %v5225_v17 = vld [vmem:[#allocation13 + $0x230] sm:$0xff] }
 0x787   :  { %5290 = vmatpush.msrb.mxu1 %v5235_v50  ;;  %v5221_v50 = vld [vmem:[#allocation13 + $0x210] sm:$0xff] }
 0x788   :  { %4491 = vmatmul.f32.gmra.mxu2 %v10038_v26  ;;  %4630 = vmatmul.f32.gmra.mxu3 %v9819_v49 }
 0x789   :  { %5291 = vmatpush.msrb.mxu1 %v5233_v9  ;;  %v5250_v9 = vld [vmem:[#allocation13 + $0x2f8] sm:$0xff] }
 0x78b   :  { %5292 = vmatpush.msrb.mxu1 %v5231_v18  ;;  %v11578_v28 = vpop.f32.mrf.mxu2  ;;  %v5219_v18 = vld [vmem:[#allocation13 + $0x200] sm:$0xff] }
 0x78c   :  { %v11570_v49 = vpop.f32.mrf.mxu3  ;;  %12582 = vst [vmem:[#allocation104_spill] sm:$0xff] %v11578_v28  ;;  %v5248_v28 = vld [vmem:[#allocation13 + $0x2e8] sm:$0xff] }
 0x78d   :  { %12579 = vst [vmem:[#allocation101_spill] sm:$0xff] %v11570_v49  ;;  %5293 = vmatpush.msrb.mxu1 %v5229_v37  ;;  %v5223_v49 = vld [vmem:[#allocation13 + $0x220] sm:$0xff] }
 0x78f   :  { %5294 = vmatpush.msrb.mxu1 %v5227_v16  ;;  %v5246_v16 = vld [vmem:[#allocation13 + $0x2d8] sm:$0xff] }
 0x790   :  { %4494 = vmatmul.f32.gmra.mxu2 %v10138_v32  ;;  %4633 = vmatmul.f32.gmra.mxu3 %v9917_v12 }
 0x791   :  { %5295 = vmatpush.msrb.mxu1 %v5225_v17  ;;  %v5242_v17 = vld [vmem:[#allocation13 + $0x2b8] sm:$0xff] }
 0x793   :  { %5296 = vmatpush.msrb.mxu1 %v5223_v49  ;;  %v11584_v37 = vpop.f32.mrf.mxu2  ;;  %v5244_v49 = vld [vmem:[#allocation13 + $0x2c8] sm:$0xff] }
 0x794   :  { %v11576_v22 = vpop.f32.mrf.mxu3  ;;  %12584 = vst [vmem:[#allocation106_spill] sm:$0xff] %v11584_v37  ;;  %v5238_v37 = vld [vmem:[#allocation13 + $0x298] sm:$0xff] }
 0x795   :  { %12581 = vst [vmem:[#allocation103_spill] sm:$0xff] %v11576_v22  ;;  %5297 = vmatpush.msrb.mxu1 %v5221_v50 }
 0x797   :  { %5298 = vmatpush.msrb.mxu1 %v5219_v18  ;;  %v5234_v18 = vld [vmem:[#allocation13 + $0x278] sm:$0xff] }
 0x798   :  { %4497 = vmatmul.f32.gmra.mxu2 %v10155_v40  ;;  %4636 = vmatmul.f32.gmra.mxu3 %v9978_v11 }
 0x799   :  { %5323 = vmatpush.msra.mxu1 %v5250_v9 }
 0x79b   :  { %5324 = vmatpush.msra.mxu1 %v5248_v28  ;;  %v11590_v50 = vpop.f32.mrf.mxu2  ;;  %v5236_v28 = vld [vmem:[#allocation13 + $0x288] sm:$0xff] }
 0x79c   :  { %v11582_v45 = vpop.f32.mrf.mxu3  ;;  %12586 = vst [vmem:[#allocation108_spill] sm:$0xff] %v11590_v50  ;;  %v5230_v50 = vld [vmem:[#allocation13 + $0x258] sm:$0xff] }
 0x79d   :  { %12583 = vst [vmem:[#allocation105_spill] sm:$0xff] %v11582_v45  ;;  %5325 = vmatpush.msra.mxu1 %v5246_v16  ;;  %v5240_v45 = vld [vmem:[#allocation13 + $0x2a8] sm:$0xff] }
 0x79f   :  { %5326 = vmatpush.msra.mxu1 %v5244_v49  ;;  %v5226_v49 = vld [vmem:[#allocation13 + $0x238] sm:$0xff] }
 0x7a0   :  { %4500 = vmatmul.f32.gmra.mxu2 %v10204_v56  ;;  %4639 = vmatmul.f32.gmra.mxu3 %v10005_v33 }
 0x7a1   :  { %5327 = vmatpush.msra.mxu1 %v5242_v17 }
 0x7a3   :  { %5328 = vmatpush.msra.mxu1 %v5240_v45  ;;  %v5228_v45 = vld [vmem:[#allocation13 + $0x248] sm:$0xff] }
 0x7a4   :  { %v11588_v22 = vpop.f32.mrf.mxu3 }
 0x7a5   :  { %12585 = vst [vmem:[#allocation107_spill] sm:$0xff] %v11588_v22  ;;  %5329 = vmatpush.msra.mxu1 %v5238_v37  ;;  %v5232_v22 = vld [vmem:[#allocation13 + $0x268] sm:$0xff] }
 0x7a7   :  { %5330 = vmatpush.msra.mxu1 %v5236_v28  ;;  %v5220_v28 = vld [vmem:[#allocation13 + $0x208] sm:$0xff] }
 0x7a8   :  { %4503 = vmatmul.f32.gmra.mxu2 %v10233_v61  ;;  %4642 = vmatmul.f32.gmra.mxu3 %v10038_v26  ;;  %v12608_v26 = vld [vmem:[#allocation45_spill] sm:$0xff] }
 0x7a9   :  { %5331 = vmatpush.msra.mxu1 %v5234_v18 }
 0x7ab   :  { %v11596_v16 = vpop.f32.mrf.mxu2  ;;  %5332 = vmatpush.msra.mxu1 %v5232_v22  ;;  %v5281_v22 = vld [vmem:[#allocation13 + $0x3f0] sm:$0xff] }
 0x7ac   :  { %v11594_v9 = vpop.f32.mrf.mxu3  ;;  %12588 = vst [vmem:[#allocation110_spill] sm:$0xff] %v11596_v16  ;;  %5303 = vmatpush.msrb.mxu0 %v5281_v22 }
 0x7ad   :  { %12587 = vst [vmem:[#allocation109_spill] sm:$0xff] %v11594_v9  ;;  %5333 = vmatpush.msra.mxu1 %v5230_v50  ;;  %v5222_v9 = vld [vmem:[#allocation13 + $0x218] sm:$0xff] }
 0x7af   :  { %5334 = vmatpush.msra.mxu1 %v5228_v45 }
 0x7b0   :  { %4506 = vmatmul.f32.gmra.mxu2 %v10321_v1  ;;  %4645 = vmatmul.f32.gmra.mxu3 %v10138_v32  ;;  %v5224_v32 = vld [vmem:[#allocation13 + $0x228] sm:$0xff] }
 0x7b1   :  { %5335 = vmatpush.msra.mxu1 %v5226_v49 }
 0x7b3   :  { %5336 = vmatpush.msra.mxu1 %v5224_v32  ;;  %v4152_v32 = vld [vmem:[#allocation11] sm:$0x3] }
 0x7b4   :  { %v11600_v17 = vpop.f32.mrf.mxu3 }
 0x7b5   :  { %12589 = vst [vmem:[#allocation111_spill] sm:$0xff] %v11600_v17  ;;  %5337 = vmatpush.msra.mxu1 %v5222_v9  ;;  %v11616_v9 = vperm.slane %v4152_v32, 0 }
 0x7b7   :  { %5338 = vmatpush.msra.mxu1 %v5220_v28  ;;  %v4182_v28 = vadd.f32 %v10822_v29, %v11616_v9  ;;  %v5184_v29 = vld [vmem:[#allocation13 + $0xf0] sm:$0xff] }
 0x7b8   :  { %4509 = vmatmul.f32.gmra.mxu2 %v10364_v44  ;;  %4648 = vmatmul.f32.gmra.mxu3 %v10155_v40 }
 0x7bb   :  { %v4301_v37 = vpop.f32.mrf.mxu2 }
 0x7bc   :  { %v11604_v18 = vpop.f32.mrf.mxu3 }
 0x7bd   :  { %12590 = vst [vmem:[#allocation112_spill] sm:$0xff] %v11604_v18  ;;  %v4185_v18 = vadd.f32 %v10901_v21, %v11616_v9  ;;  %v5182_v21 = vld [vmem:[#allocation13 + $0xe0] sm:$0xff] }
 0x7c0   :  { %4512 = vmatmul.f32.gmra.mxu2 %v10432_v6  ;;  %4651 = vmatmul.f32.gmra.mxu3 %v10204_v56 }
 0x7c3   :  { %v11606_v50 = vpop.f32.mrf.mxu2 }
 0x7c8   :  { %4515 = vmatmul.f32.gmra.mxu2 %v10459_v35  ;;  %4654 = vmatmul.f32.gmra.mxu3 %v10233_v61 }
 0x7cb   :  { %v4446_v45 = vpop.f32.mrf.mxu3  ;;  %v11610_v49 = vpop.f32.mrf.mxu2 }
 0x7cc   :  { %v4327_v45 = vadd.f32 %v10909_v60, %v4182_v28 }
 0x7d0   :  { %4518 = vmatmul.f32.gmra.mxu2 %v10520_v43  ;;  %4657 = vmatmul.f32.gmra.mxu3 %v10321_v1  ;;  %v4330_v1 = vadd.f32 %v10943_v27, %v4185_v18  ;;  %v5180_v27 = vld [vmem:[#allocation13 + $0xd0] sm:$0xff]  ;;  %v4188_v18 = vadd.f32 %v10941_v41, %v11616_v9 }
 0x7d3   :  { %v4471_v37 = vpop.f32.mrf.mxu2  ;;  %v11614_v22 = vpop.f32.mrf.mxu3 }
 0x7d4   :  { %12591 = vst [vmem:[#allocation113_spill] sm:$0xff] %v11614_v22  ;;  %v4472_v61 = vadd.f32 %v4471_v37, %v4327_v45  ;;  %v5176_v45 = vld [vmem:[#allocation13 + $0xb0] sm:$0xff] }
 0x7d6   :  { %v5032_v22 = vmax.f32 %v4472_v61, 0.0 }
 0x7d8   :  { %4521 = vmatmul.f32.gmra.mxu2 %v10578_v23  ;;  %4660 = vmatmul.f32.gmra.mxu3 %v10364_v44  ;;  %v5170_v44 = vld [vmem:[#allocation13 + $0x80] sm:$0xff] }
 0x7db   :  { %v4474_v17 = vpop.f32.mrf.mxu2  ;;  %v11626_v16 = vpop.f32.mrf.mxu3 }
 0x7dc   :  { %12592 = vst [vmem:[#allocation114_spill] sm:$0xff] %v11626_v16  ;;  %v4475_v32 = vadd.f32 %v4474_v17, %v4330_v1  ;;  %v5178_v1 = vld [vmem:[#allocation13 + $0xc0] sm:$0xff] }
 0x7dd   :  { %v12595_v17 = vld [vmem:[#allocation54_spill] sm:$0xff] }
 0x7de   :  { %v5034_v56 = vmax.f32 %v4475_v32, 0.0  ;;  %v4333_v37 = vadd.f32 %v12595_v17, %v4188_v18  ;;  %v5279_v32 = vld [vmem:[#allocation13 + $0x3e0] sm:$0xff] }
 0x7df   :  { %v5174_v16 = vld [vmem:[#allocation13 + $0xa0] sm:$0xff]  ;;  %5304 = vmatpush.msrb.mxu0 %v5279_v32  ;;  %v12602_v32 = vld [vmem:[#allocation44_spill] sm:$0xff] }
 0x7e0   :  { %v5114_v40 = vmax.f32 %v5032_v22, %v5034_v56  ;;  %4524 = vmatmul.f32.gmra.mxu2 %v10603_v3  ;;  %4663 = vmatmul.f32.gmra.mxu3 %v10432_v6  ;;  %v12594_v56 = vld [vmem:[#allocation53_spill] sm:$0xff]  ;;  %v12596_v22 = vld [vmem:[#allocation42_spill] sm:$0xff]  ;;  %v5172_v6 = vld [vmem:[#allocation13 + $0x90] sm:$0xff] }
 0x7e1   :  { %v4191_v61 = vadd.f32 %v12594_v56, %v11616_v9 }
 0x7e2   :  { %5299 = vmatmul.f32.vlgmr.msrb.gmra.mxu1 %v5114_v40 }
 0x7e3   :  { %5363 = vmatpush.msrb.mxu1 %v5184_v29  ;;  %v4477_v60 = vpop.f32.mrf.mxu2  ;;  %v11630_v28 = vpop.f32.mrf.mxu3  ;;  %v12597_v29 = vld [vmem:[#allocation57_spill] sm:$0xff] }
 0x7e4   :  { %12593 = vst [vmem:[#allocation115_spill] sm:$0xff] %v11630_v28  ;;  %v4336_v28 = vadd.f32 %v12597_v29, %v4191_v61  ;;  %v12603_v29 = vld [vmem:[#allocation49_spill] sm:$0xff] }
 0x7e5   :  { %5364 = vmatpush.msrb.mxu1 %v5182_v21  ;;  %v4478_v21 = vadd.f32 %v4477_v60, %v4333_v37  ;;  %v5166_v60 = vld [vmem:[#allocation13 + $0x60] sm:$0xff] }
 0x7e7   :  { %5365 = vmatpush.msrb.mxu1 %v5180_v27  ;;  %v5036_v18 = vmax.f32 %v4478_v21, 0.0 }
 0x7e8   :  { %4527 = vmatmul.f32.gmra.mxu2 %v12596_v22  ;;  %4666 = vmatmul.f32.gmra.mxu3 %v10459_v35 }
 0x7e9   :  { %5366 = vmatpush.msrb.mxu1 %v5178_v1  ;;  %v12599_v1 = vld [vmem:[#allocation43_spill] sm:$0xff] }
 0x7ea   :  { %5339 = vmatmul.f32.vlgmr.msra.gmra.mxu1 %v5114_v40  ;;  %v5168_v40 = vld [vmem:[#allocation13 + $0x70] sm:$0xff] }
 0x7eb   :  { %5367 = vmatpush.msrb.mxu1 %v5176_v45  ;;  %v4480_v41 = vpop.f32.mrf.mxu2  ;;  %v11640_v27 = vpop.f32.mrf.mxu3  ;;  %v5164_v45 = vld [vmem:[#allocation13 + $0x50] sm:$0xff] }
 0x7ec   :  { %12598 = vst [vmem:[#allocation53_spill] sm:$0xff] %v11640_v27  ;;  %v4481_v56 = vadd.f32 %v4480_v41, %v4336_v28  ;;  %v12601_v28 = vld [vmem:[#allocation46_spill] sm:$0xff]  ;;  %v12604_v41 = vld [vmem:[#allocation56_spill] sm:$0xff] }
 0x7ed   :  { %5368 = vmatpush.msrb.mxu1 %v5174_v16  ;;  %v4179_v16 = vadd.f32 %v12601_v28, %v11616_v9 }
 0x7ee   :  { %v5038_v17 = vmax.f32 %v4481_v56, 0.0  ;;  %v4194_v56 = vadd.f32 %v12604_v41, %v11616_v9 }
 0x7ef   :  { %5369 = vmatpush.msrb.mxu1 %v5172_v6  ;;  %v4176_v6 = vadd.f32 %v12602_v32, %v11616_v9  ;;  %v4324_v21 = vadd.f32 %v12603_v29, %v4179_v16  ;;  %v12609_v16 = vld [vmem:[#allocation63_spill] sm:$0xff] }
 0x7f0   :  { %v11642_v35 = vmax.f32 %v5036_v18, %v5038_v17  ;;  %4530 = vmatmul.f32.gmra.mxu2 %v12599_v1  ;;  %4669 = vmatmul.f32.gmra.mxu3 %v10520_v43  ;;  %v5162_v18 = vld [vmem:[#allocation13 + $0x40] sm:$0xff] }
 0x7f1   :  { %5370 = vmatpush.msrb.mxu1 %v5170_v44  ;;  %v12605_v44 = vld [vmem:[#allocation47_spill] sm:$0xff]  ;;  %v4469_v28 = vadd.f32 %v11610_v49, %v4324_v21 }
 0x7f2   :  { %v4321_v17 = vadd.f32 %v12605_v44, %v4176_v6  ;;  %v5158_v6 = vld [vmem:[#allocation13 + $0x20] sm:$0xff] }
 0x7f3   :  { %5371 = vmatpush.msrb.mxu1 %v5168_v40  ;;  %v4483_v61 = vpop.f32.mrf.mxu2  ;;  %v11646_v37 = vpop.f32.mrf.mxu3  ;;  %v12606_v40 = vld [vmem:[#allocation59_spill] sm:$0xff] }
 0x7f4   :  { %12600 = vst [vmem:[#allocation54_spill] sm:$0xff] %v11646_v37  ;;  %v4197_v27 = vadd.f32 %v12606_v40, %v11616_v9  ;;  %v12607_v37 = vld [vmem:[#allocation60_spill] sm:$0xff]  ;;  %v4466_v29 = vadd.f32 %v11606_v50, %v4321_v17  ;;  %v5030_v40 = vmax.f32 %v4469_v28, 0.0 }
 0x7f5   :  { %5372 = vmatpush.msrb.mxu1 %v5166_v60  ;;  %v4339_v43 = vadd.f32 %v12607_v37, %v4194_v56  ;;  %v5160_v60 = vld [vmem:[#allocation13 + $0x30] sm:$0xff] }
 0x7f6   :  { %v4342_v32 = vadd.f32 %v12609_v16, %v4197_v27  ;;  %v5156_v56 = vld [vmem:[#allocation13 + $0x10] sm:$0xff]  ;;  %v5028_v49 = vmax.f32 %v4466_v29, 0.0  ;;  %v12612_v16 = vld [vmem:[#allocation62_spill] sm:$0xff]  ;;  %v12613_v29 = vld [vmem:[#allocation65_spill] sm:$0xff] }
 0x7f7   :  { %5373 = vmatpush.msrb.mxu1 %v5164_v45  ;;  %v4484_v41 = vadd.f32 %v4483_v61, %v4339_v43  ;;  %v12610_v50 = vld [vmem:[#allocation48_spill] sm:$0xff]  ;;  %v5183_v61 = vld [vmem:[#allocation13 + $0xe8] sm:$0xff] }
 0x7f8   :  { %4533 = vmatmul.f32.gmra.mxu2 %v12608_v26  ;;  %4672 = vmatmul.f32.gmra.mxu3 %v10578_v23  ;;  %v5154_v23 = vld [vmem:[#allocation13] sm:$0xff]  ;;  %v5185_v43 = vld [vmem:[#allocation13 + $0xf8] sm:$0xff] }
 0x7f9   :  { %5374 = vmatpush.msrb.mxu1 %v5162_v18  ;;  %v5040_v21 = vmax.f32 %v4484_v41, 0.0  ;;  %v11666_v18 = vmax.f32 %v5028_v49, %v5030_v40  ;;  %v4203_v41 = vadd.f32 %v12613_v29, %v11616_v9  ;;  %v5177_v40 = vld [vmem:[#allocation13 + $0xb8] sm:$0xff]  ;;  %v5175_v49 = vld [vmem:[#allocation13 + $0xa8] sm:$0xff] }
 0x7fb   :  { %5375 = vmatpush.msrb.mxu1 %v5160_v60  ;;  %v4486_v45 = vpop.f32.mrf.mxu2  ;;  %v11664_v44 = vpop.f32.mrf.mxu3  ;;  %v5181_v60 = vld [vmem:[#allocation13 + $0xd8] sm:$0xff] }
 0x7fc   :  { %v4487_v37 = vadd.f32 %v4486_v45, %v4342_v32  ;;  %v4200_v32 = vadd.f32 %v12612_v16, %v11616_v9 }
 0x7fd   :  { %5376 = vmatpush.msrb.mxu1 %v5158_v6  ;;  %v12614_v6 = vld [vmem:[#allocation66_spill] sm:$0xff] }
 0x7fe   :  { %v5042_v33 = vmax.f32 %v4487_v37, 0.0  ;;  %v4345_v45 = vadd.f32 %v12614_v6, %v4200_v32  ;;  %v4348_v37 = vadd.f32 %v11281_v30, %v4203_v41  ;;  %v5171_v32 = vld [vmem:[#allocation13 + $0x88] sm:$0xff]  ;;  %v5169_v30 = vld [vmem:[#allocation13 + $0x78] sm:$0xff] }
 0x7ff   :  { %5377 = vmatpush.msrb.mxu1 %v5156_v56 }
 0x800   :  { %v11668_v27 = vmax.f32 %v5040_v21, %v5042_v33  ;;  %4536 = vmatmul.f32.gmra.mxu2 %v12610_v50  ;;  %4675 = vmatmul.f32.gmra.mxu3 %v10603_v3  ;;  %v5179_v33 = vld [vmem:[#allocation13 + $0xc8] sm:$0xff] }
 0x801   :  { %5378 = vmatpush.msrb.mxu1 %v5154_v23  ;;  %v12615_v23 = vld [vmem:[#allocation50_spill] sm:$0xff] }
 0x802   :  { %5379 = vmatmul.f32.vlgmr.msrb.gmra.mxu1 %v11666_v18 }
 0x803   :  { %5403 = vmatpush.msra.mxu1 %v5185_v43  ;;  %v4489_v17 = vpop.f32.mrf.mxu2  ;;  %v11673_v28 = vpop.f32.mrf.mxu3 }
 0x804   :  { %12611 = vst [vmem:[#allocation42_spill] sm:$0xff] %v11673_v28  ;;  %v4490_v56 = vadd.f32 %v4489_v17, %v4345_v45  ;;  %v12617_v28 = vld [vmem:[#allocation51_spill] sm:$0xff]  ;;  %v5165_v45 = vld [vmem:[#allocation13 + $0x58] sm:$0xff] }
 0x805   :  { %5404 = vmatpush.msra.mxu1 %v5183_v61  ;;  %v5167_v17 = vld [vmem:[#allocation13 + $0x68] sm:$0xff] }
 0x806   :  { %v5044_v16 = vmax.f32 %v4490_v56, 0.0  ;;  %v5277_v56 = vld [vmem:[#allocation13 + $0x3d0] sm:$0xff] }
 0x807   :  { %5405 = vmatpush.msra.mxu1 %v5181_v60  ;;  %v5173_v60 = vld [vmem:[#allocation13 + $0x98] sm:$0xff]  ;;  %5305 = vmatpush.msrb.mxu0 %v5277_v56 }
 0x808   :  { %4539 = vmatmul.f32.gmra.mxu2 %v12615_v23  ;;  %4678 = vmatmul.f32.gmra.mxu3 %v12596_v22 }
 0x809   :  { %5406 = vmatpush.msra.mxu1 %v5179_v33 }
 0x80b   :  { %5407 = vmatpush.msra.mxu1 %v5177_v40  ;;  %v4492_v21 = vpop.f32.mrf.mxu2  ;;  %v11683_v43 = vpop.f32.mrf.mxu3  ;;  %v4206_v40 = vadd.f32 %v11275_v51, %v11616_v9 }
 0x80c   :  { %12616 = vst [vmem:[#allocation57_spill] sm:$0xff] %v11683_v43  ;;  %v4493_v61 = vadd.f32 %v4492_v21, %v4348_v37  ;;  %v5163_v37 = vld [vmem:[#allocation13 + $0x48] sm:$0xff]  ;;  %v12619_v21 = vld [vmem:[#allocation69_spill] sm:$0xff] }
 0x80d   :  { %5408 = vmatpush.msra.mxu1 %v5175_v49  ;;  %v4209_v49 = vadd.f32 %v11345_v39, %v11616_v9 }
 0x80e   :  { %v5046_v29 = vmax.f32 %v4493_v61, 0.0  ;;  %v4351_v61 = vadd.f32 %v12619_v21, %v4206_v40  ;;  %v5155_v21 = vld [vmem:[#allocation13 + $0x8] sm:$0xff] }
 0x80f   :  { %5409 = vmatpush.msra.mxu1 %v5173_v60  ;;  %v12620_v60 = vld [vmem:[#allocation52_spill] sm:$0xff] }
 0x810   :  { %v11685_v6 = vmax.f32 %v5044_v16, %v5046_v29  ;;  %4542 = vmatmul.f32.gmra.mxu2 %v12617_v28  ;;  %4681 = vmatmul.f32.gmra.mxu3 %v12599_v1  ;;  %v5161_v16 = vld [vmem:[#allocation13 + $0x38] sm:$0xff]  ;;  %v4354_v29 = vadd.f32 %v11359_v63, %v4209_v49  ;;  %v5474_v63 = vld [vmem:[#allocation13 + $0x4f0] sm:$0xff] }
 0x811   :  { %5410 = vmatpush.msra.mxu1 %v5171_v32  ;;  %v5470_v49 = vld [vmem:[#allocation13 + $0x4d0] sm:$0xff] }
 0x813   :  { %5411 = vmatpush.msra.mxu1 %v5169_v30  ;;  %v4495_v33 = vpop.f32.mrf.mxu2  ;;  %v11689_v41 = vpop.f32.mrf.mxu3  ;;  %v5159_v30 = vld [vmem:[#allocation13 + $0x28] sm:$0xff] }
 0x814   :  { %12618 = vst [vmem:[#allocation43_spill] sm:$0xff] %v11689_v41  ;;  %v4496_v32 = vadd.f32 %v4495_v33, %v4351_v61  ;;  %v5157_v41 = vld [vmem:[#allocation13 + $0x18] sm:$0xff]  ;;  %v5472_v33 = vld [vmem:[#allocation13 + $0x4e0] sm:$0xff] }
 0x815   :  { %5412 = vmatpush.msra.mxu1 %v5167_v17  ;;  %v5468_v61 = vld [vmem:[#allocation13 + $0x4c0] sm:$0xff] }
 0x816   :  { %v5048_v39 = vmax.f32 %v4496_v32, 0.0  ;;  %v12624_v32 = vld [vmem:[#allocation73_spill] sm:$0xff] }
 0x817   :  { %5413 = vmatpush.msra.mxu1 %v5165_v45 }
 0x818   :  { %4545 = vmatmul.f32.gmra.mxu2 %v12620_v60  ;;  %4684 = vmatmul.f32.gmra.mxu3 %v12608_v26  ;;  %v12621_v26 = vld [vmem:[#allocation55_spill] sm:$0xff] }
 0x819   :  { %5414 = vmatpush.msra.mxu1 %v5163_v37 }
 0x81b   :  { %5415 = vmatpush.msra.mxu1 %v5161_v16  ;;  %v4498_v51 = vpop.f32.mrf.mxu2  ;;  %v11699_v17 = vpop.f32.mrf.mxu3  ;;  %v12623_v16 = vld [vmem:[#allocation72_spill] sm:$0xff] }
 0x81c   :  { %v4499_v45 = vadd.f32 %v4498_v51, %v4354_v29  ;;  %v4215_v29 = vadd.f32 %v12623_v16, %v11616_v9  ;;  %v12625_v51 = vld [vmem:[#allocation58_spill] sm:$0xff] }
 0x81d   :  { %5416 = vmatpush.msra.mxu1 %v5159_v30 }
 0x81e   :  { %v5050_v40 = vmax.f32 %v4499_v45, 0.0  ;;  %v4360_v45 = vadd.f32 %v11410_v7, %v4215_v29  ;;  %v5458_v7 = vld [vmem:[#allocation13 + $0x470] sm:$0xff] }
 0x81f   :  { %5417 = vmatpush.msra.mxu1 %v5157_v41  ;;  %v4212_v41 = vadd.f32 %v11357_v31, %v11616_v9 }
 0x820   :  { %v11701_v43 = vmax.f32 %v5048_v39, %v5050_v40  ;;  %4548 = vmatmul.f32.gmra.mxu2 %v12621_v26  ;;  %4687 = vmatmul.f32.gmra.mxu3 %v12610_v50  ;;  %v5464_v40 = vld [vmem:[#allocation13 + $0x4a0] sm:$0xff] }
 0x821   :  { %5418 = vmatpush.msra.mxu1 %v5155_v21  ;;  %v4357_v30 = vadd.f32 %v12624_v32, %v4212_v41  ;;  %v5460_v41 = vld [vmem:[#allocation13 + $0x480] sm:$0xff] }
 0x822   :  { %5419 = vmatmul.f32.vlgmr.msra.gmra.mxu1 %v11666_v18  ;;  %v5466_v18 = vld [vmem:[#allocation13 + $0x4b0] sm:$0xff] }
 0x823   :  { %5508 = vmatpush.msrb.mxu1 %v5474_v63  ;;  %v4501_v37 = vpop.f32.mrf.mxu2  ;;  %v11706_v56 = vpop.f32.mrf.mxu3 }
 0x824   :  { %12622 = vst [vmem:[#allocation46_spill] sm:$0xff] %v11706_v56  ;;  %v4502_v39 = vadd.f32 %v4501_v37, %v4357_v30  ;;  %v12626_v56 = vld [vmem:[#allocation61_spill] sm:$0xff]  ;;  %v5454_v30 = vld [vmem:[#allocation13 + $0x450] sm:$0xff] }
 0x825   :  { %5509 = vmatpush.msrb.mxu1 %v5472_v33  ;;  %v5462_v33 = vld [vmem:[#allocation13 + $0x490] sm:$0xff]  ;;  %v5456_v37 = vld [vmem:[#allocation13 + $0x460] sm:$0xff] }
 0x827   :  { %5510 = vmatpush.msrb.mxu1 %v5470_v49  ;;  %v5052_v49 = vmax.f32 %v4502_v39, 0.0  ;;  %v4221_v39 = vadd.f32 %v11437_v48, %v11616_v9 }
 0x828   :  { %4551 = vmatmul.f32.gmra.mxu2 %v12625_v51  ;;  %4690 = vmatmul.f32.gmra.mxu3 %v12615_v23 }
 0x829   :  { %5511 = vmatpush.msrb.mxu1 %v5468_v61 }
 0x82b   :  { %5512 = vmatpush.msrb.mxu1 %v5466_v18  ;;  %v4504_v21 = vpop.f32.mrf.mxu2  ;;  %v11716_v31 = vpop.f32.mrf.mxu3  ;;  %v4218_v18 = vadd.f32 %v11406_v20, %v11616_v9 }
 0x82c   :  { %v4505_v63 = vadd.f32 %v4504_v21, %v4360_v45  ;;  %v5452_v45 = vld [vmem:[#allocation13 + $0x440] sm:$0xff]  ;;  %v12628_v21 = vld [vmem:[#allocation64_spill] sm:$0xff] }
 0x82d   :  { %5513 = vmatpush.msrb.mxu1 %v5464_v40  ;;  %v4363_v40 = vadd.f32 %v11439_v5, %v4218_v18  ;;  %v5444_v5 = vld [vmem:[#allocation13 + $0x400] sm:$0xff] }
 0x82e   :  { %v5054_v16 = vmax.f32 %v4505_v63, 0.0  ;;  %v5450_v63 = vld [vmem:[#allocation13 + $0x430] sm:$0xff] }
 0x82f   :  { %5514 = vmatpush.msrb.mxu1 %v5462_v33  ;;  %v4366_v33 = vadd.f32 %v11445_v13, %v4221_v39  ;;  %v5473_v13 = vld [vmem:[#allocation13 + $0x4e8] sm:$0xff]  ;;  %v5471_v39 = vld [vmem:[#allocation13 + $0x4d8] sm:$0xff] }
 0x830   :  { %v11718_v32 = vmax.f32 %v5052_v49, %v5054_v16  ;;  %4554 = vmatmul.f32.gmra.mxu2 %v12626_v56  ;;  %4693 = vmatmul.f32.gmra.mxu3 %v12617_v28  ;;  %v5448_v16 = vld [vmem:[#allocation13 + $0x420] sm:$0xff] }
 0x831   :  { %5515 = vmatpush.msrb.mxu1 %v5460_v41 }
 0x833   :  { %5516 = vmatpush.msrb.mxu1 %v5458_v7  ;;  %v4507_v61 = vpop.f32.mrf.mxu2  ;;  %v11722_v29 = vpop.f32.mrf.mxu3 }
 0x834   :  { %12627 = vst [vmem:[#allocation44_spill] sm:$0xff] %v11722_v29  ;;  %v4508_v49 = vadd.f32 %v4507_v61, %v4363_v40  ;;  %v5475_v29 = vld [vmem:[#allocation13 + $0x4f8] sm:$0xff]  ;;  %v5275_v40 = vld [vmem:[#allocation13 + $0x3c0] sm:$0xff] }
 0x835   :  { %5517 = vmatpush.msrb.mxu1 %v5456_v37  ;;  %v5446_v37 = vld [vmem:[#allocation13 + $0x410] sm:$0xff]  ;;  %5306 = vmatpush.msrb.mxu0 %v5275_v40 }
 0x836   :  { %v5056_v48 = vmax.f32 %v4508_v49, 0.0  ;;  %v4227_v49 = vadd.f32 %v11447_v10, %v11616_v9 }
 0x837   :  { %5518 = vmatpush.msrb.mxu1 %v5454_v30 }
 0x838   :  { %4557 = vmatmul.f32.gmra.mxu2 %v12628_v21  ;;  %4696 = vmatmul.f32.gmra.mxu3 %v12620_v60  ;;  %v12629_v60 = vld [vmem:[#allocation67_spill] sm:$0xff] }
 0x839   :  { %5519 = vmatpush.msrb.mxu1 %v5452_v45 }
 0x83b   :  { %5520 = vmatpush.msrb.mxu1 %v5450_v63  ;;  %v4510_v41 = vpop.f32.mrf.mxu2  ;;  %v11732_v20 = vpop.f32.mrf.mxu3  ;;  %v4224_v63 = vadd.f32 %v11443_v52, %v11616_v9 }
 0x83c   :  { %v4511_v7 = vadd.f32 %v4510_v41, %v4366_v33  ;;  %v5469_v33 = vld [vmem:[#allocation13 + $0x4c8] sm:$0xff]  ;;  %v5467_v41 = vld [vmem:[#allocation13 + $0x4b8] sm:$0xff] }
 0x83d   :  { %5521 = vmatpush.msrb.mxu1 %v5448_v16  ;;  %v4369_v16 = vadd.f32 %v11449_v58, %v4224_v63  ;;  %v5461_v58 = vld [vmem:[#allocation13 + $0x488] sm:$0xff]  ;;  %v5459_v63 = vld [vmem:[#allocation13 + $0x478] sm:$0xff] }
 0x83e   :  { %v5058_v30 = vmax.f32 %v4511_v7, 0.0  ;;  %v12631_v7 = vld [vmem:[#allocation68_spill] sm:$0xff] }
 0x83f   :  { %5522 = vmatpush.msrb.mxu1 %v5446_v37 }
 0x840   :  { %v11734_v18 = vmax.f32 %v5056_v48, %v5058_v30  ;;  %4560 = vmatmul.f32.gmra.mxu2 %v12629_v60  ;;  %4699 = vmatmul.f32.gmra.mxu3 %v12621_v26  ;;  %v5465_v48 = vld [vmem:[#allocation13 + $0x4a8] sm:$0xff] }
 0x841   :  { %5523 = vmatpush.msrb.mxu1 %v5444_v5 }
 0x842   :  { %5524 = vmatmul.f32.vlgmr.msrb.gmra.mxu1 %v11642_v35 }
 0x843   :  { %5548 = vmatpush.msra.mxu1 %v5475_v29  ;;  %v4513_v61 = vpop.f32.mrf.mxu2  ;;  %v11739_v45 = vpop.f32.mrf.mxu3  ;;  %v4372_v29 = vadd.f32 %v11453_v8, %v4227_v49  ;;  %v5457_v8 = vld [vmem:[#allocation13 + $0x468] sm:$0xff]  ;;  %v5455_v49 = vld [vmem:[#allocation13 + $0x458] sm:$0xff] }
 0x844   :  { %12630 = vst [vmem:[#allocation49_spill] sm:$0xff] %v11739_v45  ;;  %v4514_v37 = vadd.f32 %v4513_v61, %v4369_v16  ;;  %v12633_v45 = vld [vmem:[#allocation70_spill] sm:$0xff]  ;;  %v4230_v16 = vadd.f32 %v11451_v14, %v11616_v9 }
 0x845   :  { %5549 = vmatpush.msra.mxu1 %v5473_v13  ;;  %v5463_v13 = vld [vmem:[#allocation13 + $0x498] sm:$0xff] }
 0x846   :  { %v5060_v10 = vmax.f32 %v4514_v37, 0.0 }
 0x847   :  { %5550 = vmatpush.msra.mxu1 %v5471_v39 }
 0x848   :  { %4563 = vmatmul.f32.gmra.mxu2 %v12631_v7  ;;  %4702 = vmatmul.f32.gmra.mxu3 %v12625_v51 }
 0x849   :  { %5551 = vmatpush.msra.mxu1 %v5469_v33 }
 0x84b   :  { %5552 = vmatpush.msra.mxu1 %v5467_v41  ;;  %v4516_v52 = vpop.f32.mrf.mxu2  ;;  %v11749_v30 = vpop.f32.mrf.mxu3  ;;  %v5453_v41 = vld [vmem:[#allocation13 + $0x448] sm:$0xff] }
 0x84c   :  { %12632 = vst [vmem:[#allocation56_spill] sm:$0xff] %v11749_v30  ;;  %v4517_v5 = vadd.f32 %v4516_v52, %v4372_v29  ;;  %v12635_v29 = vld [vmem:[#allocation76_spill] sm:$0xff] }
 0x84d   :  { %5553 = vmatpush.msra.mxu1 %v5465_v48  ;;  %v4233_v37 = vadd.f32 %v12635_v29, %v11616_v9  ;;  %v12636_v48 = vld [vmem:[#allocation77_spill] sm:$0xff] }
 0x84e   :  { %v5062_v39 = vmax.f32 %v4517_v5, 0.0  ;;  %v4375_v52 = vadd.f32 %v12636_v48, %v4230_v16  ;;  %v5451_v5 = vld [vmem:[#allocation13 + $0x438] sm:$0xff]  ;;  %v5445_v48 = vld [vmem:[#allocation13 + $0x408] sm:$0xff] }
 0x84f   :  { %5554 = vmatpush.msra.mxu1 %v5463_v13  ;;  %v12637_v13 = vld [vmem:[#allocation71_spill] sm:$0xff]  ;;  %v4119_v29 = vld [vmem:[#allocation10 + $0x1f8] sm:$0xff] }
 0x850   :  { %v11751_v40 = vmax.f32 %v5060_v10, %v5062_v39  ;;  %4566 = vmatmul.f32.gmra.mxu2 %v12633_v45  ;;  %4705 = vmatmul.f32.gmra.mxu3 %v12626_v56  ;;  %v12638_v10 = vld [vmem:[#allocation79_spill] sm:$0xff] }
 0x851   :  { %5555 = vmatpush.msra.mxu1 %v5461_v58  ;;  %v4378_v39 = vadd.f32 %v12638_v10, %v4233_v37  ;;  %4738 = vmatpush.msra.mxu2 %v4119_v29  ;;  %v4117_v56 = vld [vmem:[#allocation10 + $0x1e8] sm:$0xff] }
 0x852   :  { %v12640_v37 = vld [vmem:[#allocation74_spill] sm:$0xff] }
 0x853   :  { %5556 = vmatpush.msra.mxu1 %v5459_v63  ;;  %v4519_v61 = vpop.f32.mrf.mxu2  ;;  %v11755_v33 = vpop.f32.mrf.mxu3  ;;  %v5449_v63 = vld [vmem:[#allocation13 + $0x428] sm:$0xff]  ;;  %4739 = vmatpush.msra.mxu2 %v4117_v56 }
 0x854   :  { %12634 = vst [vmem:[#allocation47_spill] sm:$0xff] %v11755_v33  ;;  %v4520_v58 = vadd.f32 %v4519_v61, %v4375_v52  ;;  %v5447_v33 = vld [vmem:[#allocation13 + $0x418] sm:$0xff]  ;;  %v5619_v52 = vld [vmem:[#allocation13 + $0x6e0] sm:$0xff] }
 0x855   :  { %5557 = vmatpush.msra.mxu1 %v5457_v8  ;;  %v4115_v61 = vld [vmem:[#allocation10 + $0x1d8] sm:$0xff]  ;;  %v4109_v56 = vld [vmem:[#allocation10 + $0x1a8] sm:$0xff] }
 0x856   :  { %v5064_v30 = vmax.f32 %v4520_v58, 0.0  ;;  %4740 = vmatpush.msra.mxu2 %v4115_v61  ;;  %v12642_v58 = vld [vmem:[#allocation78_spill] sm:$0xff]  ;;  %v4107_v61 = vld [vmem:[#allocation10 + $0x198] sm:$0xff] }
 0x857   :  { %5558 = vmatpush.msra.mxu1 %v5455_v49  ;;  %v12644_v29 = vld [vmem:[#allocation82_spill] sm:$0xff] }
 0x858   :  { %4569 = vmatmul.f32.gmra.mxu2 %v12637_v13  ;;  %4708 = vmatmul.f32.gmra.mxu3 %v12628_v21 }
 0x859   :  { %5559 = vmatpush.msra.mxu1 %v5453_v41  ;;  %v5621_v41 = vld [vmem:[#allocation13 + $0x6f0] sm:$0xff] }
 0x85b   :  { %5560 = vmatpush.msra.mxu1 %v5451_v5  ;;  %v4522_v8 = vpop.f32.mrf.mxu2  ;;  %v11765_v14 = vpop.f32.mrf.mxu3 }
 0x85c   :  { %12639 = vst [vmem:[#allocation59_spill] sm:$0xff] %v11765_v14  ;;  %v4523_v49 = vadd.f32 %v4522_v8, %v4378_v39  ;;  %v5617_v39 = vld [vmem:[#allocation13 + $0x6d0] sm:$0xff]  ;;  %v5615_v8 = vld [vmem:[#allocation13 + $0x6c0] sm:$0xff] }
 0x85d   :  { %5561 = vmatpush.msra.mxu1 %v5449_v63  ;;  %v4236_v63 = vadd.f32 %v12642_v58, %v11616_v9  ;;  %v5611_v58 = vld [vmem:[#allocation13 + $0x6a0] sm:$0xff]  ;;  %v4151_v14 = vld [vmem:[#allocation10 + $0x2f8] sm:$0xff] }
 0x85e   :  { %v5066_v16 = vmax.f32 %v4523_v49, 0.0  ;;  %4883 = vmatpush.msra.mxu3 %v4151_v14 }
 0x85f   :  { %5562 = vmatpush.msra.mxu1 %v5447_v33  ;;  %v4113_v33 = vld [vmem:[#allocation10 + $0x1c8] sm:$0xff] }
 0x860   :  { %v11767_v21 = vmax.f32 %v5064_v30, %v5066_v16  ;;  %4572 = vmatmul.f32.gmra.mxu2 %v12640_v37  ;;  %4711 = vmatmul.f32.gmra.mxu3 %v12629_v60  ;;  %v4111_v30 = vld [vmem:[#allocation10 + $0x1b8] sm:$0xff]  ;;  %v4381_v16 = vadd.f32 %v12644_v29, %v4236_v63 }
 0x861   :  { %5563 = vmatpush.msra.mxu1 %v5445_v48  ;;  %4741 = vmatpush.msra.mxu2 %v4113_v33  ;;  %v5613_v48 = vld [vmem:[#allocation13 + $0x6b0] sm:$0xff] }
 0x862   :  { %5564 = vmatmul.f32.vlgmr.msra.gmra.mxu1 %v11642_v35  ;;  %v12643_v35 = vld [vmem:[#allocation80_spill] sm:$0xff] }
 0x863   :  { %5655 = vmatpush.msrb.mxu1 %v5621_v41  ;;  %v4525_v5 = vpop.f32.mrf.mxu2  ;;  %v11772_v10 = vpop.f32.mrf.mxu3  ;;  %4742 = vmatpush.msra.mxu2 %v4111_v30  ;;  %v4239_v49 = vadd.f32 %v12643_v35, %v11616_v9  ;;  %v12645_v41 = vld [vmem:[#allocation75_spill] sm:$0xff]  ;;  %v4103_v29 = vld [vmem:[#allocation10 + $0x178] sm:$0xff] }
 0x864   :  { %12641 = vst [vmem:[#allocation60_spill] sm:$0xff] %v11772_v10  ;;  %v4526_v33 = vadd.f32 %v4525_v5, %v4381_v16  ;;  %v4105_v35 = vld [vmem:[#allocation10 + $0x188] sm:$0xff]  ;;  %v5609_v10 = vld [vmem:[#allocation13 + $0x690] sm:$0xff] }
 0x865   :  { %5656 = vmatpush.msrb.mxu1 %v5619_v52  ;;  %4743 = vmatpush.msra.mxu2 %v4109_v56  ;;  %v4384_v52 = vadd.f32 %v11477_v62, %v4239_v49  ;;  %v5607_v56 = vld [vmem:[#allocation13 + $0x680] sm:$0xff]  ;;  %v5605_v5 = vld [vmem:[#allocation13 + $0x670] sm:$0xff] }
 0x866   :  { %v12648_v49 = vld [vmem:[#allocation81_spill] sm:$0xff]  ;;  %v4101_v16 = vld [vmem:[#allocation10 + $0x168] sm:$0xff] }
 0x867   :  { %5657 = vmatpush.msrb.mxu1 %v5617_v39  ;;  %4744 = vmatpush.msra.mxu2 %v4107_v61  ;;  %v4099_v61 = vld [vmem:[#allocation10 + $0x158] sm:$0xff] }
 0x868   :  { %4575 = vmatmul.f32.gmra.mxu2 %v12645_v41  ;;  %4714 = vmatmul.f32.gmra.mxu3 %v12631_v7  ;;  %v5068_v7 = vmax.f32 %v4526_v33, 0.0 }
 0x869   :  { %5658 = vmatpush.msrb.mxu1 %v5615_v8  ;;  %4745 = vmatpush.msra.mxu2 %v4105_v35  ;;  %v5601_v35 = vld [vmem:[#allocation13 + $0x650] sm:$0xff] }
 0x86b   :  { %5659 = vmatpush.msrb.mxu1 %v5613_v48  ;;  %v4528_v39 = vpop.f32.mrf.mxu2  ;;  %v11782_v30 = vpop.f32.mrf.mxu3  ;;  %4746 = vmatpush.msra.mxu2 %v4103_v29  ;;  %v4149_v48 = vld [vmem:[#allocation10 + $0x2e8] sm:$0xff] }
 0x86c   :  { %12646 = vst [vmem:[#allocation63_spill] sm:$0xff] %v11782_v30  ;;  %v4529_v63 = vadd.f32 %v4528_v39, %v4384_v52  ;;  %v4147_v52 = vld [vmem:[#allocation10 + $0x2d8] sm:$0xff]  ;;  %4884 = vmatpush.msra.mxu3 %v4149_v48  ;;  %v12650_v29 = vld [vmem:[#allocation83_spill] sm:$0xff] }
 0x86d   :  { %5660 = vmatpush.msrb.mxu1 %v5611_v58  ;;  %4747 = vmatpush.msra.mxu2 %v4101_v16  ;;  %v5603_v58 = vld [vmem:[#allocation13 + $0x660] sm:$0xff]  ;;  %v5273_v39 = vld [vmem:[#allocation13 + $0x3b0] sm:$0xff] }
 0x86e   :  { %v5070_v8 = vmax.f32 %v4529_v63, 0.0  ;;  %4885 = vmatpush.msra.mxu3 %v4147_v52  ;;  %5307 = vmatpush.msrb.mxu0 %v5273_v39  ;;  %v4095_v63 = vld [vmem:[#allocation10 + $0x138] sm:$0xff]  ;;  %v4093_v48 = vld [vmem:[#allocation10 + $0x128] sm:$0xff] }
 0x86f   :  { %5661 = vmatpush.msrb.mxu1 %v5609_v10  ;;  %4748 = vmatpush.msra.mxu2 %v4099_v61  ;;  %v4145_v10 = vld [vmem:[#allocation10 + $0x2c8] sm:$0xff]  ;;  %v4143_v16 = vld [vmem:[#allocation10 + $0x2b8] sm:$0xff]  ;;  %v4245_v61 = vadd.f32 %v11479_v24, %v11616_v9 }
 0x870   :  { %v11784_v62 = vmax.f32 %v5068_v7, %v5070_v8  ;;  %4578 = vmatmul.f32.gmra.mxu2 %v12648_v49  ;;  %4717 = vmatmul.f32.gmra.mxu3 %v12633_v45  ;;  %v4097_v7 = vld [vmem:[#allocation10 + $0x148] sm:$0xff]  ;;  %v4242_v8 = vadd.f32 %v12650_v29, %v11616_v9  ;;  %v5597_v52 = vld [vmem:[#allocation13 + $0x630] sm:$0xff]  ;;  %v3915_v29 = vpop.f32.mrf.mxu1 }
 0x871   :  { %5662 = vmatpush.msrb.mxu1 %v5607_v56  ;;  %4749 = vmatpush.msra.mxu2 %v4097_v7  ;;  %v5599_v56 = vld [vmem:[#allocation13 + $0x640] sm:$0xff]  ;;  %v12652_v39 = vld [vmem:[#allocation84_spill] sm:$0xff] }
 0x872   :  { %12647 = vst [vmem:[#allocation48_spill] sm:$0xff] %v11784_v62  ;;  %4886 = vmatpush.msra.mxu3 %v4145_v10  ;;  %v4091_v7 = vld [vmem:[#allocation10 + $0x118] sm:$0xff]  ;;  %v4390_v10 = vadd.f32 %v11493_v4, %v4245_v61  ;;  %v5591_v4 = vld [vmem:[#allocation13 + $0x600] sm:$0xff] }
 0x873   :  { %5663 = vmatpush.msrb.mxu1 %v5605_v5  ;;  %v4531_v33 = vpop.f32.mrf.mxu2  ;;  %v11788_v14 = vpop.f32.mrf.mxu3  ;;  %4750 = vmatpush.msra.mxu2 %v4095_v63  ;;  %v5595_v63 = vld [vmem:[#allocation13 + $0x620] sm:$0xff]  ;;  %v4139_v45 = vld [vmem:[#allocation10 + $0x298] sm:$0xff] }
 0x874   :  { %12649 = vst [vmem:[#allocation62_spill] sm:$0xff] %v11788_v14  ;;  %v3628_v5 = vpop.f32.mrf.mxu0  ;;  %v12651_v14 = vld [vmem:[#allocation85_spill] sm:$0xff]  ;;  %4887 = vmatpush.msra.mxu3 %v4143_v16 }
 0x875   :  { %5664 = vmatpush.msrb.mxu1 %v5603_v58  ;;  %v4387_v30 = vadd.f32 %v12651_v14, %v4242_v8  ;;  %v4141_v58 = vld [vmem:[#allocation10 + $0x2a8] sm:$0xff]  ;;  %4751 = vmatpush.msra.mxu2 %v4093_v48  ;;  %v5593_v8 = vld [vmem:[#allocation13 + $0x610] sm:$0xff]  ;;  %v5622_v61 = vld [vmem:[#allocation13 + $0x6f8] sm:$0xff] }
 0x876   :  { %4888 = vmatpush.msra.mxu3 %v4141_v58  ;;  %v4089_v14 = vld [vmem:[#allocation10 + $0x108] sm:$0xff]  ;;  %v8658_v58 = vld [vmem:[#allocation8] ss:$0 sm:$0xff] }
 0x877   :  { %5665 = vmatpush.msrb.mxu1 %v5601_v35  ;;  %v4532_v35 = vadd.f32 %v4531_v33, %v4387_v30  ;;  %4752 = vmatpush.msra.mxu2 %v4091_v7  ;;  %v4135_v30 = vld [vmem:[#allocation10 + $0x278] sm:$0xff] }
 0x878   :  { %4581 = vmatmul.f32.gmra.mxu2 %v12652_v39  ;;  %4720 = vmatmul.f32.gmra.mxu3 %v12637_v13  ;;  %v4137_v13 = vld [vmem:[#allocation10 + $0x288] sm:$0xff] }
 0x879   :  { %5666 = vmatpush.msrb.mxu1 %v5599_v56  ;;  %4889 = vmatpush.msra.mxu3 %v4139_v45  ;;  %v5072_v56 = vmax.f32 %v4532_v35, 0.0  ;;  %v3629_v35 = vadd.f32 %v8658_v58, %v3628_v5  ;;  %v5614_v5 = vld [vmem:[#allocation13 + $0x6b8] sm:$0xff] }
 0x87a   :  { %4753 = vmatpush.msra.mxu2 %v4089_v14  ;;  %v4129_v14 = vld [vmem:[#allocation10 + $0x248] sm:$0xff] }
 0x87b   :  { %5667 = vmatpush.msrb.mxu1 %v5597_v52  ;;  %v4534_v24 = vpop.f32.mrf.mxu2  ;;  %v11798_v62 = vpop.f32.mrf.mxu3  ;;  %4890 = vmatpush.msra.mxu3 %v4137_v13  ;;  %v4133_v52 = vld [vmem:[#allocation10 + $0x268] sm:$0xff]  ;;  %v4131_v13 = vld [vmem:[#allocation10 + $0x258] sm:$0xff] }
 0x87c   :  { %12653 = vst [vmem:[#allocation65_spill] sm:$0xff] %v11798_v62  ;;  %v4535_v60 = vadd.f32 %v4534_v24, %v4390_v10  ;;  %v3631_v33 = vpop.f32.mrf.mxu0  ;;  %v3918_v24 = vpop.f32.mrf.mxu1  ;;  %v3916_v62 = vadd.f32 %v3915_v29, %v3629_v35  ;;  %v5610_v35 = vld [vmem:[#allocation13 + $0x698] sm:$0xff] }
 0x87d   :  { %5668 = vmatpush.msrb.mxu1 %v5595_v63  ;;  %4891 = vmatpush.msra.mxu3 %v4135_v30  ;;  %v3632_v45 = vadd.f32 %v8658_v58, %v3631_v33  ;;  %v5618_v63 = vld [vmem:[#allocation13 + $0x6d8] sm:$0xff]  ;;  %v12656_v33 = vld [vmem:[#allocation87_spill] sm:$0xff] }
 0x87e   :  { %v5074_v16 = vmax.f32 %v4535_v60, 0.0  ;;  %v5620_v60 = vld [vmem:[#allocation13 + $0x6e8] sm:$0xff]  ;;  %v4127_v30 = vld [vmem:[#allocation10 + $0x238] sm:$0xff]  ;;  %v4009_v29 = vmax.f32 %v3916_v62, 0.0 }
 0x87f   :  { %5669 = vmatpush.msrb.mxu1 %v5593_v8  ;;  %4892 = vmatpush.msra.mxu3 %v4133_v52  ;;  %v12655_v8 = vld [vmem:[#allocation86_spill] sm:$0xff] }
 0x880   :  { %v11800_v48 = vmax.f32 %v5072_v56, %v5074_v16  ;;  %4584 = vmatmul.f32.gmra.mxu2 %v11497_v55  ;;  %4723 = vmatmul.f32.gmra.mxu3 %v12640_v37  ;;  %v4248_v56 = vadd.f32 %v12655_v8, %v11616_v9  ;;  %v3919_v16 = vadd.f32 %v3918_v24, %v3632_v45  ;;  %v4125_v58 = vld [vmem:[#allocation10 + $0x228] sm:$0xff] }
 0x881   :  { %5670 = vmatpush.msrb.mxu1 %v5591_v4  ;;  %4893 = vmatpush.msra.mxu3 %v4131_v13  ;;  %v5616_v4 = vld [vmem:[#allocation13 + $0x6c8] sm:$0xff] }
 0x882   :  { %5671 = vmatmul.f32.vlgmr.msrb.gmra.mxu1 %v11668_v27  ;;  %v5604_v62 = vld [vmem:[#allocation13 + $0x668] sm:$0xff] }
 0x883   :  { %5695 = vmatpush.msra.mxu1 %v5622_v61  ;;  %v4537_v7 = vpop.f32.mrf.mxu2  ;;  %v11805_v10 = vpop.f32.mrf.mxu3  ;;  %4894 = vmatpush.msra.mxu3 %v4129_v14  ;;  %v4251_v61 = vadd.f32 %v12656_v33, %v11616_v9  ;;  %v5608_v33 = vld [vmem:[#allocation13 + $0x688] sm:$0xff] }
 0x884   :  { %12654 = vst [vmem:[#allocation66_spill] sm:$0xff] %v11805_v10  ;;  %v12657_v10 = vld [vmem:[#allocation88_spill] sm:$0xff] }
 0x885   :  { %5696 = vmatpush.msra.mxu1 %v5620_v60  ;;  %v4393_v52 = vadd.f32 %v12657_v10, %v4248_v56  ;;  %4895 = vmatpush.msra.mxu3 %v4127_v30  ;;  %v4396_v45 = vadd.f32 %v11508_v59, %v4251_v61  ;;  %v4010_v60 = vmax.f32 %v3919_v16, 0.0  ;;  %v4123_v10 = vld [vmem:[#allocation10 + $0x218] sm:$0xff]  ;;  %v4121_v56 = vld [vmem:[#allocation10 + $0x208] sm:$0xff] }
 0x887   :  { %5697 = vmatpush.msra.mxu1 %v5618_v63  ;;  %v4538_v13 = vadd.f32 %v4537_v7, %v4393_v52  ;;  %v5612_v63 = vld [vmem:[#allocation13 + $0x6a8] sm:$0xff]  ;;  %4896 = vmatpush.msra.mxu3 %v4125_v58  ;;  %v5606_v7 = vld [vmem:[#allocation13 + $0x678] sm:$0xff] }
 0x888   :  { %4587 = vmatmul.f32.gmra.mxu2 %v11512_v36  ;;  %4726 = vmatmul.f32.gmra.mxu3 %v12645_v41  ;;  %v11817_v36 = vmax.f32 %v4009_v29, %v4010_v60  ;;  %v5602_v52 = vld [vmem:[#allocation13 + $0x658] sm:$0xff]  ;;  %v4257_v60 = vadd.f32 %v11510_v25, %v11616_v9  ;;  %v5596_v29 = vld [vmem:[#allocation13 + $0x628] sm:$0xff] }
 0x889   :  { %5698 = vmatpush.msra.mxu1 %v5616_v4  ;;  %4897 = vmatpush.msra.mxu3 %v4123_v10  ;;  %v5076_v4 = vmax.f32 %v4538_v13, 0.0 }
 0x88b   :  { %5699 = vmatpush.msra.mxu1 %v5614_v5  ;;  %v4540_v24 = vpop.f32.mrf.mxu2  ;;  %v11815_v14 = vpop.f32.mrf.mxu3  ;;  %4898 = vmatpush.msra.mxu3 %v4121_v56  ;;  %v12658_v5 = vld [vmem:[#allocation89_spill] sm:$0xff] }
 0x88c   :  { %v4541_v8 = vadd.f32 %v4540_v24, %v4396_v45  ;;  %v4254_v58 = vadd.f32 %v12658_v5, %v11616_v9  ;;  %v5600_v45 = vld [vmem:[#allocation13 + $0x648] sm:$0xff]  ;;  %v4402_v24 = vadd.f32 %v11522_v46, %v4257_v60  ;;  %v5594_v56 = vld [vmem:[#allocation13 + $0x618] sm:$0xff]  ;;  %v4260_v5 = vadd.f32 %v11518_v19, %v11616_v9 }
 0x88d   :  { %5700 = vmatpush.msra.mxu1 %v5612_v63  ;;  %v5598_v63 = vld [vmem:[#allocation13 + $0x638] sm:$0xff] }
 0x88e   :  { %v5078_v30 = vmax.f32 %v4541_v8, 0.0  ;;  %v4399_v13 = vadd.f32 %v11516_v42, %v4254_v58  ;;  %v5592_v42 = vld [vmem:[#allocation13 + $0x608] sm:$0xff]  ;;  %v5762_v58 = vld [vmem:[#allocation13 + $0x8c0] sm:$0xff]  ;;  %v4405_v60 = vadd.f32 %v11528_v38, %v4260_v5  ;;  %v5744_v5 = vld [vmem:[#allocation13 + $0x830] sm:$0xff] }
 0x88f   :  { %5701 = vmatpush.msra.mxu1 %v5610_v35 }
 0x890   :  { %v11819_v59 = vmax.f32 %v5076_v4, %v5078_v30  ;;  %4590 = vmatmul.f32.gmra.mxu2 %v11817_v36  ;;  %4729 = vmatmul.f32.gmra.mxu3 %v12648_v49 }
 0x891   :  { %5702 = vmatpush.msra.mxu1 %v5608_v33 }
 0x893   :  { %5703 = vmatpush.msra.mxu1 %v5606_v7  ;;  %v4543_v16 = vpop.f32.mrf.mxu2  ;;  %v11823_v61 = vpop.f32.mrf.mxu3  ;;  %v5768_v7 = vld [vmem:[#allocation13 + $0x8f0] sm:$0xff] }
 0x894   :  { %v4544_v10 = vadd.f32 %v4543_v16, %v4399_v13  ;;  %v5271_v16 = vld [vmem:[#allocation13 + $0x3a0] sm:$0xff] }
 0x895   :  { %5704 = vmatpush.msra.mxu1 %v5604_v62  ;;  %5308 = vmatpush.msrb.mxu0 %v5271_v16  ;;  %v12659_v16 = vld [vmem:[#allocation91_spill] sm:$0xff] }
 0x896   :  { %v5080_v25 = vmax.f32 %v4544_v10, 0.0 }
 0x897   :  { %5705 = vmatpush.msra.mxu1 %v5602_v52  ;;  %v5764_v52 = vld [vmem:[#allocation13 + $0x8d0] sm:$0xff] }
 0x898   :  { %4732 = vmatmul.f32.gmra.mxu3 %v12652_v39  ;;  %4754 = vmatmul.f32.vlgmr.msra.gmra.mxu2 %v9543_v34  ;;  %v5766_v34 = vld [vmem:[#allocation13 + $0x8e0] sm:$0xff] }
 0x899   :  { %5706 = vmatpush.msra.mxu1 %v5600_v45  ;;  %v4263_v45 = vadd.f32 %v11524_v2, %v11616_v9 }
 0x89b   :  { %5707 = vmatpush.msra.mxu1 %v5598_v63  ;;  %v4546_v35 = vpop.f32.mrf.mxu2  ;;  %v11833_v8 = vpop.f32.mrf.mxu3  ;;  %v4408_v13 = vadd.f32 %v11534_v15, %v4263_v45 }
 0x89c   :  { %v4547_v4 = vadd.f32 %v4546_v35, %v4402_v24  ;;  %v5758_v24 = vld [vmem:[#allocation13 + $0x8a0] sm:$0xff] }
 0x89d   :  { %5708 = vmatpush.msra.mxu1 %v5596_v29  ;;  %v5756_v29 = vld [vmem:[#allocation13 + $0x890] sm:$0xff] }
 0x89e   :  { %v5082_v30 = vmax.f32 %v4547_v4, 0.0 }
 0x89f   :  { %5709 = vmatpush.msra.mxu1 %v5594_v56  ;;  %v5754_v56 = vld [vmem:[#allocation13 + $0x880] sm:$0xff] }
 0x8a0   :  { %v11835_v33 = vmax.f32 %v5080_v25, %v5082_v30  ;;  %4735 = vmatmul.f32.gmra.mxu3 %v11497_v55  ;;  %4757 = vmatmul.f32.gmra.mxu2 %v9570_v57  ;;  %v5752_v25 = vld [vmem:[#allocation13 + $0x870] sm:$0xff] }
 0x8a1   :  { %5710 = vmatpush.msra.mxu1 %v5592_v42  ;;  %v5748_v42 = vld [vmem:[#allocation13 + $0x850] sm:$0xff] }
 0x8a2   :  { %5711 = vmatmul.f32.vlgmr.msra.gmra.mxu1 %v11668_v27  ;;  %v5760_v27 = vld [vmem:[#allocation13 + $0x8b0] sm:$0xff] }
 0x8a3   :  { %5802 = vmatpush.msrb.mxu1 %v5768_v7  ;;  %v4549_v46 = vpop.f32.mrf.mxu2  ;;  %v11840_v62 = vpop.f32.mrf.mxu3  ;;  %v4266_v7 = vadd.f32 %v11530_v47, %v11616_v9 }
 0x8a4   :  { %v4550_v63 = vadd.f32 %v4549_v46, %v4405_v60  ;;  %v4269_v46 = vadd.f32 %v11536_v53, %v11616_v9 }
 0x8a5   :  { %5803 = vmatpush.msrb.mxu1 %v5766_v34  ;;  %v5746_v34 = vld [vmem:[#allocation13 + $0x840] sm:$0xff] }
 0x8a6   :  { %v5084_v2 = vmax.f32 %v4550_v63, 0.0  ;;  %v5740_v63 = vld [vmem:[#allocation13 + $0x810] sm:$0xff] }
 0x8a7   :  { %5804 = vmatpush.msrb.mxu1 %v5764_v52  ;;  %v4411_v52 = vadd.f32 %v12659_v16, %v4266_v7  ;;  %v5763_v7 = vld [vmem:[#allocation13 + $0x8c8] sm:$0xff] }
 0x8a8   :  { %4760 = vmatmul.f32.gmra.mxu2 %v9615_v0  ;;  %4899 = vmatmul.f32.vlgmr.msra.gmra.mxu3 %v9570_v57  ;;  %v5750_v57 = vld [vmem:[#allocation13 + $0x860] sm:$0xff]  ;;  %v12666_v16 = vld [vmem:[#allocation95_spill] sm:$0xff] }
 0x8a9   :  { %5805 = vmatpush.msrb.mxu1 %v5762_v58  ;;  %v12661_v58 = vld [vmem:[#allocation93_spill] sm:$0xff] }
 0x8aa   :  { %v4414_v45 = vadd.f32 %v12661_v58, %v4269_v46  ;;  %v12668_v58 = vld [vmem:[#allocation97_spill] sm:$0xff] }
 0x8ab   :  { %5806 = vmatpush.msrb.mxu1 %v5760_v27  ;;  %v4552_v10 = vpop.f32.mrf.mxu2  ;;  %v11850_v19 = vpop.f32.mrf.mxu3  ;;  %v5742_v27 = vld [vmem:[#allocation13 + $0x820] sm:$0xff] }
 0x8ac   :  { %v4553_v35 = vadd.f32 %v4552_v10, %v4408_v13  ;;  %v5738_v10 = vld [vmem:[#allocation13 + $0x800] sm:$0xff] }
 0x8ad   :  { %5807 = vmatpush.msrb.mxu1 %v5758_v24 }
 0x8ae   :  { %v5086_v38 = vmax.f32 %v4553_v35, 0.0 }
 0x8af   :  { %5808 = vmatpush.msrb.mxu1 %v5756_v29 }
 0x8b0   :  { %v11852_v4 = vmax.f32 %v5084_v2, %v5086_v38  ;;  %4763 = vmatmul.f32.gmra.mxu2 %v9707_v54  ;;  %4902 = vmatmul.f32.gmra.mxu3 %v9615_v0  ;;  %v12660_v0 = vld [vmem:[#allocation27_spill] sm:$0xff]  ;;  %v5769_v2 = vld [vmem:[#allocation13 + $0x8f8] sm:$0xff] }
 0x8b1   :  { %5809 = vmatpush.msrb.mxu1 %v5754_v56  ;;  %v5767_v56 = vld [vmem:[#allocation13 + $0x8e8] sm:$0xff] }
 0x8b3   :  { %5810 = vmatpush.msrb.mxu1 %v5752_v25  ;;  %v4555_v15 = vpop.f32.mrf.mxu2  ;;  %v11856_v30 = vpop.f32.mrf.mxu3 }
 0x8b4   :  { %v4556_v60 = vadd.f32 %v4555_v15, %v4411_v52  ;;  %v12664_v15 = vld [vmem:[#allocation92_spill] sm:$0xff] }
 0x8b5   :  { %5811 = vmatpush.msrb.mxu1 %v5750_v57  ;;  %v5765_v57 = vld [vmem:[#allocation13 + $0x8d8] sm:$0xff] }
 0x8b6   :  { %v5088_v53 = vmax.f32 %v4556_v60, 0.0 }
 0x8b7   :  { %5812 = vmatpush.msrb.mxu1 %v5748_v42  ;;  %v4272_v42 = vadd.f32 %v12664_v15, %v11616_v9 }
 0x8b8   :  { %4766 = vmatmul.f32.gmra.mxu2 %v12660_v0  ;;  %4905 = vmatmul.f32.gmra.mxu3 %v9707_v54  ;;  %v12663_v54 = vld [vmem:[#allocation28_spill] sm:$0xff] }
 0x8b9   :  { %5813 = vmatpush.msrb.mxu1 %v5746_v34  ;;  %v12665_v34 = vld [vmem:[#allocation94_spill] sm:$0xff]  ;;  %v4417_v52 = vadd.f32 %v12666_v16, %v4272_v42 }
 0x8ba   :  { %v4275_v46 = vadd.f32 %v12665_v34, %v11616_v9  ;;  %v12670_v34 = vld [vmem:[#allocation96_spill] sm:$0xff]  ;;  %v5747_v16 = vld [vmem:[#allocation13 + $0x848] sm:$0xff] }
 0x8bb   :  { %5814 = vmatpush.msrb.mxu1 %v5744_v5  ;;  %v4558_v13 = vpop.f32.mrf.mxu2  ;;  %v11866_v47 = vpop.f32.mrf.mxu3  ;;  %v5761_v5 = vld [vmem:[#allocation13 + $0x8b8] sm:$0xff] }
 0x8bc   :  { %v4559_v24 = vadd.f32 %v4558_v13, %v4414_v45  ;;  %v4420_v45 = vadd.f32 %v12668_v58, %v4275_v46  ;;  %v4278_v46 = vadd.f32 %v12670_v34, %v11616_v9  ;;  %v12672_v58 = vld [vmem:[#allocation99_spill] sm:$0xff] }
 0x8bd   :  { %5815 = vmatpush.msrb.mxu1 %v5742_v27  ;;  %v5759_v27 = vld [vmem:[#allocation13 + $0x8a8] sm:$0xff] }
 0x8be   :  { %v5090_v29 = vmax.f32 %v4559_v24, 0.0  ;;  %v5757_v24 = vld [vmem:[#allocation13 + $0x898] sm:$0xff] }
 0x8bf   :  { %5816 = vmatpush.msrb.mxu1 %v5740_v63 }
 0x8c0   :  { %v11868_v35 = vmax.f32 %v5088_v53, %v5090_v29  ;;  %4769 = vmatmul.f32.gmra.mxu2 %v12663_v54  ;;  %4908 = vmatmul.f32.gmra.mxu3 %v12660_v0  ;;  %v12667_v0 = vld [vmem:[#allocation29_spill] sm:$0xff]  ;;  %v5755_v29 = vld [vmem:[#allocation13 + $0x888] sm:$0xff] }
 0x8c1   :  { %5817 = vmatpush.msrb.mxu1 %v5738_v10 }
 0x8c2   :  { %12662 = vst [vmem:[#allocation50_spill] sm:$0xff] %v11868_v35  ;;  %5818 = vmatmul.f32.vlgmr.msrb.gmra.mxu1 %v11685_v6  ;;  %v6187_v35 = vld [vmem:[#allocation13 + $0xe40] sm:$0xff] }
 0x8c3   :  { %5842 = vmatpush.msra.mxu1 %v5769_v2  ;;  %v4561_v38 = vpop.f32.mrf.mxu2  ;;  %v11873_v25 = vpop.f32.mrf.mxu3 }
 0x8c4   :  { %v4562_v60 = vadd.f32 %v4561_v38, %v4417_v52  ;;  %v5751_v38 = vld [vmem:[#allocation13 + $0x868] sm:$0xff] }
 0x8c5   :  { %5843 = vmatpush.msra.mxu1 %v5767_v56  ;;  %v12671_v52 = vld [vmem:[#allocation98_spill] sm:$0xff] }
 0x8c6   :  { %v5092_v10 = vmax.f32 %v4562_v60, 0.0  ;;  %v12673_v60 = vld [vmem:[#allocation101_spill] sm:$0xff] }
 0x8c7   :  { %5844 = vmatpush.msra.mxu1 %v5765_v57  ;;  %v5753_v57 = vld [vmem:[#allocation13 + $0x878] sm:$0xff] }
 0x8c8   :  { %4772 = vmatmul.f32.gmra.mxu2 %v12667_v0  ;;  %4911 = vmatmul.f32.gmra.mxu3 %v12663_v54  ;;  %v5269_v54 = vld [vmem:[#allocation13 + $0x390] sm:$0xff] }
 0x8c9   :  { %5845 = vmatpush.msra.mxu1 %v5763_v7  ;;  %5309 = vmatpush.msrb.mxu0 %v5269_v54  ;;  %v5749_v7 = vld [vmem:[#allocation13 + $0x858] sm:$0xff]  ;;  %v5739_v54 = vld [vmem:[#allocation13 + $0x808] sm:$0xff] }
 0x8cb   :  { %5846 = vmatpush.msra.mxu1 %v5761_v5  ;;  %v4564_v13 = vpop.f32.mrf.mxu2  ;;  %v11883_v63 = vpop.f32.mrf.mxu3  ;;  %v4281_v5 = vadd.f32 %v12671_v52, %v11616_v9  ;;  %v5911_v52 = vld [vmem:[#allocation13 + $0xad0] sm:$0xff] }
 0x8cc   :  { %v4565_v53 = vadd.f32 %v4564_v13, %v4420_v45  ;;  %v5745_v45 = vld [vmem:[#allocation13 + $0x838] sm:$0xff] }
 0x8cd   :  { %5847 = vmatpush.msra.mxu1 %v5759_v27  ;;  %v4426_v27 = vadd.f32 %v12673_v60, %v4281_v5  ;;  %v12676_v5 = vld [vmem:[#allocation100_spill] sm:$0xff] }
 0x8ce   :  { %v5094_v2 = vmax.f32 %v4565_v53, 0.0 }
 0x8cf   :  { %5848 = vmatpush.msra.mxu1 %v5757_v24  ;;  %v5743_v24 = vld [vmem:[#allocation13 + $0x828] sm:$0xff] }
 0x8d0   :  { %v11885_v56 = vmax.f32 %v5092_v10, %v5094_v2  ;;  %4775 = vmatmul.f32.gmra.mxu2 %v9917_v12  ;;  %4914 = vmatmul.f32.gmra.mxu3 %v12667_v0  ;;  %v4423_v0 = vadd.f32 %v12672_v58, %v4278_v46  ;;  %v4284_v58 = vadd.f32 %v12676_v5, %v11616_v9 }
 0x8d1   :  { %5849 = vmatpush.msra.mxu1 %v5755_v29  ;;  %v5741_v29 = vld [vmem:[#allocation13 + $0x818] sm:$0xff] }
 0x8d2   :  { %12669 = vst [vmem:[#allocation51_spill] sm:$0xff] %v11885_v56 }
 0x8d3   :  { %5850 = vmatpush.msra.mxu1 %v5753_v57  ;;  %v4567_v15 = vpop.f32.mrf.mxu2  ;;  %v11889_v42 = vpop.f32.mrf.mxu3 }
 0x8d4   :  { %v4568_v13 = vadd.f32 %v4567_v15, %v4423_v0  ;;  %v5913_v15 = vld [vmem:[#allocation13 + $0xae0] sm:$0xff] }
 0x8d5   :  { %5851 = vmatpush.msra.mxu1 %v5751_v38  ;;  %v5909_v0 = vld [vmem:[#allocation13 + $0xac0] sm:$0xff] }
 0x8d6   :  { %v5096_v57 = vmax.f32 %v4568_v13, 0.0  ;;  %v5907_v13 = vld [vmem:[#allocation13 + $0xab0] sm:$0xff] }
 0x8d7   :  { %5852 = vmatpush.msra.mxu1 %v5749_v7  ;;  %v5915_v7 = vld [vmem:[#allocation13 + $0xaf0] sm:$0xff] }
 0x8d8   :  { %4778 = vmatmul.f32.gmra.mxu2 %v9978_v11  ;;  %4917 = vmatmul.f32.gmra.mxu3 %v9917_v12  ;;  %v12675_v12 = vld [vmem:[#allocation30_spill] sm:$0xff] }
 0x8d9   :  { %5853 = vmatpush.msra.mxu1 %v5747_v16 }
 0x8db   :  { %5854 = vmatpush.msra.mxu1 %v5745_v45  ;;  %v4570_v53 = vpop.f32.mrf.mxu2  ;;  %v11899_v10 = vpop.f32.mrf.mxu3  ;;  %v12677_v45 = vld [vmem:[#allocation102_spill] sm:$0xff] }
 0x8dc   :  { %v4571_v2 = vadd.f32 %v4570_v53, %v4426_v27  ;;  %v4287_v60 = vadd.f32 %v12677_v45, %v11616_v9  ;;  %v12678_v27 = vld [vmem:[#allocation103_spill] sm:$0xff] }
 0x8dd   :  { %5855 = vmatpush.msra.mxu1 %v5743_v24  ;;  %v12679_v24 = vld [vmem:[#allocation31_spill] sm:$0xff] }
 0x8de   :  { %v5098_v38 = vmax.f32 %v4571_v2, 0.0  ;;  %v5905_v2 = vld [vmem:[#allocation13 + $0xaa0] sm:$0xff] }
 0x8df   :  { %5856 = vmatpush.msra.mxu1 %v5741_v29 }
 0x8e0   :  { %v11901_v34 = vmax.f32 %v5096_v57, %v5098_v38  ;;  %4781 = vmatmul.f32.gmra.mxu2 %v12675_v12  ;;  %4920 = vmatmul.f32.gmra.mxu3 %v9978_v11  ;;  %v4429_v11 = vadd.f32 %v12678_v27, %v4284_v58  ;;  %v5903_v38 = vld [vmem:[#allocation13 + $0xa90] sm:$0xff] }
 0x8e1   :  { %5857 = vmatpush.msra.mxu1 %v5739_v54  ;;  %v5899_v58 = vld [vmem:[#allocation13 + $0xa70] sm:$0xff] }
 0x8e2   :  { %12674 = vst [vmem:[#allocation69_spill] sm:$0xff] %v11901_v34  ;;  %5858 = vmatmul.f32.vlgmr.msra.gmra.mxu1 %v11685_v6  ;;  %v12680_v6 = vld [vmem:[#allocation105_spill] sm:$0xff]  ;;  %v5895_v27 = vld [vmem:[#allocation13 + $0xa50] sm:$0xff] }
 0x8e3   :  { %5949 = vmatpush.msrb.mxu1 %v5915_v7  ;;  %v4573_v46 = vpop.f32.mrf.mxu2  ;;  %v11906_v16 = vpop.f32.mrf.mxu3  ;;  %v4432_v53 = vadd.f32 %v12680_v6, %v4287_v60  ;;  %v5893_v6 = vld [vmem:[#allocation13 + $0xa40] sm:$0xff]  ;;  %v6062_v34 = vld [vmem:[#allocation13 + $0xcf0] sm:$0xff] }
 0x8e4   :  { %v4574_v29 = vadd.f32 %v4573_v46, %v4429_v11  ;;  %v5897_v46 = vld [vmem:[#allocation13 + $0xa60] sm:$0xff]  ;;  %v12683_v11 = vld [vmem:[#allocation104_spill] sm:$0xff] }
 0x8e5   :  { %5950 = vmatpush.msrb.mxu1 %v5913_v15 }
 0x8e6   :  { %v5100_v15 = vmax.f32 %v4574_v29, 0.0 }
 0x8e7   :  { %5951 = vmatpush.msrb.mxu1 %v5911_v52  ;;  %v5901_v52 = vld [vmem:[#allocation13 + $0xa80] sm:$0xff] }
 0x8e8   :  { %4784 = vmatmul.f32.gmra.mxu2 %v12679_v24  ;;  %4923 = vmatmul.f32.gmra.mxu3 %v12675_v12  ;;  %v12682_v12 = vld [vmem:[#allocation32_spill] sm:$0xff] }
 0x8e9   :  { %5952 = vmatpush.msrb.mxu1 %v5909_v0 }
 0x8eb   :  { %5953 = vmatpush.msrb.mxu1 %v5907_v13  ;;  %v4576_v57 = vpop.f32.mrf.mxu2  ;;  %v11916_v54 = vpop.f32.mrf.mxu3  ;;  %v4290_v13 = vadd.f32 %v12683_v11, %v11616_v9 }
 0x8ec   :  { %v4577_v7 = vadd.f32 %v4576_v57, %v4432_v53  ;;  %v12684_v53 = vld [vmem:[#allocation106_spill] sm:$0xff] }
 0x8ed   :  { %5954 = vmatpush.msrb.mxu1 %v5905_v2  ;;  %v4293_v29 = vadd.f32 %v12684_v53, %v11616_v9  ;;  %v12685_v2 = vld [vmem:[#allocation107_spill] sm:$0xff] }
 0x8ee   :  { %v5102_v5 = vmax.f32 %v4577_v7, 0.0  ;;  %v4435_v57 = vadd.f32 %v12685_v2, %v4290_v13  ;;  %v12687_v7 = vld [vmem:[#allocation109_spill] sm:$0xff] }
 0x8ef   :  { %5955 = vmatpush.msrb.mxu1 %v5903_v38  ;;  %v5891_v38 = vld [vmem:[#allocation13 + $0xa30] sm:$0xff]  ;;  %v5267_v2 = vld [vmem:[#allocation13 + $0x380] sm:$0xff] }
 0x8f0   :  { %v11918_v45 = vmax.f32 %v5100_v15, %v5102_v5  ;;  %4787 = vmatmul.f32.gmra.mxu2 %v12682_v12  ;;  %4926 = vmatmul.f32.gmra.mxu3 %v12679_v24  ;;  %v12686_v24 = vld [vmem:[#allocation33_spill] sm:$0xff]  ;;  %v4438_v15 = vadd.f32 %v12687_v7, %v4293_v29  ;;  %v12692_v7 = vld [vmem:[#allocation108_spill] sm:$0xff] }
 0x8f1   :  { %5956 = vmatpush.msrb.mxu1 %v5901_v52  ;;  %v5889_v5 = vld [vmem:[#allocation13 + $0xa20] sm:$0xff]  ;;  %5310 = vmatpush.msrb.mxu0 %v5267_v2 }
 0x8f2   :  { %12681 = vst [vmem:[#allocation55_spill] sm:$0xff] %v11918_v45  ;;  %v5885_v45 = vld [vmem:[#allocation13 + $0xa00] sm:$0xff] }
 0x8f3   :  { %5957 = vmatpush.msrb.mxu1 %v5899_v58  ;;  %v4579_v0 = vpop.f32.mrf.mxu2  ;;  %v11922_v60 = vpop.f32.mrf.mxu3 }
 0x8f4   :  { %v4580_v52 = vadd.f32 %v4579_v0, %v4435_v57  ;;  %v6060_v0 = vld [vmem:[#allocation13 + $0xce0] sm:$0xff]  ;;  %v6058_v57 = vld [vmem:[#allocation13 + $0xcd0] sm:$0xff] }
 0x8f5   :  { %5958 = vmatpush.msrb.mxu1 %v5897_v46 }
 0x8f6   :  { %v5104_v53 = vmax.f32 %v4580_v52, 0.0  ;;  %v6056_v52 = vld [vmem:[#allocation13 + $0xcc0] sm:$0xff] }
 0x8f7   :  { %5959 = vmatpush.msrb.mxu1 %v5895_v27  ;;  %v5887_v27 = vld [vmem:[#allocation13 + $0xa10] sm:$0xff] }
 0x8f8   :  { %4790 = vmatmul.f32.gmra.mxu2 %v12686_v24  ;;  %4929 = vmatmul.f32.gmra.mxu3 %v12682_v12  ;;  %v12690_v12 = vld [vmem:[#allocation34_spill] sm:$0xff] }
 0x8f9   :  { %5960 = vmatpush.msrb.mxu1 %v5893_v6 }
 0x8fb   :  { %5961 = vmatpush.msrb.mxu1 %v5891_v38  ;;  %v4582_v58 = vpop.f32.mrf.mxu2  ;;  %v11932_v46 = vpop.f32.mrf.mxu3  ;;  %v5265_v38 = vld [vmem:[#allocation13 + $0x370] sm:$0xff] }
 0x8fc   :  { %12688 = vst [vmem:[#allocation72_spill] sm:$0xff] %v11932_v46  ;;  %v4583_v11 = vadd.f32 %v4582_v58, %v4438_v15  ;;  %v4296_v15 = vadd.f32 %v12692_v7, %v11616_v9  ;;  %5311 = vmatpush.msrb.mxu0 %v5265_v38  ;;  %v12694_v58 = vld [vmem:[#allocation111_spill] sm:$0xff]  ;;  %v6052_v7 = vld [vmem:[#allocation13 + $0xca0] sm:$0xff] }
 0x8fd   :  { %5962 = vmatpush.msrb.mxu1 %v5889_v5  ;;  %v5263_v5 = vld [vmem:[#allocation13 + $0x360] sm:$0xff] }
 0x8fe   :  { %v5106_v13 = vmax.f32 %v4583_v11, 0.0  ;;  %v6054_v11 = vld [vmem:[#allocation13 + $0xcb0] sm:$0xff]  ;;  %5312 = vmatpush.msrb.mxu0 %v5263_v5  ;;  %v5255_v5 = vld [vmem:[#allocation13 + $0x320] sm:$0xff] }
 0x8ff   :  { %5963 = vmatpush.msrb.mxu1 %v5887_v27  ;;  %v4441_v27 = vadd.f32 %v12694_v58, %v4296_v15  ;;  %v5257_v58 = vld [vmem:[#allocation13 + $0x330] sm:$0xff] }
 0x900   :  { %v11934_v56 = vmax.f32 %v5104_v53, %v5106_v13  ;;  %4793 = vmatmul.f32.gmra.mxu2 %v12690_v12  ;;  %4932 = vmatmul.f32.gmra.mxu3 %v12686_v24  ;;  %v5261_v53 = vld [vmem:[#allocation13 + $0x350] sm:$0xff] }
 0x901   :  { %5964 = vmatpush.msrb.mxu1 %v5885_v45  ;;  %v12693_v45 = vld [vmem:[#allocation110_spill] sm:$0xff]  ;;  %v12696_v13 = vld [vmem:[#allocation112_spill] sm:$0xff]  ;;  %5313 = vmatpush.msrb.mxu0 %v5261_v53 }
 0x902   :  { %12689 = vst [vmem:[#allocation73_spill] sm:$0xff] %v11934_v56  ;;  %5965 = vmatmul.f32.vlgmr.msrb.gmra.mxu1 %v11701_v43  ;;  %v4299_v24 = vadd.f32 %v12693_v45, %v11616_v9  ;;  %v5259_v9 = vld [vmem:[#allocation13 + $0x340] sm:$0xff]  ;;  %v6050_v45 = vld [vmem:[#allocation13 + $0xc90] sm:$0xff] }
 0x903   :  { %6096 = vmatpush.msra.mxu1 %v6062_v34  ;;  %v4585_v6 = vpop.f32.mrf.mxu2  ;;  %v11939_v29 = vpop.f32.mrf.mxu3  ;;  %v12695_v34 = vld [vmem:[#allocation35_spill] sm:$0xff]  ;;  %5314 = vmatpush.msrb.mxu0 %v5259_v9  ;;  %v6044_v53 = vld [vmem:[#allocation13 + $0xc60] sm:$0xff] }
 0x904   :  { %12691 = vst [vmem:[#allocation58_spill] sm:$0xff] %v11939_v29  ;;  %v4444_v2 = vadd.f32 %v12696_v13, %v4299_v24  ;;  %v6046_v24 = vld [vmem:[#allocation13 + $0xc70] sm:$0xff] }
 0x905   :  { %6097 = vmatpush.msra.mxu1 %v6060_v0  ;;  %v4586_v0 = vadd.f32 %v4585_v6, %v4441_v27  ;;  %5315 = vmatpush.msrb.mxu0 %v5257_v58  ;;  %v12699_v27 = vld [vmem:[#allocation36_spill] sm:$0xff]  ;;  %v12701_v58 = vld [vmem:[#allocation37_spill] sm:$0xff] }
 0x907   :  { %6098 = vmatpush.msra.mxu1 %v6058_v57  ;;  %v5108_v56 = vmax.f32 %v4586_v0, 0.0  ;;  %5316 = vmatpush.msrb.mxu0 %v5255_v5  ;;  %v5251_v0 = vld [vmem:[#allocation13 + $0x300] sm:$0xff] }
 0x908   :  { %4796 = vmatmul.f32.gmra.mxu2 %v12695_v34  ;;  %4935 = vmatmul.f32.gmra.mxu3 %v12690_v12  ;;  %v6048_v12 = vld [vmem:[#allocation13 + $0xc80] sm:$0xff] }
 0x909   :  { %6099 = vmatpush.msra.mxu1 %v6056_v52 }
 0x90b   :  { %6100 = vmatpush.msra.mxu1 %v6054_v11  ;;  %v4588_v57 = vpop.f32.mrf.mxu2  ;;  %v11949_v38 = vpop.f32.mrf.mxu3  ;;  %v5253_v11 = vld [vmem:[#allocation13 + $0x310] sm:$0xff] }
 0x90c   :  { %12697 = vst [vmem:[#allocation76_spill] sm:$0xff] %v11949_v38  ;;  %v4589_v15 = vadd.f32 %v4588_v57, %v4444_v2  ;;  %5317 = vmatpush.msrb.mxu0 %v5253_v11  ;;  %v5282_v57 = vld [vmem:[#allocation13 + $0x3f8] sm:$0xff] }
 0x90d   :  { %6101 = vmatpush.msra.mxu1 %v6052_v7  ;;  %v6042_v7 = vld [vmem:[#allocation13 + $0xc50] sm:$0xff] }
 0x90e   :  { %v5110_v52 = vmax.f32 %v4589_v15, 0.0  ;;  %5318 = vmatpush.msrb.mxu0 %v5251_v0  ;;  %v6038_v15 = vld [vmem:[#allocation13 + $0xc30] sm:$0xff] }
 0x90f   :  { %6102 = vmatpush.msra.mxu1 %v6050_v45  ;;  %v6040_v45 = vld [vmem:[#allocation13 + $0xc40] sm:$0xff]  ;;  %v6034_v0 = vld [vmem:[#allocation13 + $0xc10] sm:$0xff] }
 0x910   :  { %v11951_v6 = vmax.f32 %v5108_v56, %v5110_v52  ;;  %4799 = vmatmul.f32.gmra.mxu2 %v12699_v27  ;;  %4938 = vmatmul.f32.gmra.mxu3 %v12695_v34  ;;  %v8659_v56 = vld [vmem:[#allocation11] sm:$0x3]  ;;  %v5280_v34 = vld [vmem:[#allocation13 + $0x3e8] sm:$0xff] }
 0x911   :  { %6103 = vmatpush.msra.mxu1 %v6048_v12  ;;  %v11957_v9 = vperm.slane %v8659_v56, 1  ;;  %5343 = vmatpush.msra.mxu0 %v5282_v57  ;;  %v5278_v12 = vld [vmem:[#allocation13 + $0x3d8] sm:$0xff]  ;;  %v6032_v56 = vld [vmem:[#allocation13 + $0xc00] sm:$0xff] }
 0x912   :  { %12698 = vst [vmem:[#allocation77_spill] sm:$0xff] %v11951_v6  ;;  %v12702_v52 = vld [vmem:[#allocation113_spill] sm:$0xff]  ;;  %v5256_v6 = vld [vmem:[#allocation13 + $0x328] sm:$0xff] }
 0x913   :  { %6104 = vmatpush.msra.mxu1 %v6046_v24  ;;  %v4591_v13 = vpop.f32.mrf.mxu2  ;;  %v11955_v2 = vpop.f32.mrf.mxu3  ;;  %5344 = vmatpush.msra.mxu0 %v5280_v34  ;;  %v4611_v5 = vadd.f32 %v12702_v52, %v11957_v9  ;;  %v6036_v24 = vld [vmem:[#allocation13 + $0xc20] sm:$0xff]  ;;  %v5274_v57 = vld [vmem:[#allocation13 + $0x3b8] sm:$0xff] }
 0x914   :  { %12700 = vst [vmem:[#allocation79_spill] sm:$0xff] %v11955_v2  ;;  %v5276_v13 = vld [vmem:[#allocation13 + $0x3c8] sm:$0xff]  ;;  %v6191_v2 = vld [vmem:[#allocation13 + $0xe60] sm:$0xff] }
 0x915   :  { %6105 = vmatpush.msra.mxu1 %v6044_v53  ;;  %5345 = vmatpush.msra.mxu0 %v5278_v12  ;;  %v12704_v34 = vld [vmem:[#allocation38_spill] sm:$0xff] }
 0x916   :  { %v6207_v12 = vld [vmem:[#allocation13 + $0xee0] sm:$0xff] }
 0x917   :  { %6106 = vmatpush.msra.mxu1 %v6042_v7  ;;  %5346 = vmatpush.msra.mxu0 %v5276_v13  ;;  %v5266_v13 = vld [vmem:[#allocation13 + $0x378] sm:$0xff] }
 0x918   :  { %4802 = vmatmul.f32.gmra.mxu2 %v12701_v58  ;;  %4941 = vmatmul.f32.gmra.mxu3 %v12699_v27  ;;  %v5272_v27 = vld [vmem:[#allocation13 + $0x3a8] sm:$0xff] }
 0x919   :  { %6107 = vmatpush.msra.mxu1 %v6040_v45  ;;  %5347 = vmatpush.msra.mxu0 %v5274_v57  ;;  %v6209_v45 = vld [vmem:[#allocation13 + $0xef0] sm:$0xff]  ;;  %v5264_v57 = vld [vmem:[#allocation13 + $0x368] sm:$0xff] }
 0x91b   :  { %6108 = vmatpush.msra.mxu1 %v6038_v15  ;;  %v11963_v11 = vpop.f32.mrf.mxu3  ;;  %v4755_v53 = vpop.f32.mrf.mxu2  ;;  %5348 = vmatpush.msra.mxu0 %v5272_v27  ;;  %v5270_v15 = vld [vmem:[#allocation13 + $0x398] sm:$0xff] }
 0x91c   :  { %12703 = vst [vmem:[#allocation74_spill] sm:$0xff] %v11963_v11  ;;  %v4756_v7 = vadd.f32 %v4755_v53, %v4611_v5  ;;  %v6205_v53 = vld [vmem:[#allocation13 + $0xed0] sm:$0xff]  ;;  %v5262_v27 = vld [vmem:[#allocation13 + $0x358] sm:$0xff]  ;;  %v12706_v11 = vld [vmem:[#allocation114_spill] sm:$0xff] }
 0x91d   :  { %6109 = vmatpush.msra.mxu1 %v6036_v24  ;;  %5349 = vmatpush.msra.mxu0 %v5270_v15  ;;  %v5268_v24 = vld [vmem:[#allocation13 + $0x388] sm:$0xff] }
 0x91f   :  { %6110 = vmatpush.msra.mxu1 %v6034_v0  ;;  %5350 = vmatpush.msra.mxu0 %v5268_v24  ;;  %v6203_v0 = vld [vmem:[#allocation13 + $0xec0] sm:$0xff]  ;;  %v6197_v24 = vld [vmem:[#allocation13 + $0xe90] sm:$0xff] }
 0x920   :  { %4805 = vmatmul.f32.gmra.mxu2 %v12704_v34  ;;  %4944 = vmatmul.f32.gmra.mxu3 %v12701_v58  ;;  %v6201_v58 = vld [vmem:[#allocation13 + $0xeb0] sm:$0xff] }
 0x921   :  { %6111 = vmatpush.msra.mxu1 %v6032_v56  ;;  %5351 = vmatpush.msra.mxu0 %v5266_v13  ;;  %v12705_v56 = vld [vmem:[#allocation39_spill] sm:$0xff]  ;;  %v6195_v13 = vld [vmem:[#allocation13 + $0xe80] sm:$0xff] }
 0x922   :  { %6112 = vmatmul.f32.vlgmr.msra.gmra.mxu1 %v11718_v32 }
 0x923   :  { %6243 = vmatpush.msrb.mxu1 %v6209_v45  ;;  %v4736_v52 = vpop.f32.mrf.mxu3  ;;  %v4758_v5 = vpop.f32.mrf.mxu2  ;;  %5352 = vmatpush.msra.mxu0 %v5264_v57  ;;  %v6199_v45 = vld [vmem:[#allocation13 + $0xea0] sm:$0xff]  ;;  %v12707_v57 = vld [vmem:[#allocation40_spill] sm:$0xff] }
 0x925   :  { %6244 = vmatpush.msrb.mxu1 %v6207_v12  ;;  %5353 = vmatpush.msra.mxu0 %v5262_v27  ;;  %v5260_v12 = vld [vmem:[#allocation13 + $0x348] sm:$0xff] }
 0x927   :  { %6245 = vmatpush.msrb.mxu1 %v6205_v53  ;;  %5354 = vmatpush.msra.mxu0 %v5260_v12  ;;  %v5258_v53 = vld [vmem:[#allocation13 + $0x338] sm:$0xff] }
 0x928   :  { %4808 = vmatmul.f32.gmra.mxu2 %v12705_v56  ;;  %4947 = vmatmul.f32.gmra.mxu3 %v12704_v34  ;;  %v4614_v34 = vadd.f32 %v12706_v11, %v11957_v9 }
 0x929   :  { %6246 = vmatpush.msrb.mxu1 %v6203_v0  ;;  %5355 = vmatpush.msra.mxu0 %v5258_v53  ;;  %v6193_v0 = vld [vmem:[#allocation13 + $0xe70] sm:$0xff] }
 0x92a   :  { %v4759_v27 = vadd.f32 %v4758_v5, %v4614_v34  ;;  %v6189_v53 = vld [vmem:[#allocation13 + $0xe50] sm:$0xff] }
 0x92b   :  { %6247 = vmatpush.msrb.mxu1 %v6201_v58  ;;  %v4761_v15 = vpop.f32.mrf.mxu2  ;;  %v4900_v52 = vpop.f32.mrf.mxu3  ;;  %5356 = vmatpush.msra.mxu0 %v5256_v6  ;;  %v5254_v58 = vld [vmem:[#allocation13 + $0x318] sm:$0xff]  ;;  %v6181_v34 = vld [vmem:[#allocation13 + $0xe10] sm:$0xff] }
 0x92c   :  { %v12708_v6 = vld [vmem:[#allocation41_spill] sm:$0xff] }
 0x92d   :  { %6248 = vmatpush.msrb.mxu1 %v6199_v45  ;;  %v4901_v45 = vadd.f32 %v4900_v52, %v4756_v7  ;;  %5357 = vmatpush.msra.mxu0 %v5254_v58  ;;  %v12709_v7 = vld [vmem:[#allocation54_spill] sm:$0xff] }
 0x92e   :  { %v4623_v5 = vadd.f32 %v12709_v7, %v11957_v9  ;;  %v6183_v52 = vld [vmem:[#allocation13 + $0xe20] sm:$0xff] }
 0x92f   :  { %6249 = vmatpush.msrb.mxu1 %v6197_v24  ;;  %v5252_v24 = vld [vmem:[#allocation13 + $0x308] sm:$0xff]  ;;  %v5029_v11 = vmax.f32 %v4901_v45, 0.0 }
 0x930   :  { %4811 = vmatmul.f32.gmra.mxu2 %v12707_v57  ;;  %4950 = vmatmul.f32.gmra.mxu3 %v12705_v56  ;;  %v6185_v56 = vld [vmem:[#allocation13 + $0xe30] sm:$0xff] }
 0x931   :  { %6250 = vmatpush.msrb.mxu1 %v6195_v13  ;;  %5358 = vmatpush.msra.mxu0 %v5252_v24  ;;  %v4626_v24 = vadd.f32 %v11664_v44, %v11957_v9  ;;  %v5216_v44 = vld [vmem:[#allocation13 + $0x1f0] sm:$0xff] }
 0x933   :  { %6251 = vmatpush.msrb.mxu1 %v6193_v0  ;;  %v4764_v12 = vpop.f32.mrf.mxu2  ;;  %v4903_v38 = vpop.f32.mrf.mxu3 }
 0x934   :  { %v4904_v29 = vadd.f32 %v4903_v38, %v4759_v27  ;;  %v12711_v27 = vld [vmem:[#allocation53_spill] sm:$0xff] }
 0x935   :  { %6252 = vmatpush.msrb.mxu1 %v6191_v2  ;;  %v4620_v45 = vadd.f32 %v12711_v27, %v11957_v9  ;;  %v6346_v27 = vld [vmem:[#allocation13 + $0x10a0] sm:$0xff] }
 0x936   :  { %v5031_v46 = vmax.f32 %v4904_v29, 0.0  ;;  %v12710_v29 = vld [vmem:[#allocation115_spill] sm:$0xff] }
 0x937   :  { %6253 = vmatpush.msrb.mxu1 %v6189_v53  ;;  %v4617_v58 = vadd.f32 %v12710_v29, %v11957_v9  ;;  %v4765_v53 = vadd.f32 %v4764_v12, %v4620_v45  ;;  %v6350_v29 = vld [vmem:[#allocation13 + $0x10c0] sm:$0xff] }
 0x938   :  { %v11974_v13 = vmax.f32 %v5029_v11, %v5031_v46  ;;  %4814 = vmatmul.f32.gmra.mxu2 %v12708_v6  ;;  %4953 = vmatmul.f32.gmra.mxu3 %v12707_v57  ;;  %v6179_v46 = vld [vmem:[#allocation13 + $0xe00] sm:$0xff] }
 0x939   :  { %6254 = vmatpush.msrb.mxu1 %v6187_v35  ;;  %v4762_v57 = vadd.f32 %v4761_v15, %v4617_v58  ;;  %v6356_v35 = vld [vmem:[#allocation13 + $0x10f0] sm:$0xff]  ;;  %v6354_v11 = vld [vmem:[#allocation13 + $0x10e0] sm:$0xff] }
 0x93a   :  { %v12712_v12 = vld [vmem:[#allocation42_spill] sm:$0xff] }
 0x93b   :  { %6255 = vmatpush.msrb.mxu1 %v6185_v56  ;;  %v4767_v38 = vpop.f32.mrf.mxu2  ;;  %v4906_v2 = vpop.f32.mrf.mxu3  ;;  %v5214_v45 = vld [vmem:[#allocation13 + $0x1e0] sm:$0xff] }
 0x93c   :  { %v4768_v0 = vadd.f32 %v4767_v38, %v4623_v5  ;;  %v4907_v56 = vadd.f32 %v4906_v2, %v4762_v57  ;;  %v4629_v2 = vadd.f32 %v12712_v12, %v11957_v9 }
 0x93d   :  { %6256 = vmatpush.msrb.mxu1 %v6183_v52  ;;  %v6352_v52 = vld [vmem:[#allocation13 + $0x10d0] sm:$0xff] }
 0x93f   :  { %6257 = vmatpush.msrb.mxu1 %v6181_v34  ;;  %v5033_v34 = vmax.f32 %v4907_v56, 0.0  ;;  %v5212_v56 = vld [vmem:[#allocation13 + $0x1d0] sm:$0xff] }
 0x940   :  { %4817 = vmatmul.f32.gmra.mxu2 %v10603_v3  ;;  %4956 = vmatmul.f32.gmra.mxu3 %v12708_v6  ;;  %v6348_v6 = vld [vmem:[#allocation13 + $0x10b0] sm:$0xff] }
 0x941   :  { %6258 = vmatpush.msrb.mxu1 %v6179_v46 }
 0x942   :  { %6259 = vmatmul.f32.vlgmr.msrb.gmra.mxu1 %v11734_v18 }
 0x943   :  { %6390 = vmatpush.msra.mxu1 %v6356_v35  ;;  %v4770_v7 = vpop.f32.mrf.mxu2  ;;  %v4909_v5 = vpop.f32.mrf.mxu3 }
 0x944   :  { %v4771_v38 = vadd.f32 %v4770_v7, %v4626_v24  ;;  %v4910_v15 = vadd.f32 %v4909_v5, %v4765_v53  ;;  %v6344_v24 = vld [vmem:[#allocation13 + $0x1090] sm:$0xff]  ;;  %v6342_v7 = vld [vmem:[#allocation13 + $0x1080] sm:$0xff] }
 0x945   :  { %6391 = vmatpush.msra.mxu1 %v6354_v11  ;;  %v6340_v5 = vld [vmem:[#allocation13 + $0x1070] sm:$0xff] }
 0x946   :  { %v5035_v58 = vmax.f32 %v4910_v15, 0.0  ;;  %v12713_v15 = vld [vmem:[#allocation57_spill] sm:$0xff] }
 0x947   :  { %6392 = vmatpush.msra.mxu1 %v6352_v52  ;;  %v5208_v52 = vld [vmem:[#allocation13 + $0x1b0] sm:$0xff] }
 0x948   :  { %v5115_v46 = vmax.f32 %v5033_v34, %v5035_v58  ;;  %4820 = vmatmul.f32.gmra.mxu2 %v12596_v22  ;;  %4959 = vmatmul.f32.gmra.mxu3 %v10603_v3  ;;  %v5210_v3 = vld [vmem:[#allocation13 + $0x1c0] sm:$0xff]  ;;  %v4632_v34 = vadd.f32 %v12713_v15, %v11957_v9 }
 0x949   :  { %6393 = vmatpush.msra.mxu1 %v6350_v29  ;;  %v6338_v29 = vld [vmem:[#allocation13 + $0x1060] sm:$0xff] }
 0x94a   :  { %5319 = vmatmul.f32.vlgmr.msrb.gmra.mxu0 %v5115_v46 }
 0x94b   :  { %6394 = vmatpush.msra.mxu1 %v6348_v6  ;;  %5383 = vmatpush.msrb.mxu0 %v5216_v44  ;;  %v4773_v57 = vpop.f32.mrf.mxu2  ;;  %v4912_v35 = vpop.f32.mrf.mxu3  ;;  %v6336_v44 = vld [vmem:[#allocation13 + $0x1050] sm:$0xff] }
 0x94c   :  { %v4774_v53 = vadd.f32 %v4773_v57, %v4629_v2  ;;  %v4913_v11 = vadd.f32 %v4912_v35, %v4768_v0  ;;  %v5206_v0 = vld [vmem:[#allocation13 + $0x1a0] sm:$0xff] }
 0x94d   :  { %6395 = vmatpush.msra.mxu1 %v6346_v27  ;;  %5384 = vmatpush.msrb.mxu0 %v5214_v45  ;;  %v5204_v27 = vld [vmem:[#allocation13 + $0x190] sm:$0xff]  ;;  %v6334_v45 = vld [vmem:[#allocation13 + $0x1040] sm:$0xff] }
 0x94e   :  { %v5202_v35 = vld [vmem:[#allocation13 + $0x180] sm:$0xff] }
 0x94f   :  { %6396 = vmatpush.msra.mxu1 %v6344_v24  ;;  %5385 = vmatpush.msrb.mxu0 %v5212_v56  ;;  %v6332_v24 = vld [vmem:[#allocation13 + $0x1030] sm:$0xff] }
 0x950   :  { %4823 = vmatmul.f32.gmra.mxu2 %v12599_v1  ;;  %4962 = vmatmul.f32.gmra.mxu3 %v12596_v22  ;;  %v5037_v22 = vmax.f32 %v4913_v11, 0.0  ;;  %v5198_v11 = vld [vmem:[#allocation13 + $0x160] sm:$0xff] }
 0x951   :  { %6397 = vmatpush.msra.mxu1 %v6342_v7  ;;  %5386 = vmatpush.msrb.mxu0 %v5210_v3  ;;  %v5200_v7 = vld [vmem:[#allocation13 + $0x170] sm:$0xff] }
 0x952   :  { %5359 = vmatmul.f32.vlgmr.msra.gmra.mxu0 %v5115_v46  ;;  %v12714_v46 = vld [vmem:[#allocation45_spill] sm:$0xff] }
 0x953   :  { %6398 = vmatpush.msra.mxu1 %v6340_v5  ;;  %5387 = vmatpush.msrb.mxu0 %v5208_v52  ;;  %v4776_v58 = vpop.f32.mrf.mxu2  ;;  %v4915_v6 = vpop.f32.mrf.mxu3  ;;  %v6330_v5 = vld [vmem:[#allocation13 + $0x1020] sm:$0xff] }
 0x954   :  { %v4777_v12 = vadd.f32 %v4776_v58, %v4632_v34  ;;  %v4916_v2 = vadd.f32 %v4915_v6, %v4771_v38  ;;  %v12715_v38 = vld [vmem:[#allocation43_spill] sm:$0xff]  ;;  %v6326_v6 = vld [vmem:[#allocation13 + $0x1000] sm:$0xff] }
 0x955   :  { %6399 = vmatpush.msra.mxu1 %v6338_v29  ;;  %5388 = vmatpush.msrb.mxu0 %v5206_v0  ;;  %v4635_v3 = vadd.f32 %v12715_v38, %v11957_v9  ;;  %v6328_v34 = vld [vmem:[#allocation13 + $0x1010] sm:$0xff] }
 0x956   :  { %v5039_v57 = vmax.f32 %v4916_v2, 0.0  ;;  %v5196_v58 = vld [vmem:[#allocation13 + $0x150] sm:$0xff] }
 0x957   :  { %6400 = vmatpush.msra.mxu1 %v6336_v44  ;;  %5389 = vmatpush.msrb.mxu0 %v5204_v27  ;;  %v6503_v44 = vld [vmem:[#allocation13 + $0x12f0] sm:$0xff]  ;;  %v4638_v27 = vadd.f32 %v11699_v17, %v11957_v9 }
 0x958   :  { %v11997_v56 = vmax.f32 %v5037_v22, %v5039_v57  ;;  %4826 = vmatmul.f32.gmra.mxu2 %v12714_v46  ;;  %4965 = vmatmul.f32.gmra.mxu3 %v12599_v1  ;;  %v5194_v1 = vld [vmem:[#allocation13 + $0x140] sm:$0xff]  ;;  %v5192_v2 = vld [vmem:[#allocation13 + $0x130] sm:$0xff] }
 0x959   :  { %6401 = vmatpush.msra.mxu1 %v6334_v45  ;;  %5390 = vmatpush.msrb.mxu0 %v5202_v35  ;;  %v5190_v22 = vld [vmem:[#allocation13 + $0x120] sm:$0xff]  ;;  %v6499_v35 = vld [vmem:[#allocation13 + $0x12d0] sm:$0xff] }
 0x95a   :  { %v5188_v38 = vld [vmem:[#allocation13 + $0x110] sm:$0xff] }
 0x95b   :  { %6402 = vmatpush.msra.mxu1 %v6332_v24  ;;  %5391 = vmatpush.msrb.mxu0 %v5200_v7  ;;  %v4779_v52 = vpop.f32.mrf.mxu2  ;;  %v4918_v15 = vpop.f32.mrf.mxu3  ;;  %v6495_v17 = vld [vmem:[#allocation13 + $0x12b0] sm:$0xff] }
 0x95c   :  { %v4780_v29 = vadd.f32 %v4779_v52, %v4635_v3  ;;  %v4919_v0 = vadd.f32 %v4918_v15, %v4774_v53  ;;  %v6501_v53 = vld [vmem:[#allocation13 + $0x12e0] sm:$0xff]  ;;  %v5217_v15 = vld [vmem:[#allocation13 + $0x1f8] sm:$0xff] }
 0x95d   :  { %6403 = vmatpush.msra.mxu1 %v6330_v5  ;;  %5392 = vmatpush.msrb.mxu0 %v5198_v11  ;;  %v6497_v3 = vld [vmem:[#allocation13 + $0x12c0] sm:$0xff] }
 0x95e   :  { %v5186_v11 = vld [vmem:[#allocation13 + $0x100] sm:$0xff] }
 0x95f   :  { %6404 = vmatpush.msra.mxu1 %v6328_v34  ;;  %5393 = vmatpush.msrb.mxu0 %v5196_v58  ;;  %v6493_v58 = vld [vmem:[#allocation13 + $0x12a0] sm:$0xff] }
 0x960   :  { %4829 = vmatmul.f32.gmra.mxu2 %v12610_v50  ;;  %4968 = vmatmul.f32.gmra.mxu3 %v12714_v46  ;;  %v5041_v46 = vmax.f32 %v4919_v0, 0.0  ;;  %v5215_v0 = vld [vmem:[#allocation13 + $0x1e8] sm:$0xff] }
 0x961   :  { %6405 = vmatpush.msra.mxu1 %v6326_v6  ;;  %5394 = vmatpush.msrb.mxu0 %v5194_v1 }
 0x962   :  { %6406 = vmatmul.f32.vlgmr.msra.gmra.mxu1 %v11751_v40 }
 0x963   :  { %6537 = vmatpush.msrb.mxu1 %v6503_v44  ;;  %5395 = vmatpush.msrb.mxu0 %v5192_v2  ;;  %v4782_v45 = vpop.f32.mrf.mxu2  ;;  %v4921_v57 = vpop.f32.mrf.mxu3  ;;  %v6491_v44 = vld [vmem:[#allocation13 + $0x1290] sm:$0xff] }
 0x964   :  { %v4783_v24 = vadd.f32 %v4782_v45, %v4638_v27  ;;  %v4922_v7 = vadd.f32 %v4921_v57, %v4777_v12  ;;  %v12716_v12 = vld [vmem:[#allocation46_spill] sm:$0xff]  ;;  %v6487_v45 = vld [vmem:[#allocation13 + $0x1270] sm:$0xff]  ;;  %v5209_v57 = vld [vmem:[#allocation13 + $0x1b8] sm:$0xff] }
 0x965   :  { %6538 = vmatpush.msrb.mxu1 %v6501_v53  ;;  %5396 = vmatpush.msrb.mxu0 %v5190_v22  ;;  %v4641_v34 = vadd.f32 %v12716_v12, %v11957_v9  ;;  %v5213_v53 = vld [vmem:[#allocation13 + $0x1d8] sm:$0xff]  ;;  %v5211_v22 = vld [vmem:[#allocation13 + $0x1c8] sm:$0xff] }
 0x966   :  { %v5043_v5 = vmax.f32 %v4922_v7, 0.0  ;;  %v6485_v7 = vld [vmem:[#allocation13 + $0x1260] sm:$0xff] }
 0x967   :  { %6539 = vmatpush.msrb.mxu1 %v6499_v35  ;;  %5397 = vmatpush.msrb.mxu0 %v5188_v38  ;;  %v4644_v35 = vadd.f32 %v11716_v31, %v11957_v9 }
 0x968   :  { %v12008_v52 = vmax.f32 %v5041_v46, %v5043_v5  ;;  %4832 = vmatmul.f32.gmra.mxu2 %v12615_v23  ;;  %4971 = vmatmul.f32.gmra.mxu3 %v12610_v50  ;;  %v6489_v50 = vld [vmem:[#allocation13 + $0x1280] sm:$0xff] }
 0x969   :  { %6540 = vmatpush.msrb.mxu1 %v6497_v3  ;;  %5398 = vmatpush.msrb.mxu0 %v5186_v11  ;;  %v6483_v3 = vld [vmem:[#allocation13 + $0x1250] sm:$0xff] }
 0x96a   :  { %5399 = vmatmul.f32.vlgmr.msrb.gmra.mxu0 %v11974_v13 }
 0x96b   :  { %6541 = vmatpush.msrb.mxu1 %v6495_v17  ;;  %5423 = vmatpush.msra.mxu0 %v5217_v15  ;;  %v4785_v6 = vpop.f32.mrf.mxu2  ;;  %v4924_v1 = vpop.f32.mrf.mxu3  ;;  %v5205_v17 = vld [vmem:[#allocation13 + $0x198] sm:$0xff] }
 0x96c   :  { %v4786_v2 = vadd.f32 %v4785_v6, %v4641_v34  ;;  %v4925_v27 = vadd.f32 %v4924_v1, %v4780_v29  ;;  %v5207_v29 = vld [vmem:[#allocation13 + $0x1a8] sm:$0xff]  ;;  %v5201_v6 = vld [vmem:[#allocation13 + $0x178] sm:$0xff] }
 0x96d   :  { %6542 = vmatpush.msrb.mxu1 %v6493_v58  ;;  %5424 = vmatpush.msra.mxu0 %v5215_v0  ;;  %v5203_v34 = vld [vmem:[#allocation13 + $0x188] sm:$0xff]  ;;  %v6479_v58 = vld [vmem:[#allocation13 + $0x1230] sm:$0xff] }
 0x96e   :  { %v5045_v15 = vmax.f32 %v4925_v27, 0.0  ;;  %v12717_v0 = vld [vmem:[#allocation52_spill] sm:$0xff]  ;;  %v5199_v27 = vld [vmem:[#allocation13 + $0x168] sm:$0xff] }
 0x96f   :  { %6543 = vmatpush.msrb.mxu1 %v6491_v44  ;;  %5425 = vmatpush.msra.mxu0 %v5213_v53  ;;  %v6477_v44 = vld [vmem:[#allocation13 + $0x1220] sm:$0xff] }
 0x970   :  { %4835 = vmatmul.f32.gmra.mxu2 %v12617_v28  ;;  %4974 = vmatmul.f32.gmra.mxu3 %v12615_v23  ;;  %v6481_v23 = vld [vmem:[#allocation13 + $0x1240] sm:$0xff] }
 0x971   :  { %6544 = vmatpush.msrb.mxu1 %v6489_v50  ;;  %5426 = vmatpush.msra.mxu0 %v5211_v22  ;;  %v6475_v22 = vld [vmem:[#allocation13 + $0x1210] sm:$0xff] }
 0x973   :  { %6545 = vmatpush.msrb.mxu1 %v6487_v45  ;;  %5427 = vmatpush.msra.mxu0 %v5209_v57  ;;  %v4788_v38 = vpop.f32.mrf.mxu2  ;;  %v4927_v46 = vpop.f32.mrf.mxu3 }
 0x974   :  { %v4789_v5 = vadd.f32 %v4788_v38, %v4644_v35  ;;  %v4928_v11 = vadd.f32 %v4927_v46, %v4783_v24  ;;  %v12718_v24 = vld [vmem:[#allocation44_spill] sm:$0xff]  ;;  %v4650_v46 = vadd.f32 %v11732_v20, %v11957_v9 }
 0x975   :  { %6546 = vmatpush.msrb.mxu1 %v6485_v7  ;;  %5428 = vmatpush.msra.mxu0 %v5207_v29  ;;  %v4647_v1 = vadd.f32 %v12718_v24, %v11957_v9  ;;  %v5197_v35 = vld [vmem:[#allocation13 + $0x158] sm:$0xff]  ;;  %v6473_v7 = vld [vmem:[#allocation13 + $0x1200] sm:$0xff]  ;;  %v6650_v29 = vld [vmem:[#allocation13 + $0x14f0] sm:$0xff] }
 0x976   :  { %v5047_v12 = vmax.f32 %v4928_v11, 0.0  ;;  %v5193_v38 = vld [vmem:[#allocation13 + $0x138] sm:$0xff]  ;;  %v5187_v24 = vld [vmem:[#allocation13 + $0x108] sm:$0xff]  ;;  %v6642_v20 = vld [vmem:[#allocation13 + $0x14b0] sm:$0xff] }
 0x977   :  { %6547 = vmatpush.msrb.mxu1 %v6483_v3  ;;  %5429 = vmatpush.msra.mxu0 %v5205_v17  ;;  %v5191_v3 = vld [vmem:[#allocation13 + $0x128] sm:$0xff] }
 0x978   :  { %v12019_v31 = vmax.f32 %v5045_v15, %v5047_v12  ;;  %4838 = vmatmul.f32.gmra.mxu2 %v12717_v0  ;;  %4977 = vmatmul.f32.gmra.mxu3 %v12617_v28  ;;  %v5195_v28 = vld [vmem:[#allocation13 + $0x148] sm:$0xff]  ;;  %v6646_v15 = vld [vmem:[#allocation13 + $0x14d0] sm:$0xff] }
 0x979   :  { %6548 = vmatpush.msrb.mxu1 %v6481_v23  ;;  %5430 = vmatpush.msra.mxu0 %v5203_v34  ;;  %v5189_v34 = vld [vmem:[#allocation13 + $0x118] sm:$0xff] }
 0x97b   :  { %6549 = vmatpush.msrb.mxu1 %v6479_v58  ;;  %5431 = vmatpush.msra.mxu0 %v5201_v6  ;;  %v4791_v53 = vpop.f32.mrf.mxu2  ;;  %v4930_v50 = vpop.f32.mrf.mxu3 }
 0x97c   :  { %v4792_v45 = vadd.f32 %v4791_v53, %v4647_v1  ;;  %v4931_v57 = vadd.f32 %v4930_v50, %v4786_v2  ;;  %v6648_v2 = vld [vmem:[#allocation13 + $0x14e0] sm:$0xff] }
 0x97d   :  { %6550 = vmatpush.msrb.mxu1 %v6477_v44  ;;  %5432 = vmatpush.msra.mxu0 %v5199_v27  ;;  %v5506_v44 = vld [vmem:[#allocation13 + $0x5f0] sm:$0xff]  ;;  %v6640_v53 = vld [vmem:[#allocation13 + $0x14a0] sm:$0xff] }
 0x97e   :  { %v5049_v58 = vmax.f32 %v4931_v57, 0.0  ;;  %v5504_v50 = vld [vmem:[#allocation13 + $0x5e0] sm:$0xff] }
 0x97f   :  { %6551 = vmatpush.msrb.mxu1 %v6475_v22  ;;  %5433 = vmatpush.msra.mxu0 %v5197_v35  ;;  %v6638_v35 = vld [vmem:[#allocation13 + $0x1490] sm:$0xff] }
 0x980   :  { %4841 = vmatmul.f32.gmra.mxu2 %v12621_v26  ;;  %4980 = vmatmul.f32.gmra.mxu3 %v12717_v0  ;;  %v6644_v0 = vld [vmem:[#allocation13 + $0x14c0] sm:$0xff] }
 0x981   :  { %6552 = vmatpush.msrb.mxu1 %v6473_v7  ;;  %5434 = vmatpush.msra.mxu0 %v5195_v28 }
 0x982   :  { %6553 = vmatmul.f32.vlgmr.msrb.gmra.mxu1 %v11767_v21 }
 0x983   :  { %6684 = vmatpush.msra.mxu1 %v6650_v29  ;;  %5435 = vmatpush.msra.mxu0 %v5193_v38  ;;  %v4794_v11 = vpop.f32.mrf.mxu2  ;;  %v4933_v17 = vpop.f32.mrf.mxu3  ;;  %v5502_v29 = vld [vmem:[#allocation13 + $0x5d0] sm:$0xff]  ;;  %v5500_v38 = vld [vmem:[#allocation13 + $0x5c0] sm:$0xff] }
 0x984   :  { %v4795_v23 = vadd.f32 %v4794_v11, %v4650_v46  ;;  %v4934_v12 = vadd.f32 %v4933_v17, %v4789_v5  ;;  %v12719_v5 = vld [vmem:[#allocation49_spill] sm:$0xff]  ;;  %v6634_v46 = vld [vmem:[#allocation13 + $0x1470] sm:$0xff] }
 0x985   :  { %6685 = vmatpush.msra.mxu1 %v6648_v2  ;;  %5436 = vmatpush.msra.mxu0 %v5191_v3  ;;  %v4653_v27 = vadd.f32 %v12719_v5, %v11957_v9  ;;  %v12720_v2 = vld [vmem:[#allocation61_spill] sm:$0xff]  ;;  %v12721_v3 = vld [vmem:[#allocation56_spill] sm:$0xff] }
 0x986   :  { %v5051_v6 = vmax.f32 %v4934_v12, 0.0  ;;  %v4656_v11 = vadd.f32 %v12721_v3, %v11957_v9  ;;  %v6632_v17 = vld [vmem:[#allocation13 + $0x1460] sm:$0xff]  ;;  %v6626_v5 = vld [vmem:[#allocation13 + $0x1430] sm:$0xff] }
 0x987   :  { %6686 = vmatpush.msra.mxu1 %v6646_v15  ;;  %5437 = vmatpush.msra.mxu0 %v5189_v34  ;;  %v6630_v34 = vld [vmem:[#allocation13 + $0x1450] sm:$0xff]  ;;  %v6620_v3 = vld [vmem:[#allocation13 + $0x1400] sm:$0xff] }
 0x988   :  { %v12030_v1 = vmax.f32 %v5049_v58, %v5051_v6  ;;  %4844 = vmatmul.f32.gmra.mxu2 %v12625_v51  ;;  %4983 = vmatmul.f32.gmra.mxu3 %v12621_v26  ;;  %v6636_v26 = vld [vmem:[#allocation13 + $0x1480] sm:$0xff]  ;;  %v5494_v6 = vld [vmem:[#allocation13 + $0x590] sm:$0xff] }
 0x989   :  { %6687 = vmatpush.msra.mxu1 %v6644_v0  ;;  %5438 = vmatpush.msra.mxu0 %v5187_v24 }
 0x98a   :  { %5439 = vmatmul.f32.vlgmr.msra.gmra.mxu0 %v11974_v13  ;;  %v5498_v13 = vld [vmem:[#allocation13 + $0x5b0] sm:$0xff] }
 0x98b   :  { %6688 = vmatpush.msra.mxu1 %v6642_v20  ;;  %5528 = vmatpush.msrb.mxu0 %v5506_v44  ;;  %v4797_v22 = vpop.f32.mrf.mxu2  ;;  %v4936_v57 = vpop.f32.mrf.mxu3  ;;  %v5492_v44 = vld [vmem:[#allocation13 + $0x580] sm:$0xff] }
 0x98c   :  { %v4798_v7 = vadd.f32 %v4797_v22, %v4653_v27  ;;  %v4937_v28 = vadd.f32 %v4936_v57, %v4792_v45  ;;  %v5496_v45 = vld [vmem:[#allocation13 + $0x5a0] sm:$0xff] }
 0x98d   :  { %6689 = vmatpush.msra.mxu1 %v6640_v53  ;;  %5529 = vmatpush.msrb.mxu0 %v5504_v50  ;;  %v12722_v53 = vld [vmem:[#allocation64_spill] sm:$0xff]  ;;  %v6624_v57 = vld [vmem:[#allocation13 + $0x1420] sm:$0xff] }
 0x98e   :  { %v5053_v24 = vmax.f32 %v4937_v28, 0.0  ;;  %v5490_v50 = vld [vmem:[#allocation13 + $0x570] sm:$0xff] }
 0x98f   :  { %6690 = vmatpush.msra.mxu1 %v6638_v35  ;;  %5530 = vmatpush.msrb.mxu0 %v5502_v29  ;;  %v5488_v35 = vld [vmem:[#allocation13 + $0x560] sm:$0xff] }
 0x990   :  { %4847 = vmatmul.f32.gmra.mxu2 %v12720_v2  ;;  %4986 = vmatmul.f32.gmra.mxu3 %v12625_v51  ;;  %v6628_v51 = vld [vmem:[#allocation13 + $0x1440] sm:$0xff] }
 0x991   :  { %6691 = vmatpush.msra.mxu1 %v6636_v26  ;;  %5531 = vmatpush.msrb.mxu0 %v5500_v38  ;;  %v6622_v26 = vld [vmem:[#allocation13 + $0x1410] sm:$0xff] }
 0x993   :  { %6692 = vmatpush.msra.mxu1 %v6634_v46  ;;  %5532 = vmatpush.msrb.mxu0 %v5498_v13  ;;  %v4800_v15 = vpop.f32.mrf.mxu2  ;;  %v4939_v12 = vpop.f32.mrf.mxu3  ;;  %v5486_v13 = vld [vmem:[#allocation13 + $0x550] sm:$0xff] }
 0x994   :  { %v4801_v58 = vadd.f32 %v4800_v15, %v4656_v11  ;;  %v4940_v0 = vadd.f32 %v4939_v12, %v4795_v23  ;;  %v12723_v23 = vld [vmem:[#allocation47_spill] sm:$0xff] }
 0x995   :  { %6693 = vmatpush.msra.mxu1 %v6632_v17  ;;  %5533 = vmatpush.msrb.mxu0 %v5496_v45  ;;  %v4659_v22 = vadd.f32 %v12723_v23, %v11957_v9  ;;  %v5947_v11 = vld [vmem:[#allocation13 + $0xbf0] sm:$0xff] }
 0x996   :  { %v5055_v20 = vmax.f32 %v4940_v0, 0.0  ;;  %v6797_v17 = vld [vmem:[#allocation13 + $0x16f0] sm:$0xff]  ;;  %v6795_v0 = vld [vmem:[#allocation13 + $0x16e0] sm:$0xff]  ;;  %5969 = vmatpush.msrb.mxu2 %v5947_v11 }
 0x997   :  { %6694 = vmatpush.msra.mxu1 %v6630_v34  ;;  %5534 = vmatpush.msrb.mxu0 %v5494_v6  ;;  %v12724_v45 = vld [vmem:[#allocation67_spill] sm:$0xff]  ;;  %v5480_v6 = vld [vmem:[#allocation13 + $0x520] sm:$0xff]  ;;  %v12728_v11 = vld [vmem:[#allocation60_spill] sm:$0xff] }
 0x998   :  { %v12041_v27 = vmax.f32 %v5053_v24, %v5055_v20  ;;  %4850 = vmatmul.f32.gmra.mxu2 %v12722_v53  ;;  %4989 = vmatmul.f32.gmra.mxu3 %v12720_v2  ;;  %v5484_v2 = vld [vmem:[#allocation13 + $0x540] sm:$0xff]  ;;  %v5482_v15 = vld [vmem:[#allocation13 + $0x530] sm:$0xff] }
 0x999   :  { %6695 = vmatpush.msra.mxu1 %v6628_v51  ;;  %5535 = vmatpush.msrb.mxu0 %v5492_v44  ;;  %v12725_v12 = vld [vmem:[#allocation59_spill] sm:$0xff]  ;;  %v5945_v20 = vld [vmem:[#allocation13 + $0xbe0] sm:$0xff] }
 0x99a   :  { %v4662_v34 = vadd.f32 %v12725_v12, %v11957_v9  ;;  %v6793_v44 = vld [vmem:[#allocation13 + $0x16d0] sm:$0xff]  ;;  %5970 = vmatpush.msrb.mxu2 %v5945_v20  ;;  %v6783_v20 = vld [vmem:[#allocation13 + $0x1680] sm:$0xff] }
 0x99b   :  { %6696 = vmatpush.msra.mxu1 %v6626_v5  ;;  %5536 = vmatpush.msrb.mxu0 %v5490_v50  ;;  %v4803_v28 = vpop.f32.mrf.mxu2  ;;  %v4942_v29 = vpop.f32.mrf.mxu3  ;;  %v5478_v50 = vld [vmem:[#allocation13 + $0x510] sm:$0xff] }
 0x99c   :  { %v4804_v38 = vadd.f32 %v4803_v28, %v4659_v22  ;;  %v4943_v46 = vadd.f32 %v4942_v29, %v4798_v7  ;;  %v12726_v7 = vld [vmem:[#allocation48_spill] sm:$0xff]  ;;  %v6791_v22 = vld [vmem:[#allocation13 + $0x16c0] sm:$0xff] }
 0x99d   :  { %6697 = vmatpush.msra.mxu1 %v6624_v57  ;;  %5537 = vmatpush.msrb.mxu0 %v5488_v35  ;;  %v5943_v23 = vld [vmem:[#allocation13 + $0xbd0] sm:$0xff]  ;;  %v5476_v28 = vld [vmem:[#allocation13 + $0x500] sm:$0xff] }
 0x99e   :  { %v5057_v57 = vmax.f32 %v4943_v46, 0.0  ;;  %5971 = vmatpush.msrb.mxu2 %v5943_v23  ;;  %v5941_v29 = vld [vmem:[#allocation13 + $0xbc0] sm:$0xff]  ;;  %v4665_v46 = vadd.f32 %v12728_v11, %v11957_v9  ;;  %v5499_v23 = vld [vmem:[#allocation13 + $0x5b8] sm:$0xff]  ;;  %v6777_v11 = vld [vmem:[#allocation13 + $0x1650] sm:$0xff] }
 0x99f   :  { %6698 = vmatpush.msra.mxu1 %v6622_v26  ;;  %5538 = vmatpush.msrb.mxu0 %v5486_v13  ;;  %v6789_v26 = vld [vmem:[#allocation13 + $0x16b0] sm:$0xff] }
 0x9a0   :  { %4853 = vmatmul.f32.gmra.mxu2 %v12724_v45  ;;  %4992 = vmatmul.f32.gmra.mxu3 %v12722_v53 }
 0x9a1   :  { %6699 = vmatpush.msra.mxu1 %v6620_v3  ;;  %5539 = vmatpush.msrb.mxu0 %v5484_v2  ;;  %v5507_v3 = vld [vmem:[#allocation13 + $0x5f8] sm:$0xff] }
 0x9a2   :  { %6700 = vmatmul.f32.vlgmr.msra.gmra.mxu1 %v12726_v7  ;;  %v12727_v2 = vld [vmem:[#allocation68_spill] sm:$0xff]  ;;  %5972 = vmatpush.msrb.mxu2 %v5941_v29 }
 0x9a3   :  { %6831 = vmatpush.msrb.mxu1 %v6797_v17  ;;  %5540 = vmatpush.msrb.mxu0 %v5482_v15  ;;  %v4806_v24 = vpop.f32.mrf.mxu2  ;;  %v4945_v51 = vpop.f32.mrf.mxu3  ;;  %v6787_v17 = vld [vmem:[#allocation13 + $0x16a0] sm:$0xff]  ;;  %v5505_v15 = vld [vmem:[#allocation13 + $0x5e8] sm:$0xff] }
 0x9a4   :  { %v12052_v5 = vadd.f32 %v4806_v24, %v4662_v34  ;;  %v4946_v53 = vadd.f32 %v4945_v51, %v4801_v58  ;;  %v5939_v58 = vld [vmem:[#allocation13 + $0xbb0] sm:$0xff]  ;;  %v5503_v51 = vld [vmem:[#allocation13 + $0x5d8] sm:$0xff] }
 0x9a5   :  { %6832 = vmatpush.msrb.mxu1 %v6795_v0  ;;  %5541 = vmatpush.msrb.mxu0 %v5480_v6  ;;  %v5937_v0 = vld [vmem:[#allocation13 + $0xba0] sm:$0xff]  ;;  %v6785_v6 = vld [vmem:[#allocation13 + $0x1690] sm:$0xff] }
 0x9a6   :  { %v5059_v35 = vmax.f32 %v4946_v53, 0.0  ;;  %5973 = vmatpush.msrb.mxu2 %v5939_v58  ;;  %v5935_v53 = vld [vmem:[#allocation13 + $0xb90] sm:$0xff]  ;;  %v5914_v58 = vld [vmem:[#allocation13 + $0xae8] sm:$0xff] }
 0x9a7   :  { %6833 = vmatpush.msrb.mxu1 %v6793_v44  ;;  %5542 = vmatpush.msrb.mxu0 %v5478_v50  ;;  %v5501_v44 = vld [vmem:[#allocation13 + $0x5c8] sm:$0xff]  ;;  %v6781_v50 = vld [vmem:[#allocation13 + $0x1670] sm:$0xff] }
 0x9a8   :  { %v12054_v13 = vmax.f32 %v5057_v57, %v5059_v35  ;;  %4856 = vmatmul.f32.gmra.mxu2 %v12727_v2  ;;  %4995 = vmatmul.f32.gmra.mxu3 %v12724_v45  ;;  %v5933_v57 = vld [vmem:[#allocation13 + $0xb80] sm:$0xff] }
 0x9a9   :  { %6834 = vmatpush.msrb.mxu1 %v6791_v22  ;;  %5543 = vmatpush.msrb.mxu0 %v5476_v28  ;;  %v12729_v22 = vld [vmem:[#allocation70_spill] sm:$0xff] }
 0x9aa   :  { %5544 = vmatmul.f32.vlgmr.msrb.gmra.mxu0 %v11997_v56  ;;  %5974 = vmatpush.msrb.mxu2 %v5937_v0  ;;  %v6779_v35 = vld [vmem:[#allocation13 + $0x1660] sm:$0xff]  ;;  %v5497_v28 = vld [vmem:[#allocation13 + $0x5a8] sm:$0xff] }
 0x9ab   :  { %6835 = vmatpush.msrb.mxu1 %v6789_v26  ;;  %5568 = vmatpush.msra.mxu0 %v5507_v3  ;;  %v4809_v12 = vpop.f32.mrf.mxu2  ;;  %v4948_v34 = vpop.f32.mrf.mxu3  ;;  %v5931_v3 = vld [vmem:[#allocation13 + $0xb70] sm:$0xff]  ;;  %v5493_v0 = vld [vmem:[#allocation13 + $0x588] sm:$0xff] }
 0x9ac   :  { %v12061_v24 = vadd.f32 %v4809_v12, %v4665_v46  ;;  %v4949_v45 = vadd.f32 %v4948_v34, %v4804_v38  ;;  %v5916_v38 = vld [vmem:[#allocation13 + $0xaf8] sm:$0xff]  ;;  %5975 = vmatpush.msrb.mxu2 %v5935_v53  ;;  %v12730_v53 = vld [vmem:[#allocation71_spill] sm:$0xff] }
 0x9ad   :  { %6836 = vmatpush.msrb.mxu1 %v6787_v17  ;;  %5569 = vmatpush.msra.mxu0 %v5505_v15  ;;  %v5495_v17 = vld [vmem:[#allocation13 + $0x598] sm:$0xff]  ;;  %v6775_v15 = vld [vmem:[#allocation13 + $0x1640] sm:$0xff] }
 0x9ae   :  { %5989 = vmatpush.msrb.mxu3 %v5916_v38  ;;  %5976 = vmatpush.msrb.mxu2 %v5933_v57  ;;  %v5061_v12 = vmax.f32 %v4949_v45, 0.0  ;;  %v5908_v45 = vld [vmem:[#allocation13 + $0xab8] sm:$0xff]  ;;  %v5489_v57 = vld [vmem:[#allocation13 + $0x568] sm:$0xff] }
 0x9af   :  { %6837 = vmatpush.msrb.mxu1 %v6785_v6  ;;  %5570 = vmatpush.msra.mxu0 %v5503_v51  ;;  %v5929_v6 = vld [vmem:[#allocation13 + $0xb60] sm:$0xff]  ;;  %v5910_v51 = vld [vmem:[#allocation13 + $0xac8] sm:$0xff] }
 0x9b0   :  { %4859 = vmatmul.f32.gmra.mxu2 %v12729_v22  ;;  %4998 = vmatmul.f32.gmra.mxu3 %v12727_v2  ;;  %v5912_v2 = vld [vmem:[#allocation13 + $0xad8] sm:$0xff] }
 0x9b1   :  { %6838 = vmatpush.msrb.mxu1 %v6783_v20  ;;  %5571 = vmatpush.msra.mxu0 %v5501_v44  ;;  %v6773_v20 = vld [vmem:[#allocation13 + $0x1630] sm:$0xff] }
 0x9b2   :  { %5990 = vmatpush.msrb.mxu3 %v5914_v58  ;;  %5977 = vmatpush.msrb.mxu2 %v5931_v3  ;;  %v6769_v3 = vld [vmem:[#allocation13 + $0x1610] sm:$0xff]  ;;  %v5487_v58 = vld [vmem:[#allocation13 + $0x558] sm:$0xff] }
 0x9b3   :  { %6839 = vmatpush.msrb.mxu1 %v6781_v50  ;;  %5572 = vmatpush.msra.mxu0 %v5499_v23  ;;  %v12065_v29 = vpop.f32.mrf.mxu2  ;;  %v4951_v26 = vpop.f32.mrf.mxu3  ;;  %v5927_v50 = vld [vmem:[#allocation13 + $0xb50] sm:$0xff]  ;;  %v6771_v23 = vld [vmem:[#allocation13 + $0x1620] sm:$0xff] }
 0x9b4   :  { %v4952_v46 = vadd.f32 %v4951_v26, %v12052_v5  ;;  %5991 = vmatpush.msrb.mxu3 %v5912_v2  ;;  %v5491_v5 = vld [vmem:[#allocation13 + $0x578] sm:$0xff]  ;;  %5978 = vmatpush.msrb.mxu2 %v5929_v6  ;;  %v5906_v26 = vld [vmem:[#allocation13 + $0xaa8] sm:$0xff] }
 0x9b5   :  { %6840 = vmatpush.msrb.mxu1 %v6779_v35  ;;  %5573 = vmatpush.msra.mxu0 %v5497_v28  ;;  %v5925_v28 = vld [vmem:[#allocation13 + $0xb40] sm:$0xff] }
 0x9b6   :  { %v5063_v34 = vmax.f32 %v4952_v46, 0.0  ;;  %5992 = vmatpush.msrb.mxu3 %v5910_v51  ;;  %5979 = vmatpush.msrb.mxu2 %v5927_v50  ;;  %v5923_v46 = vld [vmem:[#allocation13 + $0xb30] sm:$0xff]  ;;  %v6942_v51 = vld [vmem:[#allocation13 + $0x18e0] sm:$0xff] }
 0x9b7   :  { %6841 = vmatpush.msrb.mxu1 %v6777_v11  ;;  %5574 = vmatpush.msra.mxu0 %v5495_v17  ;;  %v5485_v11 = vld [vmem:[#allocation13 + $0x548] sm:$0xff] }
 0x9b8   :  { %v12068_v44 = vmax.f32 %v5061_v12, %v5063_v34  ;;  %4862 = vmatmul.f32.gmra.mxu2 %v12730_v53  ;;  %5001 = vmatmul.f32.gmra.mxu3 %v12729_v22  ;;  %v6767_v22 = vld [vmem:[#allocation13 + $0x1600] sm:$0xff]  ;;  %v12731_v17 = vld [vmem:[#allocation63_spill] sm:$0xff]  ;;  %v5483_v12 = vld [vmem:[#allocation13 + $0x538] sm:$0xff] }
 0x9b9   :  { %6842 = vmatpush.msrb.mxu1 %v6775_v15  ;;  %5575 = vmatpush.msra.mxu0 %v5493_v0  ;;  %v4668_v2 = vadd.f32 %v12731_v17, %v11957_v9  ;;  %v6944_v15 = vld [vmem:[#allocation13 + $0x18f0] sm:$0xff]  ;;  %v5921_v34 = vld [vmem:[#allocation13 + $0xb20] sm:$0xff]  ;;  %v5904_v0 = vld [vmem:[#allocation13 + $0xa98] sm:$0xff] }
 0x9ba   :  { %5993 = vmatpush.msrb.mxu3 %v5908_v45  ;;  %5980 = vmatpush.msrb.mxu2 %v5925_v28  ;;  %v6094_v17 = vld [vmem:[#allocation13 + $0xdf0] sm:$0xff] }
 0x9bb   :  { %6843 = vmatpush.msrb.mxu1 %v6773_v20  ;;  %5576 = vmatpush.msra.mxu0 %v5491_v5  ;;  %v12072_v38 = vpop.f32.mrf.mxu2  ;;  %v4954_v35 = vpop.f32.mrf.mxu3  ;;  %v4813_v6 = vadd.f32 %v12065_v29, %v4668_v2  ;;  %v5481_v5 = vld [vmem:[#allocation13 + $0x528] sm:$0xff]  ;;  %v6938_v29 = vld [vmem:[#allocation13 + $0x18c0] sm:$0xff]  ;;  %v5900_v2 = vld [vmem:[#allocation13 + $0xa78] sm:$0xff] }
 0x9bc   :  { %5994 = vmatpush.msrb.mxu3 %v5906_v26  ;;  %v4955_v20 = vadd.f32 %v4954_v35, %v12061_v24  ;;  %5981 = vmatpush.msrb.mxu2 %v5923_v46  ;;  %v5479_v26 = vld [vmem:[#allocation13 + $0x518] sm:$0xff]  ;;  %v5477_v24 = vld [vmem:[#allocation13 + $0x508] sm:$0xff]  ;;  %v5917_v35 = vld [vmem:[#allocation13 + $0xb00] sm:$0xff] }
 0x9bd   :  { %6844 = vmatpush.msrb.mxu1 %v6771_v23  ;;  %5577 = vmatpush.msra.mxu0 %v5489_v57  ;;  %v5919_v23 = vld [vmem:[#allocation13 + $0xb10] sm:$0xff] }
 0x9be   :  { %v6940_v57 = vld [vmem:[#allocation13 + $0x18d0] sm:$0xff]  ;;  %5982 = vmatpush.msrb.mxu2 %v5921_v34  ;;  %5995 = vmatpush.msrb.mxu3 %v5904_v0 }
 0x9bf   :  { %6845 = vmatpush.msrb.mxu1 %v6769_v3  ;;  %5578 = vmatpush.msra.mxu0 %v5487_v58  ;;  %v5065_v3 = vmax.f32 %v4955_v20, 0.0  ;;  %v5653_v46 = vld [vmem:[#allocation13 + $0x7f0] sm:$0xff] }
 0x9c0   :  { %4865 = vmatmul.f32.gmra.mxu2 %v12640_v37  ;;  %5004 = vmatmul.f32.gmra.mxu3 %v12730_v53  ;;  %v5902_v53 = vld [vmem:[#allocation13 + $0xa88] sm:$0xff]  ;;  %v6932_v20 = vld [vmem:[#allocation13 + $0x1890] sm:$0xff] }
 0x9c1   :  { %6846 = vmatpush.msrb.mxu1 %v6767_v22  ;;  %5579 = vmatpush.msra.mxu0 %v5485_v11  ;;  %v6936_v22 = vld [vmem:[#allocation13 + $0x18b0] sm:$0xff] }
 0x9c2   :  { %6847 = vmatmul.f32.vlgmr.msrb.gmra.mxu1 %v11800_v48  ;;  %5983 = vmatpush.msrb.mxu2 %v5919_v23  ;;  %v6930_v23 = vld [vmem:[#allocation13 + $0x1880] sm:$0xff] }
 0x9c3   :  { %6978 = vmatpush.msra.mxu1 %v6944_v15  ;;  %5580 = vmatpush.msra.mxu0 %v5483_v12  ;;  %v12081_v50 = vpop.f32.mrf.mxu2  ;;  %v4957_v45 = vpop.f32.mrf.mxu3  ;;  %v6934_v15 = vld [vmem:[#allocation13 + $0x18a0] sm:$0xff] }
 0x9c4   :  { %v4958_v28 = vadd.f32 %v4957_v45, %v4813_v6  ;;  %5996 = vmatpush.msrb.mxu3 %v5902_v53  ;;  %v5651_v12 = vld [vmem:[#allocation13 + $0x7e0] sm:$0xff]  ;;  %5984 = vmatpush.msrb.mxu2 %v5917_v35  ;;  %v6090_v53 = vld [vmem:[#allocation13 + $0xdd0] sm:$0xff]  ;;  %v5894_v35 = vld [vmem:[#allocation13 + $0xa48] sm:$0xff] }
 0x9c5   :  { %6979 = vmatpush.msra.mxu1 %v6942_v51  ;;  %5581 = vmatpush.msra.mxu0 %v5481_v5  ;;  %v6092_v6 = vld [vmem:[#allocation13 + $0xde0] sm:$0xff]  ;;  %v5898_v51 = vld [vmem:[#allocation13 + $0xa68] sm:$0xff]  ;;  %v5649_v5 = vld [vmem:[#allocation13 + $0x7d0] sm:$0xff] }
 0x9c6   :  { %v5067_v58 = vmax.f32 %v4958_v28, 0.0  ;;  %6116 = vmatpush.msra.mxu2 %v6094_v17  ;;  %5997 = vmatpush.msrb.mxu3 %v5900_v2  ;;  %v12733_v28 = vld [vmem:[#allocation65_spill] sm:$0xff] }
 0x9c7   :  { %6980 = vmatpush.msra.mxu1 %v6940_v57  ;;  %5582 = vmatpush.msra.mxu0 %v5479_v26  ;;  %v5896_v57 = vld [vmem:[#allocation13 + $0xa58] sm:$0xff]  ;;  %v4674_v26 = vadd.f32 %v12733_v28, %v11957_v9  ;;  %v5643_v2 = vld [vmem:[#allocation13 + $0x7a0] sm:$0xff]  ;;  %v6082_v28 = vld [vmem:[#allocation13 + $0xd90] sm:$0xff] }
 0x9c8   :  { %v12083_v11 = vmax.f32 %v5065_v3, %v5067_v58  ;;  %4868 = vmatmul.f32.gmra.mxu2 %v12645_v41  ;;  %5007 = vmatmul.f32.gmra.mxu3 %v12640_v37  ;;  %v12732_v37 = vld [vmem:[#allocation62_spill] sm:$0xff]  ;;  %v6928_v3 = vld [vmem:[#allocation13 + $0x1870] sm:$0xff] }
 0x9c9   :  { %6981 = vmatpush.msra.mxu1 %v6938_v29  ;;  %5583 = vmatpush.msra.mxu0 %v5477_v24  ;;  %v4671_v45 = vadd.f32 %v12732_v37, %v11957_v9  ;;  %v5645_v58 = vld [vmem:[#allocation13 + $0x7b0] sm:$0xff]  ;;  %v6088_v24 = vld [vmem:[#allocation13 + $0xdc0] sm:$0xff] }
 0x9ca   :  { %5584 = vmatmul.f32.vlgmr.msra.gmra.mxu0 %v11997_v56  ;;  %v5647_v56 = vld [vmem:[#allocation13 + $0x7c0] sm:$0xff]  ;;  %6117 = vmatpush.msra.mxu2 %v6092_v6  ;;  %v5892_v6 = vld [vmem:[#allocation13 + $0xa38] sm:$0xff] }
 0x9cb   :  { %6982 = vmatpush.msra.mxu1 %v6936_v22  ;;  %5675 = vmatpush.msrb.mxu0 %v5653_v46  ;;  %v12088_v34 = vpop.f32.mrf.mxu2  ;;  %v4960_v0 = vpop.f32.mrf.mxu3  ;;  %v4816_v29 = vadd.f32 %v12072_v38, %v4671_v45  ;;  %v4819_v22 = vadd.f32 %v12081_v50, %v4674_v26  ;;  %v6926_v46 = vld [vmem:[#allocation13 + $0x1860] sm:$0xff]  ;;  %v5888_v26 = vld [vmem:[#allocation13 + $0xa18] sm:$0xff] }
 0x9cc   :  { %5998 = vmatpush.msrb.mxu3 %v5898_v51  ;;  %6118 = vmatpush.msra.mxu2 %v6090_v53  ;;  %v6924_v51 = vld [vmem:[#allocation13 + $0x1850] sm:$0xff]  ;;  %v6922_v50 = vld [vmem:[#allocation13 + $0x1840] sm:$0xff] }
 0x9cd   :  { %6983 = vmatpush.msra.mxu1 %v6934_v15  ;;  %5676 = vmatpush.msrb.mxu0 %v5651_v12  ;;  %v4961_v17 = vadd.f32 %v4960_v0, %v4816_v29  ;;  %v6086_v12 = vld [vmem:[#allocation13 + $0xdb0] sm:$0xff]  ;;  %v5639_v37 = vld [vmem:[#allocation13 + $0x780] sm:$0xff] }
 0x9ce   :  { %5999 = vmatpush.msrb.mxu3 %v5896_v57  ;;  %6119 = vmatpush.msra.mxu2 %v6088_v24  ;;  %v6084_v45 = vld [vmem:[#allocation13 + $0xda0] sm:$0xff]  ;;  %v5637_v57 = vld [vmem:[#allocation13 + $0x770] sm:$0xff] }
 0x9cf   :  { %6984 = vmatpush.msra.mxu1 %v6932_v20  ;;  %5677 = vmatpush.msrb.mxu0 %v5649_v5  ;;  %v5069_v5 = vmax.f32 %v4961_v17, 0.0  ;;  %v6918_v29 = vld [vmem:[#allocation13 + $0x1820] sm:$0xff]  ;;  %v5633_v17 = vld [vmem:[#allocation13 + $0x750] sm:$0xff] }
 0x9d0   :  { %4871 = vmatmul.f32.gmra.mxu2 %v12648_v49  ;;  %5010 = vmatmul.f32.gmra.mxu3 %v12645_v41  ;;  %v5641_v41 = vld [vmem:[#allocation13 + $0x790] sm:$0xff] }
 0x9d1   :  { %6985 = vmatpush.msra.mxu1 %v6930_v23  ;;  %5678 = vmatpush.msrb.mxu0 %v5647_v56  ;;  %v5890_v23 = vld [vmem:[#allocation13 + $0xa28] sm:$0xff]  ;;  %v6920_v56 = vld [vmem:[#allocation13 + $0x1830] sm:$0xff] }
 0x9d2   :  { %6000 = vmatpush.msrb.mxu3 %v5894_v35  ;;  %6120 = vmatpush.msra.mxu2 %v6086_v12  ;;  %v6080_v35 = vld [vmem:[#allocation13 + $0xd80] sm:$0xff] }
 0x9d3   :  { %6986 = vmatpush.msra.mxu1 %v6928_v3  ;;  %5679 = vmatpush.msrb.mxu0 %v5645_v58  ;;  %v12098_v38 = vpop.f32.mrf.mxu2  ;;  %v4963_v15 = vpop.f32.mrf.mxu3  ;;  %v5635_v3 = vld [vmem:[#allocation13 + $0x760] sm:$0xff] }
 0x9d4   :  { %v4964_v20 = vadd.f32 %v4963_v15, %v4819_v22  ;;  %6001 = vmatpush.msrb.mxu3 %v5892_v6  ;;  %6121 = vmatpush.msra.mxu2 %v6084_v45  ;;  %v5886_v22 = vld [vmem:[#allocation13 + $0xa08] sm:$0xff]  ;;  %v6914_v15 = vld [vmem:[#allocation13 + $0x1800] sm:$0xff]  ;;  %v6078_v6 = vld [vmem:[#allocation13 + $0xd70] sm:$0xff] }
 0x9d5   :  { %6987 = vmatpush.msra.mxu1 %v6926_v46  ;;  %5680 = vmatpush.msrb.mxu0 %v5643_v2  ;;  %v6916_v46 = vld [vmem:[#allocation13 + $0x1810] sm:$0xff]  ;;  %v5631_v12 = vld [vmem:[#allocation13 + $0x740] sm:$0xff] }
 0x9d6   :  { %v5071_v0 = vmax.f32 %v4964_v20, 0.0  ;;  %6002 = vmatpush.msrb.mxu3 %v5890_v23  ;;  %6122 = vmatpush.msra.mxu2 %v6082_v28  ;;  %v7091_v20 = vld [vmem:[#allocation13 + $0x1af0] sm:$0xff]  ;;  %v7089_v45 = vld [vmem:[#allocation13 + $0x1ae0] sm:$0xff] }
 0x9d7   :  { %6988 = vmatpush.msra.mxu1 %v6924_v51  ;;  %5681 = vmatpush.msrb.mxu0 %v5641_v41  ;;  %v4680_v51 = vadd.f32 %v11815_v14, %v11957_v9  ;;  %v6074_v28 = vld [vmem:[#allocation13 + $0xd50] sm:$0xff] }
 0x9d8   :  { %v12100_v53 = vmax.f32 %v5069_v5, %v5071_v0  ;;  %4874 = vmatmul.f32.gmra.mxu2 %v12652_v39  ;;  %5013 = vmatmul.f32.gmra.mxu3 %v12648_v49  ;;  %v12734_v49 = vld [vmem:[#allocation66_spill] sm:$0xff]  ;;  %v6063_v5 = vld [vmem:[#allocation13 + $0xcf8] sm:$0xff] }
 0x9d9   :  { %6989 = vmatpush.msra.mxu1 %v6922_v50  ;;  %5682 = vmatpush.msrb.mxu0 %v5639_v37  ;;  %v4677_v2 = vadd.f32 %v12734_v49, %v11957_v9  ;;  %v5629_v50 = vld [vmem:[#allocation13 + $0x730] sm:$0xff]  ;;  %v6076_v0 = vld [vmem:[#allocation13 + $0xd60] sm:$0xff]  ;;  %v4825_v37 = vadd.f32 %v12098_v38, %v4680_v51 }
 0x9da   :  { %6003 = vmatpush.msrb.mxu3 %v5888_v26  ;;  %6123 = vmatpush.msra.mxu2 %v6080_v35  ;;  %v5625_v26 = vld [vmem:[#allocation13 + $0x710] sm:$0xff]  ;;  %v6072_v38 = vld [vmem:[#allocation13 + $0xd40] sm:$0xff] }
 0x9db   :  { %6990 = vmatpush.msra.mxu1 %v6920_v56  ;;  %5683 = vmatpush.msrb.mxu0 %v5637_v57  ;;  %v12104_v58 = vpop.f32.mrf.mxu2  ;;  %v4966_v24 = vpop.f32.mrf.mxu3  ;;  %v4822_v41 = vadd.f32 %v12088_v34, %v4677_v2  ;;  %v5627_v56 = vld [vmem:[#allocation13 + $0x720] sm:$0xff]  ;;  %v6061_v57 = vld [vmem:[#allocation13 + $0xce8] sm:$0xff]  ;;  %v7083_v49 = vld [vmem:[#allocation13 + $0x1ab0] sm:$0xff] }
 0x9dc   :  { %6004 = vmatpush.msrb.mxu3 %v5886_v22  ;;  %6124 = vmatpush.msra.mxu2 %v6078_v6  ;;  %v7085_v35 = vld [vmem:[#allocation13 + $0x1ac0] sm:$0xff]  ;;  %v5652_v6 = vld [vmem:[#allocation13 + $0x7e8] sm:$0xff]  ;;  %v6070_v51 = vld [vmem:[#allocation13 + $0xd30] sm:$0xff] }
 0x9dd   :  { %6991 = vmatpush.msra.mxu1 %v6918_v29  ;;  %5684 = vmatpush.msrb.mxu0 %v5635_v3  ;;  %v4967_v23 = vadd.f32 %v4966_v24, %v4822_v41  ;;  %v6059_v3 = vld [vmem:[#allocation13 + $0xcd8] sm:$0xff] }
 0x9de   :  { %6136 = vmatpush.msra.mxu3 %v6063_v5  ;;  %6125 = vmatpush.msra.mxu2 %v6076_v0  ;;  %v6055_v41 = vld [vmem:[#allocation13 + $0xcb8] sm:$0xff]  ;;  %v7079_v5 = vld [vmem:[#allocation13 + $0x1a90] sm:$0xff]  ;;  %v12735_v0 = vld [vmem:[#allocation90_spill] sm:$0xff] }
 0x9df   :  { %6992 = vmatpush.msra.mxu1 %v6916_v46  ;;  %5685 = vmatpush.msrb.mxu0 %v5633_v17  ;;  %v5073_v24 = vmax.f32 %v4967_v23, 0.0  ;;  %v5623_v46 = vld [vmem:[#allocation13 + $0x700] sm:$0xff]  ;;  %v6057_v17 = vld [vmem:[#allocation13 + $0xcc8] sm:$0xff] }
 0x9e0   :  { %4877 = vmatmul.f32.gmra.mxu2 %v11497_v55  ;;  %5016 = vmatmul.f32.gmra.mxu3 %v12652_v39  ;;  %v7087_v39 = vld [vmem:[#allocation13 + $0x1ad0] sm:$0xff]  ;;  %v6053_v23 = vld [vmem:[#allocation13 + $0xca8] sm:$0xff] }
 0x9e1   :  { %6993 = vmatpush.msra.mxu1 %v6914_v15  ;;  %5686 = vmatpush.msrb.mxu0 %v5631_v12  ;;  %v5654_v15 = vld [vmem:[#allocation13 + $0x7f8] sm:$0xff]  ;;  %v7081_v12 = vld [vmem:[#allocation13 + $0x1aa0] sm:$0xff] }
 0x9e2   :  { %6994 = vmatmul.f32.vlgmr.msra.gmra.mxu1 %v11819_v59  ;;  %6137 = vmatpush.msra.mxu3 %v6061_v57  ;;  %v5648_v57 = vld [vmem:[#allocation13 + $0x7c8] sm:$0xff] }
 0x9e3   :  { %7125 = vmatpush.msrb.mxu1 %v7091_v20  ;;  %5687 = vmatpush.msrb.mxu0 %v5629_v50  ;;  %v12115_v14 = vpop.f32.mrf.mxu2  ;;  %v4969_v34 = vpop.f32.mrf.mxu3 }
 0x9e4   :  { %v4970_v29 = vadd.f32 %v4969_v34, %v4825_v37  ;;  %6126 = vmatpush.msra.mxu2 %v6074_v28  ;;  %6138 = vmatpush.msra.mxu3 %v6059_v3  ;;  %v5650_v37 = vld [vmem:[#allocation13 + $0x7d8] sm:$0xff]  ;;  %v7077_v34 = vld [vmem:[#allocation13 + $0x1a80] sm:$0xff]  ;;  %v6066_v28 = vld [vmem:[#allocation13 + $0xd10] sm:$0xff] }
 0x9e5   :  { %7126 = vmatpush.msrb.mxu1 %v7089_v45  ;;  %5688 = vmatpush.msrb.mxu0 %v5627_v56  ;;  %v6068_v45 = vld [vmem:[#allocation13 + $0xd20] sm:$0xff]  ;;  %v4683_v56 = vadd.f32 %v11823_v61, %v11957_v9  ;;  %v5646_v3 = vld [vmem:[#allocation13 + $0x7b8] sm:$0xff] }
 0x9e6   :  { %v5075_v22 = vmax.f32 %v4970_v29, 0.0  ;;  %6127 = vmatpush.msra.mxu2 %v6072_v38  ;;  %6139 = vmatpush.msra.mxu3 %v6057_v17  ;;  %v7075_v29 = vld [vmem:[#allocation13 + $0x1a70] sm:$0xff]  ;;  %v6064_v61 = vld [vmem:[#allocation13 + $0xd00] sm:$0xff]  ;;  %v6049_v38 = vld [vmem:[#allocation13 + $0xc88] sm:$0xff] }
 0x9e7   :  { %7127 = vmatpush.msrb.mxu1 %v7087_v39  ;;  %5689 = vmatpush.msrb.mxu0 %v5625_v26  ;;  %v6051_v39 = vld [vmem:[#allocation13 + $0xc98] sm:$0xff]  ;;  %v4686_v26 = vadd.f32 %v11833_v8, %v11957_v9  ;;  %v7071_v17 = vld [vmem:[#allocation13 + $0x1a50] sm:$0xff] }
 0x9e8   :  { %v12117_v2 = vmax.f32 %v5073_v24, %v5075_v22  ;;  %4880 = vmatmul.f32.gmra.mxu2 %v12735_v0  ;;  %5019 = vmatmul.f32.gmra.mxu3 %v11497_v55  ;;  %v4828_v55 = vadd.f32 %v12104_v58, %v4683_v56  ;;  %v7073_v24 = vld [vmem:[#allocation13 + $0x1a60] sm:$0xff]  ;;  %v6237_v56 = vld [vmem:[#allocation13 + $0xfd0] sm:$0xff] }
 0x9e9   :  { %7128 = vmatpush.msrb.mxu1 %v7085_v35  ;;  %5690 = vmatpush.msrb.mxu0 %v5623_v46  ;;  %v4831_v35 = vadd.f32 %v12115_v14, %v4686_v26  ;;  %v5644_v46 = vld [vmem:[#allocation13 + $0x7a8] sm:$0xff]  ;;  %v7069_v14 = vld [vmem:[#allocation13 + $0x1a40] sm:$0xff] }
 0x9ea   :  { %5691 = vmatmul.f32.vlgmr.msrb.gmra.mxu0 %v12008_v52  ;;  %6128 = vmatpush.msra.mxu2 %v6070_v51  ;;  %v6041_v26 = vld [vmem:[#allocation13 + $0xc48] sm:$0xff] }
 0x9eb   :  { %7129 = vmatpush.msrb.mxu1 %v7083_v49  ;;  %5715 = vmatpush.msra.mxu0 %v5654_v15  ;;  %v12120_v20 = vpop.f32.mrf.mxu2  ;;  %v4972_v50 = vpop.f32.mrf.mxu3  ;;  %v6241_v49 = vld [vmem:[#allocation13 + $0xff0] sm:$0xff] }
 0x9ec   :  { %6140 = vmatpush.msra.mxu3 %v6055_v41  ;;  %6129 = vmatpush.msra.mxu2 %v6068_v45  ;;  %v4973_v22 = vadd.f32 %v4972_v50, %v4828_v55  ;;  %v6239_v41 = vld [vmem:[#allocation13 + $0xfe0] sm:$0xff]  ;;  %v7067_v45 = vld [vmem:[#allocation13 + $0x1a30] sm:$0xff] }
 0x9ed   :  { %7130 = vmatpush.msrb.mxu1 %v7081_v12  ;;  %5716 = vmatpush.msra.mxu0 %v5652_v6  ;;  %v5642_v12 = vld [vmem:[#allocation13 + $0x798] sm:$0xff] }
 0x9ee   :  { %6141 = vmatpush.msra.mxu3 %v6053_v23  ;;  %6130 = vmatpush.msra.mxu2 %v6066_v28  ;;  %v6047_v6 = vld [vmem:[#allocation13 + $0xc78] sm:$0xff]  ;;  %v5077_v51 = vmax.f32 %v4973_v22, 0.0  ;;  %v7065_v28 = vld [vmem:[#allocation13 + $0x1a20] sm:$0xff] }
 0x9ef   :  { %7131 = vmatpush.msrb.mxu1 %v7079_v5  ;;  %5717 = vmatpush.msra.mxu0 %v5650_v37  ;;  %v5640_v5 = vld [vmem:[#allocation13 + $0x788] sm:$0xff]  ;;  %v6039_v22 = vld [vmem:[#allocation13 + $0xc38] sm:$0xff] }
 0x9f0   :  { %6142 = vmatpush.msra.mxu3 %v6051_v39  ;;  %6131 = vmatpush.msra.mxu2 %v6064_v61  ;;  %v6045_v37 = vld [vmem:[#allocation13 + $0xc68] sm:$0xff]  ;;  %v5634_v61 = vld [vmem:[#allocation13 + $0x758] sm:$0xff] }
 0x9f1   :  { %7132 = vmatpush.msrb.mxu1 %v7077_v34  ;;  %5718 = vmatpush.msra.mxu0 %v5648_v57  ;;  %v5638_v34 = vld [vmem:[#allocation13 + $0x778] sm:$0xff]  ;;  %v5636_v39 = vld [vmem:[#allocation13 + $0x768] sm:$0xff] }
 0x9f2   :  { %6143 = vmatpush.msra.mxu3 %v6049_v38  ;;  %5985 = vmatmul.f32.vlgmr.msrb.gmra.mxu2 %v12030_v1  ;;  %v6043_v57 = vld [vmem:[#allocation13 + $0xc58] sm:$0xff]  ;;  %v4689_v38 = vadd.f32 %v11840_v62, %v11957_v9  ;;  %v5632_v62 = vld [vmem:[#allocation13 + $0x748] sm:$0xff] }
 0x9f3   :  { %7133 = vmatpush.msrb.mxu1 %v7075_v29  ;;  %5719 = vmatpush.msra.mxu0 %v5646_v3  ;;  %v12130_v8 = vpop.f32.mrf.mxu2  ;;  %v4975_v58 = vpop.f32.mrf.mxu3  ;;  %v7063_v3 = vld [vmem:[#allocation13 + $0x1a10] sm:$0xff] }
 0x9f4   :  { %v4976_v15 = vadd.f32 %v4975_v58, %v4831_v35  ;;  %5022 = vmatmul.f32.gmra.mxu3 %v12735_v0  ;;  %6263 = vmatpush.msrb.mxu2 %v6241_v49  ;;  %v6235_v0 = vld [vmem:[#allocation13 + $0xfc0] sm:$0xff]  ;;  %v4834_v58 = vadd.f32 %v12120_v20, %v4689_v38  ;;  %v6035_v20 = vld [vmem:[#allocation13 + $0xc18] sm:$0xff] }
 0x9f5   :  { %7134 = vmatpush.msrb.mxu1 %v7073_v24  ;;  %5720 = vmatpush.msra.mxu0 %v5644_v46  ;;  %v7061_v35 = vld [vmem:[#allocation13 + $0x1a00] sm:$0xff]  ;;  %v6233_v24 = vld [vmem:[#allocation13 + $0xfb0] sm:$0xff]  ;;  %v4692_v46 = vadd.f32 %v11850_v19, %v11957_v9  ;;  %v5630_v19 = vld [vmem:[#allocation13 + $0x738] sm:$0xff] }
 0x9f6   :  { %v5079_v50 = vmax.f32 %v4976_v15, 0.0  ;;  %6144 = vmatpush.msra.mxu3 %v6047_v6  ;;  %6264 = vmatpush.msrb.mxu2 %v6239_v41  ;;  %v6231_v49 = vld [vmem:[#allocation13 + $0xfa0] sm:$0xff]  ;;  %v6037_v15 = vld [vmem:[#allocation13 + $0xc28] sm:$0xff] }
 0x9f7   :  { %7135 = vmatpush.msrb.mxu1 %v7071_v17  ;;  %5721 = vmatpush.msra.mxu0 %v5642_v12  ;;  %v7238_v17 = vld [vmem:[#allocation13 + $0x1cf0] sm:$0xff]  ;;  %v4837_v12 = vadd.f32 %v12130_v8, %v4692_v46  ;;  %v6033_v8 = vld [vmem:[#allocation13 + $0xc08] sm:$0xff]  ;;  %v7228_v38 = vld [vmem:[#allocation13 + $0x1ca0] sm:$0xff] }
 0x9f8   :  { %v12134_v23 = vmax.f32 %v5077_v51, %v5079_v50  ;;  %6145 = vmatpush.msra.mxu3 %v6045_v37  ;;  %6265 = vmatpush.msrb.mxu2 %v6237_v56  ;;  %v7234_v50 = vld [vmem:[#allocation13 + $0x1cd0] sm:$0xff]  ;;  %v7232_v56 = vld [vmem:[#allocation13 + $0x1cc0] sm:$0xff] }
 0x9f9   :  { %7136 = vmatpush.msrb.mxu1 %v7069_v14  ;;  %5722 = vmatpush.msra.mxu0 %v5640_v5  ;;  %v6229_v14 = vld [vmem:[#allocation13 + $0xf90] sm:$0xff]  ;;  %v6227_v5 = vld [vmem:[#allocation13 + $0xf80] sm:$0xff] }
 0x9fa   :  { %6146 = vmatpush.msra.mxu3 %v6043_v57  ;;  %6266 = vmatpush.msrb.mxu2 %v6235_v0  ;;  %v6210_v0 = vld [vmem:[#allocation13 + $0xef8] sm:$0xff] }
 0x9fb   :  { %7137 = vmatpush.msrb.mxu1 %v7067_v45  ;;  %v12136_v55 = vpop.f32.mrf.mxu2  ;;  %v4978_v29 = vpop.f32.mrf.mxu3  ;;  %5723 = vmatpush.msra.mxu0 %v5638_v34  ;;  %v5628_v45 = vld [vmem:[#allocation13 + $0x728] sm:$0xff] }
 0x9fc   :  { %6147 = vmatpush.msra.mxu3 %v6041_v26  ;;  %6132 = vmatmul.f32.vlgmr.msra.gmra.mxu2 %v12041_v27  ;;  %v4979_v6 = vadd.f32 %v4978_v29, %v4834_v58  ;;  %v5626_v26 = vld [vmem:[#allocation13 + $0x718] sm:$0xff]  ;;  %v7226_v58 = vld [vmem:[#allocation13 + $0x1c90] sm:$0xff] }
 0x9fd   :  { %7138 = vmatpush.msrb.mxu1 %v7065_v28  ;;  %5724 = vmatpush.msra.mxu0 %v5636_v39  ;;  %v6225_v28 = vld [vmem:[#allocation13 + $0xf70] sm:$0xff] }
 0x9fe   :  { %5025 = vmatmul.f32.gmra.mxu3 %v11817_v36  ;;  %6267 = vmatpush.msrb.mxu2 %v6233_v24  ;;  %v7236_v36 = vld [vmem:[#allocation13 + $0x1ce0] sm:$0xff]  ;;  %v5081_v34 = vmax.f32 %v4979_v6, 0.0  ;;  %v7230_v39 = vld [vmem:[#allocation13 + $0x1cb0] sm:$0xff] }
 0x9ff   :  { %7139 = vmatpush.msrb.mxu1 %v7063_v3  ;;  %5725 = vmatpush.msra.mxu0 %v5634_v61  ;;  %v6223_v3 = vld [vmem:[#allocation13 + $0xf60] sm:$0xff]  ;;  %v6208_v61 = vld [vmem:[#allocation13 + $0xee8] sm:$0xff]  ;;  %v6221_v24 = vld [vmem:[#allocation13 + $0xf50] sm:$0xff] }
 0xa00   :  { %6148 = vmatpush.msra.mxu3 %v6039_v22  ;;  %6268 = vmatpush.msrb.mxu2 %v6231_v49  ;;  %v6206_v49 = vld [vmem:[#allocation13 + $0xed8] sm:$0xff]  ;;  %v6217_v6 = vld [vmem:[#allocation13 + $0xf30] sm:$0xff] }
 0xa01   :  { %7140 = vmatpush.msrb.mxu1 %v7061_v35  ;;  %5726 = vmatpush.msra.mxu0 %v5632_v62  ;;  %v5624_v35 = vld [vmem:[#allocation13 + $0x708] sm:$0xff]  ;;  %v4695_v62 = vadd.f32 %v11856_v30, %v11957_v9  ;;  %v6215_v30 = vld [vmem:[#allocation13 + $0xf20] sm:$0xff] }
 0xa02   :  { %7141 = vmatmul.f32.vlgmr.msrb.gmra.mxu1 %v11835_v33  ;;  %6149 = vmatpush.msra.mxu3 %v6037_v15  ;;  %v7224_v15 = vld [vmem:[#allocation13 + $0x1c80] sm:$0xff] }
 0xa03   :  { %7272 = vmatpush.msra.mxu1 %v7238_v17  ;;  %v12147_v51 = vpop.f32.mrf.mxu2  ;;  %v4981_v41 = vpop.f32.mrf.mxu3  ;;  %6269 = vmatpush.msrb.mxu2 %v6229_v14  ;;  %v5800_v17 = vld [vmem:[#allocation13 + $0x9f0] sm:$0xff]  ;;  %v4698_v14 = vadd.f32 %v11866_v47, %v11957_v9 }
 0xa04   :  { %v4982_v37 = vadd.f32 %v4981_v41, %v4837_v12  ;;  %5727 = vmatpush.msra.mxu0 %v5630_v19  ;;  %6150 = vmatpush.msra.mxu3 %v6035_v20  ;;  %v5798_v12 = vld [vmem:[#allocation13 + $0x9e0] sm:$0xff]  ;;  %v4840_v19 = vadd.f32 %v12136_v55, %v4695_v62  ;;  %v7222_v20 = vld [vmem:[#allocation13 + $0x1c70] sm:$0xff] }
 0xa05   :  { %7273 = vmatpush.msra.mxu1 %v7236_v36  ;;  %6270 = vmatpush.msrb.mxu2 %v6227_v5  ;;  %v6204_v36 = vld [vmem:[#allocation13 + $0xec8] sm:$0xff]  ;;  %v5796_v41 = vld [vmem:[#allocation13 + $0x9d0] sm:$0xff]  ;;  %v6202_v5 = vld [vmem:[#allocation13 + $0xeb8] sm:$0xff] }
 0xa06   :  { %v5083_v57 = vmax.f32 %v4982_v37, 0.0  ;;  %5728 = vmatpush.msra.mxu0 %v5628_v45  ;;  %6151 = vmatpush.msra.mxu3 %v6033_v8  ;;  %v5794_v45 = vld [vmem:[#allocation13 + $0x9c0] sm:$0xff]  ;;  %v6213_v47 = vld [vmem:[#allocation13 + $0xf10] sm:$0xff] }
 0xa07   :  { %7274 = vmatpush.msra.mxu1 %v7234_v50  ;;  %6005 = vmatmul.f32.vlgmr.msrb.gmra.mxu3 %v11701_v43  ;;  %v6219_v43 = vld [vmem:[#allocation13 + $0xf40] sm:$0xff] }
 0xa08   :  { %v12149_v29 = vmax.f32 %v5081_v34, %v5083_v57  ;;  %6271 = vmatpush.msrb.mxu2 %v6225_v28  ;;  %6283 = vmatpush.msrb.mxu3 %v6210_v0  ;;  %v7220_v50 = vld [vmem:[#allocation13 + $0x1c60] sm:$0xff]  ;;  %v6200_v34 = vld [vmem:[#allocation13 + $0xea8] sm:$0xff] }
 0xa09   :  { %7275 = vmatpush.msra.mxu1 %v7232_v56  ;;  %5729 = vmatpush.msra.mxu0 %v5626_v26  ;;  %v7218_v56 = vld [vmem:[#allocation13 + $0x1c50] sm:$0xff]  ;;  %v6211_v28 = vld [vmem:[#allocation13 + $0xf00] sm:$0xff]  ;;  %v6198_v26 = vld [vmem:[#allocation13 + $0xe98] sm:$0xff] }
 0xa0a   :  { %6272 = vmatpush.msrb.mxu2 %v6223_v3  ;;  %6284 = vmatpush.msrb.mxu3 %v6208_v61  ;;  %v7216_v0 = vld [vmem:[#allocation13 + $0x1c40] sm:$0xff] }
 0xa0b   :  { %7276 = vmatpush.msra.mxu1 %v7230_v39  ;;  %v12152_v22 = vpop.f32.mrf.mxu2  ;;  %v4984_v46 = vpop.f32.mrf.mxu3  ;;  %5730 = vmatpush.msra.mxu0 %v5624_v35  ;;  %v5790_v61 = vld [vmem:[#allocation13 + $0x9a0] sm:$0xff] }
 0xa0c   :  { %5731 = vmatmul.f32.vlgmr.msra.gmra.mxu0 %v12008_v52  ;;  %6273 = vmatpush.msrb.mxu2 %v6221_v24  ;;  %v4843_v52 = vadd.f32 %v12147_v51, %v4698_v14  ;;  %v4985_v37 = vadd.f32 %v4984_v46, %v4840_v19  ;;  %v5792_v51 = vld [vmem:[#allocation13 + $0x9b0] sm:$0xff]  ;;  %v12171_v14 = vpop.f32.mrf.mxu0 }
 0xa0d   :  { %7277 = vmatpush.msra.mxu1 %v7228_v38  ;;  %5822 = vmatpush.msrb.mxu0 %v5800_v17  ;;  %v7214_v38 = vld [vmem:[#allocation13 + $0x1c30] sm:$0xff]  ;;  %v6194_v17 = vld [vmem:[#allocation13 + $0xe78] sm:$0xff] }
 0xa0e   :  { %6285 = vmatpush.msrb.mxu3 %v6206_v49  ;;  %6274 = vmatpush.msrb.mxu2 %v6219_v43  ;;  %v5085_v39 = vmax.f32 %v4985_v37, 0.0  ;;  %v6388_v24 = vld [vmem:[#allocation13 + $0x11f0] sm:$0xff]  ;;  %v6386_v49 = vld [vmem:[#allocation13 + $0x11e0] sm:$0xff] }
 0xa0f   :  { %7278 = vmatpush.msra.mxu1 %v7226_v58  ;;  %5823 = vmatpush.msrb.mxu0 %v5798_v12  ;;  %v5788_v46 = vld [vmem:[#allocation13 + $0x990] sm:$0xff]  ;;  %v7212_v58 = vld [vmem:[#allocation13 + $0x1c20] sm:$0xff] }
 0xa10   :  { %6286 = vmatpush.msrb.mxu3 %v6204_v36  ;;  %6275 = vmatpush.msrb.mxu2 %v6217_v6  ;;  %v5786_v43 = vld [vmem:[#allocation13 + $0x980] sm:$0xff]  ;;  %v7210_v12 = vld [vmem:[#allocation13 + $0x1c10] sm:$0xff]  ;;  %v6192_v36 = vld [vmem:[#allocation13 + $0xe68] sm:$0xff]  ;;  %v12169_v6 = vpop.f32.mrf.mxu1 }
 0xa11   :  { %7279 = vmatpush.msra.mxu1 %v7224_v15  ;;  %5824 = vmatpush.msrb.mxu0 %v5796_v41  ;;  %v6384_v19 = vld [vmem:[#allocation13 + $0x11d0] sm:$0xff]  ;;  %v4701_v41 = vadd.f32 %v11873_v25, %v11957_v9 }
 0xa12   :  { %6152 = vmatmul.f32.vlgmr.msra.gmra.mxu3 %v11718_v32  ;;  %6276 = vmatpush.msrb.mxu2 %v6215_v30  ;;  %v6196_v32 = vld [vmem:[#allocation13 + $0xe88] sm:$0xff]  ;;  %v7208_v30 = vld [vmem:[#allocation13 + $0x1c00] sm:$0xff]  ;;  %v6380_v25 = vld [vmem:[#allocation13 + $0x11b0] sm:$0xff] }
 0xa13   :  { %7280 = vmatpush.msra.mxu1 %v7222_v20  ;;  %v12161_v8 = vpop.f32.mrf.mxu2  ;;  %v4987_v55 = vpop.f32.mrf.mxu3  ;;  %6287 = vmatpush.msrb.mxu3 %v6202_v5  ;;  %v5784_v20 = vld [vmem:[#allocation13 + $0x970] sm:$0xff]  ;;  %v4704_v5 = vadd.f32 %v11883_v63, %v11957_v9  ;;  %v4846_v37 = vadd.f32 %v12152_v22, %v4701_v41  ;;  %v6186_v63 = vld [vmem:[#allocation13 + $0xe38] sm:$0xff]  ;;  %v6378_v22 = vld [vmem:[#allocation13 + $0x11a0] sm:$0xff] }
 0xa14   :  { %v4988_v57 = vadd.f32 %v4987_v55, %v4843_v52  ;;  %5825 = vmatpush.msrb.mxu0 %v5794_v45  ;;  %6277 = vmatpush.msrb.mxu2 %v6213_v47  ;;  %v6190_v52 = vld [vmem:[#allocation13 + $0xe58] sm:$0xff]  ;;  %v7385_v45 = vld [vmem:[#allocation13 + $0x1ef0] sm:$0xff]  ;;  %v5782_v47 = vld [vmem:[#allocation13 + $0x960] sm:$0xff] }
 0xa15   :  { %7281 = vmatpush.msra.mxu1 %v7220_v50  ;;  %6288 = vmatpush.msrb.mxu3 %v6200_v34  ;;  %v6382_v50 = vld [vmem:[#allocation13 + $0x11c0] sm:$0xff]  ;;  %v6188_v55 = vld [vmem:[#allocation13 + $0xe48] sm:$0xff]  ;;  %v4849_v34 = vadd.f32 %v12161_v8, %v4704_v5 }
 0xa16   :  { %v5087_v3 = vmax.f32 %v4988_v57, 0.0  ;;  %5826 = vmatpush.msrb.mxu0 %v5792_v51  ;;  %6278 = vmatpush.msrb.mxu2 %v6211_v28  ;;  %v5780_v57 = vld [vmem:[#allocation13 + $0x950] sm:$0xff]  ;;  %v7379_v8 = vld [vmem:[#allocation13 + $0x1ec0] sm:$0xff] }
 0xa17   :  { %7282 = vmatpush.msra.mxu1 %v7218_v56  ;;  %6289 = vmatpush.msrb.mxu3 %v6198_v26  ;;  %v7383_v56 = vld [vmem:[#allocation13 + $0x1ee0] sm:$0xff] }
 0xa18   :  { %v12164_v35 = vmax.f32 %v5085_v39, %v5087_v3  ;;  %5827 = vmatpush.msrb.mxu0 %v5790_v61  ;;  %6279 = vmatmul.f32.vlgmr.msrb.gmra.mxu2 %v12054_v13  ;;  %v7381_v39 = vld [vmem:[#allocation13 + $0x1ed0] sm:$0xff]  ;;  %v5778_v26 = vld [vmem:[#allocation13 + $0x940] sm:$0xff]  ;;  %v6184_v61 = vld [vmem:[#allocation13 + $0xe28] sm:$0xff] }
 0xa19   :  { %7283 = vmatpush.msra.mxu1 %v7216_v0  ;;  %6290 = vmatpush.msrb.mxu3 %v6196_v32  ;;  %v7375_v41 = vld [vmem:[#allocation13 + $0x1ea0] sm:$0xff] }
 0xa1a   :  { %6410 = vmatpush.msra.mxu2 %v6388_v24  ;;  %5828 = vmatpush.msrb.mxu0 %v5788_v46  ;;  %v5776_v24 = vld [vmem:[#allocation13 + $0x930] sm:$0xff] }
 0xa1b   :  { %7284 = vmatpush.msra.mxu1 %v7214_v38  ;;  %v12167_v62 = vpop.f32.mrf.mxu2  ;;  %v4990_v15 = vpop.f32.mrf.mxu3  ;;  %6291 = vmatpush.msrb.mxu3 %v6194_v17  ;;  %v6376_v38 = vld [vmem:[#allocation13 + $0x1190] sm:$0xff] }
 0xa1c   :  { %6411 = vmatpush.msra.mxu2 %v6386_v49  ;;  %5829 = vmatpush.msrb.mxu0 %v5786_v43  ;;  %v4991_v51 = vadd.f32 %v4990_v15, %v4846_v37  ;;  %v12184_v17 = vpop.f32.mrf.mxu0  ;;  %v6182_v49 = vld [vmem:[#allocation13 + $0xe18] sm:$0xff]  ;;  %v6374_v43 = vld [vmem:[#allocation13 + $0x1180] sm:$0xff]  ;;  %v7377_v15 = vld [vmem:[#allocation13 + $0x1eb0] sm:$0xff] }
 0xa1d   :  { %7285 = vmatpush.msra.mxu1 %v7212_v58  ;;  %6292 = vmatpush.msrb.mxu3 %v6192_v36  ;;  %v12182_v58 = vpop.f32.mrf.mxu1  ;;  %v7373_v37 = vld [vmem:[#allocation13 + $0x1e90] sm:$0xff] }
 0xa1e   :  { %6412 = vmatpush.msra.mxu2 %v6384_v19  ;;  %5830 = vmatpush.msrb.mxu0 %v5784_v20  ;;  %v5089_v32 = vmax.f32 %v4991_v51, 0.0  ;;  %v6180_v19 = vld [vmem:[#allocation13 + $0xe08] sm:$0xff]  ;;  %v6372_v20 = vld [vmem:[#allocation13 + $0x1170] sm:$0xff]  ;;  %v5801_v51 = vld [vmem:[#allocation13 + $0x9f8] sm:$0xff] }
 0xa1f   :  { %7286 = vmatpush.msra.mxu1 %v7210_v12  ;;  %6293 = vmatpush.msrb.mxu3 %v6190_v52  ;;  %v5774_v12 = vld [vmem:[#allocation13 + $0x920] sm:$0xff]  ;;  %v5772_v52 = vld [vmem:[#allocation13 + $0x910] sm:$0xff] }
 0xa20   :  { %6413 = vmatpush.msra.mxu2 %v6382_v50  ;;  %5831 = vmatpush.msrb.mxu0 %v5782_v47  ;;  %v6355_v47 = vld [vmem:[#allocation13 + $0x10e8] sm:$0xff] }
 0xa21   :  { %7287 = vmatpush.msra.mxu1 %v7208_v30  ;;  %6294 = vmatpush.msrb.mxu3 %v6188_v55  ;;  %v6357_v30 = vld [vmem:[#allocation13 + $0x10f8] sm:$0xff]  ;;  %v5770_v55 = vld [vmem:[#allocation13 + $0x900] sm:$0xff] }
 0xa22   :  { %7288 = vmatmul.f32.vlgmr.msra.gmra.mxu1 %v11852_v4  ;;  %6414 = vmatpush.msra.mxu2 %v6380_v25  ;;  %v4707_v25 = vadd.f32 %v11889_v42, %v11957_v9  ;;  %v6353_v42 = vld [vmem:[#allocation13 + $0x10d8] sm:$0xff] }
 0xa23   :  { %7419 = vmatpush.msrb.mxu1 %v7385_v45  ;;  %v12180_v28 = vpop.f32.mrf.mxu2  ;;  %v4993_v0 = vpop.f32.mrf.mxu3  ;;  %5832 = vmatpush.msrb.mxu0 %v5780_v57  ;;  %v6370_v45 = vld [vmem:[#allocation13 + $0x1160] sm:$0xff] }
 0xa24   :  { %v4994_v3 = vadd.f32 %v4993_v0, %v4849_v34  ;;  %6295 = vmatpush.msrb.mxu3 %v6186_v63  ;;  %6415 = vmatpush.msra.mxu2 %v6378_v22  ;;  %v12195_v57 = vpop.f32.mrf.mxu0  ;;  %v6368_v63 = vld [vmem:[#allocation13 + $0x1150] sm:$0xff]  ;;  %v4710_v22 = vadd.f32 %v11899_v10, %v11957_v9  ;;  %v5797_v10 = vld [vmem:[#allocation13 + $0x9d8] sm:$0xff] }
 0xa25   :  { %7420 = vmatpush.msrb.mxu1 %v7383_v56  ;;  %5833 = vmatpush.msrb.mxu0 %v5778_v26  ;;  %v7371_v56 = vld [vmem:[#allocation13 + $0x1e80] sm:$0xff]  ;;  %v12193_v34 = vpop.f32.mrf.mxu1  ;;  %v7369_v0 = vld [vmem:[#allocation13 + $0x1e70] sm:$0xff] }
 0xa26   :  { %v5091_v46 = vmax.f32 %v4994_v3, 0.0  ;;  %6296 = vmatpush.msrb.mxu3 %v6184_v61  ;;  %6416 = vmatpush.msra.mxu2 %v6376_v38  ;;  %v6366_v26 = vld [vmem:[#allocation13 + $0x1140] sm:$0xff]  ;;  %v4855_v61 = vadd.f32 %v12180_v28, %v4710_v22  ;;  %v6351_v38 = vld [vmem:[#allocation13 + $0x10c8] sm:$0xff] }
 0xa27   :  { %7421 = vmatpush.msrb.mxu1 %v7381_v39  ;;  %5834 = vmatpush.msrb.mxu0 %v5776_v24  ;;  %v5799_v39 = vld [vmem:[#allocation13 + $0x9e8] sm:$0xff]  ;;  %v7367_v3 = vld [vmem:[#allocation13 + $0x1e60] sm:$0xff] }
 0xa28   :  { %v12186_v36 = vmax.f32 %v5089_v32, %v5091_v46  ;;  %6297 = vmatpush.msrb.mxu3 %v6182_v49  ;;  %6417 = vmatpush.msra.mxu2 %v6374_v43  ;;  %v7365_v46 = vld [vmem:[#allocation13 + $0x1e50] sm:$0xff]  ;;  %v6349_v49 = vld [vmem:[#allocation13 + $0x10b8] sm:$0xff]  ;;  %v6362_v28 = vld [vmem:[#allocation13 + $0x1120] sm:$0xff] }
 0xa29   :  { %7422 = vmatpush.msrb.mxu1 %v7379_v8  ;;  %5835 = vmatpush.msrb.mxu0 %v5774_v12  ;;  %v7363_v12 = vld [vmem:[#allocation13 + $0x1e40] sm:$0xff]  ;;  %v6343_v22 = vld [vmem:[#allocation13 + $0x1088] sm:$0xff] }
 0xa2a   :  { %6298 = vmatpush.msrb.mxu3 %v6180_v19  ;;  %6418 = vmatpush.msra.mxu2 %v6372_v20  ;;  %v6347_v19 = vld [vmem:[#allocation13 + $0x10a8] sm:$0xff] }
 0xa2b   :  { %7423 = vmatpush.msrb.mxu1 %v7377_v15  ;;  %v12188_v50 = vpop.f32.mrf.mxu2  ;;  %v4996_v5 = vpop.f32.mrf.mxu3  ;;  %6299 = vmatmul.f32.vlgmr.msrb.gmra.mxu3 %v11734_v18  ;;  %v4852_v18 = vadd.f32 %v12167_v62, %v4707_v25  ;;  %v6364_v62 = vld [vmem:[#allocation13 + $0x1130] sm:$0xff]  ;;  %v5795_v15 = vld [vmem:[#allocation13 + $0x9c8] sm:$0xff] }
 0xa2c   :  { %6430 = vmatpush.msra.mxu3 %v6357_v30  ;;  %5836 = vmatpush.msrb.mxu0 %v5772_v52  ;;  %v12206_v52 = vpop.f32.mrf.mxu0  ;;  %v5791_v25 = vld [vmem:[#allocation13 + $0x9a8] sm:$0xff] }
 0xa2d   :  { %7424 = vmatpush.msrb.mxu1 %v7375_v41  ;;  %6419 = vmatpush.msra.mxu2 %v6370_v45  ;;  %v4997_v8 = vadd.f32 %v4996_v5, %v4852_v18  ;;  %v12204_v30 = vpop.f32.mrf.mxu1  ;;  %v5793_v5 = vld [vmem:[#allocation13 + $0x9b8] sm:$0xff]  ;;  %v7361_v45 = vld [vmem:[#allocation13 + $0x1e30] sm:$0xff] }
 0xa2e   :  { %6431 = vmatpush.msra.mxu3 %v6355_v47  ;;  %5837 = vmatpush.msrb.mxu0 %v5770_v55  ;;  %v6345_v47 = vld [vmem:[#allocation13 + $0x1098] sm:$0xff] }
 0xa2f   :  { %7425 = vmatpush.msrb.mxu1 %v7373_v37  ;;  %5838 = vmatmul.f32.vlgmr.msrb.gmra.mxu0 %v12019_v31  ;;  %v5093_v20 = vmax.f32 %v4997_v8, 0.0  ;;  %v6360_v37 = vld [vmem:[#allocation13 + $0x1110] sm:$0xff]  ;;  %v5789_v18 = vld [vmem:[#allocation13 + $0x998] sm:$0xff]  ;;  %v7355_v8 = vld [vmem:[#allocation13 + $0x1e00] sm:$0xff] }
 0xa30   :  { %5862 = vmatpush.msra.mxu0 %v5801_v51  ;;  %6420 = vmatpush.msra.mxu2 %v6368_v63  ;;  %v4719_v51 = vadd.f32 %v11922_v60, %v11957_v9  ;;  %v7359_v63 = vld [vmem:[#allocation13 + $0x1e20] sm:$0xff]  ;;  %v4713_v60 = vadd.f32 %v11906_v16, %v11957_v9  ;;  %v6531_v16 = vld [vmem:[#allocation13 + $0x13d0] sm:$0xff] }
 0xa31   :  { %7426 = vmatpush.msrb.mxu1 %v7371_v56  ;;  %6432 = vmatpush.msra.mxu3 %v6353_v42  ;;  %v6358_v56 = vld [vmem:[#allocation13 + $0x1100] sm:$0xff] }
 0xa32   :  { %5863 = vmatpush.msra.mxu0 %v5799_v39  ;;  %6421 = vmatpush.msra.mxu2 %v6366_v26  ;;  %v7357_v39 = vld [vmem:[#allocation13 + $0x1e10] sm:$0xff] }
 0xa33   :  { %7427 = vmatpush.msrb.mxu1 %v7369_v0  ;;  %v12202_v32 = vpop.f32.mrf.mxu2  ;;  %v4999_v24 = vpop.f32.mrf.mxu3  ;;  %6433 = vmatpush.msra.mxu3 %v6351_v38  ;;  %v6535_v26 = vld [vmem:[#allocation13 + $0x13f0] sm:$0xff]  ;;  %v5787_v38 = vld [vmem:[#allocation13 + $0x988] sm:$0xff] }
 0xa34   :  { %v5000_v43 = vadd.f32 %v4999_v24, %v4855_v61  ;;  %5864 = vmatpush.msra.mxu0 %v5797_v10  ;;  %6422 = vmatpush.msra.mxu2 %v6364_v62  ;;  %v6341_v61 = vld [vmem:[#allocation13 + $0x1078] sm:$0xff]  ;;  %v6533_v10 = vld [vmem:[#allocation13 + $0x13e0] sm:$0xff]  ;;  %v12219_v24 = vpop.f32.mrf.mxu0 }
 0xa35   :  { %7428 = vmatpush.msrb.mxu1 %v7367_v3  ;;  %6434 = vmatpush.msra.mxu3 %v6349_v49  ;;  %v12217_v62 = vpop.f32.mrf.mxu1  ;;  %v4716_v49 = vadd.f32 %v11916_v54, %v11957_v9  ;;  %v7530_v54 = vld [vmem:[#allocation13 + $0x20e0] sm:$0xff] }
 0xa36   :  { %v5095_v41 = vmax.f32 %v5000_v43, 0.0  ;;  %5865 = vmatpush.msra.mxu0 %v5795_v15  ;;  %6423 = vmatpush.msra.mxu2 %v6362_v28  ;;  %v4858_v43 = vadd.f32 %v12188_v50, %v4713_v60  ;;  %v7532_v15 = vld [vmem:[#allocation13 + $0x20f0] sm:$0xff]  ;;  %v5779_v60 = vld [vmem:[#allocation13 + $0x948] sm:$0xff] }
 0xa37   :  { %7429 = vmatpush.msrb.mxu1 %v7365_v46  ;;  %6435 = vmatpush.msra.mxu3 %v6347_v19  ;;  %v6339_v46 = vld [vmem:[#allocation13 + $0x1068] sm:$0xff]  ;;  %v12736_v28 = vld [vmem:[#allocation72_spill] sm:$0xff]  ;;  %v4861_v50 = vadd.f32 %v12202_v32, %v4716_v49 }
 0xa38   :  { %v12208_v55 = vmax.f32 %v5093_v20, %v5095_v41  ;;  %5866 = vmatpush.msra.mxu0 %v5793_v5  ;;  %6424 = vmatpush.msra.mxu2 %v6360_v37  ;;  %v5785_v19 = vld [vmem:[#allocation13 + $0x978] sm:$0xff]  ;;  %v5361_v41 = vadd.f32 %v12184_v17, %v12182_v58  ;;  %v12737_v5 = vld [vmem:[#allocation50_spill] sm:$0xff]  ;;  %v7524_v49 = vld [vmem:[#allocation13 + $0x20b0] sm:$0xff] }
 0xa39   :  { %7430 = vmatpush.msrb.mxu1 %v7363_v12  ;;  %6436 = vmatpush.msra.mxu3 %v6345_v47  ;;  %v4722_v12 = vadd.f32 %v12736_v28, %v11957_v9  ;;  %v6337_v20 = vld [vmem:[#allocation13 + $0x1058] sm:$0xff]  ;;  %v6529_v37 = vld [vmem:[#allocation13 + $0x13c0] sm:$0xff]  ;;  %v5783_v47 = vld [vmem:[#allocation13 + $0x968] sm:$0xff] }
 0xa3a   :  { %5867 = vmatpush.msra.mxu0 %v5791_v25  ;;  %6425 = vmatpush.msra.mxu2 %v6358_v56  ;;  %v6335_v25 = vld [vmem:[#allocation13 + $0x1048] sm:$0xff]  ;;  %v5781_v17 = vld [vmem:[#allocation13 + $0x958] sm:$0xff]  ;;  %v5421_v32 = vadd.f32 %v12204_v30, %v5361_v41  ;;  %v6521_v41 = vld [vmem:[#allocation13 + $0x1380] sm:$0xff] }
 0xa3b   :  { %7431 = vmatpush.msrb.mxu1 %v7361_v45  ;;  %v4863_v0 = vpop.f32.mrf.mxu2  ;;  %v5002_v42 = vpop.f32.mrf.mxu3  ;;  %6437 = vmatpush.msra.mxu3 %v6343_v22  ;;  %v6527_v22 = vld [vmem:[#allocation13 + $0x13b0] sm:$0xff]  ;;  %v6329_v28 = vld [vmem:[#allocation13 + $0x1018] sm:$0xff] }
 0xa3c   :  { %v12212_v3 = vadd.f32 %v4863_v0, %v4719_v51  ;;  %6426 = vmatmul.f32.vlgmr.msra.gmra.mxu2 %v12068_v44  ;;  %5868 = vmatpush.msra.mxu0 %v5789_v18  ;;  %v5003_v45 = vadd.f32 %v5002_v42, %v4858_v43  ;;  %v6333_v0 = vld [vmem:[#allocation13 + $0x1038] sm:$0xff]  ;;  %v7526_v42 = vld [vmem:[#allocation13 + $0x20c0] sm:$0xff]  ;;  %v6523_v43 = vld [vmem:[#allocation13 + $0x1390] sm:$0xff] }
 0xa3d   :  { %7432 = vmatpush.msrb.mxu1 %v7359_v63  ;;  %6557 = vmatpush.msrb.mxu2 %v6535_v26  ;;  %v7528_v63 = vld [vmem:[#allocation13 + $0x20d0] sm:$0xff] }
 0xa3e   :  { %6438 = vmatpush.msra.mxu3 %v6341_v61  ;;  %5869 = vmatpush.msra.mxu0 %v5787_v38  ;;  %v5097_v26 = vmax.f32 %v5003_v45, 0.0  ;;  %v5565_v38 = vpop.f32.mrf.mxu1 }
 0xa3f   :  { %7433 = vmatpush.msrb.mxu1 %v7357_v39  ;;  %6558 = vmatpush.msrb.mxu2 %v6533_v10  ;;  %v6525_v39 = vld [vmem:[#allocation13 + $0x13a0] sm:$0xff] }
 0xa40   :  { %6439 = vmatpush.msra.mxu3 %v6339_v46  ;;  %5870 = vmatpush.msra.mxu0 %v5785_v19  ;;  %v5441_v46 = vadd.f32 %v12206_v52, %v5421_v32  ;;  %v5775_v52 = vld [vmem:[#allocation13 + $0x928] sm:$0xff]  ;;  %v7516_v32 = vld [vmem:[#allocation13 + $0x2070] sm:$0xff] }
 0xa41   :  { %7434 = vmatpush.msrb.mxu1 %v7355_v8  ;;  %6559 = vmatpush.msrb.mxu2 %v6531_v16  ;;  %v6331_v8 = vld [vmem:[#allocation13 + $0x1028] sm:$0xff]  ;;  %v5777_v16 = vld [vmem:[#allocation13 + $0x938] sm:$0xff] }
 0xa42   :  { %7435 = vmatmul.f32.vlgmr.msrb.gmra.mxu1 %v12737_v5  ;;  %6440 = vmatpush.msra.mxu3 %v6337_v20  ;;  %v7522_v20 = vld [vmem:[#allocation13 + $0x20a0] sm:$0xff] }
 0xa43   :  { %7566 = vmatpush.msra.mxu1 %v7532_v15  ;;  %v4866_v56 = vpop.f32.mrf.mxu2  ;;  %v5005_v51 = vpop.f32.mrf.mxu3  ;;  %6560 = vmatpush.msrb.mxu2 %v6529_v37 }
 0xa44   :  { %v12230_v18 = vadd.f32 %v4866_v56, %v4722_v12  ;;  %v5006_v58 = vadd.f32 %v5005_v51, %v4861_v50  ;;  %5871 = vmatpush.msra.mxu0 %v5783_v47  ;;  %6441 = vmatpush.msra.mxu3 %v6335_v25  ;;  %v12738_v12 = vld [vmem:[#allocation58_spill] sm:$0xff]  ;;  %v7520_v47 = vld [vmem:[#allocation13 + $0x2090] sm:$0xff] }
 0xa45   :  { %7567 = vmatpush.msra.mxu1 %v7530_v54  ;;  %6561 = vmatpush.msrb.mxu2 %v6527_v22  ;;  %v4725_v19 = vadd.f32 %v12738_v12, %v11957_v9  ;;  %v6327_v50 = vld [vmem:[#allocation13 + $0x1008] sm:$0xff]  ;;  %v6519_v51 = vld [vmem:[#allocation13 + $0x1370] sm:$0xff]  ;;  %v7518_v22 = vld [vmem:[#allocation13 + $0x2080] sm:$0xff] }
 0xa46   :  { %v5099_v61 = vmax.f32 %v5006_v58, 0.0  ;;  %5872 = vmatpush.msra.mxu0 %v5781_v17  ;;  %6442 = vmatpush.msra.mxu3 %v6333_v0  ;;  %v5773_v58 = vld [vmem:[#allocation13 + $0x918] sm:$0xff]  ;;  %v6517_v17 = vld [vmem:[#allocation13 + $0x1360] sm:$0xff]  ;;  %v6502_v0 = vld [vmem:[#allocation13 + $0x12e8] sm:$0xff] }
 0xa47   :  { %7568 = vmatpush.msra.mxu1 %v7528_v63  ;;  %v5585_v10 = vpop.f32.mrf.mxu0  ;;  %6562 = vmatpush.msrb.mxu2 %v6525_v39  ;;  %v6504_v63 = vld [vmem:[#allocation13 + $0x12f8] sm:$0xff]  ;;  %v7510_v12 = vld [vmem:[#allocation13 + $0x2040] sm:$0xff] }
 0xa48   :  { %v12234_v15 = vmax.f32 %v5097_v26, %v5099_v61  ;;  %v5586_v30 = vadd.f32 %v5585_v10, %v5565_v38  ;;  %5873 = vmatpush.msra.mxu0 %v5779_v60  ;;  %6443 = vmatpush.msra.mxu3 %v6331_v8  ;;  %v12739_v39 = vld [vmem:[#allocation76_spill] sm:$0xff]  ;;  %v7514_v61 = vld [vmem:[#allocation13 + $0x2060] sm:$0xff] }
 0xa49   :  { %7569 = vmatpush.msra.mxu1 %v7526_v42  ;;  %6563 = vmatpush.msrb.mxu2 %v6523_v43  ;;  %v5771_v42 = vld [vmem:[#allocation13 + $0x908] sm:$0xff]  ;;  %v4728_v26 = vadd.f32 %v12739_v39, %v11957_v9  ;;  %v5948_v38 = vld [vmem:[#allocation13 + $0xbf8] sm:$0xff] }
 0xa4a   :  { %v12238_v54 = vadd.f32 %v5586_v30, %v5441_v46  ;;  %5874 = vmatpush.msra.mxu0 %v5777_v16  ;;  %6444 = vmatpush.msra.mxu3 %v6329_v28  ;;  %v6500_v60 = vld [vmem:[#allocation13 + $0x12d8] sm:$0xff]  ;;  %v7512_v46 = vld [vmem:[#allocation13 + $0x2050] sm:$0xff]  ;;  %v6498_v16 = vld [vmem:[#allocation13 + $0x12c8] sm:$0xff] }
 0xa4b   :  { %7570 = vmatpush.msra.mxu1 %v7524_v49  ;;  %v4869_v37 = vpop.f32.mrf.mxu2  ;;  %v5008_v45 = vpop.f32.mrf.mxu3  ;;  %6564 = vmatpush.msrb.mxu2 %v6521_v41  ;;  %v5946_v49 = vld [vmem:[#allocation13 + $0xbe8] sm:$0xff]  ;;  %v6511_v28 = vld [vmem:[#allocation13 + $0x1330] sm:$0xff] }
 0xa4c   :  { %v12240_v25 = vadd.f32 %v4869_v37, %v4725_v19  ;;  %v5009_v56 = vadd.f32 %v5008_v45, %v12212_v3  ;;  %5875 = vmatpush.msra.mxu0 %v5775_v52  ;;  %6445 = vmatpush.msra.mxu3 %v6327_v50  ;;  %v6515_v3 = vld [vmem:[#allocation13 + $0x1350] sm:$0xff]  ;;  %v5944_v19 = vld [vmem:[#allocation13 + $0xbd8] sm:$0xff]  ;;  %v6509_v52 = vld [vmem:[#allocation13 + $0x1320] sm:$0xff] }
 0xa4d   :  { %7571 = vmatpush.msra.mxu1 %v7522_v20  ;;  %6446 = vmatmul.f32.vlgmr.msra.gmra.mxu3 %v11751_v40  ;;  %v6513_v40 = vld [vmem:[#allocation13 + $0x1340] sm:$0xff]  ;;  %v7508_v50 = vld [vmem:[#allocation13 + $0x2030] sm:$0xff]  ;;  %v5942_v37 = vld [vmem:[#allocation13 + $0xbc8] sm:$0xff] }
 0xa4e   :  { %6565 = vmatpush.msrb.mxu2 %v6519_v51  ;;  %6577 = vmatpush.msrb.mxu3 %v6504_v63  ;;  %v5101_v20 = vmax.f32 %v5009_v56, 0.0  ;;  %v12740_v51 = vld [vmem:[#allocation79_spill] sm:$0xff]  ;;  %v7506_v56 = vld [vmem:[#allocation13 + $0x2020] sm:$0xff] }
 0xa4f   :  { %7572 = vmatpush.msra.mxu1 %v7520_v47  ;;  %5876 = vmatpush.msra.mxu0 %v5773_v58  ;;  %v6507_v47 = vld [vmem:[#allocation13 + $0x1310] sm:$0xff]  ;;  %v4731_v63 = vadd.f32 %v12740_v51, %v11957_v9  ;;  %v6492_v58 = vld [vmem:[#allocation13 + $0x1298] sm:$0xff]  ;;  %v6482_v51 = vld [vmem:[#allocation13 + $0x1248] sm:$0xff] }
 0xa50   :  { %6566 = vmatpush.msrb.mxu2 %v6517_v17  ;;  %6578 = vmatpush.msrb.mxu3 %v6502_v0  ;;  %v6505_v17 = vld [vmem:[#allocation13 + $0x1300] sm:$0xff] }
 0xa51   :  { %7573 = vmatpush.msra.mxu1 %v7518_v22  ;;  %5877 = vmatpush.msra.mxu0 %v5771_v42  ;;  %v5940_v22 = vld [vmem:[#allocation13 + $0xbb8] sm:$0xff]  ;;  %v7504_v42 = vld [vmem:[#allocation13 + $0x2010] sm:$0xff] }
 0xa52   :  { %5878 = vmatmul.f32.vlgmr.msra.gmra.mxu0 %v12019_v31  ;;  %6567 = vmatpush.msrb.mxu2 %v6515_v3  ;;  %v6496_v31 = vld [vmem:[#allocation13 + $0x12b8] sm:$0xff]  ;;  %v5938_v3 = vld [vmem:[#allocation13 + $0xba8] sm:$0xff] }
 0xa53   :  { %7574 = vmatpush.msra.mxu1 %v7516_v32  ;;  %v4872_v8 = vpop.f32.mrf.mxu2  ;;  %v5011_v10 = vpop.f32.mrf.mxu3  ;;  %6009 = vmatpush.msrb.mxu0 %v5948_v38  ;;  %v6682_v38 = vld [vmem:[#allocation13 + $0x15f0] sm:$0xff] }
 0xa54   :  { %v12247_v43 = vadd.f32 %v4872_v8, %v4728_v26  ;;  %v5012_v30 = vadd.f32 %v5011_v10, %v12230_v18  ;;  %6579 = vmatpush.msrb.mxu3 %v6500_v60  ;;  %6568 = vmatpush.msrb.mxu2 %v6513_v40  ;;  %v6494_v18 = vld [vmem:[#allocation13 + $0x12a8] sm:$0xff]  ;;  %v7502_v60 = vld [vmem:[#allocation13 + $0x2000] sm:$0xff]  ;;  %v5936_v40 = vld [vmem:[#allocation13 + $0xb98] sm:$0xff] }
 0xa55   :  { %7575 = vmatpush.msra.mxu1 %v7514_v61  ;;  %6010 = vmatpush.msrb.mxu0 %v5946_v49  ;;  %v6490_v61 = vld [vmem:[#allocation13 + $0x1288] sm:$0xff]  ;;  %v6488_v8 = vld [vmem:[#allocation13 + $0x1278] sm:$0xff]  ;;  %v6680_v10 = vld [vmem:[#allocation13 + $0x15e0] sm:$0xff] }
 0xa56   :  { %v5103_v41 = vmax.f32 %v5012_v30, 0.0  ;;  %6580 = vmatpush.msrb.mxu3 %v6498_v16  ;;  %6569 = vmatpush.msrb.mxu2 %v6511_v28  ;;  %v5934_v49 = vld [vmem:[#allocation13 + $0xb88] sm:$0xff]  ;;  %v6678_v28 = vld [vmem:[#allocation13 + $0x15d0] sm:$0xff] }
 0xa57   :  { %7576 = vmatpush.msra.mxu1 %v7512_v46  ;;  %6011 = vmatpush.msrb.mxu0 %v5944_v19  ;;  %v7679_v46 = vld [vmem:[#allocation13 + $0x22f0] sm:$0xff]  ;;  %v6486_v16 = vld [vmem:[#allocation13 + $0x1268] sm:$0xff]  ;;  %v7677_v19 = vld [vmem:[#allocation13 + $0x22e0] sm:$0xff] }
 0xa58   :  { %v12250_v45 = vmax.f32 %v5101_v20, %v5103_v41  ;;  %6581 = vmatpush.msrb.mxu3 %v6496_v31  ;;  %6570 = vmatpush.msrb.mxu2 %v6509_v52  ;;  %v5932_v20 = vld [vmem:[#allocation13 + $0xb78] sm:$0xff] }
 0xa59   :  { %7577 = vmatpush.msra.mxu1 %v7510_v12  ;;  %6012 = vmatpush.msrb.mxu0 %v5942_v37  ;;  %v12742_v12 = vld [vmem:[#allocation51_spill] sm:$0xff]  ;;  %v6484_v52 = vld [vmem:[#allocation13 + $0x1258] sm:$0xff] }
 0xa5a   :  { %6582 = vmatpush.msrb.mxu3 %v6494_v18  ;;  %6571 = vmatpush.msrb.mxu2 %v6507_v47  ;;  %v5930_v47 = vld [vmem:[#allocation13 + $0xb68] sm:$0xff] }
 0xa5b   :  { %7578 = vmatpush.msra.mxu1 %v7508_v50  ;;  %v4875_v0 = vpop.f32.mrf.mxu2  ;;  %v5014_v32 = vpop.f32.mrf.mxu3  ;;  %6013 = vmatpush.msrb.mxu0 %v5940_v22  ;;  %v6676_v50 = vld [vmem:[#allocation13 + $0x15c0] sm:$0xff] }
 0xa5c   :  { %v12254_v39 = vadd.f32 %v4875_v0, %v4731_v63  ;;  %v5015_v26 = vadd.f32 %v5014_v32, %v12240_v25  ;;  %6583 = vmatpush.msrb.mxu3 %v6492_v58  ;;  %6572 = vmatpush.msrb.mxu2 %v6505_v17  ;;  %v12741_v25 = vld [vmem:[#allocation74_spill] sm:$0xff]  ;;  %v6674_v63 = vld [vmem:[#allocation13 + $0x15b0] sm:$0xff]  ;;  %v5928_v17 = vld [vmem:[#allocation13 + $0xb58] sm:$0xff] }
 0xa5d   :  { %7579 = vmatpush.msra.mxu1 %v7506_v56  ;;  %6014 = vmatpush.msrb.mxu0 %v5938_v3  ;;  %v4734_v30 = vadd.f32 %v12741_v25, %v11957_v9  ;;  %v7675_v9 = vld [vmem:[#allocation13 + $0x22d0] sm:$0xff]  ;;  %v7673_v58 = vld [vmem:[#allocation13 + $0x22c0] sm:$0xff]  ;;  %v6480_v0 = vld [vmem:[#allocation13 + $0x1238] sm:$0xff] }
 0xa5e   :  { %6584 = vmatpush.msrb.mxu3 %v6490_v61  ;;  %6573 = vmatmul.f32.vlgmr.msrb.gmra.mxu2 %v12083_v11  ;;  %v5105_v56 = vmax.f32 %v5015_v26, 0.0  ;;  %v6672_v32 = vld [vmem:[#allocation13 + $0x15a0] sm:$0xff]  ;;  %v5926_v3 = vld [vmem:[#allocation13 + $0xb48] sm:$0xff]  ;;  %v6666_v25 = vld [vmem:[#allocation13 + $0x1570] sm:$0xff] }
 0xa5f   :  { %7580 = vmatpush.msra.mxu1 %v7504_v42  ;;  %6704 = vmatpush.msra.mxu2 %v6682_v38  ;;  %v6478_v61 = vld [vmem:[#allocation13 + $0x1228] sm:$0xff]  ;;  %v6670_v38 = vld [vmem:[#allocation13 + $0x1590] sm:$0xff]  ;;  %v7669_v26 = vld [vmem:[#allocation13 + $0x22a0] sm:$0xff] }
 0xa60   :  { %6015 = vmatpush.msrb.mxu0 %v5936_v40  ;;  %6585 = vmatpush.msrb.mxu3 %v6488_v8  ;;  %v6476_v40 = vld [vmem:[#allocation13 + $0x1218] sm:$0xff]  ;;  %v6668_v8 = vld [vmem:[#allocation13 + $0x1580] sm:$0xff] }
 0xa61   :  { %7581 = vmatpush.msra.mxu1 %v7502_v60  ;;  %6705 = vmatpush.msra.mxu2 %v6680_v10  ;;  %v5924_v60 = vld [vmem:[#allocation13 + $0xb38] sm:$0xff]  ;;  %v7667_v10 = vld [vmem:[#allocation13 + $0x2290] sm:$0xff] }
 0xa62   :  { %7582 = vmatmul.f32.vlgmr.msra.gmra.mxu1 %v12742_v12  ;;  %6016 = vmatpush.msrb.mxu0 %v5934_v49  ;;  %v6474_v49 = vld [vmem:[#allocation13 + $0x1208] sm:$0xff] }
 0xa63   :  { %v4878_v41 = vpop.f32.mrf.mxu2  ;;  %v5017_v31 = vpop.f32.mrf.mxu3  ;;  %7713 = vmatpush.msrb.mxu1 %v7679_v46  ;;  %6586 = vmatpush.msrb.mxu3 %v6486_v16  ;;  %v5922_v46 = vld [vmem:[#allocation13 + $0xb28] sm:$0xff] }
 0xa64   :  { %v12261_v37 = vadd.f32 %v4878_v41, %v4734_v30  ;;  %v5018_v18 = vadd.f32 %v5017_v31, %v12247_v43  ;;  %6706 = vmatpush.msra.mxu2 %v6678_v28  ;;  %6017 = vmatpush.msrb.mxu0 %v5932_v20  ;;  %v7671_v43 = vld [vmem:[#allocation13 + $0x22b0] sm:$0xff]  ;;  %v7665_v30 = vld [vmem:[#allocation13 + $0x2280] sm:$0xff]  ;;  %v5920_v20 = vld [vmem:[#allocation13 + $0xb18] sm:$0xff] }
 0xa65   :  { %7714 = vmatpush.msrb.mxu1 %v7677_v19  ;;  %6587 = vmatpush.msrb.mxu3 %v6484_v52  ;;  %v6651_v19 = vld [vmem:[#allocation13 + $0x14f8] sm:$0xff]  ;;  %v7663_v31 = vld [vmem:[#allocation13 + $0x2270] sm:$0xff]  ;;  %v6664_v52 = vld [vmem:[#allocation13 + $0x1560] sm:$0xff] }
 0xa66   :  { %v5107_v22 = vmax.f32 %v5018_v18, 0.0  ;;  %6707 = vmatpush.msra.mxu2 %v6676_v50  ;;  %6018 = vmatpush.msrb.mxu0 %v5930_v47  ;;  %v6649_v50 = vld [vmem:[#allocation13 + $0x14e8] sm:$0xff]  ;;  %v6095_v47 = vld [vmem:[#allocation13 + $0xdf8] sm:$0xff] }
 0xa67   :  { %7715 = vmatpush.msrb.mxu1 %v7675_v9  ;;  %6588 = vmatpush.msrb.mxu3 %v6482_v51  ;;  %v5918_v18 = vld [vmem:[#allocation13 + $0xb08] sm:$0xff]  ;;  %v7661_v9 = vld [vmem:[#allocation13 + $0x2260] sm:$0xff]  ;;  %v6662_v51 = vld [vmem:[#allocation13 + $0x1550] sm:$0xff] }
 0xa68   :  { %v12264_v42 = vmax.f32 %v5105_v56, %v5107_v22  ;;  %6708 = vmatpush.msra.mxu2 %v6674_v63  ;;  %6019 = vmatpush.msrb.mxu0 %v5928_v17  ;;  %v6647_v63 = vld [vmem:[#allocation13 + $0x14d8] sm:$0xff]  ;;  %v6093_v56 = vld [vmem:[#allocation13 + $0xde8] sm:$0xff]  ;;  %v6660_v22 = vld [vmem:[#allocation13 + $0x1540] sm:$0xff] }
 0xa69   :  { %7716 = vmatpush.msrb.mxu1 %v7673_v58  ;;  %6589 = vmatpush.msrb.mxu3 %v6480_v0  ;;  %v7657_v58 = vld [vmem:[#allocation13 + $0x2240] sm:$0xff]  ;;  %v6091_v17 = vld [vmem:[#allocation13 + $0xdd8] sm:$0xff]  ;;  %v6658_v0 = vld [vmem:[#allocation13 + $0x1530] sm:$0xff] }
 0xa6a   :  { %6709 = vmatpush.msra.mxu2 %v6672_v32  ;;  %6020 = vmatpush.msrb.mxu0 %v5926_v3  ;;  %v6643_v32 = vld [vmem:[#allocation13 + $0x14b8] sm:$0xff] }
 0xa6b   :  { %7717 = vmatpush.msrb.mxu1 %v7671_v43  ;;  %6590 = vmatpush.msrb.mxu3 %v6478_v61  ;;  %v4881_v16 = vpop.f32.mrf.mxu2  ;;  %v5020_v28 = vpop.f32.mrf.mxu3  ;;  %v7655_v43 = vld [vmem:[#allocation13 + $0x2230] sm:$0xff]  ;;  %v6089_v61 = vld [vmem:[#allocation13 + $0xdc8] sm:$0xff] }
 0xa6c   :  { %6710 = vmatpush.msra.mxu2 %v6670_v38  ;;  %6021 = vmatpush.msrb.mxu0 %v5924_v60  ;;  %v5021_v41 = vadd.f32 %v5020_v28, %v12254_v39  ;;  %v7659_v39 = vld [vmem:[#allocation13 + $0x2250] sm:$0xff]  ;;  %v6656_v38 = vld [vmem:[#allocation13 + $0x1520] sm:$0xff] }
 0xa6d   :  { %7718 = vmatpush.msrb.mxu1 %v7669_v26  ;;  %6591 = vmatpush.msrb.mxu3 %v6476_v40  ;;  %v6641_v26 = vld [vmem:[#allocation13 + $0x14a8] sm:$0xff]  ;;  %v7653_v60 = vld [vmem:[#allocation13 + $0x2220] sm:$0xff]  ;;  %v6087_v40 = vld [vmem:[#allocation13 + $0xdb8] sm:$0xff] }
 0xa6e   :  { %6711 = vmatpush.msra.mxu2 %v6668_v8  ;;  %6022 = vmatpush.msrb.mxu0 %v5922_v46  ;;  %v6654_v8 = vld [vmem:[#allocation13 + $0x1510] sm:$0xff]  ;;  %v6652_v16 = vld [vmem:[#allocation13 + $0x1500] sm:$0xff] }
 0xa6f   :  { %7719 = vmatpush.msrb.mxu1 %v7667_v10  ;;  %6592 = vmatpush.msrb.mxu3 %v6474_v49  ;;  %v5109_v10 = vmax.f32 %v5021_v41, 0.0  ;;  %v6639_v49 = vld [vmem:[#allocation13 + $0x1498] sm:$0xff] }
 0xa70   :  { %6712 = vmatpush.msra.mxu2 %v6666_v25  ;;  %6593 = vmatmul.f32.vlgmr.msrb.gmra.mxu3 %v11767_v21  ;;  %v6645_v21 = vld [vmem:[#allocation13 + $0x14c8] sm:$0xff]  ;;  %v7651_v25 = vld [vmem:[#allocation13 + $0x2210] sm:$0xff]  ;;  %v6083_v41 = vld [vmem:[#allocation13 + $0xd98] sm:$0xff] }
 0xa71   :  { %7720 = vmatpush.msrb.mxu1 %v7665_v30  ;;  %6724 = vmatpush.msra.mxu3 %v6651_v19  ;;  %v6085_v30 = vld [vmem:[#allocation13 + $0xda8] sm:$0xff]  ;;  %v6829_v19 = vld [vmem:[#allocation13 + $0x17f0] sm:$0xff] }
 0xa72   :  { %6023 = vmatpush.msrb.mxu0 %v5920_v20  ;;  %6713 = vmatpush.msra.mxu2 %v6664_v52  ;;  %v7649_v20 = vld [vmem:[#allocation13 + $0x2200] sm:$0xff] }
 0xa73   :  { %7721 = vmatpush.msrb.mxu1 %v7663_v31  ;;  %6725 = vmatpush.msra.mxu3 %v6649_v50  ;;  %v6635_v31 = vld [vmem:[#allocation13 + $0x1478] sm:$0xff]  ;;  %v6827_v52 = vld [vmem:[#allocation13 + $0x17e0] sm:$0xff] }
 0xa74   :  { %6024 = vmatpush.msrb.mxu0 %v5918_v18  ;;  %6714 = vmatpush.msra.mxu2 %v6662_v51  ;;  %v12273_v18 = vpop.f32.mrf.mxu1  ;;  %v6081_v51 = vld [vmem:[#allocation13 + $0xd88] sm:$0xff] }
 0xa75   :  { %7722 = vmatpush.msrb.mxu1 %v7661_v9  ;;  %6025 = vmatmul.f32.vlgmr.msrb.gmra.mxu0 %v12030_v1  ;;  %v12275_v9 = vpop.f32.mrf.mxu0 }
 0xa76   :  { %6156 = vmatpush.msra.mxu0 %v6095_v47  ;;  %6726 = vmatpush.msra.mxu3 %v6647_v63  ;;  %v7826_v47 = vld [vmem:[#allocation13 + $0x24f0] sm:$0xff]  ;;  %v6633_v63 = vld [vmem:[#allocation13 + $0x1468] sm:$0xff] }
 0xa77   :  { %7723 = vmatpush.msrb.mxu1 %v7659_v39  ;;  %6715 = vmatpush.msra.mxu2 %v6660_v22  ;;  %v5023_v3 = vpop.f32.mrf.mxu3  ;;  %v6825_v39 = vld [vmem:[#allocation13 + $0x17d0] sm:$0xff]  ;;  %v7824_v22 = vld [vmem:[#allocation13 + $0x24e0] sm:$0xff] }
 0xa78   :  { %6157 = vmatpush.msra.mxu0 %v6093_v56  ;;  %6727 = vmatpush.msra.mxu3 %v6645_v21  ;;  %v5024_v1 = vadd.f32 %v5023_v3, %v12261_v37  ;;  %v6637_v37 = vld [vmem:[#allocation13 + $0x1488] sm:$0xff]  ;;  %v12743_v56 = vld [vmem:[#allocation69_spill] sm:$0xff]  ;;  %v6821_v3 = vld [vmem:[#allocation13 + $0x17b0] sm:$0xff] }
 0xa79   :  { %7724 = vmatpush.msrb.mxu1 %v7657_v58  ;;  %6716 = vmatpush.msra.mxu2 %v6658_v0  ;;  %v6079_v21 = vld [vmem:[#allocation13 + $0xd78] sm:$0xff]  ;;  %v7822_v0 = vld [vmem:[#allocation13 + $0x24d0] sm:$0xff] }
 0xa7a   :  { %6158 = vmatpush.msra.mxu0 %v6091_v17  ;;  %6728 = vmatpush.msra.mxu3 %v6643_v32  ;;  %v5111_v46 = vmax.f32 %v5024_v1, 0.0  ;;  %v6631_v58 = vld [vmem:[#allocation13 + $0x1458] sm:$0xff]  ;;  %v6823_v17 = vld [vmem:[#allocation13 + $0x17c0] sm:$0xff]  ;;  %v6077_v32 = vld [vmem:[#allocation13 + $0xd68] sm:$0xff] }
 0xa7b   :  { %7725 = vmatpush.msrb.mxu1 %v7655_v43  ;;  %6717 = vmatpush.msra.mxu2 %v6656_v38  ;;  %v6629_v43 = vld [vmem:[#allocation13 + $0x1448] sm:$0xff]  ;;  %v6075_v38 = vld [vmem:[#allocation13 + $0xd58] sm:$0xff] }
 0xa7c   :  { %6159 = vmatpush.msra.mxu0 %v6089_v61  ;;  %6729 = vmatpush.msra.mxu3 %v6641_v26  ;;  %v12270_v28 = vmax.f32 %v5109_v10, %v5111_v46  ;;  %v7820_v61 = vld [vmem:[#allocation13 + $0x24c0] sm:$0xff]  ;;  %v6627_v1 = vld [vmem:[#allocation13 + $0x1438] sm:$0xff]  ;;  %v6625_v46 = vld [vmem:[#allocation13 + $0x1428] sm:$0xff] }
 0xa7d   :  { %7726 = vmatpush.msrb.mxu1 %v7653_v60  ;;  %6718 = vmatpush.msra.mxu2 %v6654_v8  ;;  %v6819_v26 = vld [vmem:[#allocation13 + $0x17a0] sm:$0xff]  ;;  %v5712_v60 = vpop.f32.mrf.mxu1  ;;  %v6073_v8 = vld [vmem:[#allocation13 + $0xd48] sm:$0xff] }
 0xa7e   :  { %6160 = vmatpush.msra.mxu0 %v6087_v40  ;;  %6730 = vmatpush.msra.mxu3 %v6639_v49  ;;  %v7818_v40 = vld [vmem:[#allocation13 + $0x24b0] sm:$0xff] }
 0xa7f   :  { %7727 = vmatpush.msrb.mxu1 %v7651_v25  ;;  %6719 = vmatpush.msra.mxu2 %v6652_v16  ;;  %v6817_v49 = vld [vmem:[#allocation13 + $0x1790] sm:$0xff]  ;;  %v6071_v16 = vld [vmem:[#allocation13 + $0xd38] sm:$0xff] }
 0xa80   :  { %6161 = vmatpush.msra.mxu0 %v6085_v30  ;;  %6731 = vmatpush.msra.mxu3 %v6637_v37  ;;  %v7816_v30 = vld [vmem:[#allocation13 + $0x24a0] sm:$0xff]  ;;  %v6623_v37 = vld [vmem:[#allocation13 + $0x1418] sm:$0xff] }
 0xa81   :  { %6720 = vmatmul.f32.vlgmr.msra.gmra.mxu2 %v12100_v53  ;;  %v5026_v50 = vpop.f32.mrf.mxu3  ;;  %7728 = vmatpush.msrb.mxu1 %v7649_v20 }
 0xa82   :  { %6851 = vmatpush.msrb.mxu2 %v6829_v19  ;;  %6162 = vmatpush.msra.mxu0 %v6083_v41  ;;  %v6815_v19 = vld [vmem:[#allocation13 + $0x1780] sm:$0xff]  ;;  %v7814_v41 = vld [vmem:[#allocation13 + $0x2490] sm:$0xff] }
 0xa83   :  { %6732 = vmatpush.msra.mxu3 %v6635_v31  ;;  %7729 = vmatmul.f32.vlgmr.msrb.gmra.mxu1 %v12743_v56  ;;  %v6069_v31 = vld [vmem:[#allocation13 + $0xd28] sm:$0xff]  ;;  %v6813_v50 = vld [vmem:[#allocation13 + $0x1770] sm:$0xff] }
 0xa84   :  { %6852 = vmatpush.msrb.mxu2 %v6827_v52  ;;  %7860 = vmatpush.msra.mxu1 %v7826_v47  ;;  %v6621_v52 = vld [vmem:[#allocation13 + $0x1408] sm:$0xff]  ;;  %v7812_v47 = vld [vmem:[#allocation13 + $0x2480] sm:$0xff] }
 0xa85   :  { %6163 = vmatpush.msra.mxu0 %v6081_v51  ;;  %6733 = vmatpush.msra.mxu3 %v6633_v63  ;;  %v6798_v51 = vld [vmem:[#allocation13 + $0x16f8] sm:$0xff] }
 0xa86   :  { %6853 = vmatpush.msrb.mxu2 %v6825_v39  ;;  %7861 = vmatpush.msra.mxu1 %v7824_v22  ;;  %v6067_v63 = vld [vmem:[#allocation13 + $0xd18] sm:$0xff]  ;;  %v7810_v39 = vld [vmem:[#allocation13 + $0x2470] sm:$0xff]  ;;  %v12281_v22 = vpop.f32.mrf.mxu1 }
 0xa87   :  { %6164 = vmatpush.msra.mxu0 %v6079_v21  ;;  %6734 = vmatpush.msra.mxu3 %v6631_v58  ;;  %v6796_v21 = vld [vmem:[#allocation13 + $0x16e8] sm:$0xff] }
 0xa88   :  { %6854 = vmatpush.msrb.mxu2 %v6823_v17  ;;  %7862 = vmatpush.msra.mxu1 %v7822_v0  ;;  %v6065_v58 = vld [vmem:[#allocation13 + $0xd08] sm:$0xff]  ;;  %v7808_v17 = vld [vmem:[#allocation13 + $0x2460] sm:$0xff]  ;;  %v6242_v0 = vld [vmem:[#allocation13 + $0xff8] sm:$0xff] }
 0xa89   :  { %6165 = vmatpush.msra.mxu0 %v6077_v32  ;;  %6735 = vmatpush.msra.mxu3 %v6629_v43  ;;  %v5732_v10 = vpop.f32.mrf.mxu0  ;;  %v6809_v32 = vld [vmem:[#allocation13 + $0x1750] sm:$0xff]  ;;  %v6794_v43 = vld [vmem:[#allocation13 + $0x16d8] sm:$0xff] }
 0xa8a   :  { %6855 = vmatpush.msrb.mxu2 %v6821_v3  ;;  %7863 = vmatpush.msra.mxu1 %v7820_v61  ;;  %v5733_v25 = vadd.f32 %v5732_v10, %v5712_v60  ;;  %v7806_v3 = vld [vmem:[#allocation13 + $0x2450] sm:$0xff]  ;;  %v6240_v61 = vld [vmem:[#allocation13 + $0xfe8] sm:$0xff] }
 0xa8b   :  { %6166 = vmatpush.msra.mxu0 %v6075_v38  ;;  %6736 = vmatpush.msra.mxu3 %v6627_v1  ;;  %v6807_v38 = vld [vmem:[#allocation13 + $0x1740] sm:$0xff]  ;;  %v6805_v60 = vld [vmem:[#allocation13 + $0x1730] sm:$0xff] }
 0xa8c   :  { %6856 = vmatpush.msrb.mxu2 %v6819_v26  ;;  %7864 = vmatpush.msra.mxu1 %v7818_v40  ;;  %v12279_v20 = vadd.f32 %v5733_v25, %v12238_v54  ;;  %v6811_v54 = vld [vmem:[#allocation13 + $0x1760] sm:$0xff]  ;;  %v6238_v26 = vld [vmem:[#allocation13 + $0xfd8] sm:$0xff] }
 0xa8d   :  { %6167 = vmatpush.msra.mxu0 %v6073_v8  ;;  %6737 = vmatpush.msra.mxu3 %v6625_v46  ;;  %v7804_v1 = vld [vmem:[#allocation13 + $0x2440] sm:$0xff]  ;;  %v6790_v40 = vld [vmem:[#allocation13 + $0x16b8] sm:$0xff]  ;;  %v7802_v8 = vld [vmem:[#allocation13 + $0x2430] sm:$0xff] }
 0xa8e   :  { %6857 = vmatpush.msrb.mxu2 %v6817_v49  ;;  %7865 = vmatpush.msra.mxu1 %v7816_v30  ;;  %v12285_v10 = vpop.f32.mrf.mxu1  ;;  %v6236_v46 = vld [vmem:[#allocation13 + $0xfc8] sm:$0xff]  ;;  %v7800_v25 = vld [vmem:[#allocation13 + $0x2420] sm:$0xff]  ;;  %v6234_v30 = vld [vmem:[#allocation13 + $0xfb8] sm:$0xff] }
 0xa8f   :  { %6168 = vmatpush.msra.mxu0 %v6071_v16  ;;  %6738 = vmatpush.msra.mxu3 %v6623_v37  ;;  %v6788_v49 = vld [vmem:[#allocation13 + $0x16a8] sm:$0xff]  ;;  %v6801_v16 = vld [vmem:[#allocation13 + $0x1710] sm:$0xff]  ;;  %v6786_v37 = vld [vmem:[#allocation13 + $0x1698] sm:$0xff] }
 0xa90   :  { %6858 = vmatpush.msrb.mxu2 %v6815_v19  ;;  %7866 = vmatpush.msra.mxu1 %v7814_v41  ;;  %v7798_v19 = vld [vmem:[#allocation13 + $0x2410] sm:$0xff]  ;;  %v12287_v41 = vpop.f32.mrf.mxu2 }
 0xa91   :  { %6169 = vmatpush.msra.mxu0 %v6069_v31  ;;  %6739 = vmatpush.msra.mxu3 %v6621_v52  ;;  %v6232_v31 = vld [vmem:[#allocation13 + $0xfa8] sm:$0xff]  ;;  %v6799_v52 = vld [vmem:[#allocation13 + $0x1700] sm:$0xff] }
 0xa92   :  { %6859 = vmatpush.msrb.mxu2 %v6813_v50  ;;  %7867 = vmatpush.msra.mxu1 %v7812_v47  ;;  %v6784_v50 = vld [vmem:[#allocation13 + $0x1688] sm:$0xff]  ;;  %v6976_v47 = vld [vmem:[#allocation13 + $0x19f0] sm:$0xff] }
 0xa93   :  { %6740 = vmatmul.f32.vlgmr.msra.gmra.mxu3 %v12726_v7  ;;  %6170 = vmatpush.msra.mxu0 %v6067_v63  ;;  %v6792_v7 = vld [vmem:[#allocation13 + $0x16c8] sm:$0xff]  ;;  %v6230_v63 = vld [vmem:[#allocation13 + $0xf98] sm:$0xff] }
 0xa94   :  { %6871 = vmatpush.msrb.mxu3 %v6798_v51  ;;  %7868 = vmatpush.msra.mxu1 %v7810_v39  ;;  %v7796_v51 = vld [vmem:[#allocation13 + $0x2400] sm:$0xff]  ;;  %v6782_v39 = vld [vmem:[#allocation13 + $0x1678] sm:$0xff] }
 0xa95   :  { %6860 = vmatpush.msrb.mxu2 %v6811_v54  ;;  %6171 = vmatpush.msra.mxu0 %v6065_v58  ;;  %v5321_v58 = vadd.f32 %v12171_v14, %v12169_v6  ;;  %v5546_v6 = vadd.f32 %v12219_v24, %v12217_v62  ;;  %v7969_v14 = vld [vmem:[#allocation13 + $0x26d0] sm:$0xff]  ;;  %v6774_v62 = vld [vmem:[#allocation13 + $0x1638] sm:$0xff]  ;;  %v6966_v24 = vld [vmem:[#allocation13 + $0x19a0] sm:$0xff] }
 0xa96   :  { %6872 = vmatpush.msrb.mxu3 %v6796_v21  ;;  %7869 = vmatpush.msra.mxu1 %v7808_v17  ;;  %v12289_v54 = vpop.f32.mrf.mxu1  ;;  %v6974_v21 = vld [vmem:[#allocation13 + $0x19e0] sm:$0xff]  ;;  %v7973_v17 = vld [vmem:[#allocation13 + $0x26f0] sm:$0xff] }
 0xa97   :  { %6172 = vmatmul.f32.vlgmr.msra.gmra.mxu0 %v12041_v27  ;;  %6861 = vmatpush.msrb.mxu2 %v6809_v32  ;;  %v6803_v27 = vld [vmem:[#allocation13 + $0x1720] sm:$0xff]  ;;  %v6780_v32 = vld [vmem:[#allocation13 + $0x1668] sm:$0xff] }
 0xa98   :  { %6303 = vmatpush.msrb.mxu0 %v6242_v0  ;;  %6873 = vmatpush.msrb.mxu3 %v6794_v43  ;;  %v6228_v0 = vld [vmem:[#allocation13 + $0xf88] sm:$0xff]  ;;  %v6972_v43 = vld [vmem:[#allocation13 + $0x19d0] sm:$0xff] }
 0xa99   :  { %7870 = vmatpush.msra.mxu1 %v7806_v3  ;;  %6862 = vmatpush.msrb.mxu2 %v6807_v38  ;;  %v12744_v3 = vld [vmem:[#allocation55_spill] sm:$0xff]  ;;  %v6226_v38 = vld [vmem:[#allocation13 + $0xf78] sm:$0xff] }
 0xa9a   :  { %6304 = vmatpush.msrb.mxu0 %v6240_v61  ;;  %6874 = vmatpush.msrb.mxu3 %v6792_v7  ;;  %v7971_v61 = vld [vmem:[#allocation13 + $0x26e0] sm:$0xff]  ;;  %v6778_v7 = vld [vmem:[#allocation13 + $0x1658] sm:$0xff] }
 0xa9b   :  { %7871 = vmatpush.msra.mxu1 %v7804_v1  ;;  %6863 = vmatpush.msrb.mxu2 %v6805_v60  ;;  %v6970_v1 = vld [vmem:[#allocation13 + $0x19c0] sm:$0xff]  ;;  %v6224_v60 = vld [vmem:[#allocation13 + $0xf68] sm:$0xff] }
 0xa9c   :  { %6305 = vmatpush.msrb.mxu0 %v6238_v26  ;;  %6875 = vmatpush.msrb.mxu3 %v6790_v40  ;;  %v5381_v26 = vadd.f32 %v12193_v34, %v5321_v58  ;;  %v6133_v40 = vpop.f32.mrf.mxu2  ;;  %v7967_v34 = vld [vmem:[#allocation13 + $0x26c0] sm:$0xff]  ;;  %v6216_v58 = vld [vmem:[#allocation13 + $0xf28] sm:$0xff] }
 0xa9d   :  { %7872 = vmatpush.msra.mxu1 %v7802_v8  ;;  %6864 = vmatpush.msrb.mxu2 %v6803_v27  ;;  %v6776_v8 = vld [vmem:[#allocation13 + $0x1648] sm:$0xff] }
 0xa9e   :  { %6306 = vmatpush.msrb.mxu0 %v6236_v46  ;;  %6876 = vmatpush.msrb.mxu3 %v6788_v49  ;;  %v6968_v46 = vld [vmem:[#allocation13 + $0x19b0] sm:$0xff]  ;;  %v5401_v27 = vadd.f32 %v12195_v57, %v5381_v26  ;;  %v5693_v49 = vadd.f32 %v12275_v9, %v12273_v18  ;;  %v6772_v57 = vld [vmem:[#allocation13 + $0x1628] sm:$0xff]  ;;  %v7963_v9 = vld [vmem:[#allocation13 + $0x26a0] sm:$0xff] }
 0xa9f   :  { %7873 = vmatpush.msra.mxu1 %v7800_v25  ;;  %6865 = vmatpush.msrb.mxu2 %v6801_v16  ;;  %v6222_v25 = vld [vmem:[#allocation13 + $0xf58] sm:$0xff]  ;;  %v7957_v26 = vld [vmem:[#allocation13 + $0x2670] sm:$0xff] }
 0xaa0   :  { %6307 = vmatpush.msrb.mxu0 %v6234_v30  ;;  %6877 = vmatpush.msrb.mxu3 %v6786_v37  ;;  %v6113_v30 = vpop.f32.mrf.mxu1  ;;  %v5588_v16 = vadd.f32 %v5546_v6, %v5401_v27  ;;  %v7965_v37 = vld [vmem:[#allocation13 + $0x26b0] sm:$0xff]  ;;  %v6958_v6 = vld [vmem:[#allocation13 + $0x1960] sm:$0xff]  ;;  %v6389_v27 = vld [vmem:[#allocation13 + $0x11f8] sm:$0xff] }
 0xaa1   :  { %7874 = vmatpush.msra.mxu1 %v7798_v19  ;;  %6866 = vmatpush.msrb.mxu2 %v6799_v52  ;;  %v6220_v19 = vld [vmem:[#allocation13 + $0xf48] sm:$0xff] }
 0xaa2   :  { %6308 = vmatpush.msrb.mxu0 %v6232_v31  ;;  %6878 = vmatpush.msrb.mxu3 %v6784_v50  ;;  %v6964_v31 = vld [vmem:[#allocation13 + $0x1990] sm:$0xff]  ;;  %v5735_v18 = vadd.f32 %v5693_v49, %v5588_v16  ;;  %v6218_v50 = vld [vmem:[#allocation13 + $0xf38] sm:$0xff] }
 0xaa3   :  { %6867 = vmatmul.f32.vlgmr.msrb.gmra.mxu2 %v12117_v2  ;;  %7875 = vmatpush.msra.mxu1 %v7796_v51  ;;  %v6770_v51 = vld [vmem:[#allocation13 + $0x1618] sm:$0xff]  ;;  %v6956_v49 = vld [vmem:[#allocation13 + $0x1950] sm:$0xff] }
 0xaa4   :  { %6998 = vmatpush.msra.mxu2 %v6976_v47  ;;  %6309 = vmatpush.msrb.mxu0 %v6230_v63  ;;  %v6962_v63 = vld [vmem:[#allocation13 + $0x1980] sm:$0xff]  ;;  %v6385_v16 = vld [vmem:[#allocation13 + $0x11d8] sm:$0xff] }
 0xaa5   :  { %6879 = vmatpush.msrb.mxu3 %v6782_v39  ;;  %7876 = vmatmul.f32.vlgmr.msra.gmra.mxu1 %v12744_v3  ;;  %v5987_v39 = vadd.f32 %v12287_v41, %v12289_v54  ;;  %v6214_v41 = vld [vmem:[#allocation13 + $0xf18] sm:$0xff] }
 0xaa6   :  { %6999 = vmatpush.msra.mxu2 %v6974_v21  ;;  %8007 = vmatpush.msrb.mxu1 %v7973_v17  ;;  %v7961_v21 = vld [vmem:[#allocation13 + $0x2690] sm:$0xff] }
 0xaa7   :  { %6310 = vmatpush.msrb.mxu0 %v6228_v0  ;;  %6880 = vmatpush.msrb.mxu3 %v6780_v32  ;;  %v6280_v0 = vpop.f32.mrf.mxu2  ;;  %v6768_v32 = vld [vmem:[#allocation13 + $0x1608] sm:$0xff] }
 0xaa8   :  { %7000 = vmatpush.msra.mxu2 %v6972_v43  ;;  %8008 = vmatpush.msrb.mxu1 %v7971_v61  ;;  %v6960_v43 = vld [vmem:[#allocation13 + $0x1970] sm:$0xff]  ;;  %v6134_v61 = vadd.f32 %v6133_v40, %v6113_v30  ;;  %v6212_v40 = vld [vmem:[#allocation13 + $0xf08] sm:$0xff] }
 0xaa9   :  { %6311 = vmatpush.msrb.mxu0 %v6226_v38  ;;  %6881 = vmatpush.msrb.mxu3 %v6778_v7  ;;  %v6260_v7 = vpop.f32.mrf.mxu1  ;;  %v6387_v30 = vld [vmem:[#allocation13 + $0x11e8] sm:$0xff] }
 0xaaa   :  { %7001 = vmatpush.msra.mxu2 %v6970_v1  ;;  %8009 = vmatpush.msrb.mxu1 %v7969_v14  ;;  %v6945_v1 = vld [vmem:[#allocation13 + $0x18f8] sm:$0xff]  ;;  %v6281_v54 = vadd.f32 %v6280_v0, %v6260_v7  ;;  %v6931_v0 = vld [vmem:[#allocation13 + $0x1888] sm:$0xff]  ;;  %v7121_v7 = vld [vmem:[#allocation13 + $0x1be0] sm:$0xff] }
 0xaab   :  { %6312 = vmatpush.msrb.mxu0 %v6224_v60  ;;  %6882 = vmatpush.msrb.mxu3 %v6776_v8  ;;  %v6943_v60 = vld [vmem:[#allocation13 + $0x18e8] sm:$0xff]  ;;  %v7955_v8 = vld [vmem:[#allocation13 + $0x2660] sm:$0xff] }
 0xaac   :  { %7002 = vmatpush.msra.mxu2 %v6968_v46  ;;  %8010 = vmatpush.msrb.mxu1 %v7967_v34  ;;  %v5839_v52 = vpop.f32.mrf.mxu0  ;;  %v6941_v34 = vld [vmem:[#allocation13 + $0x18d8] sm:$0xff] }
 0xaad   :  { %6313 = vmatpush.msrb.mxu0 %v6222_v25  ;;  %6883 = vmatpush.msrb.mxu3 %v6774_v62  ;;  %v5840_v47 = vadd.f32 %v5839_v52, %v12281_v22  ;;  %v7959_v22 = vld [vmem:[#allocation13 + $0x2680] sm:$0xff]  ;;  %v7953_v25 = vld [vmem:[#allocation13 + $0x2650] sm:$0xff] }
 0xaae   :  { %7003 = vmatpush.msra.mxu2 %v6966_v24  ;;  %8011 = vmatpush.msrb.mxu1 %v7965_v37  ;;  %v6954_v62 = vld [vmem:[#allocation13 + $0x1940] sm:$0xff]  ;;  %v6952_v37 = vld [vmem:[#allocation13 + $0x1930] sm:$0xff] }
 0xaaf   :  { %6314 = vmatpush.msrb.mxu0 %v6220_v19  ;;  %6884 = vmatpush.msrb.mxu3 %v6772_v57  ;;  %v5882_v17 = vadd.f32 %v5840_v47, %v5735_v18  ;;  %v7951_v24 = vld [vmem:[#allocation13 + $0x2640] sm:$0xff]  ;;  %v6937_v19 = vld [vmem:[#allocation13 + $0x18b8] sm:$0xff]  ;;  %v7949_v57 = vld [vmem:[#allocation13 + $0x2630] sm:$0xff] }
 0xab0   :  { %7004 = vmatpush.msra.mxu2 %v6964_v31  ;;  %8012 = vmatpush.msrb.mxu1 %v7963_v9  ;;  %v6383_v31 = vld [vmem:[#allocation13 + $0x11c8] sm:$0xff]  ;;  %v6950_v52 = vld [vmem:[#allocation13 + $0x1920] sm:$0xff]  ;;  %v6381_v9 = vld [vmem:[#allocation13 + $0x11b8] sm:$0xff] }
 0xab1   :  { %6315 = vmatpush.msrb.mxu0 %v6218_v50  ;;  %6885 = vmatpush.msrb.mxu3 %v6770_v51  ;;  %v6029_v38 = vadd.f32 %v5987_v39, %v5882_v17  ;;  %v7947_v18 = vld [vmem:[#allocation13 + $0x2620] sm:$0xff]  ;;  %v6948_v50 = vld [vmem:[#allocation13 + $0x1910] sm:$0xff]  ;;  %v6407_v47 = vpop.f32.mrf.mxu1  ;;  %v6933_v51 = vld [vmem:[#allocation13 + $0x1898] sm:$0xff] }
 0xab2   :  { %7005 = vmatpush.msra.mxu2 %v6962_v63  ;;  %8013 = vmatpush.msrb.mxu1 %v7961_v21  ;;  %v7945_v63 = vld [vmem:[#allocation13 + $0x2610] sm:$0xff]  ;;  %v6379_v21 = vld [vmem:[#allocation13 + $0x11a8] sm:$0xff] }
 0xab3   :  { %6316 = vmatpush.msrb.mxu0 %v6216_v58  ;;  %6886 = vmatpush.msrb.mxu3 %v6768_v32  ;;  %v6176_v14 = vadd.f32 %v6134_v61, %v6029_v38  ;;  %v6946_v58 = vld [vmem:[#allocation13 + $0x1900] sm:$0xff]  ;;  %v7123_v32 = vld [vmem:[#allocation13 + $0x1bf0] sm:$0xff]  ;;  %v6929_v38 = vld [vmem:[#allocation13 + $0x1878] sm:$0xff] }
 0xab4   :  { %7006 = vmatpush.msra.mxu2 %v6960_v43  ;;  %8014 = vmatpush.msrb.mxu1 %v7959_v22  ;;  %v7943_v43 = vld [vmem:[#allocation13 + $0x2600] sm:$0xff]  ;;  %v6377_v22 = vld [vmem:[#allocation13 + $0x1198] sm:$0xff] }
 0xab5   :  { %6887 = vmatmul.f32.vlgmr.msrb.gmra.mxu3 %v11800_v48  ;;  %6317 = vmatpush.msrb.mxu0 %v6214_v41  ;;  %v6323_v46 = vadd.f32 %v6281_v54, %v6176_v14  ;;  %v6939_v48 = vld [vmem:[#allocation13 + $0x18c8] sm:$0xff]  ;;  %v8118_v14 = vld [vmem:[#allocation13 + $0x28e0] sm:$0xff] }
 0xab6   :  { %7018 = vmatpush.msra.mxu3 %v6945_v1  ;;  %8015 = vmatpush.msrb.mxu1 %v7957_v26  ;;  %v8120_v1 = vld [vmem:[#allocation13 + $0x28f0] sm:$0xff]  ;;  %v6375_v41 = vld [vmem:[#allocation13 + $0x1188] sm:$0xff] }
 0xab7   :  { %7007 = vmatpush.msra.mxu2 %v6958_v6  ;;  %6318 = vmatpush.msrb.mxu0 %v6212_v40  ;;  %v6927_v54 = vld [vmem:[#allocation13 + $0x1868] sm:$0xff]  ;;  %v7119_v26 = vld [vmem:[#allocation13 + $0x1bd0] sm:$0xff]  ;;  %v12745_v6 = vld [vmem:[#allocation73_spill] sm:$0xff] }
 0xab8   :  { %7019 = vmatpush.msra.mxu3 %v6943_v60  ;;  %8016 = vmatpush.msrb.mxu1 %v7955_v8  ;;  %v6373_v60 = vld [vmem:[#allocation13 + $0x1178] sm:$0xff]  ;;  %v7117_v8 = vld [vmem:[#allocation13 + $0x1bc0] sm:$0xff] }
 0xab9   :  { %6319 = vmatmul.f32.vlgmr.msrb.gmra.mxu0 %v12054_v13  ;;  %7008 = vmatpush.msra.mxu2 %v6956_v49  ;;  %v6935_v13 = vld [vmem:[#allocation13 + $0x18a8] sm:$0xff]  ;;  %v6925_v40 = vld [vmem:[#allocation13 + $0x1858] sm:$0xff] }
 0xaba   :  { %6450 = vmatpush.msra.mxu0 %v6389_v27  ;;  %7020 = vmatpush.msra.mxu3 %v6941_v34  ;;  %v6371_v27 = vld [vmem:[#allocation13 + $0x1168] sm:$0xff]  ;;  %v7115_v34 = vld [vmem:[#allocation13 + $0x1bb0] sm:$0xff] }
 0xabb   :  { %8017 = vmatpush.msrb.mxu1 %v7953_v25  ;;  %7009 = vmatpush.msra.mxu2 %v6954_v62  ;;  %v6923_v49 = vld [vmem:[#allocation13 + $0x1848] sm:$0xff]  ;;  %v8114_v25 = vld [vmem:[#allocation13 + $0x28c0] sm:$0xff]  ;;  %v6921_v62 = vld [vmem:[#allocation13 + $0x1838] sm:$0xff] }
 0xabc   :  { %6451 = vmatpush.msra.mxu0 %v6387_v30  ;;  %7021 = vmatpush.msra.mxu3 %v6939_v48  ;;  %v6369_v30 = vld [vmem:[#allocation13 + $0x1158] sm:$0xff]  ;;  %v7113_v48 = vld [vmem:[#allocation13 + $0x1ba0] sm:$0xff] }
 0xabd   :  { %8018 = vmatpush.msrb.mxu1 %v7951_v24  ;;  %7010 = vmatpush.msra.mxu2 %v6952_v37  ;;  %v8112_v24 = vld [vmem:[#allocation13 + $0x28b0] sm:$0xff]  ;;  %v6919_v37 = vld [vmem:[#allocation13 + $0x1828] sm:$0xff] }
 0xabe   :  { %6452 = vmatpush.msra.mxu0 %v6385_v16  ;;  %7022 = vmatpush.msra.mxu3 %v6937_v19  ;;  %v6367_v16 = vld [vmem:[#allocation13 + $0x1148] sm:$0xff]  ;;  %v7111_v19 = vld [vmem:[#allocation13 + $0x1b90] sm:$0xff] }
 0xabf   :  { %8019 = vmatpush.msrb.mxu1 %v7949_v57  ;;  %7011 = vmatpush.msra.mxu2 %v6950_v52  ;;  %v6427_v39 = vpop.f32.mrf.mxu2  ;;  %v8110_v57 = vld [vmem:[#allocation13 + $0x28a0] sm:$0xff] }
 0xac0   :  { %6453 = vmatpush.msra.mxu0 %v6383_v31  ;;  %7023 = vmatpush.msra.mxu3 %v6935_v13  ;;  %v6428_v17 = vadd.f32 %v6427_v39, %v6407_v47  ;;  %v6365_v31 = vld [vmem:[#allocation13 + $0x1138] sm:$0xff]  ;;  %v6363_v47 = vld [vmem:[#allocation13 + $0x1128] sm:$0xff] }
 0xac1   :  { %8020 = vmatpush.msrb.mxu1 %v7947_v18  ;;  %7012 = vmatpush.msra.mxu2 %v6948_v50  ;;  %v6917_v13 = vld [vmem:[#allocation13 + $0x1818] sm:$0xff]  ;;  %v7109_v18 = vld [vmem:[#allocation13 + $0x1b80] sm:$0xff]  ;;  %v8108_v50 = vld [vmem:[#allocation13 + $0x2890] sm:$0xff] }
 0xac2   :  { %6454 = vmatpush.msra.mxu0 %v6381_v9  ;;  %7024 = vmatpush.msra.mxu3 %v6933_v51  ;;  %v12306_v61 = vadd.f32 %v6428_v17, %v6323_v46  ;;  %v8116_v46 = vld [vmem:[#allocation13 + $0x28d0] sm:$0xff]  ;;  %v6915_v51 = vld [vmem:[#allocation13 + $0x1808] sm:$0xff]  ;;  %v6361_v17 = vld [vmem:[#allocation13 + $0x1118] sm:$0xff] }
 0xac3   :  { %8021 = vmatpush.msrb.mxu1 %v7945_v63  ;;  %7013 = vmatpush.msra.mxu2 %v6946_v58  ;;  %v7107_v63 = vld [vmem:[#allocation13 + $0x1b70] sm:$0xff]  ;;  %v7092_v58 = vld [vmem:[#allocation13 + $0x1af8] sm:$0xff] }
 0xac4   :  { %6455 = vmatpush.msra.mxu0 %v6379_v21  ;;  %7025 = vmatpush.msra.mxu3 %v6931_v0  ;;  %v8106_v21 = vld [vmem:[#allocation13 + $0x2880] sm:$0xff] }
 0xac5   :  { %7014 = vmatmul.f32.vlgmr.msra.gmra.mxu2 %v12134_v23  ;;  %8022 = vmatpush.msrb.mxu1 %v7943_v43  ;;  %v7105_v0 = vld [vmem:[#allocation13 + $0x1b60] sm:$0xff]  ;;  %v6359_v43 = vld [vmem:[#allocation13 + $0x1108] sm:$0xff] }
 0xac6   :  { %7145 = vmatpush.msrb.mxu2 %v7123_v32  ;;  %6456 = vmatpush.msra.mxu0 %v6377_v22  ;;  %v7090_v32 = vld [vmem:[#allocation13 + $0x1ae8] sm:$0xff]  ;;  %v6536_v22 = vld [vmem:[#allocation13 + $0x13f8] sm:$0xff] }
 0xac7   :  { %7026 = vmatpush.msra.mxu3 %v6929_v38  ;;  %8023 = vmatmul.f32.vlgmr.msrb.gmra.mxu1 %v12745_v6  ;;  %v7103_v38 = vld [vmem:[#allocation13 + $0x1b50] sm:$0xff] }
 0xac8   :  { %7146 = vmatpush.msrb.mxu2 %v7121_v7  ;;  %8154 = vmatpush.msra.mxu1 %v8120_v1  ;;  %v7088_v7 = vld [vmem:[#allocation13 + $0x1ad8] sm:$0xff]  ;;  %v8100_v1 = vld [vmem:[#allocation13 + $0x2850] sm:$0xff] }
 0xac9   :  { %6457 = vmatpush.msra.mxu0 %v6375_v41  ;;  %7027 = vmatpush.msra.mxu3 %v6927_v54  ;;  %v6534_v41 = vld [vmem:[#allocation13 + $0x13e8] sm:$0xff]  ;;  %v7101_v54 = vld [vmem:[#allocation13 + $0x1b40] sm:$0xff] }
 0xaca   :  { %7147 = vmatpush.msrb.mxu2 %v7119_v26  ;;  %8155 = vmatpush.msra.mxu1 %v8118_v14  ;;  %v8098_v26 = vld [vmem:[#allocation13 + $0x2840] sm:$0xff]  ;;  %v6532_v14 = vld [vmem:[#allocation13 + $0x13d8] sm:$0xff] }
 0xacb   :  { %6458 = vmatpush.msra.mxu0 %v6373_v60  ;;  %7028 = vmatpush.msra.mxu3 %v6925_v40  ;;  %v7099_v60 = vld [vmem:[#allocation13 + $0x1b30] sm:$0xff]  ;;  %v7084_v40 = vld [vmem:[#allocation13 + $0x1ab8] sm:$0xff] }
 0xacc   :  { %7148 = vmatpush.msrb.mxu2 %v7117_v8  ;;  %8156 = vmatpush.msra.mxu1 %v8116_v46  ;;  %v8096_v8 = vld [vmem:[#allocation13 + $0x2830] sm:$0xff]  ;;  %v6530_v46 = vld [vmem:[#allocation13 + $0x13c8] sm:$0xff] }
 0xacd   :  { %6459 = vmatpush.msra.mxu0 %v6371_v27  ;;  %7029 = vmatpush.msra.mxu3 %v6923_v49  ;;  %v7097_v27 = vld [vmem:[#allocation13 + $0x1b20] sm:$0xff] }
 0xace   :  { %7149 = vmatpush.msrb.mxu2 %v7115_v34  ;;  %8157 = vmatpush.msra.mxu1 %v8114_v25  ;;  %v8094_v49 = vld [vmem:[#allocation13 + $0x2820] sm:$0xff]  ;;  %v6528_v34 = vld [vmem:[#allocation13 + $0x13b8] sm:$0xff]  ;;  %v7095_v25 = vld [vmem:[#allocation13 + $0x1b10] sm:$0xff] }
 0xacf   :  { %6460 = vmatpush.msra.mxu0 %v6369_v30  ;;  %7030 = vmatpush.msra.mxu3 %v6921_v62  ;;  %v5879_v52 = vpop.f32.mrf.mxu0  ;;  %v6554_v30 = vpop.f32.mrf.mxu1  ;;  %v7080_v62 = vld [vmem:[#allocation13 + $0x1a98] sm:$0xff] }
 0xad0   :  { %7150 = vmatpush.msrb.mxu2 %v7113_v48  ;;  %8158 = vmatpush.msra.mxu1 %v8112_v24  ;;  %v5880_v9 = vadd.f32 %v5879_v52, %v12285_v10  ;;  %v8104_v10 = vld [vmem:[#allocation13 + $0x2870] sm:$0xff]  ;;  %v8090_v52 = vld [vmem:[#allocation13 + $0x2800] sm:$0xff] }
 0xad1   :  { %6461 = vmatpush.msra.mxu0 %v6367_v16  ;;  %7031 = vmatpush.msra.mxu3 %v6919_v37  ;;  %v8092_v48 = vld [vmem:[#allocation13 + $0x2810] sm:$0xff]  ;;  %v6526_v16 = vld [vmem:[#allocation13 + $0x13a8] sm:$0xff]  ;;  %v7093_v37 = vld [vmem:[#allocation13 + $0x1b00] sm:$0xff] }
 0xad2   :  { %7151 = vmatpush.msrb.mxu2 %v7111_v19  ;;  %8159 = vmatpush.msra.mxu1 %v8110_v57  ;;  %v12312_v39 = vadd.f32 %v5880_v9, %v12279_v20  ;;  %v8102_v20 = vld [vmem:[#allocation13 + $0x2860] sm:$0xff]  ;;  %v7078_v57 = vld [vmem:[#allocation13 + $0x1a88] sm:$0xff]  ;;  %v7076_v9 = vld [vmem:[#allocation13 + $0x1a78] sm:$0xff] }
 0xad3   :  { %6462 = vmatpush.msra.mxu0 %v6365_v31  ;;  %7032 = vmatpush.msra.mxu3 %v6917_v13  ;;  %v7270_v31 = vld [vmem:[#allocation13 + $0x1df0] sm:$0xff] }
 0xad4   :  { %7152 = vmatpush.msrb.mxu2 %v7109_v18  ;;  %8160 = vmatpush.msra.mxu1 %v8108_v50  ;;  %v6524_v18 = vld [vmem:[#allocation13 + $0x1398] sm:$0xff]  ;;  %v7268_v50 = vld [vmem:[#allocation13 + $0x1de0] sm:$0xff] }
 0xad5   :  { %6463 = vmatpush.msra.mxu0 %v6363_v47  ;;  %7033 = vmatpush.msra.mxu3 %v6915_v51  ;;  %v6522_v47 = vld [vmem:[#allocation13 + $0x1388] sm:$0xff] }
 0xad6   :  { %7153 = vmatpush.msrb.mxu2 %v7107_v63  ;;  %8161 = vmatpush.msra.mxu1 %v8106_v21  ;;  %v7074_v51 = vld [vmem:[#allocation13 + $0x1a68] sm:$0xff]  ;;  %v7266_v63 = vld [vmem:[#allocation13 + $0x1dd0] sm:$0xff]  ;;  %v12746_v21 = vld [vmem:[#allocation77_spill] sm:$0xff] }
 0xad7   :  { %7034 = vmatmul.f32.vlgmr.msra.gmra.mxu3 %v11819_v59  ;;  %6464 = vmatpush.msra.mxu0 %v6361_v17  ;;  %v7086_v59 = vld [vmem:[#allocation13 + $0x1ac8] sm:$0xff]  ;;  %v7264_v17 = vld [vmem:[#allocation13 + $0x1dc0] sm:$0xff] }
 0xad8   :  { %7165 = vmatpush.msrb.mxu3 %v7092_v58  ;;  %8162 = vmatpush.msra.mxu1 %v8104_v10  ;;  %v7072_v58 = vld [vmem:[#allocation13 + $0x1a58] sm:$0xff]  ;;  %v6518_v10 = vld [vmem:[#allocation13 + $0x1368] sm:$0xff] }
 0xad9   :  { %7154 = vmatpush.msrb.mxu2 %v7105_v0  ;;  %6465 = vmatpush.msra.mxu0 %v6359_v43  ;;  %v7070_v0 = vld [vmem:[#allocation13 + $0x1a48] sm:$0xff]  ;;  %v6516_v43 = vld [vmem:[#allocation13 + $0x1358] sm:$0xff] }
 0xada   :  { %7166 = vmatpush.msrb.mxu3 %v7090_v32  ;;  %8163 = vmatpush.msra.mxu1 %v8102_v20  ;;  %v7262_v32 = vld [vmem:[#allocation13 + $0x1db0] sm:$0xff]  ;;  %v7068_v20 = vld [vmem:[#allocation13 + $0x1a38] sm:$0xff] }
 0xadb   :  { %6466 = vmatmul.f32.vlgmr.msra.gmra.mxu0 %v12068_v44  ;;  %7155 = vmatpush.msrb.mxu2 %v7103_v38  ;;  %v7082_v44 = vld [vmem:[#allocation13 + $0x1aa8] sm:$0xff] }
 0xadc   :  { %6597 = vmatpush.msrb.mxu0 %v6536_v22  ;;  %7167 = vmatpush.msrb.mxu3 %v7088_v7  ;;  %v7260_v22 = vld [vmem:[#allocation13 + $0x1da0] sm:$0xff]  ;;  %v6514_v38 = vld [vmem:[#allocation13 + $0x1348] sm:$0xff] }
 0xadd   :  { %8164 = vmatpush.msra.mxu1 %v8100_v1  ;;  %7156 = vmatpush.msrb.mxu2 %v7101_v54  ;;  %v7066_v7 = vld [vmem:[#allocation13 + $0x1a28] sm:$0xff]  ;;  %v7258_v1 = vld [vmem:[#allocation13 + $0x1d90] sm:$0xff]  ;;  %v6512_v54 = vld [vmem:[#allocation13 + $0x1338] sm:$0xff] }
 0xade   :  { %6598 = vmatpush.msrb.mxu0 %v6534_v41  ;;  %7168 = vmatpush.msrb.mxu3 %v7086_v59  ;;  %v6006_v41 = vpop.f32.mrf.mxu3  ;;  %v7064_v59 = vld [vmem:[#allocation13 + $0x1a18] sm:$0xff] }
 0xadf   :  { %8165 = vmatpush.msra.mxu1 %v8098_v26  ;;  %7157 = vmatpush.msrb.mxu2 %v7099_v60 }
 0xae0   :  { %6599 = vmatpush.msrb.mxu0 %v6532_v14  ;;  %7169 = vmatpush.msrb.mxu3 %v7084_v40  ;;  %v7256_v14 = vld [vmem:[#allocation13 + $0x1d80] sm:$0xff]  ;;  %v6510_v40 = vld [vmem:[#allocation13 + $0x1328] sm:$0xff] }
 0xae1   :  { %8166 = vmatpush.msra.mxu1 %v8096_v8  ;;  %7158 = vmatpush.msrb.mxu2 %v7097_v27  ;;  %v6574_v24 = vpop.f32.mrf.mxu2  ;;  %v7062_v8 = vld [vmem:[#allocation13 + $0x1a08] sm:$0xff] }
 0xae2   :  { %6600 = vmatpush.msrb.mxu0 %v6530_v46  ;;  %7170 = vmatpush.msrb.mxu3 %v7082_v44  ;;  %v6575_v19 = vadd.f32 %v6574_v24, %v6554_v30  ;;  %v7254_v46 = vld [vmem:[#allocation13 + $0x1d70] sm:$0xff]  ;;  %v7239_v44 = vld [vmem:[#allocation13 + $0x1cf8] sm:$0xff]  ;;  %v6506_v30 = vld [vmem:[#allocation13 + $0x1308] sm:$0xff] }
 0xae3   :  { %8167 = vmatpush.msra.mxu1 %v8094_v49  ;;  %7159 = vmatpush.msrb.mxu2 %v7095_v25  ;;  %v6508_v49 = vld [vmem:[#allocation13 + $0x1318] sm:$0xff]  ;;  %v7237_v25 = vld [vmem:[#allocation13 + $0x1ce8] sm:$0xff] }
 0xae4   :  { %6601 = vmatpush.msrb.mxu0 %v6528_v34  ;;  %7171 = vmatpush.msrb.mxu3 %v7080_v62  ;;  %v12317_v13 = vadd.f32 %v6575_v19, %v12306_v61  ;;  %v6520_v61 = vld [vmem:[#allocation13 + $0x1378] sm:$0xff]  ;;  %v7252_v34 = vld [vmem:[#allocation13 + $0x1d60] sm:$0xff]  ;;  %v7250_v62 = vld [vmem:[#allocation13 + $0x1d50] sm:$0xff] }
 0xae5   :  { %8168 = vmatpush.msra.mxu1 %v8092_v48  ;;  %7160 = vmatpush.msrb.mxu2 %v7093_v37  ;;  %v6683_v48 = vld [vmem:[#allocation13 + $0x15f8] sm:$0xff]  ;;  %v7233_v37 = vld [vmem:[#allocation13 + $0x1cc8] sm:$0xff] }
 0xae6   :  { %6602 = vmatpush.msrb.mxu0 %v6526_v16  ;;  %7172 = vmatpush.msrb.mxu3 %v7078_v57  ;;  %v7235_v24 = vld [vmem:[#allocation13 + $0x1cd8] sm:$0xff]  ;;  %v6681_v16 = vld [vmem:[#allocation13 + $0x15e8] sm:$0xff] }
 0xae7   :  { %7161 = vmatmul.f32.vlgmr.msrb.gmra.mxu2 %v12149_v29  ;;  %8169 = vmatpush.msra.mxu1 %v8090_v52  ;;  %v6679_v19 = vld [vmem:[#allocation13 + $0x15d8] sm:$0xff]  ;;  %v6677_v52 = vld [vmem:[#allocation13 + $0x15c8] sm:$0xff] }
 0xae8   :  { %7292 = vmatpush.msra.mxu2 %v7270_v31  ;;  %6603 = vmatpush.msrb.mxu0 %v6524_v18  ;;  %v7231_v57 = vld [vmem:[#allocation13 + $0x1cb8] sm:$0xff]  ;;  %v7244_v31 = vld [vmem:[#allocation13 + $0x1d20] sm:$0xff]  ;;  %v7229_v18 = vld [vmem:[#allocation13 + $0x1ca8] sm:$0xff] }
 0xae9   :  { %7173 = vmatpush.msrb.mxu3 %v7076_v9  ;;  %8170 = vmatmul.f32.vlgmr.msra.gmra.mxu1 %v12746_v21  ;;  %v7242_v9 = vld [vmem:[#allocation13 + $0x1d10] sm:$0xff] }
 0xaea   :  { %7293 = vmatpush.msra.mxu2 %v7268_v50  ;;  %6604 = vmatpush.msrb.mxu0 %v6522_v47  ;;  %v7227_v50 = vld [vmem:[#allocation13 + $0x1c98] sm:$0xff]  ;;  %v7240_v47 = vld [vmem:[#allocation13 + $0x1d00] sm:$0xff] }
 0xaeb   :  { %7174 = vmatpush.msrb.mxu3 %v7074_v51  ;;  %v6673_v51 = vld [vmem:[#allocation13 + $0x15a8] sm:$0xff] }
 0xaec   :  { %7294 = vmatpush.msra.mxu2 %v7266_v63  ;;  %6605 = vmatpush.msrb.mxu0 %v6520_v61  ;;  %v7225_v63 = vld [vmem:[#allocation13 + $0x1c88] sm:$0xff]  ;;  %v7417_v61 = vld [vmem:[#allocation13 + $0x1ff0] sm:$0xff] }
 0xaed   :  { %7175 = vmatpush.msrb.mxu3 %v7072_v58  ;;  %v6671_v58 = vld [vmem:[#allocation13 + $0x1598] sm:$0xff] }
 0xaee   :  { %7295 = vmatpush.msra.mxu2 %v7264_v17  ;;  %6606 = vmatpush.msrb.mxu0 %v6518_v10  ;;  %v7223_v17 = vld [vmem:[#allocation13 + $0x1c78] sm:$0xff]  ;;  %v7415_v10 = vld [vmem:[#allocation13 + $0x1fe0] sm:$0xff] }
 0xaef   :  { %7176 = vmatpush.msrb.mxu3 %v7070_v0  ;;  %v6669_v0 = vld [vmem:[#allocation13 + $0x1588] sm:$0xff] }
 0xaf0   :  { %7296 = vmatpush.msra.mxu2 %v7262_v32  ;;  %6607 = vmatpush.msrb.mxu0 %v6516_v43  ;;  %v7221_v32 = vld [vmem:[#allocation13 + $0x1c68] sm:$0xff]  ;;  %v7413_v43 = vld [vmem:[#allocation13 + $0x1fd0] sm:$0xff] }
 0xaf1   :  { %7177 = vmatpush.msrb.mxu3 %v7068_v20  ;;  %v6667_v20 = vld [vmem:[#allocation13 + $0x1578] sm:$0xff] }
 0xaf2   :  { %7297 = vmatpush.msra.mxu2 %v7260_v22  ;;  %v6026_v26 = vpop.f32.mrf.mxu0  ;;  %6608 = vmatpush.msrb.mxu0 %v6514_v38  ;;  %v7219_v22 = vld [vmem:[#allocation13 + $0x1c58] sm:$0xff]  ;;  %v7411_v38 = vld [vmem:[#allocation13 + $0x1fc0] sm:$0xff] }
 0xaf3   :  { %7178 = vmatpush.msrb.mxu3 %v7066_v7  ;;  %v6027_v60 = vadd.f32 %v6026_v26, %v6006_v41  ;;  %v6665_v7 = vld [vmem:[#allocation13 + $0x1568] sm:$0xff]  ;;  %v7409_v41 = vld [vmem:[#allocation13 + $0x1fb0] sm:$0xff]  ;;  %v7407_v26 = vld [vmem:[#allocation13 + $0x1fa0] sm:$0xff] }
 0xaf4   :  { %7298 = vmatpush.msra.mxu2 %v7258_v1  ;;  %6609 = vmatpush.msrb.mxu0 %v6512_v54  ;;  %v7217_v1 = vld [vmem:[#allocation13 + $0x1c48] sm:$0xff]  ;;  %v6663_v54 = vld [vmem:[#allocation13 + $0x1558] sm:$0xff] }
 0xaf5   :  { %7179 = vmatpush.msrb.mxu3 %v7064_v59  ;;  %v12322_v27 = vadd.f32 %v6027_v60, %v12312_v39  ;;  %v7248_v39 = vld [vmem:[#allocation13 + $0x1d40] sm:$0xff]  ;;  %v7215_v59 = vld [vmem:[#allocation13 + $0x1c38] sm:$0xff]  ;;  %v7213_v60 = vld [vmem:[#allocation13 + $0x1c28] sm:$0xff] }
 0xaf6   :  { %7299 = vmatpush.msra.mxu2 %v7256_v14  ;;  %6610 = vmatpush.msrb.mxu0 %v6510_v40  ;;  %v6661_v14 = vld [vmem:[#allocation13 + $0x1548] sm:$0xff]  ;;  %v7405_v40 = vld [vmem:[#allocation13 + $0x1f90] sm:$0xff] }
 0xaf7   :  { %7180 = vmatpush.msrb.mxu3 %v7062_v8  ;;  %v6659_v8 = vld [vmem:[#allocation13 + $0x1538] sm:$0xff] }
 0xaf8   :  { %7181 = vmatmul.f32.vlgmr.msrb.gmra.mxu3 %v11835_v33  ;;  %7300 = vmatpush.msra.mxu2 %v7254_v46  ;;  %v7246_v33 = vld [vmem:[#allocation13 + $0x1d30] sm:$0xff]  ;;  %v7211_v46 = vld [vmem:[#allocation13 + $0x1c18] sm:$0xff] }
 0xaf9   :  { %7312 = vmatpush.msra.mxu3 %v7239_v44  ;;  %6611 = vmatpush.msrb.mxu0 %v6508_v49  ;;  %v6153_v44 = vpop.f32.mrf.mxu3  ;;  %v7403_v49 = vld [vmem:[#allocation13 + $0x1f80] sm:$0xff] }
 0xafa   :  { %7301 = vmatpush.msra.mxu2 %v7252_v34  ;;  %v6657_v34 = vld [vmem:[#allocation13 + $0x1528] sm:$0xff] }
 0xafb   :  { %7313 = vmatpush.msra.mxu3 %v7237_v25  ;;  %6612 = vmatpush.msrb.mxu0 %v6506_v30  ;;  %v7209_v30 = vld [vmem:[#allocation13 + $0x1c08] sm:$0xff] }
 0xafc   :  { %6613 = vmatmul.f32.vlgmr.msrb.gmra.mxu0 %v12083_v11  ;;  %7302 = vmatpush.msra.mxu2 %v7250_v62  ;;  %v6675_v11 = vld [vmem:[#allocation13 + $0x15b8] sm:$0xff] }
 0xafd   :  { %6744 = vmatpush.msra.mxu0 %v6683_v48  ;;  %7314 = vmatpush.msra.mxu3 %v7235_v24  ;;  %v7401_v48 = vld [vmem:[#allocation13 + $0x1f70] sm:$0xff]  ;;  %v7386_v24 = vld [vmem:[#allocation13 + $0x1ef8] sm:$0xff] }
 0xafe   :  { %7303 = vmatpush.msra.mxu2 %v7248_v39  ;;  %v6655_v39 = vld [vmem:[#allocation13 + $0x1518] sm:$0xff] }
 0xaff   :  { %6745 = vmatpush.msra.mxu0 %v6681_v16  ;;  %7315 = vmatpush.msra.mxu3 %v7233_v37  ;;  %v7399_v37 = vld [vmem:[#allocation13 + $0x1f60] sm:$0xff] }
 0xb00   :  { %7304 = vmatpush.msra.mxu2 %v7246_v33  ;;  %v7384_v33 = vld [vmem:[#allocation13 + $0x1ee8] sm:$0xff] }
 0xb01   :  { %6746 = vmatpush.msra.mxu0 %v6679_v19  ;;  %7316 = vmatpush.msra.mxu3 %v7231_v57  ;;  %v6653_v19 = vld [vmem:[#allocation13 + $0x1508] sm:$0xff]  ;;  %v7397_v57 = vld [vmem:[#allocation13 + $0x1f50] sm:$0xff] }
 0xb02   :  { %7305 = vmatpush.msra.mxu2 %v7244_v31  ;;  %v6830_v31 = vld [vmem:[#allocation13 + $0x17f8] sm:$0xff] }
 0xb03   :  { %6747 = vmatpush.msra.mxu0 %v6677_v52  ;;  %7317 = vmatpush.msra.mxu3 %v7229_v18  ;;  %v7382_v52 = vld [vmem:[#allocation13 + $0x1ed8] sm:$0xff]  ;;  %v7395_v18 = vld [vmem:[#allocation13 + $0x1f40] sm:$0xff] }
 0xb04   :  { %7306 = vmatpush.msra.mxu2 %v7242_v9  ;;  %v7380_v9 = vld [vmem:[#allocation13 + $0x1ec8] sm:$0xff] }
 0xb05   :  { %6748 = vmatpush.msra.mxu0 %v6675_v11  ;;  %7318 = vmatpush.msra.mxu3 %v7227_v50  ;;  %v6826_v11 = vld [vmem:[#allocation13 + $0x17d8] sm:$0xff] }
 0xb06   :  { %7307 = vmatpush.msra.mxu2 %v7240_v47  ;;  %v7378_v50 = vld [vmem:[#allocation13 + $0x1eb8] sm:$0xff]  ;;  %v7391_v47 = vld [vmem:[#allocation13 + $0x1f20] sm:$0xff] }
 0xb07   :  { %6749 = vmatpush.msra.mxu0 %v6673_v51  ;;  %7319 = vmatpush.msra.mxu3 %v7225_v63  ;;  %v6824_v51 = vld [vmem:[#allocation13 + $0x17c8] sm:$0xff] }
 0xb08   :  { %7308 = vmatmul.f32.vlgmr.msra.gmra.mxu2 %v12164_v35  ;;  %v7376_v63 = vld [vmem:[#allocation13 + $0x1ea8] sm:$0xff] }
 0xb09   :  { %7439 = vmatpush.msrb.mxu2 %v7417_v61  ;;  %6750 = vmatpush.msra.mxu0 %v6671_v58  ;;  %v7389_v61 = vld [vmem:[#allocation13 + $0x1f10] sm:$0xff]  ;;  %v7374_v58 = vld [vmem:[#allocation13 + $0x1e98] sm:$0xff] }
 0xb0a   :  { %7320 = vmatpush.msra.mxu3 %v7223_v17  ;;  %v7387_v17 = vld [vmem:[#allocation13 + $0x1f00] sm:$0xff] }
 0xb0b   :  { %7440 = vmatpush.msrb.mxu2 %v7415_v10  ;;  %6751 = vmatpush.msra.mxu0 %v6669_v0  ;;  %v6820_v10 = vld [vmem:[#allocation13 + $0x17a8] sm:$0xff] }
 0xb0c   :  { %7321 = vmatpush.msra.mxu3 %v7221_v32  ;;  %v7372_v0 = vld [vmem:[#allocation13 + $0x1e88] sm:$0xff]  ;;  %v7564_v32 = vld [vmem:[#allocation13 + $0x21f0] sm:$0xff] }
 0xb0d   :  { %7441 = vmatpush.msrb.mxu2 %v7413_v43  ;;  %6752 = vmatpush.msra.mxu0 %v6667_v20  ;;  %v6818_v43 = vld [vmem:[#allocation13 + $0x1798] sm:$0xff] }
 0xb0e   :  { %7322 = vmatpush.msra.mxu3 %v7219_v22  ;;  %v7370_v20 = vld [vmem:[#allocation13 + $0x1e78] sm:$0xff]  ;;  %v7562_v22 = vld [vmem:[#allocation13 + $0x21e0] sm:$0xff] }
 0xb0f   :  { %7442 = vmatpush.msrb.mxu2 %v7411_v38  ;;  %6753 = vmatpush.msra.mxu0 %v6665_v7  ;;  %v6816_v38 = vld [vmem:[#allocation13 + $0x1788] sm:$0xff] }
 0xb10   :  { %7323 = vmatpush.msra.mxu3 %v7217_v1  ;;  %v7368_v7 = vld [vmem:[#allocation13 + $0x1e68] sm:$0xff]  ;;  %v7560_v1 = vld [vmem:[#allocation13 + $0x21d0] sm:$0xff] }
 0xb11   :  { %7443 = vmatpush.msrb.mxu2 %v7409_v41  ;;  %6754 = vmatpush.msra.mxu0 %v6663_v54  ;;  %v6814_v41 = vld [vmem:[#allocation13 + $0x1778] sm:$0xff] }
 0xb12   :  { %7324 = vmatpush.msra.mxu3 %v7215_v59  ;;  %v7366_v54 = vld [vmem:[#allocation13 + $0x1e58] sm:$0xff]  ;;  %v7558_v59 = vld [vmem:[#allocation13 + $0x21c0] sm:$0xff] }
 0xb13   :  { %7444 = vmatpush.msrb.mxu2 %v7407_v26  ;;  %6755 = vmatpush.msra.mxu0 %v6661_v14  ;;  %v6812_v26 = vld [vmem:[#allocation13 + $0x1768] sm:$0xff] }
 0xb14   :  { %7325 = vmatpush.msra.mxu3 %v7213_v60  ;;  %v6173_v25 = vpop.f32.mrf.mxu0  ;;  %v7364_v14 = vld [vmem:[#allocation13 + $0x1e48] sm:$0xff]  ;;  %v7556_v60 = vld [vmem:[#allocation13 + $0x21b0] sm:$0xff] }
 0xb15   :  { %7445 = vmatpush.msrb.mxu2 %v7405_v40  ;;  %6756 = vmatpush.msra.mxu0 %v6659_v8  ;;  %v6174_v62 = vadd.f32 %v6173_v25, %v6153_v44  ;;  %v6810_v40 = vld [vmem:[#allocation13 + $0x1758] sm:$0xff]  ;;  %v6808_v44 = vld [vmem:[#allocation13 + $0x1748] sm:$0xff] }
 0xb16   :  { %7326 = vmatpush.msra.mxu3 %v7211_v46  ;;  %v7362_v8 = vld [vmem:[#allocation13 + $0x1e38] sm:$0xff]  ;;  %v7554_v46 = vld [vmem:[#allocation13 + $0x21a0] sm:$0xff] }
 0xb17   :  { %7446 = vmatpush.msrb.mxu2 %v7403_v49  ;;  %6757 = vmatpush.msra.mxu0 %v6657_v34  ;;  %v12328_v16 = vadd.f32 %v6174_v62, %v12322_v27  ;;  %v6828_v27 = vld [vmem:[#allocation13 + $0x17e8] sm:$0xff]  ;;  %v7552_v34 = vld [vmem:[#allocation13 + $0x2190] sm:$0xff]  ;;  %v6806_v25 = vld [vmem:[#allocation13 + $0x1738] sm:$0xff] }
 0xb18   :  { %7327 = vmatpush.msra.mxu3 %v7209_v30  ;;  %v7360_v49 = vld [vmem:[#allocation13 + $0x1e28] sm:$0xff]  ;;  %v7358_v30 = vld [vmem:[#allocation13 + $0x1e18] sm:$0xff]  ;;  %v7550_v62 = vld [vmem:[#allocation13 + $0x2180] sm:$0xff] }
 0xb19   :  { %7328 = vmatmul.f32.vlgmr.msra.gmra.mxu3 %v11852_v4  ;;  %7447 = vmatpush.msrb.mxu2 %v7401_v48  ;;  %v7393_v4 = vld [vmem:[#allocation13 + $0x1f30] sm:$0xff]  ;;  %v6804_v48 = vld [vmem:[#allocation13 + $0x1728] sm:$0xff] }
 0xb1a   :  { %7459 = vmatpush.msrb.mxu3 %v7386_v24  ;;  %6758 = vmatpush.msra.mxu0 %v6655_v39  ;;  %v6300_v24 = vpop.f32.mrf.mxu3  ;;  %v7356_v39 = vld [vmem:[#allocation13 + $0x1e08] sm:$0xff] }
 0xb1b   :  { %7448 = vmatpush.msrb.mxu2 %v7399_v37 }
 0xb1c   :  { %7460 = vmatpush.msrb.mxu3 %v7384_v33  ;;  %6759 = vmatpush.msra.mxu0 %v6653_v19  ;;  %v7548_v33 = vld [vmem:[#allocation13 + $0x2170] sm:$0xff] }
 0xb1d   :  { %6760 = vmatmul.f32.vlgmr.msra.gmra.mxu0 %v12100_v53  ;;  %7449 = vmatpush.msrb.mxu2 %v7397_v57  ;;  %v6822_v53 = vld [vmem:[#allocation13 + $0x17b8] sm:$0xff] }
 0xb1e   :  { %6891 = vmatpush.msrb.mxu0 %v6830_v31  ;;  %7461 = vmatpush.msrb.mxu3 %v7382_v52  ;;  %v7533_v57 = vld [vmem:[#allocation13 + $0x20f8] sm:$0xff]  ;;  %v7546_v52 = vld [vmem:[#allocation13 + $0x2160] sm:$0xff] }
 0xb1f   :  { %7450 = vmatpush.msrb.mxu2 %v7395_v18  ;;  %v6802_v31 = vld [vmem:[#allocation13 + $0x1718] sm:$0xff] }
 0xb20   :  { %6892 = vmatpush.msrb.mxu0 %v6828_v27  ;;  %7462 = vmatpush.msrb.mxu3 %v7380_v9  ;;  %v7531_v27 = vld [vmem:[#allocation13 + $0x20e8] sm:$0xff] }
 0xb21   :  { %7451 = vmatpush.msrb.mxu2 %v7393_v4  ;;  %v6800_v9 = vld [vmem:[#allocation13 + $0x1708] sm:$0xff]  ;;  %v7544_v4 = vld [vmem:[#allocation13 + $0x2150] sm:$0xff] }
 0xb22   :  { %6893 = vmatpush.msrb.mxu0 %v6826_v11  ;;  %7463 = vmatpush.msrb.mxu3 %v7378_v50  ;;  %v6977_v11 = vld [vmem:[#allocation13 + $0x19f8] sm:$0xff] }
 0xb23   :  { %7452 = vmatpush.msrb.mxu2 %v7391_v47  ;;  %v7529_v50 = vld [vmem:[#allocation13 + $0x20d8] sm:$0xff]  ;;  %v7542_v47 = vld [vmem:[#allocation13 + $0x2140] sm:$0xff] }
 0xb24   :  { %6894 = vmatpush.msrb.mxu0 %v6824_v51  ;;  %7464 = vmatpush.msrb.mxu3 %v7376_v63  ;;  %v6975_v51 = vld [vmem:[#allocation13 + $0x19e8] sm:$0xff]  ;;  %v6973_v63 = vld [vmem:[#allocation13 + $0x19d8] sm:$0xff] }
 0xb25   :  { %7453 = vmatpush.msrb.mxu2 %v7389_v61  ;;  %v7525_v61 = vld [vmem:[#allocation13 + $0x20b8] sm:$0xff] }
 0xb26   :  { %6895 = vmatpush.msrb.mxu0 %v6822_v53  ;;  %7465 = vmatpush.msrb.mxu3 %v7374_v58  ;;  %v7538_v53 = vld [vmem:[#allocation13 + $0x2120] sm:$0xff]  ;;  %v6971_v58 = vld [vmem:[#allocation13 + $0x19c8] sm:$0xff] }
 0xb27   :  { %7454 = vmatpush.msrb.mxu2 %v7387_v17  ;;  %v7523_v17 = vld [vmem:[#allocation13 + $0x20a8] sm:$0xff] }
 0xb28   :  { %6896 = vmatpush.msrb.mxu0 %v6820_v10  ;;  %7466 = vmatpush.msrb.mxu3 %v7372_v0  ;;  %v7536_v10 = vld [vmem:[#allocation13 + $0x2110] sm:$0xff]  ;;  %v7521_v0 = vld [vmem:[#allocation13 + $0x2098] sm:$0xff] }
 0xb29   :  { %7455 = vmatmul.f32.vlgmr.msrb.gmra.mxu2 %v12186_v36 }
 0xb2a   :  { %7586 = vmatpush.msra.mxu2 %v7564_v32  ;;  %6897 = vmatpush.msrb.mxu0 %v6818_v43  ;;  %v7534_v32 = vld [vmem:[#allocation13 + $0x2100] sm:$0xff]  ;;  %v6967_v43 = vld [vmem:[#allocation13 + $0x19a8] sm:$0xff] }
 0xb2b   :  { %7467 = vmatpush.msrb.mxu3 %v7370_v20  ;;  %v7519_v20 = vld [vmem:[#allocation13 + $0x2088] sm:$0xff] }
 0xb2c   :  { %7587 = vmatpush.msra.mxu2 %v7562_v22  ;;  %6898 = vmatpush.msrb.mxu0 %v6816_v38  ;;  %v7711_v22 = vld [vmem:[#allocation13 + $0x23f0] sm:$0xff]  ;;  %v6965_v38 = vld [vmem:[#allocation13 + $0x1998] sm:$0xff] }
 0xb2d   :  { %7468 = vmatpush.msrb.mxu3 %v7368_v7  ;;  %v7517_v7 = vld [vmem:[#allocation13 + $0x2078] sm:$0xff] }
 0xb2e   :  { %7588 = vmatpush.msra.mxu2 %v7560_v1  ;;  %6899 = vmatpush.msrb.mxu0 %v6814_v41  ;;  %v7709_v1 = vld [vmem:[#allocation13 + $0x23e0] sm:$0xff]  ;;  %v6963_v41 = vld [vmem:[#allocation13 + $0x1988] sm:$0xff] }
 0xb2f   :  { %7469 = vmatpush.msrb.mxu3 %v7366_v54  ;;  %v7515_v54 = vld [vmem:[#allocation13 + $0x2068] sm:$0xff] }
 0xb30   :  { %7589 = vmatpush.msra.mxu2 %v7558_v59  ;;  %6900 = vmatpush.msrb.mxu0 %v6812_v26  ;;  %v7707_v59 = vld [vmem:[#allocation13 + $0x23d0] sm:$0xff]  ;;  %v6961_v26 = vld [vmem:[#allocation13 + $0x1978] sm:$0xff] }
 0xb31   :  { %7470 = vmatpush.msrb.mxu3 %v7364_v14  ;;  %v7513_v14 = vld [vmem:[#allocation13 + $0x2058] sm:$0xff] }
 0xb32   :  { %7590 = vmatpush.msra.mxu2 %v7556_v60  ;;  %6901 = vmatpush.msrb.mxu0 %v6810_v40  ;;  %v7705_v60 = vld [vmem:[#allocation13 + $0x23c0] sm:$0xff]  ;;  %v6959_v40 = vld [vmem:[#allocation13 + $0x1968] sm:$0xff] }
 0xb33   :  { %7471 = vmatpush.msrb.mxu3 %v7362_v8  ;;  %v7511_v8 = vld [vmem:[#allocation13 + $0x2048] sm:$0xff] }
 0xb34   :  { %7591 = vmatpush.msra.mxu2 %v7554_v46  ;;  %6902 = vmatpush.msrb.mxu0 %v6808_v44  ;;  %v7703_v46 = vld [vmem:[#allocation13 + $0x23b0] sm:$0xff]  ;;  %v6957_v44 = vld [vmem:[#allocation13 + $0x1958] sm:$0xff] }
 0xb35   :  { %7472 = vmatpush.msrb.mxu3 %v7360_v49  ;;  %v7509_v49 = vld [vmem:[#allocation13 + $0x2038] sm:$0xff] }
 0xb36   :  { %7592 = vmatpush.msra.mxu2 %v7552_v34  ;;  %6903 = vmatpush.msrb.mxu0 %v6806_v25  ;;  %v6320_v37 = vpop.f32.mrf.mxu0  ;;  %v7701_v34 = vld [vmem:[#allocation13 + $0x23a0] sm:$0xff]  ;;  %v6955_v25 = vld [vmem:[#allocation13 + $0x1948] sm:$0xff] }
 0xb37   :  { %7473 = vmatpush.msrb.mxu3 %v7358_v30  ;;  %v6321_v19 = vadd.f32 %v6320_v37, %v6300_v24  ;;  %v7507_v30 = vld [vmem:[#allocation13 + $0x2028] sm:$0xff]  ;;  %v7505_v24 = vld [vmem:[#allocation13 + $0x2018] sm:$0xff] }
 0xb38   :  { %7593 = vmatpush.msra.mxu2 %v7550_v62  ;;  %6904 = vmatpush.msrb.mxu0 %v6804_v48  ;;  %v7699_v62 = vld [vmem:[#allocation13 + $0x2390] sm:$0xff]  ;;  %v6953_v48 = vld [vmem:[#allocation13 + $0x1938] sm:$0xff]  ;;  %v6951_v37 = vld [vmem:[#allocation13 + $0x1928] sm:$0xff] }
 0xb39   :  { %7474 = vmatpush.msrb.mxu3 %v7356_v39  ;;  %v12334_v18 = vadd.f32 %v6321_v19, %v12328_v16  ;;  %v7527_v16 = vld [vmem:[#allocation13 + $0x20c8] sm:$0xff]  ;;  %v7697_v39 = vld [vmem:[#allocation13 + $0x2380] sm:$0xff]  ;;  %v6447_v19 = vpop.f32.mrf.mxu3 }
 0xb3a   :  { %7475 = vmatmul.f32.vlgmr.msrb.gmra.mxu3 %v12737_v5  ;;  %7594 = vmatpush.msra.mxu2 %v7548_v33  ;;  %v7540_v5 = vld [vmem:[#allocation13 + $0x2130] sm:$0xff]  ;;  %v7503_v33 = vld [vmem:[#allocation13 + $0x2008] sm:$0xff] }
 0xb3b   :  { %7606 = vmatpush.msra.mxu3 %v7533_v57  ;;  %6905 = vmatpush.msrb.mxu0 %v6802_v31  ;;  %v7695_v57 = vld [vmem:[#allocation13 + $0x2370] sm:$0xff] }
 0xb3c   :  { %7595 = vmatpush.msra.mxu2 %v7546_v52  ;;  %v7680_v52 = vld [vmem:[#allocation13 + $0x22f8] sm:$0xff] }
 0xb3d   :  { %7607 = vmatpush.msra.mxu3 %v7531_v27  ;;  %6906 = vmatpush.msrb.mxu0 %v6800_v9  ;;  %v6949_v27 = vld [vmem:[#allocation13 + $0x1918] sm:$0xff] }
 0xb3e   :  { %6907 = vmatmul.f32.vlgmr.msrb.gmra.mxu0 %v12117_v2  ;;  %7596 = vmatpush.msra.mxu2 %v7544_v4  ;;  %v6969_v2 = vld [vmem:[#allocation13 + $0x19b8] sm:$0xff]  ;;  %v7693_v4 = vld [vmem:[#allocation13 + $0x2360] sm:$0xff] }
 0xb3f   :  { %7038 = vmatpush.msra.mxu0 %v6977_v11  ;;  %7608 = vmatpush.msra.mxu3 %v7529_v50  ;;  %v7678_v11 = vld [vmem:[#allocation13 + $0x22e8] sm:$0xff] }
 0xb40   :  { %7597 = vmatpush.msra.mxu2 %v7542_v47  ;;  %v6947_v50 = vld [vmem:[#allocation13 + $0x1908] sm:$0xff] }
 0xb41   :  { %7039 = vmatpush.msra.mxu0 %v6975_v51  ;;  %7609 = vmatpush.msra.mxu3 %v7527_v16  ;;  %v7691_v51 = vld [vmem:[#allocation13 + $0x2350] sm:$0xff]  ;;  %v7124_v16 = vld [vmem:[#allocation13 + $0x1bf8] sm:$0xff] }
 0xb42   :  { %7598 = vmatpush.msra.mxu2 %v7540_v5  ;;  %v7676_v5 = vld [vmem:[#allocation13 + $0x22d8] sm:$0xff] }
 0xb43   :  { %7040 = vmatpush.msra.mxu0 %v6973_v63  ;;  %7610 = vmatpush.msra.mxu3 %v7525_v61  ;;  %v7689_v63 = vld [vmem:[#allocation13 + $0x2340] sm:$0xff]  ;;  %v7122_v61 = vld [vmem:[#allocation13 + $0x1be8] sm:$0xff] }
 0xb44   :  { %7599 = vmatpush.msra.mxu2 %v7538_v53  ;;  %v7687_v53 = vld [vmem:[#allocation13 + $0x2330] sm:$0xff] }
 0xb45   :  { %7041 = vmatpush.msra.mxu0 %v6971_v58  ;;  %7611 = vmatpush.msra.mxu3 %v7523_v17  ;;  %v7672_v58 = vld [vmem:[#allocation13 + $0x22b8] sm:$0xff]  ;;  %v7685_v17 = vld [vmem:[#allocation13 + $0x2320] sm:$0xff] }
 0xb46   :  { %7600 = vmatpush.msra.mxu2 %v7536_v10  ;;  %v7118_v10 = vld [vmem:[#allocation13 + $0x1bc8] sm:$0xff] }
 0xb47   :  { %7042 = vmatpush.msra.mxu0 %v6969_v2  ;;  %7612 = vmatpush.msra.mxu3 %v7521_v0  ;;  %v7670_v2 = vld [vmem:[#allocation13 + $0x22a8] sm:$0xff]  ;;  %v7683_v0 = vld [vmem:[#allocation13 + $0x2310] sm:$0xff] }
 0xb48   :  { %7601 = vmatpush.msra.mxu2 %v7534_v32  ;;  %v7668_v32 = vld [vmem:[#allocation13 + $0x2298] sm:$0xff] }
 0xb49   :  { %7043 = vmatpush.msra.mxu0 %v6967_v43  ;;  %7613 = vmatpush.msra.mxu3 %v7519_v20  ;;  %v7681_v43 = vld [vmem:[#allocation13 + $0x2300] sm:$0xff]  ;;  %v7114_v20 = vld [vmem:[#allocation13 + $0x1ba8] sm:$0xff] }
 0xb4a   :  { %7602 = vmatmul.f32.vlgmr.msra.gmra.mxu2 %v12208_v55 }
 0xb4b   :  { %7733 = vmatpush.msrb.mxu2 %v7711_v22  ;;  %7044 = vmatpush.msra.mxu0 %v6965_v38  ;;  %v7666_v22 = vld [vmem:[#allocation13 + $0x2288] sm:$0xff]  ;;  %v7858_v38 = vld [vmem:[#allocation13 + $0x25f0] sm:$0xff] }
 0xb4c   :  { %7614 = vmatpush.msra.mxu3 %v7517_v7  ;;  %v7112_v7 = vld [vmem:[#allocation13 + $0x1b98] sm:$0xff] }
 0xb4d   :  { %7734 = vmatpush.msrb.mxu2 %v7709_v1  ;;  %7045 = vmatpush.msra.mxu0 %v6963_v41  ;;  %v7664_v1 = vld [vmem:[#allocation13 + $0x2278] sm:$0xff]  ;;  %v7856_v41 = vld [vmem:[#allocation13 + $0x25e0] sm:$0xff] }
 0xb4e   :  { %7615 = vmatpush.msra.mxu3 %v7515_v54  ;;  %v7110_v54 = vld [vmem:[#allocation13 + $0x1b88] sm:$0xff] }
 0xb4f   :  { %7735 = vmatpush.msrb.mxu2 %v7707_v59  ;;  %7046 = vmatpush.msra.mxu0 %v6961_v26  ;;  %v7662_v59 = vld [vmem:[#allocation13 + $0x2268] sm:$0xff]  ;;  %v7854_v26 = vld [vmem:[#allocation13 + $0x25d0] sm:$0xff] }
 0xb50   :  { %7616 = vmatpush.msra.mxu3 %v7513_v14  ;;  %v7108_v14 = vld [vmem:[#allocation13 + $0x1b78] sm:$0xff] }
 0xb51   :  { %7736 = vmatpush.msrb.mxu2 %v7705_v60  ;;  %7047 = vmatpush.msra.mxu0 %v6959_v40  ;;  %v7660_v60 = vld [vmem:[#allocation13 + $0x2258] sm:$0xff]  ;;  %v7852_v40 = vld [vmem:[#allocation13 + $0x25c0] sm:$0xff] }
 0xb52   :  { %7617 = vmatpush.msra.mxu3 %v7511_v8  ;;  %v7106_v8 = vld [vmem:[#allocation13 + $0x1b68] sm:$0xff] }
 0xb53   :  { %7737 = vmatpush.msrb.mxu2 %v7703_v46  ;;  %7048 = vmatpush.msra.mxu0 %v6957_v44  ;;  %v7658_v46 = vld [vmem:[#allocation13 + $0x2248] sm:$0xff]  ;;  %v7850_v44 = vld [vmem:[#allocation13 + $0x25b0] sm:$0xff] }
 0xb54   :  { %7618 = vmatpush.msra.mxu3 %v7509_v49  ;;  %v7104_v49 = vld [vmem:[#allocation13 + $0x1b58] sm:$0xff] }
 0xb55   :  { %7738 = vmatpush.msrb.mxu2 %v7701_v34  ;;  %7049 = vmatpush.msra.mxu0 %v6955_v25  ;;  %v7656_v34 = vld [vmem:[#allocation13 + $0x2238] sm:$0xff]  ;;  %v7848_v25 = vld [vmem:[#allocation13 + $0x25a0] sm:$0xff] }
 0xb56   :  { %7619 = vmatpush.msra.mxu3 %v7507_v30  ;;  %v7102_v30 = vld [vmem:[#allocation13 + $0x1b48] sm:$0xff] }
 0xb57   :  { %7739 = vmatpush.msrb.mxu2 %v7699_v62  ;;  %7050 = vmatpush.msra.mxu0 %v6953_v48  ;;  %v7654_v62 = vld [vmem:[#allocation13 + $0x2228] sm:$0xff]  ;;  %v7846_v48 = vld [vmem:[#allocation13 + $0x2590] sm:$0xff] }
 0xb58   :  { %7620 = vmatpush.msra.mxu3 %v7505_v24  ;;  %v6467_v31 = vpop.f32.mrf.mxu0  ;;  %v7100_v24 = vld [vmem:[#allocation13 + $0x1b38] sm:$0xff] }
 0xb59   :  { %7740 = vmatpush.msrb.mxu2 %v7697_v39  ;;  %7051 = vmatpush.msra.mxu0 %v6951_v37  ;;  %v6468_v9 = vadd.f32 %v6467_v31, %v6447_v19  ;;  %v7652_v39 = vld [vmem:[#allocation13 + $0x2218] sm:$0xff]  ;;  %v7844_v37 = vld [vmem:[#allocation13 + $0x2580] sm:$0xff]  ;;  %v7650_v19 = vld [vmem:[#allocation13 + $0x2208] sm:$0xff] }
 0xb5a   :  { %7621 = vmatpush.msra.mxu3 %v7503_v33  ;;  %v7098_v33 = vld [vmem:[#allocation13 + $0x1b28] sm:$0xff]  ;;  %v7842_v31 = vld [vmem:[#allocation13 + $0x2570] sm:$0xff] }
 0xb5b   :  { %7622 = vmatmul.f32.vlgmr.msra.gmra.mxu3 %v12742_v12  ;;  %7741 = vmatpush.msrb.mxu2 %v7695_v57  ;;  %v12341_v47 = vadd.f32 %v6468_v9, %v12334_v18  ;;  %v7674_v12 = vld [vmem:[#allocation13 + $0x22c8] sm:$0xff]  ;;  %v7120_v18 = vld [vmem:[#allocation13 + $0x1bd8] sm:$0xff]  ;;  %v6594_v57 = vpop.f32.mrf.mxu3 }
 0xb5c   :  { %7753 = vmatpush.msrb.mxu3 %v7680_v52  ;;  %7052 = vmatpush.msra.mxu0 %v6949_v27  ;;  %v7827_v27 = vld [vmem:[#allocation13 + $0x24f8] sm:$0xff] }
 0xb5d   :  { %7742 = vmatpush.msrb.mxu2 %v7693_v4  ;;  %v7096_v9 = vld [vmem:[#allocation13 + $0x1b18] sm:$0xff] }
 0xb5e   :  { %7754 = vmatpush.msrb.mxu3 %v7678_v11  ;;  %7053 = vmatpush.msra.mxu0 %v6947_v50  ;;  %v7840_v11 = vld [vmem:[#allocation13 + $0x2560] sm:$0xff]  ;;  %v7825_v50 = vld [vmem:[#allocation13 + $0x24e8] sm:$0xff] }
 0xb5f   :  { %7054 = vmatmul.f32.vlgmr.msra.gmra.mxu0 %v12134_v23  ;;  %7743 = vmatpush.msrb.mxu2 %v7691_v51  ;;  %v7116_v23 = vld [vmem:[#allocation13 + $0x1bb8] sm:$0xff]  ;;  %v7094_v51 = vld [vmem:[#allocation13 + $0x1b08] sm:$0xff] }
 0xb60   :  { %7185 = vmatpush.msrb.mxu0 %v7124_v16  ;;  %7755 = vmatpush.msrb.mxu3 %v7676_v5  ;;  %v7838_v5 = vld [vmem:[#allocation13 + $0x2550] sm:$0xff] }
 0xb61   :  { %7744 = vmatpush.msrb.mxu2 %v7689_v63  ;;  %v7271_v63 = vld [vmem:[#allocation13 + $0x1df8] sm:$0xff] }
 0xb62   :  { %7186 = vmatpush.msrb.mxu0 %v7122_v61  ;;  %7756 = vmatpush.msrb.mxu3 %v7674_v12  ;;  %v7823_v61 = vld [vmem:[#allocation13 + $0x24d8] sm:$0xff]  ;;  %v7836_v12 = vld [vmem:[#allocation13 + $0x2540] sm:$0xff] }
 0xb63   :  { %7745 = vmatpush.msrb.mxu2 %v7687_v53  ;;  %v7269_v53 = vld [vmem:[#allocation13 + $0x1de8] sm:$0xff] }
 0xb64   :  { %7187 = vmatpush.msrb.mxu0 %v7120_v18  ;;  %7757 = vmatpush.msrb.mxu3 %v7672_v58  ;;  %v7834_v18 = vld [vmem:[#allocation13 + $0x2530] sm:$0xff]  ;;  %v7819_v58 = vld [vmem:[#allocation13 + $0x24b8] sm:$0xff] }
 0xb65   :  { %7746 = vmatpush.msrb.mxu2 %v7685_v17  ;;  %v7832_v17 = vld [vmem:[#allocation13 + $0x2520] sm:$0xff] }
 0xb66   :  { %7188 = vmatpush.msrb.mxu0 %v7118_v10  ;;  %7758 = vmatpush.msrb.mxu3 %v7670_v2  ;;  %v7265_v10 = vld [vmem:[#allocation13 + $0x1dc8] sm:$0xff] }
 0xb67   :  { %7747 = vmatpush.msrb.mxu2 %v7683_v0  ;;  %v7817_v2 = vld [vmem:[#allocation13 + $0x24a8] sm:$0xff]  ;;  %v7830_v0 = vld [vmem:[#allocation13 + $0x2510] sm:$0xff] }
 0xb68   :  { %7189 = vmatpush.msrb.mxu0 %v7116_v23  ;;  %7759 = vmatpush.msrb.mxu3 %v7668_v32  ;;  %v7815_v23 = vld [vmem:[#allocation13 + $0x2498] sm:$0xff]  ;;  %v7828_v32 = vld [vmem:[#allocation13 + $0x2500] sm:$0xff] }
 0xb69   :  { %7748 = vmatpush.msrb.mxu2 %v7681_v43  ;;  %v7261_v43 = vld [vmem:[#allocation13 + $0x1da8] sm:$0xff] }
 0xb6a   :  { %7190 = vmatpush.msrb.mxu0 %v7114_v20  ;;  %7760 = vmatpush.msrb.mxu3 %v7666_v22  ;;  %v7813_v20 = vld [vmem:[#allocation13 + $0x2488] sm:$0xff]  ;;  %v8005_v22 = vld [vmem:[#allocation13 + $0x27f0] sm:$0xff] }
 0xb6b   :  { %7749 = vmatmul.f32.vlgmr.msrb.gmra.mxu2 %v12234_v15 }
 0xb6c   :  { %7880 = vmatpush.msra.mxu2 %v7858_v38  ;;  %7191 = vmatpush.msrb.mxu0 %v7112_v7  ;;  %v7259_v38 = vld [vmem:[#allocation13 + $0x1d98] sm:$0xff] }
 0xb6d   :  { %7761 = vmatpush.msrb.mxu3 %v7664_v1  ;;  %v7811_v7 = vld [vmem:[#allocation13 + $0x2478] sm:$0xff]  ;;  %v8003_v1 = vld [vmem:[#allocation13 + $0x27e0] sm:$0xff] }
 0xb6e   :  { %7881 = vmatpush.msra.mxu2 %v7856_v41  ;;  %7192 = vmatpush.msrb.mxu0 %v7110_v54  ;;  %v7257_v41 = vld [vmem:[#allocation13 + $0x1d88] sm:$0xff] }
 0xb6f   :  { %7762 = vmatpush.msrb.mxu3 %v7662_v59  ;;  %v7809_v54 = vld [vmem:[#allocation13 + $0x2468] sm:$0xff]  ;;  %v8001_v59 = vld [vmem:[#allocation13 + $0x27d0] sm:$0xff] }
 0xb70   :  { %7882 = vmatpush.msra.mxu2 %v7854_v26  ;;  %7193 = vmatpush.msrb.mxu0 %v7108_v14  ;;  %v7255_v26 = vld [vmem:[#allocation13 + $0x1d78] sm:$0xff] }
 0xb71   :  { %7763 = vmatpush.msrb.mxu3 %v7660_v60  ;;  %v7807_v14 = vld [vmem:[#allocation13 + $0x2458] sm:$0xff]  ;;  %v7999_v60 = vld [vmem:[#allocation13 + $0x27c0] sm:$0xff] }
 0xb72   :  { %7883 = vmatpush.msra.mxu2 %v7852_v40  ;;  %7194 = vmatpush.msrb.mxu0 %v7106_v8  ;;  %v7253_v40 = vld [vmem:[#allocation13 + $0x1d68] sm:$0xff] }
 0xb73   :  { %7764 = vmatpush.msrb.mxu3 %v7658_v46  ;;  %v7805_v8 = vld [vmem:[#allocation13 + $0x2448] sm:$0xff]  ;;  %v7997_v46 = vld [vmem:[#allocation13 + $0x27b0] sm:$0xff] }
 0xb74   :  { %7884 = vmatpush.msra.mxu2 %v7850_v44  ;;  %7195 = vmatpush.msrb.mxu0 %v7104_v49  ;;  %v7251_v44 = vld [vmem:[#allocation13 + $0x1d58] sm:$0xff] }
 0xb75   :  { %7765 = vmatpush.msrb.mxu3 %v7656_v34  ;;  %v7803_v49 = vld [vmem:[#allocation13 + $0x2438] sm:$0xff]  ;;  %v7995_v34 = vld [vmem:[#allocation13 + $0x27a0] sm:$0xff] }
 0xb76   :  { %7885 = vmatpush.msra.mxu2 %v7848_v25  ;;  %7196 = vmatpush.msrb.mxu0 %v7102_v30  ;;  %v7249_v25 = vld [vmem:[#allocation13 + $0x1d48] sm:$0xff] }
 0xb77   :  { %7766 = vmatpush.msrb.mxu3 %v7654_v62  ;;  %v7801_v30 = vld [vmem:[#allocation13 + $0x2428] sm:$0xff]  ;;  %v7993_v62 = vld [vmem:[#allocation13 + $0x2790] sm:$0xff] }
 0xb78   :  { %7886 = vmatpush.msra.mxu2 %v7846_v48  ;;  %7197 = vmatpush.msrb.mxu0 %v7100_v24  ;;  %v7247_v48 = vld [vmem:[#allocation13 + $0x1d38] sm:$0xff] }
 0xb79   :  { %7767 = vmatpush.msrb.mxu3 %v7652_v39  ;;  %v6614_v52 = vpop.f32.mrf.mxu0  ;;  %v7799_v24 = vld [vmem:[#allocation13 + $0x2418] sm:$0xff]  ;;  %v7991_v39 = vld [vmem:[#allocation13 + $0x2780] sm:$0xff] }
 0xb7a   :  { %7887 = vmatpush.msra.mxu2 %v7844_v37  ;;  %7198 = vmatpush.msrb.mxu0 %v7098_v33  ;;  %v6615_v4 = vadd.f32 %v6614_v52, %v6594_v57  ;;  %v7245_v37 = vld [vmem:[#allocation13 + $0x1d28] sm:$0xff]  ;;  %v7974_v57 = vld [vmem:[#allocation13 + $0x26f8] sm:$0xff]  ;;  %v7987_v52 = vld [vmem:[#allocation13 + $0x2760] sm:$0xff] }
 0xb7b   :  { %7768 = vmatpush.msrb.mxu3 %v7650_v19  ;;  %v7797_v33 = vld [vmem:[#allocation13 + $0x2408] sm:$0xff]  ;;  %v7989_v19 = vld [vmem:[#allocation13 + $0x2770] sm:$0xff] }
 0xb7c   :  { %7769 = vmatmul.f32.vlgmr.msrb.gmra.mxu3 %v12743_v56  ;;  %7888 = vmatpush.msra.mxu2 %v7842_v31  ;;  %v12347_v16 = vadd.f32 %v6615_v4, %v12341_v47  ;;  %v7821_v56 = vld [vmem:[#allocation13 + $0x24c8] sm:$0xff]  ;;  %v7267_v47 = vld [vmem:[#allocation13 + $0x1dd8] sm:$0xff]  ;;  %v7985_v4 = vld [vmem:[#allocation13 + $0x2750] sm:$0xff] }
 0xb7d   :  { %7900 = vmatpush.msra.mxu3 %v7827_v27  ;;  %7199 = vmatpush.msrb.mxu0 %v7096_v9  ;;  %v7243_v31 = vld [vmem:[#allocation13 + $0x1d18] sm:$0xff]  ;;  %v7972_v27 = vld [vmem:[#allocation13 + $0x26e8] sm:$0xff] }
 0xb7e   :  { %7889 = vmatpush.msra.mxu2 %v7840_v11  ;;  %v7241_v9 = vld [vmem:[#allocation13 + $0x1d08] sm:$0xff]  ;;  %v7418_v11 = vld [vmem:[#allocation13 + $0x1ff8] sm:$0xff] }
 0xb7f   :  { %7901 = vmatpush.msra.mxu3 %v7825_v50  ;;  %7200 = vmatpush.msrb.mxu0 %v7094_v51  ;;  %v7970_v50 = vld [vmem:[#allocation13 + $0x26d8] sm:$0xff]  ;;  %v7983_v51 = vld [vmem:[#allocation13 + $0x2740] sm:$0xff] }
 0xb80   :  { %7201 = vmatmul.f32.vlgmr.msrb.gmra.mxu0 %v12149_v29  ;;  %7890 = vmatpush.msra.mxu2 %v7838_v5  ;;  %v7263_v29 = vld [vmem:[#allocation13 + $0x1db8] sm:$0xff]  ;;  %v7416_v5 = vld [vmem:[#allocation13 + $0x1fe8] sm:$0xff] }
 0xb81   :  { %7332 = vmatpush.msra.mxu0 %v7271_v63  ;;  %7902 = vmatpush.msra.mxu3 %v7823_v61  ;;  %v7968_v63 = vld [vmem:[#allocation13 + $0x26c8] sm:$0xff]  ;;  %v7414_v61 = vld [vmem:[#allocation13 + $0x1fd8] sm:$0xff] }
 0xb82   :  { %7891 = vmatpush.msra.mxu2 %v7836_v12  ;;  %v7966_v12 = vld [vmem:[#allocation13 + $0x26b8] sm:$0xff] }
 0xb83   :  { %7333 = vmatpush.msra.mxu0 %v7269_v53  ;;  %7903 = vmatpush.msra.mxu3 %v7821_v56  ;;  %v7979_v53 = vld [vmem:[#allocation13 + $0x2720] sm:$0xff]  ;;  %v7412_v56 = vld [vmem:[#allocation13 + $0x1fc8] sm:$0xff] }
 0xb84   :  { %7892 = vmatpush.msra.mxu2 %v7834_v18  ;;  %v7964_v18 = vld [vmem:[#allocation13 + $0x26a8] sm:$0xff] }
 0xb85   :  { %7334 = vmatpush.msra.mxu0 %v7267_v47  ;;  %7904 = vmatpush.msra.mxu3 %v7819_v58  ;;  %v7977_v47 = vld [vmem:[#allocation13 + $0x2710] sm:$0xff]  ;;  %v7962_v58 = vld [vmem:[#allocation13 + $0x2698] sm:$0xff] }
 0xb86   :  { %7893 = vmatpush.msra.mxu2 %v7832_v17  ;;  %v7975_v17 = vld [vmem:[#allocation13 + $0x2700] sm:$0xff] }
 0xb87   :  { %7335 = vmatpush.msra.mxu0 %v7265_v10  ;;  %7905 = vmatpush.msra.mxu3 %v7817_v2  ;;  %v7408_v10 = vld [vmem:[#allocation13 + $0x1fa8] sm:$0xff] }
 0xb88   :  { %7894 = vmatpush.msra.mxu2 %v7830_v0  ;;  %v7960_v2 = vld [vmem:[#allocation13 + $0x2688] sm:$0xff]  ;;  %v8152_v0 = vld [vmem:[#allocation13 + $0x29f0] sm:$0xff] }
 0xb89   :  { %7336 = vmatpush.msra.mxu0 %v7263_v29  ;;  %7906 = vmatpush.msra.mxu3 %v7815_v23  ;;  %v7406_v29 = vld [vmem:[#allocation13 + $0x1f98] sm:$0xff] }
 0xb8a   :  { %7895 = vmatpush.msra.mxu2 %v7828_v32  ;;  %v7958_v23 = vld [vmem:[#allocation13 + $0x2678] sm:$0xff]  ;;  %v8150_v32 = vld [vmem:[#allocation13 + $0x29e0] sm:$0xff] }
 0xb8b   :  { %7337 = vmatpush.msra.mxu0 %v7261_v43  ;;  %7907 = vmatpush.msra.mxu3 %v7813_v20  ;;  %v7404_v43 = vld [vmem:[#allocation13 + $0x1f88] sm:$0xff] }
 0xb8c   :  { %7896 = vmatmul.f32.vlgmr.msra.gmra.mxu2 %v12250_v45  ;;  %v7956_v20 = vld [vmem:[#allocation13 + $0x2668] sm:$0xff] }
 0xb8d   :  { %8027 = vmatpush.msrb.mxu2 %v8005_v22  ;;  %7338 = vmatpush.msra.mxu0 %v7259_v38  ;;  %v8148_v22 = vld [vmem:[#allocation13 + $0x29d0] sm:$0xff]  ;;  %v7402_v38 = vld [vmem:[#allocation13 + $0x1f78] sm:$0xff] }
 0xb8e   :  { %7908 = vmatpush.msra.mxu3 %v7811_v7  ;;  %v7954_v7 = vld [vmem:[#allocation13 + $0x2658] sm:$0xff] }
 0xb8f   :  { %8028 = vmatpush.msrb.mxu2 %v8003_v1  ;;  %7339 = vmatpush.msra.mxu0 %v7257_v41  ;;  %v8146_v1 = vld [vmem:[#allocation13 + $0x29c0] sm:$0xff]  ;;  %v7400_v41 = vld [vmem:[#allocation13 + $0x1f68] sm:$0xff] }
 0xb90   :  { %7909 = vmatpush.msra.mxu3 %v7809_v54  ;;  %v7952_v54 = vld [vmem:[#allocation13 + $0x2648] sm:$0xff] }
 0xb91   :  { %8029 = vmatpush.msrb.mxu2 %v8001_v59  ;;  %7340 = vmatpush.msra.mxu0 %v7255_v26  ;;  %v8144_v59 = vld [vmem:[#allocation13 + $0x29b0] sm:$0xff]  ;;  %v7398_v26 = vld [vmem:[#allocation13 + $0x1f58] sm:$0xff] }
 0xb92   :  { %7910 = vmatpush.msra.mxu3 %v7807_v14  ;;  %v7950_v14 = vld [vmem:[#allocation13 + $0x2638] sm:$0xff] }
 0xb93   :  { %8030 = vmatpush.msrb.mxu2 %v7999_v60  ;;  %7341 = vmatpush.msra.mxu0 %v7253_v40  ;;  %v8142_v60 = vld [vmem:[#allocation13 + $0x29a0] sm:$0xff]  ;;  %v7396_v40 = vld [vmem:[#allocation13 + $0x1f48] sm:$0xff] }
 0xb94   :  { %7911 = vmatpush.msra.mxu3 %v7805_v8  ;;  %v7948_v8 = vld [vmem:[#allocation13 + $0x2628] sm:$0xff] }
 0xb95   :  { %8031 = vmatpush.msrb.mxu2 %v7997_v46  ;;  %7342 = vmatpush.msra.mxu0 %v7251_v44  ;;  %v8140_v46 = vld [vmem:[#allocation13 + $0x2990] sm:$0xff]  ;;  %v7394_v44 = vld [vmem:[#allocation13 + $0x1f38] sm:$0xff] }
 0xb96   :  { %7912 = vmatpush.msra.mxu3 %v7803_v49  ;;  %v7946_v49 = vld [vmem:[#allocation13 + $0x2618] sm:$0xff] }
 0xb97   :  { %8032 = vmatpush.msrb.mxu2 %v7995_v34  ;;  %7343 = vmatpush.msra.mxu0 %v7249_v25  ;;  %v8138_v34 = vld [vmem:[#allocation13 + $0x2980] sm:$0xff]  ;;  %v7392_v25 = vld [vmem:[#allocation13 + $0x1f28] sm:$0xff] }
 0xb98   :  { %7913 = vmatpush.msra.mxu3 %v7801_v30  ;;  %v7944_v30 = vld [vmem:[#allocation13 + $0x2608] sm:$0xff] }
 0xb99   :  { %8033 = vmatpush.msrb.mxu2 %v7993_v62  ;;  %7344 = vmatpush.msra.mxu0 %v7247_v48  ;;  %v8136_v62 = vld [vmem:[#allocation13 + $0x2970] sm:$0xff]  ;;  %v8121_v48 = vld [vmem:[#allocation13 + $0x28f8] sm:$0xff] }
 0xb9a   :  { %7914 = vmatpush.msra.mxu3 %v7799_v24  ;;  %v7390_v24 = vld [vmem:[#allocation13 + $0x1f18] sm:$0xff] }
 0xb9b   :  { %8034 = vmatpush.msrb.mxu2 %v7991_v39  ;;  %7345 = vmatpush.msra.mxu0 %v7245_v37  ;;  %v8134_v39 = vld [vmem:[#allocation13 + $0x2960] sm:$0xff]  ;;  %v8119_v37 = vld [vmem:[#allocation13 + $0x28e8] sm:$0xff] }
 0xb9c   :  { %7915 = vmatpush.msra.mxu3 %v7797_v33  ;;  %v7388_v33 = vld [vmem:[#allocation13 + $0x1f08] sm:$0xff] }
 0xb9d   :  { %7916 = vmatmul.f32.vlgmr.msra.gmra.mxu3 %v12744_v3  ;;  %8035 = vmatpush.msrb.mxu2 %v7989_v19  ;;  %v7981_v3 = vld [vmem:[#allocation13 + $0x2730] sm:$0xff] }
 0xb9e   :  { %8047 = vmatpush.msrb.mxu3 %v7974_v57  ;;  %7346 = vmatpush.msra.mxu0 %v7243_v31  ;;  %v8132_v19 = vld [vmem:[#allocation13 + $0x2950] sm:$0xff]  ;;  %v7565_v57 = vld [vmem:[#allocation13 + $0x21f8] sm:$0xff] }
 0xb9f   :  { %8036 = vmatpush.msrb.mxu2 %v7987_v52  ;;  %v8117_v31 = vld [vmem:[#allocation13 + $0x28d8] sm:$0xff]  ;;  %v8130_v52 = vld [vmem:[#allocation13 + $0x2940] sm:$0xff] }
 0xba0   :  { %8048 = vmatpush.msrb.mxu3 %v7972_v27  ;;  %7347 = vmatpush.msra.mxu0 %v7241_v9  ;;  %v7563_v27 = vld [vmem:[#allocation13 + $0x21e8] sm:$0xff] }
 0xba1   :  { %7348 = vmatmul.f32.vlgmr.msra.gmra.mxu0 %v12164_v35  ;;  %8037 = vmatpush.msrb.mxu2 %v7985_v4  ;;  %v7410_v35 = vld [vmem:[#allocation13 + $0x1fb8] sm:$0xff]  ;;  %v8115_v9 = vld [vmem:[#allocation13 + $0x28c8] sm:$0xff] }
 0xba2   :  { %7479 = vmatpush.msrb.mxu0 %v7418_v11  ;;  %8049 = vmatpush.msrb.mxu3 %v7970_v50  ;;  %v7561_v4 = vld [vmem:[#allocation13 + $0x21d8] sm:$0xff]  ;;  %v8126_v50 = vld [vmem:[#allocation13 + $0x2920] sm:$0xff] }
 0xba3   :  { %8038 = vmatpush.msrb.mxu2 %v7983_v51  ;;  %v8113_v11 = vld [vmem:[#allocation13 + $0x28b8] sm:$0xff]  ;;  %v7559_v51 = vld [vmem:[#allocation13 + $0x21c8] sm:$0xff] }
 0xba4   :  { %7480 = vmatpush.msrb.mxu0 %v7416_v5  ;;  %8050 = vmatpush.msrb.mxu3 %v7968_v63  ;;  %v8111_v5 = vld [vmem:[#allocation13 + $0x28a8] sm:$0xff]  ;;  %v8124_v63 = vld [vmem:[#allocation13 + $0x2910] sm:$0xff] }
 0xba5   :  { %8039 = vmatpush.msrb.mxu2 %v7981_v3  ;;  %v8109_v3 = vld [vmem:[#allocation13 + $0x2898] sm:$0xff] }
 0xba6   :  { %7481 = vmatpush.msrb.mxu0 %v7414_v61  ;;  %8051 = vmatpush.msrb.mxu3 %v7966_v12  ;;  %v8122_v61 = vld [vmem:[#allocation13 + $0x2900] sm:$0xff]  ;;  %v7555_v12 = vld [vmem:[#allocation13 + $0x21a8] sm:$0xff] }
 0xba7   :  { %8040 = vmatpush.msrb.mxu2 %v7979_v53  ;;  %v8107_v53 = vld [vmem:[#allocation13 + $0x2888] sm:$0xff] }
 0xba8   :  { %7482 = vmatpush.msrb.mxu0 %v7412_v56  ;;  %8052 = vmatpush.msrb.mxu3 %v7964_v18  ;;  %v7553_v56 = vld [vmem:[#allocation13 + $0x2198] sm:$0xff] }
 0xba9   :  { %8041 = vmatpush.msrb.mxu2 %v7977_v47  ;;  %v8105_v18 = vld [vmem:[#allocation13 + $0x2878] sm:$0xff]  ;;  %v7551_v47 = vld [vmem:[#allocation13 + $0x2188] sm:$0xff] }
 0xbaa   :  { %7483 = vmatpush.msrb.mxu0 %v7410_v35  ;;  %8053 = vmatpush.msrb.mxu3 %v7962_v58  ;;  %v8103_v35 = vld [vmem:[#allocation13 + $0x2868] sm:$0xff]  ;;  %v7549_v58 = vld [vmem:[#allocation13 + $0x2178] sm:$0xff] }
 0xbab   :  { %8042 = vmatpush.msrb.mxu2 %v7975_v17  ;;  %v8101_v17 = vld [vmem:[#allocation13 + $0x2858] sm:$0xff] }
 0xbac   :  { %7484 = vmatpush.msrb.mxu0 %v7408_v10  ;;  %8054 = vmatpush.msrb.mxu3 %v7960_v2  ;;  %v7547_v10 = vld [vmem:[#allocation13 + $0x2168] sm:$0xff] }
 0xbad   :  { %8043 = vmatmul.f32.vlgmr.msrb.gmra.mxu2 %v12264_v42  ;;  %v8099_v2 = vld [vmem:[#allocation13 + $0x2848] sm:$0xff] }
 0xbae   :  { %8174 = vmatpush.msra.mxu2 %v8152_v0  ;;  %7485 = vmatpush.msrb.mxu0 %v7406_v29  ;;  %v7545_v0 = vld [vmem:[#allocation13 + $0x2158] sm:$0xff] }
 0xbaf   :  { %8055 = vmatpush.msrb.mxu3 %v7958_v23  ;;  %v8097_v29 = vld [vmem:[#allocation13 + $0x2838] sm:$0xff]  ;;  %v7543_v23 = vld [vmem:[#allocation13 + $0x2148] sm:$0xff] }
 0xbb0   :  { %8175 = vmatpush.msra.mxu2 %v8150_v32  ;;  %7486 = vmatpush.msrb.mxu0 %v7404_v43  ;;  %v8095_v32 = vld [vmem:[#allocation13 + $0x2828] sm:$0xff]  ;;  %v7541_v43 = vld [vmem:[#allocation13 + $0x2138] sm:$0xff] }
 0xbb1   :  { %8056 = vmatpush.msrb.mxu3 %v7956_v20  ;;  %v8093_v20 = vld [vmem:[#allocation13 + $0x2818] sm:$0xff] }
 0xbb2   :  { %8176 = vmatpush.msra.mxu2 %v8148_v22  ;;  %7487 = vmatpush.msrb.mxu0 %v7402_v38  ;;  %v7539_v22 = vld [vmem:[#allocation13 + $0x2128] sm:$0xff] }
 0xbb3   :  { %8057 = vmatpush.msrb.mxu3 %v7954_v7  ;;  %v8091_v38 = vld [vmem:[#allocation13 + $0x2808] sm:$0xff]  ;;  %v7537_v7 = vld [vmem:[#allocation13 + $0x2118] sm:$0xff] }
 0xbb4   :  { %8177 = vmatpush.msra.mxu2 %v8146_v1  ;;  %7488 = vmatpush.msrb.mxu0 %v7400_v41  ;;  %v7535_v1 = vld [vmem:[#allocation13 + $0x2108] sm:$0xff]  ;;  %v7712_v41 = vld [vmem:[#allocation13 + $0x23f8] sm:$0xff] }
 0xbb5   :  { %8058 = vmatpush.msrb.mxu3 %v7952_v54  ;;  %v7710_v54 = vld [vmem:[#allocation13 + $0x23e8] sm:$0xff] }
 0xbb6   :  { %8178 = vmatpush.msra.mxu2 %v8144_v59  ;;  %7489 = vmatpush.msrb.mxu0 %v7398_v26  ;;  %v7708_v59 = vld [vmem:[#allocation13 + $0x23d8] sm:$0xff]  ;;  %v7706_v26 = vld [vmem:[#allocation13 + $0x23c8] sm:$0xff] }
 0xbb7   :  { %8059 = vmatpush.msrb.mxu3 %v7950_v14  ;;  %v7704_v14 = vld [vmem:[#allocation13 + $0x23b8] sm:$0xff] }
 0xbb8   :  { %8179 = vmatpush.msra.mxu2 %v8142_v60  ;;  %7490 = vmatpush.msrb.mxu0 %v7396_v40  ;;  %v7702_v60 = vld [vmem:[#allocation13 + $0x23a8] sm:$0xff]  ;;  %v7700_v40 = vld [vmem:[#allocation13 + $0x2398] sm:$0xff] }
 0xbb9   :  { %8060 = vmatpush.msrb.mxu3 %v7948_v8  ;;  %v7698_v8 = vld [vmem:[#allocation13 + $0x2388] sm:$0xff] }
 0xbba   :  { %8180 = vmatpush.msra.mxu2 %v8140_v46  ;;  %7491 = vmatpush.msrb.mxu0 %v7394_v44  ;;  %v7694_v46 = vld [vmem:[#allocation13 + $0x2368] sm:$0xff]  ;;  %v7692_v44 = vld [vmem:[#allocation13 + $0x2358] sm:$0xff] }
 0xbbb   :  { %8061 = vmatpush.msrb.mxu3 %v7946_v49  ;;  %v7688_v49 = vld [vmem:[#allocation13 + $0x2338] sm:$0xff] }
 0xbbc   :  { %8181 = vmatpush.msra.mxu2 %v8138_v34  ;;  %7492 = vmatpush.msrb.mxu0 %v7392_v25  ;;  %v7686_v34 = vld [vmem:[#allocation13 + $0x2328] sm:$0xff]  ;;  %v7684_v25 = vld [vmem:[#allocation13 + $0x2318] sm:$0xff] }
 0xbbd   :  { %8062 = vmatpush.msrb.mxu3 %v7944_v30  ;;  %v7682_v30 = vld [vmem:[#allocation13 + $0x2308] sm:$0xff] }
 0xbbe   :  { %8063 = vmatmul.f32.vlgmr.msrb.gmra.mxu3 %v12745_v6  ;;  %8182 = vmatpush.msra.mxu2 %v8136_v62  ;;  %v8128_v6 = vld [vmem:[#allocation13 + $0x2930] sm:$0xff]  ;;  %v7859_v62 = vld [vmem:[#allocation13 + $0x25f8] sm:$0xff] }
 0xbbf   :  { %8194 = vmatpush.msra.mxu3 %v8121_v48  ;;  %7493 = vmatpush.msrb.mxu0 %v7390_v24  ;;  %v12359_v48 = vpop.f32.mrf.mxu1  ;;  %v12361_v24 = vpop.f32.mrf.mxu2 }
 0xbc0   :  { %8183 = vmatpush.msra.mxu2 %v8134_v39  ;;  %v7857_v39 = vld [vmem:[#allocation13 + $0x25e8] sm:$0xff] }
 0xbc1   :  { %8195 = vmatpush.msra.mxu3 %v8119_v37  ;;  %7494 = vmatpush.msrb.mxu0 %v7388_v33  ;;  %v7855_v37 = vld [vmem:[#allocation13 + $0x25d8] sm:$0xff]  ;;  %v7853_v33 = vld [vmem:[#allocation13 + $0x25c8] sm:$0xff] }
 0xbc2   :  { %7495 = vmatmul.f32.vlgmr.msrb.gmra.mxu0 %v12186_v36  ;;  %8184 = vmatpush.msra.mxu2 %v8132_v19  ;;  %v7557_v36 = vld [vmem:[#allocation13 + $0x21b8] sm:$0xff] }
 0xbc3   :  { %7626 = vmatpush.msra.mxu0 %v7565_v57  ;;  %8196 = vmatpush.msra.mxu3 %v8117_v31  ;;  %v7851_v19 = vld [vmem:[#allocation13 + $0x25b8] sm:$0xff] }
 0xbc4   :  { %8185 = vmatpush.msra.mxu2 %v8130_v52  ;;  %v7849_v52 = vld [vmem:[#allocation13 + $0x25a8] sm:$0xff] }
 0xbc5   :  { %7627 = vmatpush.msra.mxu0 %v7563_v27  ;;  %8197 = vmatpush.msra.mxu3 %v8115_v9  ;;  %v7847_v27 = vld [vmem:[#allocation13 + $0x2598] sm:$0xff]  ;;  %v7845_v9 = vld [vmem:[#allocation13 + $0x2588] sm:$0xff] }
 0xbc6   :  { %8186 = vmatpush.msra.mxu2 %v8128_v6  ;;  %v7843_v6 = vld [vmem:[#allocation13 + $0x2578] sm:$0xff] }
 0xbc7   :  { %7628 = vmatpush.msra.mxu0 %v7561_v4  ;;  %8198 = vmatpush.msra.mxu3 %v8113_v11  ;;  %v12364_v57 = vpop.f32.mrf.mxu1  ;;  %v12366_v31 = vpop.f32.mrf.mxu2  ;;  %v7841_v11 = vld [vmem:[#allocation13 + $0x2568] sm:$0xff] }
 0xbc8   :  { %8187 = vmatpush.msra.mxu2 %v8126_v50  ;;  %v7839_v50 = vld [vmem:[#allocation13 + $0x2558] sm:$0xff] }
 0xbc9   :  { %7629 = vmatpush.msra.mxu0 %v7559_v51  ;;  %8199 = vmatpush.msra.mxu3 %v8111_v5  ;;  %v7837_v51 = vld [vmem:[#allocation13 + $0x2548] sm:$0xff]  ;;  %v7835_v5 = vld [vmem:[#allocation13 + $0x2538] sm:$0xff] }
 0xbca   :  { %8188 = vmatpush.msra.mxu2 %v8124_v63 }
 0xbcb   :  { %7630 = vmatpush.msra.mxu0 %v7557_v36  ;;  %8200 = vmatpush.msra.mxu3 %v8109_v3  ;;  %v7833_v3 = vld [vmem:[#allocation13 + $0x2528] sm:$0xff] }
 0xbcc   :  { %8189 = vmatpush.msra.mxu2 %v8122_v61  ;;  %v7831_v61 = vld [vmem:[#allocation13 + $0x2518] sm:$0xff] }
 0xbcd   :  { %7631 = vmatpush.msra.mxu0 %v7555_v12  ;;  %8201 = vmatpush.msra.mxu3 %v8107_v53  ;;  %v8261_v12 = vld [vmem:[#allocation16 + $0x78] sm:$0xff]  ;;  %v7829_v53 = vld [vmem:[#allocation13 + $0x2508] sm:$0xff] }
 0xbce   :  { %8190 = vmatmul.f32.vlgmr.msra.gmra.mxu2 %v12270_v28  ;;  %8282 = vmatpush.msrb.mxu1 %v8261_v12  ;;  %v8145_v12 = vld [vmem:[#allocation13 + $0x29b8] sm:$0xff] }
 0xbcf   :  { %7632 = vmatpush.msra.mxu0 %v7553_v56  ;;  %8202 = vmatpush.msra.mxu3 %v8105_v18  ;;  %v12370_v4 = vpop.f32.mrf.mxu2  ;;  %v8260_v56 = vld [vmem:[#allocation16 + $0x70] sm:$0xff] }
 0xbd0   :  { %v8006_v18 = vld [vmem:[#allocation13 + $0x27f8] sm:$0xff]  ;;  %8283 = vmatpush.msrb.mxu1 %v8260_v56  ;;  %v8143_v56 = vld [vmem:[#allocation13 + $0x29a8] sm:$0xff] }
 0xbd1   :  { %7633 = vmatpush.msra.mxu0 %v7551_v47  ;;  %8203 = vmatpush.msra.mxu3 %v8103_v35 }
 0xbd3   :  { %7634 = vmatpush.msra.mxu0 %v7549_v58  ;;  %8204 = vmatpush.msra.mxu3 %v8101_v17  ;;  %v8004_v58 = vld [vmem:[#allocation13 + $0x27e8] sm:$0xff] }
 0xbd4   :  { %v8259_v17 = vld [vmem:[#allocation16 + $0x68] sm:$0xff] }
 0xbd5   :  { %7635 = vmatpush.msra.mxu0 %v7547_v10  ;;  %8205 = vmatpush.msra.mxu3 %v8099_v2  ;;  %v8002_v10 = vld [vmem:[#allocation13 + $0x27d8] sm:$0xff]  ;;  %v8258_v2 = vld [vmem:[#allocation16 + $0x60] sm:$0xff] }
 0xbd6   :  { %8284 = vmatpush.msrb.mxu1 %v8259_v17 }
 0xbd7   :  { %7636 = vmatpush.msra.mxu0 %v7545_v0  ;;  %8206 = vmatpush.msra.mxu3 %v8097_v29  ;;  %v12374_v36 = vpop.f32.mrf.mxu2  ;;  %v8000_v0 = vld [vmem:[#allocation13 + $0x27c8] sm:$0xff]  ;;  %v8257_v29 = vld [vmem:[#allocation16 + $0x58] sm:$0xff] }
 0xbd8   :  { %8285 = vmatpush.msrb.mxu1 %v8258_v2  ;;  %v12399_v2 = vld [vmem:[#allocation14] sm:$0x3] }
 0xbd9   :  { %7637 = vmatpush.msra.mxu0 %v7543_v23  ;;  %8207 = vmatpush.msra.mxu3 %v8095_v32  ;;  %v7998_v23 = vld [vmem:[#allocation13 + $0x27b8] sm:$0xff] }
 0xbda   :  { %8286 = vmatpush.msrb.mxu1 %v8257_v29  ;;  %v8256_v32 = vld [vmem:[#allocation16 + $0x50] sm:$0xff] }
 0xbdb   :  { %7638 = vmatpush.msra.mxu0 %v7541_v43  ;;  %8208 = vmatpush.msra.mxu3 %v8093_v20  ;;  %v8137_v29 = vld [vmem:[#allocation13 + $0x2978] sm:$0xff] }
 0xbdc   :  { %8287 = vmatpush.msrb.mxu1 %v8256_v32 }
 0xbdd   :  { %7639 = vmatpush.msra.mxu0 %v7539_v22  ;;  %8209 = vmatpush.msra.mxu3 %v8091_v38  ;;  %v8255_v22 = vld [vmem:[#allocation16 + $0x48] sm:$0xff]  ;;  %v7994_v38 = vld [vmem:[#allocation13 + $0x2798] sm:$0xff] }
 0xbde   :  { %8210 = vmatmul.f32.vlgmr.msra.gmra.mxu3 %v12746_v21  ;;  %v7696_v21 = vld [vmem:[#allocation13 + $0x2378] sm:$0xff]  ;;  %8288 = vmatpush.msrb.mxu1 %v8255_v22  ;;  %v8135_v22 = vld [vmem:[#allocation13 + $0x2968] sm:$0xff] }
 0xbdf   :  { %7640 = vmatpush.msra.mxu0 %v7537_v7  ;;  %v12378_v35 = vpop.f32.mrf.mxu2  ;;  %v8254_v7 = vld [vmem:[#allocation16 + $0x40] sm:$0xff] }
 0xbe0   :  { %8289 = vmatpush.msrb.mxu1 %v8254_v7  ;;  %v8133_v7 = vld [vmem:[#allocation13 + $0x2958] sm:$0xff] }
 0xbe1   :  { %7641 = vmatpush.msra.mxu0 %v7535_v1  ;;  %v7992_v1 = vld [vmem:[#allocation13 + $0x2788] sm:$0xff] }
 0xbe2   :  { %7642 = vmatmul.f32.vlgmr.msra.gmra.mxu0 %v12208_v55  ;;  %v7690_v55 = vld [vmem:[#allocation13 + $0x2348] sm:$0xff] }
 0xbe3   :  { %7773 = vmatpush.msrb.mxu0 %v7712_v41  ;;  %v8253_v41 = vld [vmem:[#allocation16 + $0x38] sm:$0xff] }
 0xbe4   :  { %8290 = vmatpush.msrb.mxu1 %v8253_v41  ;;  %v8131_v41 = vld [vmem:[#allocation13 + $0x2948] sm:$0xff] }
 0xbe5   :  { %7774 = vmatpush.msrb.mxu0 %v7710_v54  ;;  %v7990_v54 = vld [vmem:[#allocation13 + $0x2778] sm:$0xff] }
 0xbe7   :  { %7775 = vmatpush.msrb.mxu0 %v7708_v59  ;;  %v12383_v20 = vpop.f32.mrf.mxu2  ;;  %v8252_v59 = vld [vmem:[#allocation16 + $0x30] sm:$0xff] }
 0xbe8   :  { %8291 = vmatpush.msrb.mxu1 %v8252_v59  ;;  %v8129_v59 = vld [vmem:[#allocation13 + $0x2938] sm:$0xff] }
 0xbe9   :  { %7776 = vmatpush.msrb.mxu0 %v7706_v26 }
 0xbeb   :  { %7777 = vmatpush.msrb.mxu0 %v7704_v14 }
 0xbed   :  { %7778 = vmatpush.msrb.mxu0 %v7702_v60  ;;  %v7988_v60 = vld [vmem:[#allocation13 + $0x2768] sm:$0xff] }
 0xbef   :  { %7779 = vmatpush.msrb.mxu0 %v7700_v40  ;;  %v7603_v14 = vpop.f32.mrf.mxu2  ;;  %v8251_v40 = vld [vmem:[#allocation16 + $0x28] sm:$0xff] }
 0xbf0   :  { %8292 = vmatpush.msrb.mxu1 %v8251_v40  ;;  %v6741_v40 = vpop.f32.mrf.mxu3 }
 0xbf1   :  { %7780 = vmatpush.msrb.mxu0 %v7698_v8  ;;  %v7986_v8 = vld [vmem:[#allocation13 + $0x2758] sm:$0xff] }
 0xbf3   :  { %7781 = vmatpush.msrb.mxu0 %v7696_v21  ;;  %v8250_v21 = vld [vmem:[#allocation16 + $0x20] sm:$0xff] }
 0xbf4   :  { %8293 = vmatpush.msrb.mxu1 %v8250_v21 }
 0xbf5   :  { %7782 = vmatpush.msrb.mxu0 %v7694_v46  ;;  %v7984_v46 = vld [vmem:[#allocation13 + $0x2748] sm:$0xff] }
 0xbf7   :  { %7783 = vmatpush.msrb.mxu0 %v7692_v44  ;;  %v8249_v44 = vld [vmem:[#allocation16 + $0x18] sm:$0xff] }
 0xbf8   :  { %8294 = vmatpush.msrb.mxu1 %v8249_v44  ;;  %v6888_v21 = vpop.f32.mrf.mxu3 }
 0xbf9   :  { %7784 = vmatpush.msrb.mxu0 %v7690_v55  ;;  %v7982_v55 = vld [vmem:[#allocation13 + $0x2738] sm:$0xff] }
 0xbfb   :  { %7785 = vmatpush.msrb.mxu0 %v7688_v49  ;;  %v8248_v49 = vld [vmem:[#allocation16 + $0x10] sm:$0xff] }
 0xbfc   :  { %8295 = vmatpush.msrb.mxu1 %v8248_v49  ;;  %v8277_v49 = vld [vmem:[#allocation16 + $0xf8] sm:$0xff] }
 0xbfd   :  { %7786 = vmatpush.msrb.mxu0 %v7686_v34  ;;  %8302 = vmatpush.msrb.mxu2 %v8277_v49 }
 0xbff   :  { %7787 = vmatpush.msrb.mxu0 %v7684_v25  ;;  %v7750_v25 = vpop.f32.mrf.mxu2 }
 0xc00   :  { %v7035_v44 = vpop.f32.mrf.mxu3 }
 0xc01   :  { %7788 = vmatpush.msrb.mxu0 %v7682_v30  ;;  %v7980_v30 = vld [vmem:[#allocation13 + $0x2728] sm:$0xff] }
 0xc02   :  { %7789 = vmatmul.f32.vlgmr.msrb.gmra.mxu0 %v12234_v15  ;;  %v12368_v15 = vpop.f32.mrf.mxu1 }
 0xc03   :  { %7920 = vmatpush.msra.mxu0 %v7859_v62  ;;  %v8247_v62 = vld [vmem:[#allocation16 + $0x8] sm:$0xff] }
 0xc04   :  { %8296 = vmatpush.msrb.mxu1 %v8247_v62 }
 0xc05   :  { %7921 = vmatpush.msra.mxu0 %v7857_v39  ;;  %v6722_v39 = vadd.f32 %v12361_v24, %v12359_v48  ;;  %v8151_v24 = vld [vmem:[#allocation13 + $0x29e8] sm:$0xff] }
 0xc07   :  { %7922 = vmatpush.msra.mxu0 %v7855_v37  ;;  %v7978_v37 = vld [vmem:[#allocation13 + $0x2718] sm:$0xff] }
 0xc08   :  { %v7182_v62 = vpop.f32.mrf.mxu3 }
 0xc09   :  { %7923 = vmatpush.msra.mxu0 %v7853_v33  ;;  %v8246_v33 = vld [vmem:[#allocation16] sm:$0xff] }
 0xc0a   :  { %v12372_v63 = vpop.f32.mrf.mxu1  ;;  %8297 = vmatpush.msrb.mxu1 %v8246_v33  ;;  %v8272_v33 = vld [vmem:[#allocation16 + $0xd0] sm:$0xff] }
 0xc0b   :  { %7924 = vmatpush.msra.mxu0 %v7851_v19  ;;  %v6869_v19 = vadd.f32 %v12366_v31, %v12364_v57  ;;  %v7163_v48 = vadd.f32 %v12374_v36, %v12372_v63 }
 0xc0d   :  { %7925 = vmatpush.msra.mxu0 %v7849_v52  ;;  %v7976_v52 = vld [vmem:[#allocation13 + $0x2708] sm:$0xff] }
 0xc0f   :  { %7926 = vmatpush.msra.mxu0 %v7847_v27  ;;  %v6764_v27 = vadd.f32 %v6722_v39, %v12317_v13  ;;  %v8149_v13 = vld [vmem:[#allocation13 + $0x29d8] sm:$0xff] }
 0xc11   :  { %7927 = vmatpush.msra.mxu0 %v7845_v9  ;;  %v7016_v9 = vadd.f32 %v12370_v4, %v12368_v15  ;;  %v8147_v4 = vld [vmem:[#allocation13 + $0x29c8] sm:$0xff] }
 0xc12   :  { %v12376_v47 = vpop.f32.mrf.mxu1 }
 0xc13   :  { %7928 = vmatpush.msra.mxu0 %v7843_v6  ;;  %v8153_v6 = vld [vmem:[#allocation13 + $0x29f8] sm:$0xff]  ;;  %v7310_v31 = vadd.f32 %v12378_v35, %v12376_v47 }
 0xc14   :  { %v8141_v35 = vld [vmem:[#allocation13 + $0x2998] sm:$0xff] }
 0xc15   :  { %7929 = vmatpush.msra.mxu0 %v7841_v11 }
 0xc17   :  { %7930 = vmatpush.msra.mxu0 %v7839_v50  ;;  %v7897_v50 = vpop.f32.mrf.mxu2 }
 0xc19   :  { %7931 = vmatpush.msra.mxu0 %v7837_v51  ;;  %v6911_v51 = vadd.f32 %v6869_v19, %v6764_v27  ;;  %v8270_v19 = vld [vmem:[#allocation16 + $0xc0] sm:$0xff] }
 0xc1a   :  { %v12381_v43 = vpop.f32.mrf.mxu1 }
 0xc1b   :  { %7932 = vmatpush.msra.mxu0 %v7835_v5  ;;  %v7058_v57 = vadd.f32 %v7016_v9, %v6911_v51  ;;  %v7457_v15 = vadd.f32 %v12383_v20, %v12381_v43  ;;  %v8269_v9 = vld [vmem:[#allocation16 + $0xb8] sm:$0xff]  ;;  %v8267_v51 = vld [vmem:[#allocation16 + $0xa8] sm:$0xff] }
 0xc1d   :  { %7933 = vmatpush.msra.mxu0 %v7833_v3  ;;  %v7205_v5 = vadd.f32 %v7163_v48, %v7058_v57  ;;  %v8266_v48 = vld [vmem:[#allocation16 + $0xa0] sm:$0xff] }
 0xc1f   :  { %7934 = vmatpush.msra.mxu0 %v7831_v61  ;;  %v7352_v3 = vadd.f32 %v7310_v31, %v7205_v5  ;;  %v8265_v31 = vld [vmem:[#allocation16 + $0x98] sm:$0xff]  ;;  %v8263_v5 = vld [vmem:[#allocation16 + $0x88] sm:$0xff] }
 0xc21   :  { %7935 = vmatpush.msra.mxu0 %v7829_v53 }
 0xc22   :  { %7936 = vmatmul.f32.vlgmr.msra.gmra.mxu0 %v12250_v45  ;;  %v7996_v45 = vld [vmem:[#allocation13 + $0x27a8] sm:$0xff]  ;;  %v7583_v26 = vpop.f32.mrf.mxu1 }
 0xc23   :  { %8067 = vmatpush.msrb.mxu0 %v8006_v18  ;;  %v7604_v61 = vadd.f32 %v7603_v14, %v7583_v26  ;;  %v8127_v26 = vld [vmem:[#allocation13 + $0x2928] sm:$0xff]  ;;  %v8125_v14 = vld [vmem:[#allocation13 + $0x2918] sm:$0xff] }
 0xc25   :  { %8068 = vmatpush.msrb.mxu0 %v8004_v58 }
 0xc27   :  { %8069 = vmatpush.msrb.mxu0 %v8002_v10  ;;  %v8139_v10 = vld [vmem:[#allocation13 + $0x2988] sm:$0xff] }
 0xc29   :  { %8070 = vmatpush.msrb.mxu0 %v8000_v0 }
 0xc2a   :  { %v7730_v34 = vpop.f32.mrf.mxu1 }
 0xc2b   :  { %8071 = vmatpush.msrb.mxu0 %v7998_v23  ;;  %v7751_v53 = vadd.f32 %v7750_v25, %v7730_v34  ;;  %v8276_v34 = vld [vmem:[#allocation16 + $0xf0] sm:$0xff]  ;;  %v8275_v25 = vld [vmem:[#allocation16 + $0xe8] sm:$0xff] }
 0xc2c   :  { %8303 = vmatpush.msrb.mxu2 %v8276_v34 }
 0xc2d   :  { %8072 = vmatpush.msrb.mxu0 %v7996_v45  ;;  %v8238_v45 = vperm.slane %v12399_v2, 0 }
 0xc2e   :  { %8304 = vmatpush.msrb.mxu2 %v8275_v25 }
 0xc2f   :  { %8073 = vmatpush.msrb.mxu0 %v7994_v38 }
 0xc30   :  { %v8044_v36 = vpop.f32.mrf.mxu2 }
 0xc31   :  { %8074 = vmatpush.msrb.mxu0 %v7992_v1 }
 0xc32   :  { %v7877_v11 = vpop.f32.mrf.mxu1 }
 0xc33   :  { %8075 = vmatpush.msrb.mxu0 %v7990_v54  ;;  %v7898_v47 = vadd.f32 %v7897_v50, %v7877_v11  ;;  %v8268_v50 = vld [vmem:[#allocation16 + $0xb0] sm:$0xff] }
 0xc35   :  { %8076 = vmatpush.msrb.mxu0 %v7988_v60  ;;  %v8123_v60 = vld [vmem:[#allocation13 + $0x2908] sm:$0xff] }
 0xc37   :  { %8077 = vmatpush.msrb.mxu0 %v7986_v8  ;;  %v6761_v8 = vpop.f32.mrf.mxu0 }
 0xc39   :  { %8078 = vmatpush.msrb.mxu0 %v7984_v46 }
 0xc3a   :  { %v8024_v63 = vpop.f32.mrf.mxu1 }
 0xc3b   :  { %8079 = vmatpush.msrb.mxu0 %v7982_v55  ;;  %v8045_v17 = vadd.f32 %v8044_v36, %v8024_v63 }
 0xc3d   :  { %8080 = vmatpush.msrb.mxu0 %v7980_v30  ;;  %v8274_v30 = vld [vmem:[#allocation16 + $0xe0] sm:$0xff] }
 0xc3e   :  { %8305 = vmatpush.msrb.mxu2 %v8274_v30 }
 0xc3f   :  { %8081 = vmatpush.msrb.mxu0 %v7978_v37  ;;  %v6908_v46 = vpop.f32.mrf.mxu0  ;;  %v8273_v37 = vld [vmem:[#allocation16 + $0xd8] sm:$0xff] }
 0xc40   :  { %8306 = vmatpush.msrb.mxu2 %v8273_v37 }
 0xc41   :  { %8082 = vmatpush.msrb.mxu0 %v7976_v52  ;;  %v7329_v52 = vpop.f32.mrf.mxu3 }
 0xc42   :  { %8083 = vmatmul.f32.vlgmr.msrb.gmra.mxu0 %v12264_v42  ;;  %v7499_v42 = vadd.f32 %v7457_v15, %v7352_v3  ;;  %v8171_v23 = vpop.f32.mrf.mxu1  ;;  %8307 = vmatpush.msrb.mxu2 %v8272_v33  ;;  %v8262_v15 = vld [vmem:[#allocation16 + $0x80] sm:$0xff] }
 0xc43   :  { %8214 = vmatpush.msra.mxu0 %v8153_v6 }
 0xc44   :  { %v7646_v18 = vadd.f32 %v7604_v61, %v7499_v42  ;;  %v6762_v61 = vadd.f32 %v6761_v8, %v6741_v40  ;;  %v8647_v40 = vld [vmem:[#allocation17] ss:$0 sm:$0xff] }
 0xc45   :  { %8215 = vmatpush.msra.mxu0 %v8151_v24 }
 0xc46   :  { %v7793_v58 = vadd.f32 %v7751_v53, %v7646_v18  ;;  %v6765_v63 = vadd.f32 %v6762_v61, %v12347_v16 }
 0xc47   :  { %8216 = vmatpush.msra.mxu0 %v8149_v13  ;;  %v7055_v55 = vpop.f32.mrf.mxu0  ;;  %v8264_v13 = vld [vmem:[#allocation16 + $0x90] sm:$0xff] }
 0xc48   :  { %v7940_v0 = vadd.f32 %v7898_v47, %v7793_v58  ;;  %v7056_v36 = vadd.f32 %v7055_v55, %v7035_v44 }
 0xc49   :  { %8217 = vmatpush.msra.mxu0 %v8147_v4  ;;  %v7476_v6 = vpop.f32.mrf.mxu3 }
 0xc4a   :  { %v8087_v43 = vadd.f32 %v8045_v17, %v7940_v0 }
 0xc4b   :  { %8218 = vmatpush.msra.mxu0 %v8145_v12  ;;  %v6909_v12 = vadd.f32 %v6908_v46, %v6888_v21 }
 0xc4d   :  { %8219 = vmatpush.msra.mxu0 %v8143_v56  ;;  %v6912_v56 = vadd.f32 %v6909_v12, %v6765_v63 }
 0xc4f   :  { %8220 = vmatpush.msra.mxu0 %v8141_v35  ;;  %v7202_v39 = vpop.f32.mrf.mxu0  ;;  %v7059_v47 = vadd.f32 %v7056_v36, %v6912_v56 }
 0xc50   :  { %v7203_v18 = vadd.f32 %v7202_v39, %v7182_v62 }
 0xc51   :  { %8221 = vmatpush.msra.mxu0 %v8139_v10  ;;  %v8191_v32 = vpop.f32.mrf.mxu2  ;;  %v7623_v24 = vpop.f32.mrf.mxu3 }
 0xc52   :  { %v8192_v20 = vadd.f32 %v8191_v32, %v8171_v23  ;;  %v7206_v58 = vadd.f32 %v7203_v18, %v7059_v47 }
 0xc53   :  { %8222 = vmatpush.msra.mxu0 %v8137_v29 }
 0xc54   :  { %v8234_v38 = vadd.f32 %v8192_v20, %v8087_v43 }
 0xc55   :  { %8223 = vmatpush.msra.mxu0 %v8135_v22 }
 0xc56   :  { %v8242_v1 = vadd.f32 %v8238_v45, %v8234_v38 }
 0xc57   :  { %8224 = vmatpush.msra.mxu0 %v8133_v7  ;;  %v7349_v27 = vpop.f32.mrf.mxu0 }
 0xc58   :  { %v8244_v54 = vmax.f32 %v8242_v1, 0.0  ;;  %v7350_v35 = vadd.f32 %v7349_v27, %v7329_v52 }
 0xc59   :  { %8225 = vmatpush.msra.mxu0 %v8131_v41  ;;  %v7770_v4 = vpop.f32.mrf.mxu3 }
 0xc5a   :  { %8298 = vmatmul.f32.vlgmr.msrb.gmra.mxu1 %v8244_v54  ;;  %v7353_v10 = vadd.f32 %v7350_v35, %v7206_v58 }
 0xc5b   :  { %8226 = vmatpush.msra.mxu0 %v8129_v59  ;;  %v8239_v59 = vperm.slane %v12399_v2, 1 }
 0xc5d   :  { %8227 = vmatpush.msra.mxu0 %v8127_v26 }
 0xc5f   :  { %8228 = vmatpush.msra.mxu0 %v8125_v14  ;;  %v7496_v11 = vpop.f32.mrf.mxu0 }
 0xc60   :  { %v7497_v17 = vadd.f32 %v7496_v11, %v7476_v6 }
 0xc61   :  { %8229 = vmatpush.msra.mxu0 %v8123_v60  ;;  %v7917_v42 = vpop.f32.mrf.mxu3 }
 0xc62   :  { %8230 = vmatmul.f32.vlgmr.msra.gmra.mxu0 %v12270_v28  ;;  %v8271_v28 = vld [vmem:[#allocation16 + $0xc8] sm:$0xff]  ;;  %v7500_v32 = vadd.f32 %v7497_v17, %v7353_v10 }
 0xc63   :  { %8308 = vmatpush.msrb.mxu2 %v8271_v28 }
 0xc65   :  { %8309 = vmatpush.msrb.mxu2 %v8270_v19 }
 0xc67   :  { %8310 = vmatpush.msrb.mxu2 %v8269_v9  ;;  %v7643_v57 = vpop.f32.mrf.mxu0 }
 0xc68   :  { %v7644_v0 = vadd.f32 %v7643_v57, %v7623_v24 }
 0xc69   :  { %8311 = vmatpush.msrb.mxu2 %v8268_v50  ;;  %v8064_v29 = vpop.f32.mrf.mxu3 }
 0xc6a   :  { %v7647_v20 = vadd.f32 %v7644_v0, %v7500_v32 }
 0xc6b   :  { %8312 = vmatpush.msrb.mxu2 %v8267_v51 }
 0xc6d   :  { %8313 = vmatpush.msrb.mxu2 %v8266_v48 }
 0xc6f   :  { %8314 = vmatpush.msrb.mxu2 %v8265_v31 }
 0xc71   :  { %8315 = vmatpush.msrb.mxu2 %v8264_v13  ;;  %v8211_v7 = vpop.f32.mrf.mxu3 }
 0xc73   :  { %8316 = vmatpush.msrb.mxu2 %v8263_v5 }
 0xc75   :  { %8317 = vmatpush.msrb.mxu2 %v8262_v15 }
 0xc7f   :  { %v7790_v3 = vpop.f32.mrf.mxu0 }
 0xc80   :  { %v7791_v43 = vadd.f32 %v7790_v3, %v7770_v4 }
 0xc82   :  { %v7794_v22 = vadd.f32 %v7791_v43, %v7647_v20 }
 0xc9f   :  { %v7937_v53 = vpop.f32.mrf.mxu0 }
 0xca0   :  { %v7938_v45 = vadd.f32 %v7937_v53, %v7917_v42 }
 0xca2   :  { %v7941_v16 = vadd.f32 %v7938_v45, %v7794_v22 }
 0xcbf   :  { %v8084_v23 = vpop.f32.mrf.mxu0 }
 0xcc0   :  { %v8085_v38 = vadd.f32 %v8084_v23, %v8064_v29 }
 0xcc2   :  { %v8088_v41 = vadd.f32 %v8085_v38, %v7941_v16 }
 0xcd7   :  { %v8299_v8 = vpop.f32.mrf.mxu1 }
 0xcd8   :  { %v8300_v21 = vadd.f32 %v8647_v40, %v8299_v8 }
 0xcdf   :  { %v8231_v1 = vpop.f32.mrf.mxu0 }
 0xce0   :  { %v8232_v54 = vadd.f32 %v8231_v1, %v8211_v7 }
 0xce2   :  { %v8235_v26 = vadd.f32 %v8232_v54, %v8088_v41 }
 0xce4   :  { %v8243_v14 = vadd.f32 %v8239_v59, %v8235_v26 }
 0xce6   :  { %v8245_v60 = vmax.f32 %v8243_v14, 0.0 }
 0xce8   :  { %8318 = vmatmul.f32.vlgmr.msrb.gmra.mxu2 %v8245_v60 }
 0xd6b   :  { %v8319_v46 = vpop.f32.mrf.mxu2 }
 0xd6c   :  { %v8320_v44 = vadd.f32 %v8319_v46, %v8300_v21 }
 0xd6e   :  { %8322 = vst [vmem:[#allocation19] sm:$0xff] %v8320_v44 }
 0xd6f   :  { %8333 = dma.vmem_to_hbm [thread:$0]  %s8329_s12, 128, %s8331_s27, [#allocation4]  }
 0xd70   :  { %8936 = dma.done.wait [#allocation4], 128  }
 0xd71   :  { %8937 = vsyncadd [#allocation4], 4294967168 }
 0xd72   :  { %8338 = vsyncpa [#allocation3], 1 }
 0xd73   :  { %8339 = vsyncpa [#allocation6], 1 }
 0xd74   :  { %8340 = vsyncpa [#allocation9], 1 }
 0xd75   :  { %8341 = vsyncpa [#allocation12], 1 }
 0xd76   :  { %8342 = vsyncpa [#allocation15], 1 }
 0xd77   :  { %8343 = vsyncpa [#allocation18], 1 }
 0xd78   :  { %8344 = vsyncpa [#allocation4], 1 }

</bundles_post_ra>
